<compile_context>
chip_gen: v6e
topology: v6e:2x2x1
jax: 0.10.0
libtpu: 0.0.40
codegen_flags: <defaults>
</compile_context>

<pallas_src>
import functools

import numpy as np
import jax
import jax.numpy as jnp
from jax.experimental import pallas as pl
from jax.experimental.pallas import tpu as pltpu


# ----------------------------------------------------------------------------
# Architecture constants (fixed by the PyTorch module).
# ----------------------------------------------------------------------------
_H = _W = 84
_C1_OUT, _C1_K, _C1_S = 64, 4, 4        # Conv2d(c, 64, k=4, s=4)
_C2_OUT, _C2_K, _C2_S = 32, 4, 2        # Conv2d(64, 32, k=4, s=2)
_C3_OUT, _C3_K, _C3_S = 32, 2, 1        # Conv2d(32, 32, k=2, s=1)
_FC1_IN, _FC1_OUT = 512, 256

_S1 = 21            # conv1 spatial output (84-4)//4 + 1
_S2 = 9             # conv2 spatial output (21-4)//2 + 1
_S3 = 8             # conv3 spatial output ( 9-2)//1 + 1
_SP = 4             # maxpool spatial output

# Polyphase-padded layout of the conv1 output (act1) as seen by the kernel:
#   act1[2u+ph, 2v+pw, :]  ->  phase grid p = ph*2+pw, position (u, v)
# conv2 (k=4, s=2) tap windows then become contiguous static slices.
# _PH=10 covers every row conv2 reads; _PW=24 (multiple of 8) keeps in-kernel
# reshapes layout no-ops; columns v with 2v+pw > 20 hold zero patches.
_PH, _PW = 10, 24
_W2PAD = 16                               # padded w-extent of the conv2 output tiles
_R1 = 4 * _PH * _PW                       # 960 conv1-patch rows per sample

_LANE = 128                               # lane width for the padded fc2 output
_BATCH_BLOCK = 16                         # samples per grid step (fits scoped VMEM
                                          # comfortably on v5e/v6e/v7x)


def _choose_batch_block(n):
    """Pick the per-step sample block and the padded batch size."""
    if n <= _BATCH_BLOCK:
        return n, n
    nb = -(-n // _BATCH_BLOCK)
    return _BATCH_BLOCK, nb * _BATCH_BLOCK


# ----------------------------------------------------------------------------
# Fused forward kernel: one grid step = (one network, one block of B samples).
# ----------------------------------------------------------------------------
def _dqn_fused_kernel(p1_ref, w1_ref, b1_ref, w2_ref, b2_ref, w3_ref, b3_ref,
                      wf1_ref, fb1_ref, wf2_ref, fb2_ref, out_ref, *, batch_block):
    f32 = jnp.float32
    bf16 = jnp.bfloat16
    B = batch_block
    k1 = p1_ref.shape[-1]

    # ---- conv1 + ReLU: stride == kernel => one GEMM over the polyphase patch rows.
    #      Bias + ReLU + bf16 cast happen ONCE here (before the overlapping slices).
    p1 = p1_ref[...].reshape(B * _R1, k1)
    a1 = jnp.dot(p1, w1_ref[0], preferred_element_type=f32)             # (B*960, 64)
    a1 = jnp.maximum(a1 + b1_ref[0], 0.0).astype(bf16)
    g = a1.reshape(B, 4, _PH, _PW, _C1_OUT)                             # phase grids

    # ---- conv2 + ReLU (k=4, s=2): 16 tap slabs lane-concatenated -> ONE GEMM, K=1024.
    slabs = []
    for ki in range(_C2_K):
        for kj in range(_C2_K):
            u0, ph = ki // 2, ki % 2
            v0, pw = kj // 2, kj % 2
            s = g[:, ph * 2 + pw, u0:u0 + _S2, v0:v0 + _W2PAD, :]       # (B, 9, 16, 64)
            slabs.append(s.reshape(B * _S2 * _W2PAD, _C1_OUT))
    x2 = jnp.concatenate(slabs, axis=-1)                                # (B*144, 1024)
    a2 = jnp.dot(x2, w2_ref[0], preferred_element_type=f32)             # (B*144, 32)
    a2 = jnp.maximum(a2 + b2_ref[0], 0.0).astype(bf16)
    a2 = a2.reshape(B, _S2, _W2PAD, _C2_OUT)      # valid spatial region: [:, :, :9, :]

    # ---- conv3 + ReLU (k=2, s=1): 4 tap slabs lane-concatenated -> ONE GEMM, K=128.
    slabs = []
    for ki in range(_C3_K):
        for kj in range(_C3_K):
            s = a2[:, ki:ki + _S3, kj:kj + _S3, :]                      # (B, 8, 8, 32)
            slabs.append(s.reshape(B * _S3 * _S3, _C2_OUT))
    x3 = jnp.concatenate(slabs, axis=-1)                                # (B*64, 128)
    a3 = jnp.dot(x3, w3_ref[0], preferred_element_type=f32)             # (B*64, 32)
    a3 = jnp.maximum(a3 + b3_ref[0], 0.0)                               # f32, rows=h*8+w

    # ---- MaxPool2d(2) on the VPU + flatten: for each pooled position pick the 4
    #      contributing conv3 rows (static sublane extractions), max them, and
    #      lane-concatenate the 16 pooled (B, 32) channel groups into a lane-dense
    #      (B, 512) slab whose column order matches the re-laid-out fc1 weight.
    pv = a3.reshape(B, _S3 * _S3, _C3_OUT)                              # (B, 64, 32)
    cols = []
    for i in range(_SP):
        for j in range(_SP):
            r = (2 * i) * _S3 + 2 * j
            m = jnp.maximum(jnp.maximum(pv[:, r, :], pv[:, r + 1, :]),
                            jnp.maximum(pv[:, r + _S3, :], pv[:, r + _S3 + 1, :]))
            cols.append(m)
    pf = jnp.concatenate(cols, axis=-1).astype(bf16)                    # (B, 512)

    # ---- fc1 + ReLU: single real (B, 512) @ (512, 256) GEMM.
    h1 = jnp.dot(pf, wf1_ref[0], preferred_element_type=f32)            # (B, 256)
    h1 = jnp.maximum(h1 + fb1_ref[0], 0.0).astype(bf16)

    # ---- fc2 (output padded to 128 lanes -> unmasked batched store; host slices).
    q = jnp.dot(h1, wf2_ref[0], preferred_element_type=f32) + fb2_ref[0]  # (B, dpad)
    out_ref[0] = q


# ----------------------------------------------------------------------------
# Host-side layout preparation (pure JAX glue).
# ----------------------------------------------------------------------------
def _prep_conv1_patches(x):
    """NCHW (N,C,84,84) f32 -> polyphase-packed conv1 patch rows (N, 960, C*16) bf16."""
    n, c, _, _ = x.shape
    k1 = c * _C1_K * _C1_K
    p = (x.astype(jnp.bfloat16)
          .reshape(n, c, _S1, _C1_K, _S1, _C1_K)
          .transpose(0, 2, 4, 1, 3, 5)                  # [n, oh, ow, c, ki, kj]
          .reshape(n, _S1, _S1, k1))
    # Keep only the rows conv2 reads (oh < 20), zero-pad columns out to 2*_PW.
    p = p[:, :2 * _PH, :, :]                            # (n, 20, 21, k1)
    p = jnp.pad(p, ((0, 0), (0, 0), (0, 2 * _PW - _S1), (0, 0)))   # (n, 20, 48, k1)
    p = (p.reshape(n, _PH, 2, _PW, 2, k1)               # [n, u, ph, v, pw, k]
          .transpose(0, 2, 4, 1, 3, 5)                  # [n, ph, pw, u, v, k]
          .reshape(n, _R1, k1))
    return p


def _prep_net_params(net):
    """PyTorch-layout params of one network -> kernel-layout (bf16 weights, f32 biases)."""
    c = net['c1_w'].shape[1]
    f32, bf16 = jnp.float32, jnp.bfloat16

    w1 = net['c1_w'].reshape(_C1_OUT, c * _C1_K * _C1_K).T              # (C*16, 64)
    # conv2 / conv3 weights laid out for the lane-concatenated im2col GEMMs:
    # row index = tap*(in_channels) + cin.
    w2 = (net['c2_w'].transpose(2, 3, 1, 0)                             # (4,4,64,32)
            .reshape(_C2_K * _C2_K * _C1_OUT, _C2_OUT))                 # (1024, 32)
    w3 = (net['c3_w'].transpose(2, 3, 1, 0)                             # (2,2,32,32)
            .reshape(_C3_K * _C3_K * _C2_OUT, _C3_OUT))                 # (128, 32)
    # fc1: torch input index is c*16 + i*4 + j; kernel presents (i*4+j)*32 + c.
    wf1 = (net['fc1_w'].reshape(_FC1_OUT, _C3_OUT, _SP, _SP)
             .transpose(2, 3, 1, 0)                                     # (4,4,32,256)
             .reshape(_SP * _SP * _C3_OUT, _FC1_OUT))                   # (512, 256)
    # fc2: pad output dim to a multiple of 128 lanes (zero columns, zero bias).
    d = net['fc2_w'].shape[0]
    dpad = ((d + _LANE - 1) // _LANE) * _LANE
    wf2 = jnp.zeros((_FC1_OUT, dpad), f32).at[:, :d].set(net['fc2_w'].T)
    fb2 = jnp.zeros((1, dpad), f32).at[:, :d].set(net['fc2_b'][None, :])

    return dict(
        w1=w1.astype(bf16), b1=net['c1_b'].reshape(1, -1).astype(f32),
        w2=w2.astype(bf16), b2=net['c2_b'].reshape(1, -1).astype(f32),
        w3=w3.astype(bf16), b3=net['c3_b'].reshape(1, -1).astype(f32),
        wf1=wf1.astype(bf16), fb1=net['fc1_b'].reshape(1, -1).astype(f32),
        wf2=wf2.astype(bf16), fb2=fb2.astype(f32),
    )


def prep_kernel_params(nets):
    """Stack one or more PyTorch-layout nets into kernel-layout arrays (num_nets, ...)."""
    preps = [_prep_net_params(n) for n in nets]
    return {k: jnp.stack([p[k] for p in preps], axis=0) for k in preps[0]}


_PARAM_ORDER = ('w1', 'b1', 'w2', 'b2', 'w3', 'b3', 'wf1', 'fb1', 'wf2', 'fb2')


def _net_block_spec(arr):
    tail = tuple(arr.shape[1:])
    zeros = (0,) * len(tail)
    return pl.BlockSpec((1,) + tail, lambda i, b, _z=zeros: (i,) + _z)


# ----------------------------------------------------------------------------
# Fused Pallas forward for all stacked networks.
# Returns (num_nets, n_padded, d_padded) f32; callers slice to (n, d).
# ----------------------------------------------------------------------------
@jax.jit
def dqn_apply(kparams, x):
    n = x.shape[0]
    num_nets = kparams['w1'].shape[0]
    dpad = kparams['wf2'].shape[-1]
    bb, n_pad = _choose_batch_block(n)
    nb = n_pad // bb

    p1 = _prep_conv1_patches(x)                      # (n, 960, C*16) bf16
    if n_pad != n:
        p1 = jnp.pad(p1, ((0, n_pad - n), (0, 0), (0, 0)))
    k1 = p1.shape[-1]

    in_specs = [pl.BlockSpec((bb, _R1, k1), lambda i, b: (b, 0, 0))]
    in_specs += [_net_block_spec(kparams[k]) for k in _PARAM_ORDER]
    out_spec = pl.BlockSpec((1, bb, dpad), lambda i, b: (i, b, 0))

    flops = 2 * num_nets * n_pad * (
        _R1 * k1 * _C1_OUT
        + (_S2 * _W2PAD) * (_C2_K * _C2_K * _C1_OUT) * _C2_OUT
        + (_S3 * _S3) * (_C3_K * _C3_K * _C2_OUT) * _C3_OUT
        + _FC1_IN * _FC1_OUT
        + _FC1_OUT * dpad)
    bytes_accessed = int(
        p1.size * p1.dtype.itemsize
        + sum(v.size * v.dtype.itemsize for v in kparams.values())
        + num_nets * n_pad * dpad * 4)

    out = pl.pallas_call(
        functools.partial(_dqn_fused_kernel, batch_block=bb),
        out_shape=jax.ShapeDtypeStruct((num_nets, n_pad, dpad), jnp.float32),
        grid=(num_nets, nb),
        in_specs=in_specs,
        out_specs=out_spec,
        compiler_params=pltpu.CompilerParams(
            dimension_semantics=("parallel", "parallel")),
        cost_estimate=pl.CostEstimate(flops=int(flops), transcendentals=0,
                                      bytes_accessed=bytes_accessed),
    )(p1, *(kparams[k] for k in _PARAM_ORDER))
    return out


# ----------------------------------------------------------------------------
# Parameter init (PyTorch layout, PyTorch-default-like uniform(-1/sqrt(fan_in))).
# ----------------------------------------------------------------------------
def _conv_params(key, out_c, in_c, k):
    bound = 1.0 / np.sqrt(in_c * k * k)
    kw, kb = jax.random.split(key)
    w = jax.random.uniform(kw, (out_c, in_c, k, k), jnp.float32, -bound, bound)
    b = jax.random.uniform(kb, (out_c,), jnp.float32, -bound, bound)
    return w, b


def _linear_params(key, out_f, in_f):
    bound = 1.0 / np.sqrt(in_f)
    kw, kb = jax.random.split(key)
    w = jax.random.uniform(kw, (out_f, in_f), jnp.float32, -bound, bound)
    b = jax.random.uniform(kb, (out_f,), jnp.float32, -bound, bound)
    return w, b


def build_cnn_params(key, c, output_dim):
    k1, k2, k3, k4, k5 = jax.random.split(key, 5)
    c1_w, c1_b = _conv_params(k1, _C1_OUT, c, _C1_K)
    c2_w, c2_b = _conv_params(k2, _C2_OUT, _C1_OUT, _C2_K)
    c3_w, c3_b = _conv_params(k3, _C3_OUT, _C2_OUT, _C3_K)
    fc1_w, fc1_b = _linear_params(k4, _FC1_OUT, _FC1_IN)
    fc2_w, fc2_b = _linear_params(k5, output_dim, _FC1_OUT)
    return dict(c1_w=c1_w, c1_b=c1_b, c2_w=c2_w, c2_b=c2_b, c3_w=c3_w, c3_b=c3_b,
                fc1_w=fc1_w, fc1_b=fc1_b, fc2_w=fc2_w, fc2_b=fc2_b)


def dqn_init(key, input_dim, output_dim):
    c, h, w = input_dim
    if h != 84:
        raise ValueError(f'Expecting input height: 84, got: {h}')
    if w != 84:
        raise ValueError(f'Expecting input width: 84, got: {w}')
    online = build_cnn_params(key, c, output_dim)
    target = jax.tree_util.tree_map(lambda p: p, online)   # frozen copy of online
    return {'online': online, 'target': target}


# ----------------------------------------------------------------------------
# Public forward API (matches the PyTorch module semantics).
# ----------------------------------------------------------------------------
def dqn_forward(params, x, model):
    if model not in ('online', 'target'):
        raise ValueError(f"model must be 'online' or 'target', got {model!r}")
    kp = prep_kernel_params([params[model]])
    d = params[model]['fc2_w'].shape[0]
    q = dqn_apply(kp, x)
    return q[0, :x.shape[0], :d]


def dqn_forward_both(params, x):
    """Evaluate online AND target in one fused Pallas call (shared input / launch)."""
    kp = prep_kernel_params([params['online'], params['target']])
    d = params['online']['fc2_w'].shape[0]
    n = x.shape[0]
    q = dqn_apply(kp, x)
    return q[0, :n, :d], q[1, :n, :d]


# Pure-JAX reference of the PyTorch module (f32), used only for a numeric sanity check.
def _reference_forward(net, x):
    dn = ('NCHW', 'OIHW', 'NCHW')
    y = jax.lax.conv_general_dilated(x, net['c1_w'], (4, 4), 'VALID', dimension_numbers=dn)
    y = jax.nn.relu(y + net['c1_b'][None, :, None, None])
    y = jax.lax.conv_general_dilated(y, net['c2_w'], (2, 2), 'VALID', dimension_numbers=dn)
    y = jax.nn.relu(y + net['c2_b'][None, :, None, None])
    y = jax.lax.conv_general_dilated(y, net['c3_w'], (1, 1), 'VALID', dimension_numbers=dn)
    y = jax.nn.relu(y + net['c3_b'][None, :, None, None])
    n, ch, hh, ww = y.shape
    y = y.reshape(n, ch, hh // 2, 2, ww // 2, 2).max(axis=(3, 5))
    y = y.reshape(n, -1)
    y = jax.nn.relu(y @ net['fc1_w'].T + net['fc1_b'])
    return y @ net['fc2_w'].T + net['fc2_b']


# ----------------------------------------------------------------------------
if __name__ == "__main__":
    key = jax.random.PRNGKey(0)
    k_params, k_x, k_xb = jax.random.split(key, 3)

    batch, c, h, w = 2, 4, 84, 84        # module requires 84x84 spatial input
    output_dim = 8

    params = dqn_init(k_params, (c, h, w), output_dim)
    x = jax.random.normal(k_x, (batch, c, h, w), dtype=jnp.float32)

    # Fused online + target evaluation (grid = (2 nets, 1 batch block)).
    q_online, q_target = dqn_forward_both(params, x)
    jax.block_until_ready((q_online, q_target))

    assert q_online.shape == (batch, output_dim)
    assert q_target.shape == (batch, output_dim)
    assert bool(jnp.all(jnp.isfinite(q_online)))
    assert bool(jnp.all(jnp.isfinite(q_target)))

    ref = _reference_forward(params['online'], x)
    err = float(jnp.max(jnp.abs(q_online - ref)))
    assert err < 5e-2, f"mismatch vs reference (both): {err}"

    # Also exercise the multi-block batched path (B=16 per step, padded batch).
    xb = jax.random.normal(k_xb, (20, c, h, w), dtype=jnp.float32)
    qb = dqn_forward(params, xb, 'target')
    jax.block_until_ready(qb)
    assert qb.shape == (20, output_dim)
    refb = _reference_forward(params['target'], xb)
    errb = float(jnp.max(jnp.abs(qb - refb)))
    assert errb < 5e-2, f"mismatch vs reference (batched): {errb}"

    print("KERNEL_OK")
</pallas_src>

<mosaic_0001>
module attributes {stable_mosaic.version = 11 : i64} {
  func.func @_dqn_fused_kernel(%arg0: i32, %arg1: i32, %arg2: memref<2x960x64xbf16, #tpu.memory_space<vmem>>, %arg3: memref<1x64x64xbf16, #tpu.memory_space<vmem>>, %arg4: memref<1x1x64xf32, #tpu.memory_space<vmem>>, %arg5: memref<1x1024x32xbf16, #tpu.memory_space<vmem>>, %arg6: memref<1x1x32xf32, #tpu.memory_space<vmem>>, %arg7: memref<1x128x32xbf16, #tpu.memory_space<vmem>>, %arg8: memref<1x1x32xf32, #tpu.memory_space<vmem>>, %arg9: memref<1x512x256xbf16, #tpu.memory_space<vmem>>, %arg10: memref<1x1x256xf32, #tpu.memory_space<vmem>>, %arg11: memref<1x256x128xbf16, #tpu.memory_space<vmem>>, %arg12: memref<1x1x128xf32, #tpu.memory_space<vmem>>, %arg13: memref<1x2x128xf32, #tpu.memory_space<vmem>>) attributes {dimension_semantics = [#tpu.dimension_semantics<parallel>, #tpu.dimension_semantics<parallel>], iteration_bounds = array<i64: 2, 1>, scalar_prefetch = 0 : i64, scratch_operands = 0 : i64, tpu.core_type = #tpu.core_type<tc>, window_params = [{transform_indices = @transform_0, window_bounds = array<i64: 2, 960, 64>}, {transform_indices = @transform_1, window_bounds = array<i64: 1, 64, 64>}, {transform_indices = @transform_2, window_bounds = array<i64: 1, 1, 64>}, {transform_indices = @transform_3, window_bounds = array<i64: 1, 1024, 32>}, {transform_indices = @transform_4, window_bounds = array<i64: 1, 1, 32>}, {transform_indices = @transform_5, window_bounds = array<i64: 1, 128, 32>}, {transform_indices = @transform_6, window_bounds = array<i64: 1, 1, 32>}, {transform_indices = @transform_7, window_bounds = array<i64: 1, 512, 256>}, {transform_indices = @transform_8, window_bounds = array<i64: 1, 1, 256>}, {transform_indices = @transform_9, window_bounds = array<i64: 1, 256, 128>}, {transform_indices = @transform_10, window_bounds = array<i64: 1, 1, 128>}, {transform_indices = @transform_11, window_bounds = array<i64: 1, 2, 128>}]} {
    %c0 = arith.constant 0 : index
    %c0_0 = arith.constant 0 : index
    %c0_1 = arith.constant 0 : index
    %0 = vector.load %arg2[%c0, %c0_0, %c0_1] : memref<2x960x64xbf16, #tpu.memory_space<vmem>>, vector<2x960x64xbf16>
    %1 = vector.shape_cast %0 : vector<2x960x64xbf16> to vector<1920x64xbf16>
    %c0_2 = arith.constant 0 : index
    %c0_3 = arith.constant 0 : index
    %c0_4 = arith.constant 0 : index
    %2 = vector.load %arg3[%c0_2, %c0_3, %c0_4] : memref<1x64x64xbf16, #tpu.memory_space<vmem>>, vector<1x64x64xbf16>
    %3 = vector.shape_cast %2 : vector<1x64x64xbf16> to vector<64x64xbf16>
    %cst = arith.constant dense<0.000000e+00> : vector<1920x64xf32>
    %4 = tpu.matmul %1, %3, %cst {dimension_numbers = #tpu.dot_dimension_numbers<[1], [0], [0], [1], [0, 0, 1, 1], [], []>} : vector<1920x64xbf16>, vector<64x64xbf16>, vector<1920x64xf32> -> vector<1920x64xf32>
    %c0_5 = arith.constant 0 : index
    %c0_6 = arith.constant 0 : index
    %c0_7 = arith.constant 0 : index
    %5 = vector.load %arg4[%c0_5, %c0_6, %c0_7] : memref<1x1x64xf32, #tpu.memory_space<vmem>>, vector<1x1x64xf32>
    %6 = vector.shape_cast %5 : vector<1x1x64xf32> to vector<1x64xf32>
    %7 = vector.broadcast %6 : vector<1x64xf32> to vector<1920x64xf32>
    %8 = arith.addf %4, %7 : vector<1920x64xf32>
    %cst_8 = arith.constant 0.000000e+00 : f32
    %9 = vector.broadcast %cst_8 : f32 to vector<1920x64xf32>
    %10 = arith.maximumf %8, %9 : vector<1920x64xf32>
    %11 = arith.truncf %10 : vector<1920x64xf32> to vector<1920x64xbf16>
    %12 = vector.shape_cast %11 : vector<1920x64xbf16> to vector<2x4x10x24x64xbf16>
    %13 = vector.extract_strided_slice %12 {offsets = [0, 0, 0, 0, 0], sizes = [2, 1, 9, 16, 64], strides = [1, 1, 1, 1, 1]} : vector<2x4x10x24x64xbf16> to vector<2x1x9x16x64xbf16>
    %14 = vector.shape_cast %13 : vector<2x1x9x16x64xbf16> to vector<2x9x16x64xbf16>
    %15 = vector.shape_cast %14 : vector<2x9x16x64xbf16> to vector<288x64xbf16>
    %16 = vector.extract_strided_slice %12 {offsets = [0, 1, 0, 0, 0], sizes = [2, 1, 9, 16, 64], strides = [1, 1, 1, 1, 1]} : vector<2x4x10x24x64xbf16> to vector<2x1x9x16x64xbf16>
    %17 = vector.shape_cast %16 : vector<2x1x9x16x64xbf16> to vector<2x9x16x64xbf16>
    %18 = vector.shape_cast %17 : vector<2x9x16x64xbf16> to vector<288x64xbf16>
    %19 = vector.extract_strided_slice %12 {offsets = [0, 0, 0, 1, 0], sizes = [2, 1, 9, 16, 64], strides = [1, 1, 1, 1, 1]} : vector<2x4x10x24x64xbf16> to vector<2x1x9x16x64xbf16>
    %20 = vector.shape_cast %19 : vector<2x1x9x16x64xbf16> to vector<2x9x16x64xbf16>
    %21 = vector.shape_cast %20 : vector<2x9x16x64xbf16> to vector<288x64xbf16>
    %22 = vector.extract_strided_slice %12 {offsets = [0, 1, 0, 1, 0], sizes = [2, 1, 9, 16, 64], strides = [1, 1, 1, 1, 1]} : vector<2x4x10x24x64xbf16> to vector<2x1x9x16x64xbf16>
    %23 = vector.shape_cast %22 : vector<2x1x9x16x64xbf16> to vector<2x9x16x64xbf16>
    %24 = vector.shape_cast %23 : vector<2x9x16x64xbf16> to vector<288x64xbf16>
    %25 = vector.extract_strided_slice %12 {offsets = [0, 2, 0, 0, 0], sizes = [2, 1, 9, 16, 64], strides = [1, 1, 1, 1, 1]} : vector<2x4x10x24x64xbf16> to vector<2x1x9x16x64xbf16>
    %26 = vector.shape_cast %25 : vector<2x1x9x16x64xbf16> to vector<2x9x16x64xbf16>
    %27 = vector.shape_cast %26 : vector<2x9x16x64xbf16> to vector<288x64xbf16>
    %28 = vector.extract_strided_slice %12 {offsets = [0, 3, 0, 0, 0], sizes = [2, 1, 9, 16, 64], strides = [1, 1, 1, 1, 1]} : vector<2x4x10x24x64xbf16> to vector<2x1x9x16x64xbf16>
    %29 = vector.shape_cast %28 : vector<2x1x9x16x64xbf16> to vector<2x9x16x64xbf16>
    %30 = vector.shape_cast %29 : vector<2x9x16x64xbf16> to vector<288x64xbf16>
    %31 = vector.extract_strided_slice %12 {offsets = [0, 2, 0, 1, 0], sizes = [2, 1, 9, 16, 64], strides = [1, 1, 1, 1, 1]} : vector<2x4x10x24x64xbf16> to vector<2x1x9x16x64xbf16>
    %32 = vector.shape_cast %31 : vector<2x1x9x16x64xbf16> to vector<2x9x16x64xbf16>
    %33 = vector.shape_cast %32 : vector<2x9x16x64xbf16> to vector<288x64xbf16>
    %34 = vector.extract_strided_slice %12 {offsets = [0, 3, 0, 1, 0], sizes = [2, 1, 9, 16, 64], strides = [1, 1, 1, 1, 1]} : vector<2x4x10x24x64xbf16> to vector<2x1x9x16x64xbf16>
    %35 = vector.shape_cast %34 : vector<2x1x9x16x64xbf16> to vector<2x9x16x64xbf16>
    %36 = vector.shape_cast %35 : vector<2x9x16x64xbf16> to vector<288x64xbf16>
    %37 = vector.extract_strided_slice %12 {offsets = [0, 0, 1, 0, 0], sizes = [2, 1, 9, 16, 64], strides = [1, 1, 1, 1, 1]} : vector<2x4x10x24x64xbf16> to vector<2x1x9x16x64xbf16>
    %38 = vector.shape_cast %37 : vector<2x1x9x16x64xbf16> to vector<2x9x16x64xbf16>
    %39 = vector.shape_cast %38 : vector<2x9x16x64xbf16> to vector<288x64xbf16>
    %40 = vector.extract_strided_slice %12 {offsets = [0, 1, 1, 0, 0], sizes = [2, 1, 9, 16, 64], strides = [1, 1, 1, 1, 1]} : vector<2x4x10x24x64xbf16> to vector<2x1x9x16x64xbf16>
    %41 = vector.shape_cast %40 : vector<2x1x9x16x64xbf16> to vector<2x9x16x64xbf16>
    %42 = vector.shape_cast %41 : vector<2x9x16x64xbf16> to vector<288x64xbf16>
    %43 = vector.extract_strided_slice %12 {offsets = [0, 0, 1, 1, 0], sizes = [2, 1, 9, 16, 64], strides = [1, 1, 1, 1, 1]} : vector<2x4x10x24x64xbf16> to vector<2x1x9x16x64xbf16>
    %44 = vector.shape_cast %43 : vector<2x1x9x16x64xbf16> to vector<2x9x16x64xbf16>
    %45 = vector.shape_cast %44 : vector<2x9x16x64xbf16> to vector<288x64xbf16>
    %46 = vector.extract_strided_slice %12 {offsets = [0, 1, 1, 1, 0], sizes = [2, 1, 9, 16, 64], strides = [1, 1, 1, 1, 1]} : vector<2x4x10x24x64xbf16> to vector<2x1x9x16x64xbf16>
    %47 = vector.shape_cast %46 : vector<2x1x9x16x64xbf16> to vector<2x9x16x64xbf16>
    %48 = vector.shape_cast %47 : vector<2x9x16x64xbf16> to vector<288x64xbf16>
    %49 = vector.extract_strided_slice %12 {offsets = [0, 2, 1, 0, 0], sizes = [2, 1, 9, 16, 64], strides = [1, 1, 1, 1, 1]} : vector<2x4x10x24x64xbf16> to vector<2x1x9x16x64xbf16>
    %50 = vector.shape_cast %49 : vector<2x1x9x16x64xbf16> to vector<2x9x16x64xbf16>
    %51 = vector.shape_cast %50 : vector<2x9x16x64xbf16> to vector<288x64xbf16>
    %52 = vector.extract_strided_slice %12 {offsets = [0, 3, 1, 0, 0], sizes = [2, 1, 9, 16, 64], strides = [1, 1, 1, 1, 1]} : vector<2x4x10x24x64xbf16> to vector<2x1x9x16x64xbf16>
    %53 = vector.shape_cast %52 : vector<2x1x9x16x64xbf16> to vector<2x9x16x64xbf16>
    %54 = vector.shape_cast %53 : vector<2x9x16x64xbf16> to vector<288x64xbf16>
    %55 = vector.extract_strided_slice %12 {offsets = [0, 2, 1, 1, 0], sizes = [2, 1, 9, 16, 64], strides = [1, 1, 1, 1, 1]} : vector<2x4x10x24x64xbf16> to vector<2x1x9x16x64xbf16>
    %56 = vector.shape_cast %55 : vector<2x1x9x16x64xbf16> to vector<2x9x16x64xbf16>
    %57 = vector.shape_cast %56 : vector<2x9x16x64xbf16> to vector<288x64xbf16>
    %58 = vector.extract_strided_slice %12 {offsets = [0, 3, 1, 1, 0], sizes = [2, 1, 9, 16, 64], strides = [1, 1, 1, 1, 1]} : vector<2x4x10x24x64xbf16> to vector<2x1x9x16x64xbf16>
    %59 = vector.shape_cast %58 : vector<2x1x9x16x64xbf16> to vector<2x9x16x64xbf16>
    %60 = vector.shape_cast %59 : vector<2x9x16x64xbf16> to vector<288x64xbf16>
    %61 = tpu.concatenate %15, %18, %21, %24, %27, %30, %33, %36, %39, %42, %45, %48, %51, %54, %57, %60 in 1 : vector<288x64xbf16>, vector<288x64xbf16>, vector<288x64xbf16>, vector<288x64xbf16>, vector<288x64xbf16>, vector<288x64xbf16>, vector<288x64xbf16>, vector<288x64xbf16>, vector<288x64xbf16>, vector<288x64xbf16>, vector<288x64xbf16>, vector<288x64xbf16>, vector<288x64xbf16>, vector<288x64xbf16>, vector<288x64xbf16>, vector<288x64xbf16> -> vector<288x1024xbf16>
    %c0_9 = arith.constant 0 : index
    %c0_10 = arith.constant 0 : index
    %c0_11 = arith.constant 0 : index
    %62 = vector.load %arg5[%c0_9, %c0_10, %c0_11] : memref<1x1024x32xbf16, #tpu.memory_space<vmem>>, vector<1x1024x32xbf16>
    %63 = vector.shape_cast %62 : vector<1x1024x32xbf16> to vector<1024x32xbf16>
    %cst_12 = arith.constant dense<0.000000e+00> : vector<288x32xf32>
    %64 = tpu.matmul %61, %63, %cst_12 {dimension_numbers = #tpu.dot_dimension_numbers<[1], [0], [0], [1], [0, 0, 1, 1], [], []>} : vector<288x1024xbf16>, vector<1024x32xbf16>, vector<288x32xf32> -> vector<288x32xf32>
    %c0_13 = arith.constant 0 : index
    %c0_14 = arith.constant 0 : index
    %c0_15 = arith.constant 0 : index
    %65 = vector.load %arg6[%c0_13, %c0_14, %c0_15] : memref<1x1x32xf32, #tpu.memory_space<vmem>>, vector<1x1x32xf32>
    %66 = vector.shape_cast %65 : vector<1x1x32xf32> to vector<1x32xf32>
    %67 = vector.broadcast %66 : vector<1x32xf32> to vector<288x32xf32>
    %68 = arith.addf %64, %67 : vector<288x32xf32>
    %cst_16 = arith.constant 0.000000e+00 : f32
    %69 = vector.broadcast %cst_16 : f32 to vector<288x32xf32>
    %70 = arith.maximumf %68, %69 : vector<288x32xf32>
    %71 = arith.truncf %70 : vector<288x32xf32> to vector<288x32xbf16>
    %72 = vector.shape_cast %71 : vector<288x32xbf16> to vector<2x9x16x32xbf16>
    %73 = vector.extract_strided_slice %72 {offsets = [0, 0, 0, 0], sizes = [2, 8, 8, 32], strides = [1, 1, 1, 1]} : vector<2x9x16x32xbf16> to vector<2x8x8x32xbf16>
    %74 = vector.shape_cast %73 : vector<2x8x8x32xbf16> to vector<128x32xbf16>
    %75 = vector.extract_strided_slice %72 {offsets = [0, 0, 1, 0], sizes = [2, 8, 8, 32], strides = [1, 1, 1, 1]} : vector<2x9x16x32xbf16> to vector<2x8x8x32xbf16>
    %76 = vector.shape_cast %75 : vector<2x8x8x32xbf16> to vector<128x32xbf16>
    %77 = vector.extract_strided_slice %72 {offsets = [0, 1, 0, 0], sizes = [2, 8, 8, 32], strides = [1, 1, 1, 1]} : vector<2x9x16x32xbf16> to vector<2x8x8x32xbf16>
    %78 = vector.shape_cast %77 : vector<2x8x8x32xbf16> to vector<128x32xbf16>
    %79 = vector.extract_strided_slice %72 {offsets = [0, 1, 1, 0], sizes = [2, 8, 8, 32], strides = [1, 1, 1, 1]} : vector<2x9x16x32xbf16> to vector<2x8x8x32xbf16>
    %80 = vector.shape_cast %79 : vector<2x8x8x32xbf16> to vector<128x32xbf16>
    %81 = tpu.concatenate %74, %76, %78, %80 in 1 : vector<128x32xbf16>, vector<128x32xbf16>, vector<128x32xbf16>, vector<128x32xbf16> -> vector<128x128xbf16>
    %c0_17 = arith.constant 0 : index
    %c0_18 = arith.constant 0 : index
    %c0_19 = arith.constant 0 : index
    %82 = vector.load %arg7[%c0_17, %c0_18, %c0_19] : memref<1x128x32xbf16, #tpu.memory_space<vmem>>, vector<1x128x32xbf16>
    %83 = vector.shape_cast %82 : vector<1x128x32xbf16> to vector<128x32xbf16>
    %cst_20 = arith.constant dense<0.000000e+00> : vector<128x32xf32>
    %84 = tpu.matmul %81, %83, %cst_20 {dimension_numbers = #tpu.dot_dimension_numbers<[1], [0], [0], [1], [0, 0, 1, 1], [], []>} : vector<128x128xbf16>, vector<128x32xbf16>, vector<128x32xf32> -> vector<128x32xf32>
    %c0_21 = arith.constant 0 : index
    %c0_22 = arith.constant 0 : index
    %c0_23 = arith.constant 0 : index
    %85 = vector.load %arg8[%c0_21, %c0_22, %c0_23] : memref<1x1x32xf32, #tpu.memory_space<vmem>>, vector<1x1x32xf32>
    %86 = vector.shape_cast %85 : vector<1x1x32xf32> to vector<1x32xf32>
    %87 = vector.broadcast %86 : vector<1x32xf32> to vector<128x32xf32>
    %88 = arith.addf %84, %87 : vector<128x32xf32>
    %cst_24 = arith.constant 0.000000e+00 : f32
    %89 = vector.broadcast %cst_24 : f32 to vector<128x32xf32>
    %90 = arith.maximumf %88, %89 : vector<128x32xf32>
    %91 = vector.shape_cast %90 : vector<128x32xf32> to vector<2x64x32xf32>
    %92 = vector.extract_strided_slice %91 {offsets = [0, 0, 0], sizes = [2, 1, 32], strides = [1, 1, 1]} : vector<2x64x32xf32> to vector<2x1x32xf32>
    %93 = vector.shape_cast %92 : vector<2x1x32xf32> to vector<2x32xf32>
    %94 = vector.extract_strided_slice %91 {offsets = [0, 1, 0], sizes = [2, 1, 32], strides = [1, 1, 1]} : vector<2x64x32xf32> to vector<2x1x32xf32>
    %95 = vector.shape_cast %94 : vector<2x1x32xf32> to vector<2x32xf32>
    %96 = arith.maximumf %93, %95 : vector<2x32xf32>
    %97 = vector.extract_strided_slice %91 {offsets = [0, 8, 0], sizes = [2, 1, 32], strides = [1, 1, 1]} : vector<2x64x32xf32> to vector<2x1x32xf32>
    %98 = vector.shape_cast %97 : vector<2x1x32xf32> to vector<2x32xf32>
    %99 = vector.extract_strided_slice %91 {offsets = [0, 9, 0], sizes = [2, 1, 32], strides = [1, 1, 1]} : vector<2x64x32xf32> to vector<2x1x32xf32>
    %100 = vector.shape_cast %99 : vector<2x1x32xf32> to vector<2x32xf32>
    %101 = arith.maximumf %98, %100 : vector<2x32xf32>
    %102 = arith.maximumf %96, %101 : vector<2x32xf32>
    %103 = vector.extract_strided_slice %91 {offsets = [0, 2, 0], sizes = [2, 1, 32], strides = [1, 1, 1]} : vector<2x64x32xf32> to vector<2x1x32xf32>
    %104 = vector.shape_cast %103 : vector<2x1x32xf32> to vector<2x32xf32>
    %105 = vector.extract_strided_slice %91 {offsets = [0, 3, 0], sizes = [2, 1, 32], strides = [1, 1, 1]} : vector<2x64x32xf32> to vector<2x1x32xf32>
    %106 = vector.shape_cast %105 : vector<2x1x32xf32> to vector<2x32xf32>
    %107 = arith.maximumf %104, %106 : vector<2x32xf32>
    %108 = vector.extract_strided_slice %91 {offsets = [0, 10, 0], sizes = [2, 1, 32], strides = [1, 1, 1]} : vector<2x64x32xf32> to vector<2x1x32xf32>
    %109 = vector.shape_cast %108 : vector<2x1x32xf32> to vector<2x32xf32>
    %110 = vector.extract_strided_slice %91 {offsets = [0, 11, 0], sizes = [2, 1, 32], strides = [1, 1, 1]} : vector<2x64x32xf32> to vector<2x1x32xf32>
    %111 = vector.shape_cast %110 : vector<2x1x32xf32> to vector<2x32xf32>
    %112 = arith.maximumf %109, %111 : vector<2x32xf32>
    %113 = arith.maximumf %107, %112 : vector<2x32xf32>
    %114 = vector.extract_strided_slice %91 {offsets = [0, 4, 0], sizes = [2, 1, 32], strides = [1, 1, 1]} : vector<2x64x32xf32> to vector<2x1x32xf32>
    %115 = vector.shape_cast %114 : vector<2x1x32xf32> to vector<2x32xf32>
    %116 = vector.extract_strided_slice %91 {offsets = [0, 5, 0], sizes = [2, 1, 32], strides = [1, 1, 1]} : vector<2x64x32xf32> to vector<2x1x32xf32>
    %117 = vector.shape_cast %116 : vector<2x1x32xf32> to vector<2x32xf32>
    %118 = arith.maximumf %115, %117 : vector<2x32xf32>
    %119 = vector.extract_strided_slice %91 {offsets = [0, 12, 0], sizes = [2, 1, 32], strides = [1, 1, 1]} : vector<2x64x32xf32> to vector<2x1x32xf32>
    %120 = vector.shape_cast %119 : vector<2x1x32xf32> to vector<2x32xf32>
    %121 = vector.extract_strided_slice %91 {offsets = [0, 13, 0], sizes = [2, 1, 32], strides = [1, 1, 1]} : vector<2x64x32xf32> to vector<2x1x32xf32>
    %122 = vector.shape_cast %121 : vector<2x1x32xf32> to vector<2x32xf32>
    %123 = arith.maximumf %120, %122 : vector<2x32xf32>
    %124 = arith.maximumf %118, %123 : vector<2x32xf32>
    %125 = vector.extract_strided_slice %91 {offsets = [0, 6, 0], sizes = [2, 1, 32], strides = [1, 1, 1]} : vector<2x64x32xf32> to vector<2x1x32xf32>
    %126 = vector.shape_cast %125 : vector<2x1x32xf32> to vector<2x32xf32>
    %127 = vector.extract_strided_slice %91 {offsets = [0, 7, 0], sizes = [2, 1, 32], strides = [1, 1, 1]} : vector<2x64x32xf32> to vector<2x1x32xf32>
    %128 = vector.shape_cast %127 : vector<2x1x32xf32> to vector<2x32xf32>
    %129 = arith.maximumf %126, %128 : vector<2x32xf32>
    %130 = vector.extract_strided_slice %91 {offsets = [0, 14, 0], sizes = [2, 1, 32], strides = [1, 1, 1]} : vector<2x64x32xf32> to vector<2x1x32xf32>
    %131 = vector.shape_cast %130 : vector<2x1x32xf32> to vector<2x32xf32>
    %132 = vector.extract_strided_slice %91 {offsets = [0, 15, 0], sizes = [2, 1, 32], strides = [1, 1, 1]} : vector<2x64x32xf32> to vector<2x1x32xf32>
    %133 = vector.shape_cast %132 : vector<2x1x32xf32> to vector<2x32xf32>
    %134 = arith.maximumf %131, %133 : vector<2x32xf32>
    %135 = arith.maximumf %129, %134 : vector<2x32xf32>
    %136 = vector.extract_strided_slice %91 {offsets = [0, 16, 0], sizes = [2, 1, 32], strides = [1, 1, 1]} : vector<2x64x32xf32> to vector<2x1x32xf32>
    %137 = vector.shape_cast %136 : vector<2x1x32xf32> to vector<2x32xf32>
    %138 = vector.extract_strided_slice %91 {offsets = [0, 17, 0], sizes = [2, 1, 32], strides = [1, 1, 1]} : vector<2x64x32xf32> to vector<2x1x32xf32>
    %139 = vector.shape_cast %138 : vector<2x1x32xf32> to vector<2x32xf32>
    %140 = arith.maximumf %137, %139 : vector<2x32xf32>
    %141 = vector.extract_strided_slice %91 {offsets = [0, 24, 0], sizes = [2, 1, 32], strides = [1, 1, 1]} : vector<2x64x32xf32> to vector<2x1x32xf32>
    %142 = vector.shape_cast %141 : vector<2x1x32xf32> to vector<2x32xf32>
    %143 = vector.extract_strided_slice %91 {offsets = [0, 25, 0], sizes = [2, 1, 32], strides = [1, 1, 1]} : vector<2x64x32xf32> to vector<2x1x32xf32>
    %144 = vector.shape_cast %143 : vector<2x1x32xf32> to vector<2x32xf32>
    %145 = arith.maximumf %142, %144 : vector<2x32xf32>
    %146 = arith.maximumf %140, %145 : vector<2x32xf32>
    %147 = vector.extract_strided_slice %91 {offsets = [0, 18, 0], sizes = [2, 1, 32], strides = [1, 1, 1]} : vector<2x64x32xf32> to vector<2x1x32xf32>
    %148 = vector.shape_cast %147 : vector<2x1x32xf32> to vector<2x32xf32>
    %149 = vector.extract_strided_slice %91 {offsets = [0, 19, 0], sizes = [2, 1, 32], strides = [1, 1, 1]} : vector<2x64x32xf32> to vector<2x1x32xf32>
    %150 = vector.shape_cast %149 : vector<2x1x32xf32> to vector<2x32xf32>
    %151 = arith.maximumf %148, %150 : vector<2x32xf32>
    %152 = vector.extract_strided_slice %91 {offsets = [0, 26, 0], sizes = [2, 1, 32], strides = [1, 1, 1]} : vector<2x64x32xf32> to vector<2x1x32xf32>
    %153 = vector.shape_cast %152 : vector<2x1x32xf32> to vector<2x32xf32>
    %154 = vector.extract_strided_slice %91 {offsets = [0, 27, 0], sizes = [2, 1, 32], strides = [1, 1, 1]} : vector<2x64x32xf32> to vector<2x1x32xf32>
    %155 = vector.shape_cast %154 : vector<2x1x32xf32> to vector<2x32xf32>
    %156 = arith.maximumf %153, %155 : vector<2x32xf32>
    %157 = arith.maximumf %151, %156 : vector<2x32xf32>
    %158 = vector.extract_strided_slice %91 {offsets = [0, 20, 0], sizes = [2, 1, 32], strides = [1, 1, 1]} : vector<2x64x32xf32> to vector<2x1x32xf32>
    %159 = vector.shape_cast %158 : vector<2x1x32xf32> to vector<2x32xf32>
    %160 = vector.extract_strided_slice %91 {offsets = [0, 21, 0], sizes = [2, 1, 32], strides = [1, 1, 1]} : vector<2x64x32xf32> to vector<2x1x32xf32>
    %161 = vector.shape_cast %160 : vector<2x1x32xf32> to vector<2x32xf32>
    %162 = arith.maximumf %159, %161 : vector<2x32xf32>
    %163 = vector.extract_strided_slice %91 {offsets = [0, 28, 0], sizes = [2, 1, 32], strides = [1, 1, 1]} : vector<2x64x32xf32> to vector<2x1x32xf32>
    %164 = vector.shape_cast %163 : vector<2x1x32xf32> to vector<2x32xf32>
    %165 = vector.extract_strided_slice %91 {offsets = [0, 29, 0], sizes = [2, 1, 32], strides = [1, 1, 1]} : vector<2x64x32xf32> to vector<2x1x32xf32>
    %166 = vector.shape_cast %165 : vector<2x1x32xf32> to vector<2x32xf32>
    %167 = arith.maximumf %164, %166 : vector<2x32xf32>
    %168 = arith.maximumf %162, %167 : vector<2x32xf32>
    %169 = vector.extract_strided_slice %91 {offsets = [0, 22, 0], sizes = [2, 1, 32], strides = [1, 1, 1]} : vector<2x64x32xf32> to vector<2x1x32xf32>
    %170 = vector.shape_cast %169 : vector<2x1x32xf32> to vector<2x32xf32>
    %171 = vector.extract_strided_slice %91 {offsets = [0, 23, 0], sizes = [2, 1, 32], strides = [1, 1, 1]} : vector<2x64x32xf32> to vector<2x1x32xf32>
    %172 = vector.shape_cast %171 : vector<2x1x32xf32> to vector<2x32xf32>
    %173 = arith.maximumf %170, %172 : vector<2x32xf32>
    %174 = vector.extract_strided_slice %91 {offsets = [0, 30, 0], sizes = [2, 1, 32], strides = [1, 1, 1]} : vector<2x64x32xf32> to vector<2x1x32xf32>
    %175 = vector.shape_cast %174 : vector<2x1x32xf32> to vector<2x32xf32>
    %176 = vector.extract_strided_slice %91 {offsets = [0, 31, 0], sizes = [2, 1, 32], strides = [1, 1, 1]} : vector<2x64x32xf32> to vector<2x1x32xf32>
    %177 = vector.shape_cast %176 : vector<2x1x32xf32> to vector<2x32xf32>
    %178 = arith.maximumf %175, %177 : vector<2x32xf32>
    %179 = arith.maximumf %173, %178 : vector<2x32xf32>
    %180 = vector.extract_strided_slice %91 {offsets = [0, 32, 0], sizes = [2, 1, 32], strides = [1, 1, 1]} : vector<2x64x32xf32> to vector<2x1x32xf32>
    %181 = vector.shape_cast %180 : vector<2x1x32xf32> to vector<2x32xf32>
    %182 = vector.extract_strided_slice %91 {offsets = [0, 33, 0], sizes = [2, 1, 32], strides = [1, 1, 1]} : vector<2x64x32xf32> to vector<2x1x32xf32>
    %183 = vector.shape_cast %182 : vector<2x1x32xf32> to vector<2x32xf32>
    %184 = arith.maximumf %181, %183 : vector<2x32xf32>
    %185 = vector.extract_strided_slice %91 {offsets = [0, 40, 0], sizes = [2, 1, 32], strides = [1, 1, 1]} : vector<2x64x32xf32> to vector<2x1x32xf32>
    %186 = vector.shape_cast %185 : vector<2x1x32xf32> to vector<2x32xf32>
    %187 = vector.extract_strided_slice %91 {offsets = [0, 41, 0], sizes = [2, 1, 32], strides = [1, 1, 1]} : vector<2x64x32xf32> to vector<2x1x32xf32>
    %188 = vector.shape_cast %187 : vector<2x1x32xf32> to vector<2x32xf32>
    %189 = arith.maximumf %186, %188 : vector<2x32xf32>
    %190 = arith.maximumf %184, %189 : vector<2x32xf32>
    %191 = vector.extract_strided_slice %91 {offsets = [0, 34, 0], sizes = [2, 1, 32], strides = [1, 1, 1]} : vector<2x64x32xf32> to vector<2x1x32xf32>
    %192 = vector.shape_cast %191 : vector<2x1x32xf32> to vector<2x32xf32>
    %193 = vector.extract_strided_slice %91 {offsets = [0, 35, 0], sizes = [2, 1, 32], strides = [1, 1, 1]} : vector<2x64x32xf32> to vector<2x1x32xf32>
    %194 = vector.shape_cast %193 : vector<2x1x32xf32> to vector<2x32xf32>
    %195 = arith.maximumf %192, %194 : vector<2x32xf32>
    %196 = vector.extract_strided_slice %91 {offsets = [0, 42, 0], sizes = [2, 1, 32], strides = [1, 1, 1]} : vector<2x64x32xf32> to vector<2x1x32xf32>
    %197 = vector.shape_cast %196 : vector<2x1x32xf32> to vector<2x32xf32>
    %198 = vector.extract_strided_slice %91 {offsets = [0, 43, 0], sizes = [2, 1, 32], strides = [1, 1, 1]} : vector<2x64x32xf32> to vector<2x1x32xf32>
    %199 = vector.shape_cast %198 : vector<2x1x32xf32> to vector<2x32xf32>
    %200 = arith.maximumf %197, %199 : vector<2x32xf32>
    %201 = arith.maximumf %195, %200 : vector<2x32xf32>
    %202 = vector.extract_strided_slice %91 {offsets = [0, 36, 0], sizes = [2, 1, 32], strides = [1, 1, 1]} : vector<2x64x32xf32> to vector<2x1x32xf32>
    %203 = vector.shape_cast %202 : vector<2x1x32xf32> to vector<2x32xf32>
    %204 = vector.extract_strided_slice %91 {offsets = [0, 37, 0], sizes = [2, 1, 32], strides = [1, 1, 1]} : vector<2x64x32xf32> to vector<2x1x32xf32>
    %205 = vector.shape_cast %204 : vector<2x1x32xf32> to vector<2x32xf32>
    %206 = arith.maximumf %203, %205 : vector<2x32xf32>
    %207 = vector.extract_strided_slice %91 {offsets = [0, 44, 0], sizes = [2, 1, 32], strides = [1, 1, 1]} : vector<2x64x32xf32> to vector<2x1x32xf32>
    %208 = vector.shape_cast %207 : vector<2x1x32xf32> to vector<2x32xf32>
    %209 = vector.extract_strided_slice %91 {offsets = [0, 45, 0], sizes = [2, 1, 32], strides = [1, 1, 1]} : vector<2x64x32xf32> to vector<2x1x32xf32>
    %210 = vector.shape_cast %209 : vector<2x1x32xf32> to vector<2x32xf32>
    %211 = arith.maximumf %208, %210 : vector<2x32xf32>
    %212 = arith.maximumf %206, %211 : vector<2x32xf32>
    %213 = vector.extract_strided_slice %91 {offsets = [0, 38, 0], sizes = [2, 1, 32], strides = [1, 1, 1]} : vector<2x64x32xf32> to vector<2x1x32xf32>
    %214 = vector.shape_cast %213 : vector<2x1x32xf32> to vector<2x32xf32>
    %215 = vector.extract_strided_slice %91 {offsets = [0, 39, 0], sizes = [2, 1, 32], strides = [1, 1, 1]} : vector<2x64x32xf32> to vector<2x1x32xf32>
    %216 = vector.shape_cast %215 : vector<2x1x32xf32> to vector<2x32xf32>
    %217 = arith.maximumf %214, %216 : vector<2x32xf32>
    %218 = vector.extract_strided_slice %91 {offsets = [0, 46, 0], sizes = [2, 1, 32], strides = [1, 1, 1]} : vector<2x64x32xf32> to vector<2x1x32xf32>
    %219 = vector.shape_cast %218 : vector<2x1x32xf32> to vector<2x32xf32>
    %220 = vector.extract_strided_slice %91 {offsets = [0, 47, 0], sizes = [2, 1, 32], strides = [1, 1, 1]} : vector<2x64x32xf32> to vector<2x1x32xf32>
    %221 = vector.shape_cast %220 : vector<2x1x32xf32> to vector<2x32xf32>
    %222 = arith.maximumf %219, %221 : vector<2x32xf32>
    %223 = arith.maximumf %217, %222 : vector<2x32xf32>
    %224 = vector.extract_strided_slice %91 {offsets = [0, 48, 0], sizes = [2, 1, 32], strides = [1, 1, 1]} : vector<2x64x32xf32> to vector<2x1x32xf32>
    %225 = vector.shape_cast %224 : vector<2x1x32xf32> to vector<2x32xf32>
    %226 = vector.extract_strided_slice %91 {offsets = [0, 49, 0], sizes = [2, 1, 32], strides = [1, 1, 1]} : vector<2x64x32xf32> to vector<2x1x32xf32>
    %227 = vector.shape_cast %226 : vector<2x1x32xf32> to vector<2x32xf32>
    %228 = arith.maximumf %225, %227 : vector<2x32xf32>
    %229 = vector.extract_strided_slice %91 {offsets = [0, 56, 0], sizes = [2, 1, 32], strides = [1, 1, 1]} : vector<2x64x32xf32> to vector<2x1x32xf32>
    %230 = vector.shape_cast %229 : vector<2x1x32xf32> to vector<2x32xf32>
    %231 = vector.extract_strided_slice %91 {offsets = [0, 57, 0], sizes = [2, 1, 32], strides = [1, 1, 1]} : vector<2x64x32xf32> to vector<2x1x32xf32>
    %232 = vector.shape_cast %231 : vector<2x1x32xf32> to vector<2x32xf32>
    %233 = arith.maximumf %230, %232 : vector<2x32xf32>
    %234 = arith.maximumf %228, %233 : vector<2x32xf32>
    %235 = vector.extract_strided_slice %91 {offsets = [0, 50, 0], sizes = [2, 1, 32], strides = [1, 1, 1]} : vector<2x64x32xf32> to vector<2x1x32xf32>
    %236 = vector.shape_cast %235 : vector<2x1x32xf32> to vector<2x32xf32>
    %237 = vector.extract_strided_slice %91 {offsets = [0, 51, 0], sizes = [2, 1, 32], strides = [1, 1, 1]} : vector<2x64x32xf32> to vector<2x1x32xf32>
    %238 = vector.shape_cast %237 : vector<2x1x32xf32> to vector<2x32xf32>
    %239 = arith.maximumf %236, %238 : vector<2x32xf32>
    %240 = vector.extract_strided_slice %91 {offsets = [0, 58, 0], sizes = [2, 1, 32], strides = [1, 1, 1]} : vector<2x64x32xf32> to vector<2x1x32xf32>
    %241 = vector.shape_cast %240 : vector<2x1x32xf32> to vector<2x32xf32>
    %242 = vector.extract_strided_slice %91 {offsets = [0, 59, 0], sizes = [2, 1, 32], strides = [1, 1, 1]} : vector<2x64x32xf32> to vector<2x1x32xf32>
    %243 = vector.shape_cast %242 : vector<2x1x32xf32> to vector<2x32xf32>
    %244 = arith.maximumf %241, %243 : vector<2x32xf32>
    %245 = arith.maximumf %239, %244 : vector<2x32xf32>
    %246 = vector.extract_strided_slice %91 {offsets = [0, 52, 0], sizes = [2, 1, 32], strides = [1, 1, 1]} : vector<2x64x32xf32> to vector<2x1x32xf32>
    %247 = vector.shape_cast %246 : vector<2x1x32xf32> to vector<2x32xf32>
    %248 = vector.extract_strided_slice %91 {offsets = [0, 53, 0], sizes = [2, 1, 32], strides = [1, 1, 1]} : vector<2x64x32xf32> to vector<2x1x32xf32>
    %249 = vector.shape_cast %248 : vector<2x1x32xf32> to vector<2x32xf32>
    %250 = arith.maximumf %247, %249 : vector<2x32xf32>
    %251 = vector.extract_strided_slice %91 {offsets = [0, 60, 0], sizes = [2, 1, 32], strides = [1, 1, 1]} : vector<2x64x32xf32> to vector<2x1x32xf32>
    %252 = vector.shape_cast %251 : vector<2x1x32xf32> to vector<2x32xf32>
    %253 = vector.extract_strided_slice %91 {offsets = [0, 61, 0], sizes = [2, 1, 32], strides = [1, 1, 1]} : vector<2x64x32xf32> to vector<2x1x32xf32>
    %254 = vector.shape_cast %253 : vector<2x1x32xf32> to vector<2x32xf32>
    %255 = arith.maximumf %252, %254 : vector<2x32xf32>
    %256 = arith.maximumf %250, %255 : vector<2x32xf32>
    %257 = vector.extract_strided_slice %91 {offsets = [0, 54, 0], sizes = [2, 1, 32], strides = [1, 1, 1]} : vector<2x64x32xf32> to vector<2x1x32xf32>
    %258 = vector.shape_cast %257 : vector<2x1x32xf32> to vector<2x32xf32>
    %259 = vector.extract_strided_slice %91 {offsets = [0, 55, 0], sizes = [2, 1, 32], strides = [1, 1, 1]} : vector<2x64x32xf32> to vector<2x1x32xf32>
    %260 = vector.shape_cast %259 : vector<2x1x32xf32> to vector<2x32xf32>
    %261 = arith.maximumf %258, %260 : vector<2x32xf32>
    %262 = vector.extract_strided_slice %91 {offsets = [0, 62, 0], sizes = [2, 1, 32], strides = [1, 1, 1]} : vector<2x64x32xf32> to vector<2x1x32xf32>
    %263 = vector.shape_cast %262 : vector<2x1x32xf32> to vector<2x32xf32>
    %264 = vector.extract_strided_slice %91 {offsets = [0, 63, 0], sizes = [2, 1, 32], strides = [1, 1, 1]} : vector<2x64x32xf32> to vector<2x1x32xf32>
    %265 = vector.shape_cast %264 : vector<2x1x32xf32> to vector<2x32xf32>
    %266 = arith.maximumf %263, %265 : vector<2x32xf32>
    %267 = arith.maximumf %261, %266 : vector<2x32xf32>
    %268 = tpu.concatenate %102, %113, %124, %135, %146, %157, %168, %179, %190, %201, %212, %223, %234, %245, %256, %267 in 1 : vector<2x32xf32>, vector<2x32xf32>, vector<2x32xf32>, vector<2x32xf32>, vector<2x32xf32>, vector<2x32xf32>, vector<2x32xf32>, vector<2x32xf32>, vector<2x32xf32>, vector<2x32xf32>, vector<2x32xf32>, vector<2x32xf32>, vector<2x32xf32>, vector<2x32xf32>, vector<2x32xf32>, vector<2x32xf32> -> vector<2x512xf32>
    %269 = arith.truncf %268 : vector<2x512xf32> to vector<2x512xbf16>
    %c0_25 = arith.constant 0 : index
    %c0_26 = arith.constant 0 : index
    %c0_27 = arith.constant 0 : index
    %270 = vector.load %arg9[%c0_25, %c0_26, %c0_27] : memref<1x512x256xbf16, #tpu.memory_space<vmem>>, vector<1x512x256xbf16>
    %271 = vector.shape_cast %270 : vector<1x512x256xbf16> to vector<512x256xbf16>
    %cst_28 = arith.constant dense<0.000000e+00> : vector<2x256xf32>
    %272 = tpu.matmul %269, %271, %cst_28 {dimension_numbers = #tpu.dot_dimension_numbers<[1], [0], [0], [1], [0, 0, 1, 1], [], []>} : vector<2x512xbf16>, vector<512x256xbf16>, vector<2x256xf32> -> vector<2x256xf32>
    %c0_29 = arith.constant 0 : index
    %c0_30 = arith.constant 0 : index
    %c0_31 = arith.constant 0 : index
    %273 = vector.load %arg10[%c0_29, %c0_30, %c0_31] : memref<1x1x256xf32, #tpu.memory_space<vmem>>, vector<1x1x256xf32>
    %274 = vector.shape_cast %273 : vector<1x1x256xf32> to vector<1x256xf32>
    %275 = vector.broadcast %274 : vector<1x256xf32> to vector<2x256xf32>
    %276 = arith.addf %272, %275 : vector<2x256xf32>
    %cst_32 = arith.constant 0.000000e+00 : f32
    %277 = vector.broadcast %cst_32 : f32 to vector<2x256xf32>
    %278 = arith.maximumf %276, %277 : vector<2x256xf32>
    %279 = arith.truncf %278 : vector<2x256xf32> to vector<2x256xbf16>
    %c0_33 = arith.constant 0 : index
    %c0_34 = arith.constant 0 : index
    %c0_35 = arith.constant 0 : index
    %280 = vector.load %arg11[%c0_33, %c0_34, %c0_35] : memref<1x256x128xbf16, #tpu.memory_space<vmem>>, vector<1x256x128xbf16>
    %281 = vector.shape_cast %280 : vector<1x256x128xbf16> to vector<256x128xbf16>
    %cst_36 = arith.constant dense<0.000000e+00> : vector<2x128xf32>
    %282 = tpu.matmul %279, %281, %cst_36 {dimension_numbers = #tpu.dot_dimension_numbers<[1], [0], [0], [1], [0, 0, 1, 1], [], []>} : vector<2x256xbf16>, vector<256x128xbf16>, vector<2x128xf32> -> vector<2x128xf32>
    %c0_37 = arith.constant 0 : index
    %c0_38 = arith.constant 0 : index
    %c0_39 = arith.constant 0 : index
    %283 = vector.load %arg12[%c0_37, %c0_38, %c0_39] : memref<1x1x128xf32, #tpu.memory_space<vmem>>, vector<1x1x128xf32>
    %284 = vector.shape_cast %283 : vector<1x1x128xf32> to vector<1x128xf32>
    %285 = vector.broadcast %284 : vector<1x128xf32> to vector<2x128xf32>
    %286 = arith.addf %282, %285 : vector<2x128xf32>
    %c0_40 = arith.constant 0 : index
    %c0_41 = arith.constant 0 : index
    %c0_42 = arith.constant 0 : index
    %287 = vector.load %arg13[%c0_40, %c0_41, %c0_42] : memref<1x2x128xf32, #tpu.memory_space<vmem>>, vector<1x2x128xf32>
    %288 = vector.shape_cast %287 : vector<1x2x128xf32> to vector<2x128xf32>
    %289 = vector.shape_cast %286 : vector<2x128xf32> to vector<1x2x128xf32>
    tpu.vector_store %arg13[%c0_40, %c0_41, %c0_42], %289 {strides = array<i32>} : memref<1x2x128xf32, #tpu.memory_space<vmem>>, vector<1x2x128xf32>,
    return
  }
  func.func @transform_0(%arg0: i32, %arg1: i32) -> (i32, i32, i32) {
    %c0_i32 = arith.constant 0 : i32
    %c0_i32_0 = arith.constant 0 : i32
    %c0_i32_1 = arith.constant 0 : i32
    return %arg1, %c0_i32, %c0_i32_0 : i32, i32, i32
  }
  func.func @transform_1(%arg0: i32, %arg1: i32) -> (i32, i32, i32) {
    %c0_i32 = arith.constant 0 : i32
    %c0_i32_0 = arith.constant 0 : i32
    %c0_i32_1 = arith.constant 0 : i32
    return %arg0, %c0_i32, %c0_i32_0 : i32, i32, i32
  }
  func.func @transform_2(%arg0: i32, %arg1: i32) -> (i32, i32, i32) {
    %c0_i32 = arith.constant 0 : i32
    %c0_i32_0 = arith.constant 0 : i32
    %c0_i32_1 = arith.constant 0 : i32
    return %arg0, %c0_i32, %c0_i32_0 : i32, i32, i32
  }
  func.func @transform_3(%arg0: i32, %arg1: i32) -> (i32, i32, i32) {
    %c0_i32 = arith.constant 0 : i32
    %c0_i32_0 = arith.constant 0 : i32
    %c0_i32_1 = arith.constant 0 : i32
    return %arg0, %c0_i32, %c0_i32_0 : i32, i32, i32
  }
  func.func @transform_4(%arg0: i32, %arg1: i32) -> (i32, i32, i32) {
    %c0_i32 = arith.constant 0 : i32
    %c0_i32_0 = arith.constant 0 : i32
    %c0_i32_1 = arith.constant 0 : i32
    return %arg0, %c0_i32, %c0_i32_0 : i32, i32, i32
  }
  func.func @transform_5(%arg0: i32, %arg1: i32) -> (i32, i32, i32) {
    %c0_i32 = arith.constant 0 : i32
    %c0_i32_0 = arith.constant 0 : i32
    %c0_i32_1 = arith.constant 0 : i32
    return %arg0, %c0_i32, %c0_i32_0 : i32, i32, i32
  }
  func.func @transform_6(%arg0: i32, %arg1: i32) -> (i32, i32, i32) {
    %c0_i32 = arith.constant 0 : i32
    %c0_i32_0 = arith.constant 0 : i32
    %c0_i32_1 = arith.constant 0 : i32
    return %arg0, %c0_i32, %c0_i32_0 : i32, i32, i32
  }
  func.func @transform_7(%arg0: i32, %arg1: i32) -> (i32, i32, i32) {
    %c0_i32 = arith.constant 0 : i32
    %c0_i32_0 = arith.constant 0 : i32
    %c0_i32_1 = arith.constant 0 : i32
    return %arg0, %c0_i32, %c0_i32_0 : i32, i32, i32
  }
  func.func @transform_8(%arg0: i32, %arg1: i32) -> (i32, i32, i32) {
    %c0_i32 = arith.constant 0 : i32
    %c0_i32_0 = arith.constant 0 : i32
    %c0_i32_1 = arith.constant 0 : i32
    return %arg0, %c0_i32, %c0_i32_0 : i32, i32, i32
  }
  func.func @transform_9(%arg0: i32, %arg1: i32) -> (i32, i32, i32) {
    %c0_i32 = arith.constant 0 : i32
    %c0_i32_0 = arith.constant 0 : i32
    %c0_i32_1 = arith.constant 0 : i32
    return %arg0, %c0_i32, %c0_i32_0 : i32, i32, i32
  }
  func.func @transform_10(%arg0: i32, %arg1: i32) -> (i32, i32, i32) {
    %c0_i32 = arith.constant 0 : i32
    %c0_i32_0 = arith.constant 0 : i32
    %c0_i32_1 = arith.constant 0 : i32
    return %arg0, %c0_i32, %c0_i32_0 : i32, i32, i32
  }
  func.func @transform_11(%arg0: i32, %arg1: i32) -> (i32, i32, i32) {
    %c0_i32 = arith.constant 0 : i32
    %c0_i32_0 = arith.constant 0 : i32
    return %arg0, %arg1, %c0_i32 : i32, i32, i32
  }
}

</mosaic_0001>

<bundles_post_ra>
// kernel: dqn_apply.1
= control target key start
LH: loop header
LB: loop body
LE: loop exit
PB: predicated region body
PF: predicated region fallthrough
CT: control target
= control target key end

     0   :  { %s17107_s0 = inlined_call_operand.vmem [shape: bf16[2,960,64], index: 0, kind: input, shape index: {}]   ;;  %s17108_s1 = inlined_call_operand.vmem [shape: bf16[2,64,64], index: 1, kind: input, shape index: {}]   ;;  %s17109_s2 = inlined_call_operand.vmem [shape: f32[2,1,64], index: 2, kind: input, shape index: {}]   ;;  %s17110_s3 = inlined_call_operand.vmem [shape: bf16[2,1024,32], index: 3, kind: input, shape index: {}]   ;;  %s17111_s4 = inlined_call_operand.vmem [shape: f32[2,1,32], index: 4, kind: input, shape index: {}]   ;;  %s17112_s5 = inlined_call_operand.vmem [shape: bf16[2,128,32], index: 5, kind: input, shape index: {}]   ;;  %s17113_s6 = inlined_call_operand.vmem [shape: f32[2,1,32], index: 6, kind: input, shape index: {}]   ;;  %s17114_s7 = inlined_call_operand.vmem [shape: bf16[2,512,256], index: 7, kind: input, shape index: {}]   ;;  %s17115_s8 = inlined_call_operand.vmem [shape: f32[2,1,256], index: 8, kind: input, shape index: {}]   ;;  %s17116_s9 = inlined_call_operand.vmem [shape: bf16[2,256,128], index: 9, kind: input, shape index: {}]   ;;  %s17117_s10 = inlined_call_operand.vmem [shape: f32[2,1,128], index: 10, kind: input, shape index: {}]   ;;  %s17118_s11 = inlined_call_operand.hbm [shape: f32[2,2,128], index: 11, kind: output, shape index: {}]  }
   0x1   :  { %17319 = sst [smem:[#allocation222_spill]] %s17108_s1 }
   0x2   :  { %17320 = sst [smem:[#allocation223_spill]] %s17110_s3 }
   0x3   :  { %17321 = sst [smem:[#allocation224_spill]] %s17114_s7 }
   0x4   :  { %16 = vsyncpa [#allocation3], 0 }
   0x5   :  { %18 = vsyncpa [#allocation3 + $0x1], 0  ;;  %s11593_s17 = smov 0   ;;  %s11595_s18 = smov 0  }
   0x6   :  { %s11597_s19 = smov 0   ;;  %s11599_s20 = smov 0  }
   0x7   :  { %s11601_s21 = smov 0   ;;  %s11603_s22 = smov 0  }
   0x8 LB: > { %17322 = sst [smem:[#allocation5_spill]] %s11522_s21  ;;  %s9498_s23 = sadd.s32 4294967295, %s11526_s22   ;;  %s11526_s22 = sphi %s11603_s22, %s24_s22   ;;  %s11522_s21 = sphi %s11601_s21, %s18188_s21   ;;  %s11518_s20 = sphi %s11599_s20, %s18187_s20   ;;  %s11514_s19 = sphi %s11597_s19, %s18191_s19   ;;  %s11510_s18 = sphi %s11595_s18, %s18190_s18   ;;  %s11506_s17 = sphi %s11593_s17, %s18189_s17  }
   0x9   : > { %s9499_s24 = sadd.s32 4294967294, %s11526_s22   ;;  %s36_s25 = sadd.s32 1, %s11522_s21 }
   0xa   : > { %s331_s26 = sadd.s32 1, %s11514_s19  ;;  %p38_p0 = scmp.ge.s32.totalorder %s36_s25, 2 }
   0xb   : > { %p341_p1 = scmp.ne.s32.totalorder %s11514_s19, %s11510_s18  ;;  %p342_p2 = scmp.eq.s32.totalorder %s9498_s23, 1 }
   0xc   : > { %p347_p3 = scmp.ne.s32.totalorder %s11510_s18, %s11506_s17  ;;  %s18193_s25 = smov (%p38_p0, %s36_s25), 0 }
   0xd   : > { %17323 = sst [smem:[#allocation6_spill]] %s18193_s25  ;;  %p11633_p4 = por %p342_p2, %p341_p1 }
   0xe   : > { %p348_p5 = scmp.eq.s32.totalorder %s9499_s24, 1  ;;  %s326_s28 = ssub.s32 %s11522_s21, %s18193_s25 }
   0xf   : > { %p9503_p6 = scmp.ge.s32.totalorder %s11526_s22, 1  ;;  %p329_p7 = scmp.eq.s32.totalorder %s326_s28, 0 }
  0x10   : > { %p11640_p8 = por %p348_p5, %p347_p3  ;;  %p447_p9 = scmp.lt.s32.totalorder %s11526_s22, 3 }
  0x11   : > { %s11646_s30 = scalar_select %p329_p7, %s11514_s19, %s331_s26  }
  0x12   : > { %p448_p10 = pnand %p9503_p6, %p447_p9 }
  0x14   : > { %451 = sbr.rel (%p448_p10) target bundleno = 2238 (0x8be), region = 64 }
  0x19   : > { %p536_p11 = scmp.lt.s32.totalorder %s11518_s20, 1  ;;  %v11140_v0 = vld [vmem:[%s17107_s0] sm:$0xff]   ;;  %vm1457_vm0 = vcmask 523264   ;;  %s17326_s1 = sld [smem:[#allocation222_spill]]  ;;  %v11141_v5 = vld [vmem:[%s17107_s0 + $0x8] sm:$0xff]   ;;  %v11142_v6 = vld [vmem:[%s17107_s0 + $0x10] sm:$0xff]  }
  0x1a   : > { %10775 = vmatprep.mubr.msk.bf16.mxu0 %vm1457_vm0, %v11140_v0  ;;  %v11143_v7 = vld [vmem:[%s17107_s0 + $0x18] sm:$0xff]   ;;  %v11144_v8 = vld [vmem:[%s17107_s0 + $0x20] sm:$0xff]   ;;  %v11145_v9 = vld [vmem:[%s17107_s0 + $0x28] sm:$0xff]   ;;  %s17327_s3 = sld [smem:[#allocation223_spill]]  ;;  %vm3771_vm1 = vsmask.f32 3328 }
  0x1b   : > { %s11653_s14 = scalar_select %p536_p11, %s11518_s20, 1  ;;  %v11146_v10 = vld [vmem:[%s17107_s0 + $0x30] sm:$0xff]   ;;  %v11147_v11 = vld [vmem:[%s17107_s0 + $0x38] sm:$0xff]   ;;  %v11148_v12 = vld [vmem:[%s17107_s0 + $0x40] sm:$0xff]   ;;  %vm3772_vm2 = vsmask.f32 7440 }
  0x1c   : > { %v11149_v13 = vld [vmem:[%s17107_s0 + $0x48] sm:$0xff]   ;;  %v11150_v14 = vld [vmem:[%s17107_s0 + $0x50] sm:$0xff]   ;;  %v11151_v15 = vld [vmem:[%s17107_s0 + $0x58] sm:$0xff]   ;;  %s17328_s7 = sld [smem:[#allocation224_spill]]  ;;  %s11528_s28 = smov 64   ;;  %vm8215_vm4 = vcmask 261120  }
  0x1d   : > { %s10308_s15 = sshll.u32 %s11653_s14, 5  ;;  %v11152_v16 = vld [vmem:[%s17107_s0 + $0x60] sm:$0xff]   ;;  %v11153_v17 = vld [vmem:[%s17107_s0 + $0x68] sm:$0xff]   ;;  %v11154_v18 = vld [vmem:[%s17107_s0 + $0x70] sm:$0xff]   ;;  %s551_s21 = scalar_lea.vmem %s17111_s4, %s11653_s14  ;;  %vm8256_vm5 = vcmask 785408   ;;  %vm8540_vm6 = vcmask 1041409  }
  0x1e   : > { %v11155_v19 = vld [vmem:[%s17107_s0 + $0x78] sm:$0xff]   ;;  %v11156_v20 = vld [vmem:[%s17107_s0 + $0x80] sm:$0xff]   ;;  %v11157_v21 = vld [vmem:[%s17107_s0 + $0x88] sm:$0xff]   ;;  %s10310_s16 = sshll.u32 %s11653_s14, 6  ;;  %s11531_s13 = smov 96  }
  0x1f   : > { %s540_s24 = scalar_lea.vmem %s17326_s1, %s10308_s15  ;;  %s10309_s1 = sshll.u32 %s11653_s14, 9  ;;  %v11158_v22 = vld [vmem:[%s17107_s0 + $0x90] sm:$0xff]   ;;  %v11159_v23 = vld [vmem:[%s17107_s0 + $0x98] sm:$0xff]   ;;  %v11160_v24 = vld [vmem:[%s17107_s0 + $0xa0] sm:$0xff]  }
  0x20   : > { %v11136_v1 = vld [vmem:[%s540_s24 + $0x18] sm:$0xff]   ;;  %v11137_v2 = vld [vmem:[%s540_s24 + $0x10] sm:$0xff]   ;;  %v11138_v3 = vld [vmem:[%s540_s24 + $0x8] sm:$0xff]   ;;  %s11725_s25 = scalar_lea.vmem %s17327_s3, %s10309_s1  ;;  %s11880_s15 = scalar_lea.vmem %s17109_s2, %s11653_s14 }
  0x21   : > { %10767 = vmatprep.subr.bf16.mxu0 %v11136_v1  ;;  %v11139_v4 = vld [vmem:[%s540_s24] sm:$0xff]   ;;  %v11161_v25 = vld [vmem:[%s17107_s0 + $0xa8] sm:$0xff]   ;;  %v11162_v26 = vld [vmem:[%s17107_s0 + $0xb0] sm:$0xff]   ;;  %s10312_s24 = sshll.u32 %s11653_s14, 7 }
  0x22   : > { %10768 = vmatpush3.bf16.msra.mxu0 %v11136_v1  ;;  %v11163_v27 = vld [vmem:[%s17107_s0 + $0xb8] sm:$0xff]   ;;  %v11164_v28 = vld [vmem:[%s17107_s0 + $0xc0] sm:$0xff]   ;;  %v11165_v29 = vld [vmem:[%s17107_s0 + $0xc8] sm:$0xff]   ;;  %s11804_s3 = scalar_lea.vmem %s17328_s7, %s10309_s1  ;;  %s11831_s12 = scalar_lea.vmem %s17116_s9, %s10312_s24 }
  0x23   : > { %10769 = vmatprep.subr.bf16.mxu0 %v11137_v2  ;;  %v11166_v30 = vld [vmem:[%s17107_s0 + $0xd0] sm:$0xff]   ;;  %v11167_v31 = vld [vmem:[%s17107_s0 + $0xd8] sm:$0xff]   ;;  %v11168_v32 = vld [vmem:[%s17107_s0 + $0xe0] sm:$0xff]   ;;  %s16534_s7 = scalar_lea.vmem %s17112_s5, %s10310_s16  ;;  %s11530_s24 = smov 32  }
  0x24   : > { %v11169_v33 = vld [vmem:[%s17107_s0 + $0xe8] sm:$0xff]   ;;  %v11170_v34 = vld [vmem:[%s17107_s0 + $0xf0] sm:$0xff]   ;;  %v11171_v35 = vld [vmem:[%s17107_s0 + $0xf8] sm:$0xff]  }
  0x25   : > { %v11172_v36 = vld [vmem:[%s17107_s0 + $0x100] sm:$0xff]   ;;  %v11173_v37 = vld [vmem:[%s17107_s0 + $0x108] sm:$0xff]   ;;  %v11174_v38 = vld [vmem:[%s17107_s0 + $0x110] sm:$0xff]  }
  0x26   : > { %10770 = vmatpush3.bf16.msra.mxu0 %v11137_v2  ;;  %v11175_v39 = vld [vmem:[%s17107_s0 + $0x118] sm:$0xff]   ;;  %v11176_v40 = vld [vmem:[%s17107_s0 + $0x120] sm:$0xff]   ;;  %v11177_v41 = vld [vmem:[%s17107_s0 + $0x128] sm:$0xff]  }
  0x27   : > { %10771 = vmatprep.subr.bf16.mxu0 %v11138_v3  ;;  %v11178_v42 = vld [vmem:[%s17107_s0 + $0x130] sm:$0xff]   ;;  %v11179_v43 = vld [vmem:[%s17107_s0 + $0x138] sm:$0xff]   ;;  %v11180_v44 = vld [vmem:[%s17107_s0 + $0x140] sm:$0xff]  }
  0x28   : > { %v11181_v45 = vld [vmem:[%s17107_s0 + $0x148] sm:$0xff]   ;;  %v11182_v46 = vld [vmem:[%s17107_s0 + $0x150] sm:$0xff]   ;;  %v11183_v47 = vld [vmem:[%s17107_s0 + $0x158] sm:$0xff]  }
  0x29   : > { %v11184_v48 = vld [vmem:[%s17107_s0 + $0x160] sm:$0xff]   ;;  %v11185_v49 = vld [vmem:[%s17107_s0 + $0x168] sm:$0xff]   ;;  %v11186_v50 = vld [vmem:[%s17107_s0 + $0x170] sm:$0xff]  }
  0x2a   : > { %10772 = vmatpush3.bf16.msra.mxu0 %v11138_v3  ;;  %v11187_v51 = vld [vmem:[%s17107_s0 + $0x178] sm:$0xff]   ;;  %v11188_v52 = vld [vmem:[%s17107_s0 + $0x180] sm:$0xff]   ;;  %v11189_v53 = vld [vmem:[%s17107_s0 + $0x188] sm:$0xff]  }
  0x2b   : > { %10773 = vmatprep.subr.bf16.mxu0 %v11139_v4  ;;  %v11190_v54 = vld [vmem:[%s17107_s0 + $0x190] sm:$0xff]   ;;  %v11886_v55 = vld [vmem:[%s11880_s15] ss:$0 sm:$0xff]  ;;  %v11191_v61 = vld [vmem:[%s17107_s0 + $0x198] sm:$0xff]  }
  0x2c   : > { %v11192_v0 = vld [vmem:[%s17107_s0 + $0x1a0] sm:$0xff]   ;;  %vm11957_vm3 = vmor %vm3771_vm1, %vm3772_vm2 }
  0x2e   : > { %10774 = vmatpush3.bf16.msra.mxu0 %v11139_v4 }
  0x31   : > { %10776 = vmatmul.mubr.msk.bf16.vlgmr.msra.gmra.mxu0 %vm1457_vm0, %v11141_v5 }
  0x32   : > { %10779 = vmatprep.mubr.msk.bf16.mxu0 %vm1457_vm0, %v11142_v6 }
  0x39   : > { %10780 = vmatmul.mubr.msk.bf16.gmra.mxu0 %vm1457_vm0, %v11143_v7 }
  0x3a   : > { %10783 = vmatprep.mubr.msk.bf16.mxu0 %vm1457_vm0, %v11144_v8 }
  0x41   : > { %10784 = vmatmul.mubr.msk.bf16.gmra.mxu0 %vm1457_vm0, %v11145_v9 }
  0x42   : > { %10787 = vmatprep.mubr.msk.bf16.mxu0 %vm1457_vm0, %v11146_v10 }
  0x49   : > { %10788 = vmatmul.mubr.msk.bf16.gmra.mxu0 %vm1457_vm0, %v11147_v11 }
  0x4a   : > { %10791 = vmatprep.mubr.msk.bf16.mxu0 %vm1457_vm0, %v11148_v12 }
  0x51   : > { %10792 = vmatmul.mubr.msk.bf16.gmra.mxu0 %vm1457_vm0, %v11149_v13 }
  0x52   : > { %10795 = vmatprep.mubr.msk.bf16.mxu0 %vm1457_vm0, %v11150_v14 }
  0x59   : > { %10796 = vmatmul.mubr.msk.bf16.gmra.mxu0 %vm1457_vm0, %v11151_v15  ;;  %v11193_v15 = vld [vmem:[%s17107_s0 + $0x1a8] sm:$0xff]  }
  0x5a   : > { %10799 = vmatprep.mubr.msk.bf16.mxu0 %vm1457_vm0, %v11152_v16 }
  0x61   : > { %10800 = vmatmul.mubr.msk.bf16.gmra.mxu0 %vm1457_vm0, %v11153_v17  ;;  %v11194_v17 = vld [vmem:[%s17107_s0 + $0x1b0] sm:$0xff]  }
  0x62   : > { %10803 = vmatprep.mubr.msk.bf16.mxu0 %vm1457_vm0, %v11154_v18 }
  0x69   : > { %10804 = vmatmul.mubr.msk.bf16.gmra.mxu0 %vm1457_vm0, %v11155_v19 }
  0x6a   : > { %10807 = vmatprep.mubr.msk.bf16.mxu0 %vm1457_vm0, %v11156_v20 }
  0x71   : > { %10808 = vmatmul.mubr.msk.bf16.gmra.mxu0 %vm1457_vm0, %v11157_v21 }
  0x72   : > { %10811 = vmatprep.mubr.msk.bf16.mxu0 %vm1457_vm0, %v11158_v22 }
  0x79   : > { %10812 = vmatmul.mubr.msk.bf16.gmra.mxu0 %vm1457_vm0, %v11159_v23 }
  0x7a   : > { %10815 = vmatprep.mubr.msk.bf16.mxu0 %vm1457_vm0, %v11160_v24 }
  0x81   : > { %10816 = vmatmul.mubr.msk.bf16.gmra.mxu0 %vm1457_vm0, %v11161_v25 }
  0x82   : > { %10819 = vmatprep.mubr.msk.bf16.mxu0 %vm1457_vm0, %v11162_v26 }
  0x89   : > { %10820 = vmatmul.mubr.msk.bf16.gmra.mxu0 %vm1457_vm0, %v11163_v27 }
  0x8a   : > { %10823 = vmatprep.mubr.msk.bf16.mxu0 %vm1457_vm0, %v11164_v28 }
  0x91   : > { %10824 = vmatmul.mubr.msk.bf16.gmra.mxu0 %vm1457_vm0, %v11165_v29 }
  0x92   : > { %10827 = vmatprep.mubr.msk.bf16.mxu0 %vm1457_vm0, %v11166_v30 }
  0x99   : > { %10828 = vmatmul.mubr.msk.bf16.gmra.mxu0 %vm1457_vm0, %v11167_v31 }
  0x9a   : > { %10831 = vmatprep.mubr.msk.bf16.mxu0 %vm1457_vm0, %v11168_v32 }
  0xa1   : > { %10832 = vmatmul.mubr.msk.bf16.gmra.mxu0 %vm1457_vm0, %v11169_v33 }
  0xa2   : > { %10835 = vmatprep.mubr.msk.bf16.mxu0 %vm1457_vm0, %v11170_v34  ;;  %v11195_v34 = vld [vmem:[%s17107_s0 + $0x1b8] sm:$0xff]  }
  0xa9   : > { %10836 = vmatmul.mubr.msk.bf16.gmra.mxu0 %vm1457_vm0, %v11171_v35  ;;  %v11196_v35 = vld [vmem:[%s17107_s0 + $0x1c0] sm:$0xff]  }
  0xaa   : > { %10839 = vmatprep.mubr.msk.bf16.mxu0 %vm1457_vm0, %v11172_v36 }
  0xb1   : > { %10840 = vmatmul.mubr.msk.bf16.gmra.mxu0 %vm1457_vm0, %v11173_v37 }
  0xb2   : > { %10843 = vmatprep.mubr.msk.bf16.mxu0 %vm1457_vm0, %v11174_v38 }
  0xb9   : > { %10844 = vmatmul.mubr.msk.bf16.gmra.mxu0 %vm1457_vm0, %v11175_v39 }
  0xba   : > { %10847 = vmatprep.mubr.msk.bf16.mxu0 %vm1457_vm0, %v11176_v40 }
  0xc1   : > { %10848 = vmatmul.mubr.msk.bf16.gmra.mxu0 %vm1457_vm0, %v11177_v41 }
  0xc2   : > { %10851 = vmatprep.mubr.msk.bf16.mxu0 %vm1457_vm0, %v11178_v42 }
  0xc9   : > { %10852 = vmatmul.mubr.msk.bf16.gmra.mxu0 %vm1457_vm0, %v11179_v43 }
  0xca   : > { %10855 = vmatprep.mubr.msk.bf16.mxu0 %vm1457_vm0, %v11180_v44 }
  0xd1   : > { %10856 = vmatmul.mubr.msk.bf16.gmra.mxu0 %vm1457_vm0, %v11181_v45 }
  0xd2   : > { %10859 = vmatprep.mubr.msk.bf16.mxu0 %vm1457_vm0, %v11182_v46 }
  0xd9   : > { %10860 = vmatmul.mubr.msk.bf16.gmra.mxu0 %vm1457_vm0, %v11183_v47 }
  0xda   : > { %10863 = vmatprep.mubr.msk.bf16.mxu0 %vm1457_vm0, %v11184_v48 }
  0xe1   : > { %10864 = vmatmul.mubr.msk.bf16.gmra.mxu0 %vm1457_vm0, %v11185_v49 }
  0xe2   : > { %10867 = vmatprep.mubr.msk.bf16.mxu0 %vm1457_vm0, %v11186_v50 }
  0xe9   : > { %10868 = vmatmul.mubr.msk.bf16.gmra.mxu0 %vm1457_vm0, %v11187_v51 }
  0xea   : > { %10871 = vmatprep.mubr.msk.bf16.mxu0 %vm1457_vm0, %v11188_v52 }
  0xf1   : > { %v10777_v56 = vpop.f32.mrf.mxu0  ;;  %10872 = vmatmul.mubr.msk.bf16.gmra.mxu0 %vm1457_vm0, %v11189_v53 }
  0xf2   : > { %10875 = vmatprep.mubr.msk.bf16.mxu0 %vm1457_vm0, %v11190_v54  ;;  %v1861_v58 = vadd.f32 %v10777_v56, %v11886_v55  ;;  %v11197_v54 = vld [vmem:[%s17107_s0 + $0x1c8] sm:$0xff]  }
  0xf3   : > { %v1852_v57 = vpop.f32.mrf.mxu0 }
  0xf4   : > { %v1853_v59 = vadd.f32 %v11886_v55, %v1852_v57  ;;  %v11901_v2 = vmax.f32 %v1861_v58, 0.0  ;;  %v11198_v58 = vld [vmem:[%s17107_s0 + $0x1d0] sm:$0xff]  }
  0xf5   : > { %v10778_v60 = vpop.f32.mrf.mxu0 }
  0xf6   : > { %v11895_v62 = vmax.f32 %v1853_v59, 0.0  ;;  %v1864_v63 = vadd.f32 %v10778_v60, %v11886_v55 }
  0xf7   : > { %v1855_v1 = vpop.f32.mrf.mxu0 }
  0xf8   : > { %17329 = vst [vmem:[#allocation7_spill] sm:$0xff] %v11895_v62  ;;  %v10313_v3 = vpack.c.bf16 %v11895_v62, %v11895_v62  ;;  %v11905_v4 = vmax.f32 %v1864_v63, 0.0  ;;  %v1856_v5 = vadd.f32 %v11886_v55, %v1855_v1 }
  0xf9   : > { %v10781_v6 = vpop.f32.mrf.mxu0  ;;  %10876 = vmatmul.mubr.msk.bf16.gmra.mxu0 %vm1457_vm0, %v11191_v61 }
  0xfa   : > { %v3052_v7 = vpack.c.bf16 %v11905_v4, %v11901_v2  ;;  %10879 = vmatprep.mubr.msk.bf16.mxu0 %vm1457_vm0, %v11192_v0  ;;  %v3775_v8 = vshrl.u32 %v10313_v3, 16  ;;  %v3778_v9 = vshll.u32 %v10313_v3, 16  ;;  %v11912_v10 = vmax.f32 %v1856_v5, 0.0 }
  0xfb   : > { %v1868_v11 = vpop.f32.mrf.mxu0  ;;  %v1877_v13 = vadd.f32 %v10781_v6, %v11886_v55  ;;  %v10316_v0 = vpack.c.bf16 %v11905_v4, %v11905_v4 }
  0xfc   : > { %17330 = vst [vmem:[#allocation8_spill] sm:$0xff] %v11912_v10  ;;  %v3777_v18 = vrot.slane %v3775_v8, 4  ;;  %v3780_v19 = vrot.slane %v3778_v9, 5  ;;  %v11926_v20 = vpack.c.bf16 %v11912_v10, %v11912_v10  ;;  %v1869_v24 = vadd.f32 %v11886_v55, %v1868_v11 }
  0xfd   : > { %v10782_v14 = vpop.f32.mrf.mxu0  ;;  %v11930_v23 = vmax.f32 %v1877_v13, 0.0  ;;  %v10315_v9 = vpack.c.bf16 %v11901_v2, %v11901_v2  ;;  %v11203_v2 = vld [vmem:[%s17107_s0 + $0x1f8] sm:$0xff]  }
  0xfe   : > { %v1880_v16 = vadd.f32 %v10782_v14, %v11886_v55  ;;  %v3781_v27 = vor.u32 %v3780_v19, %v3777_v18  ;;  %v3784_v28 = vshll.u32 %v11926_v20, 16  ;;  %v11939_v31 = vmax.f32 %v1869_v24, 0.0  ;;  %v11200_v19 = vld [vmem:[%s17107_s0 + $0x1e0] sm:$0xff]  }
  0xff   : > { %v1871_v21 = vpop.f32.mrf.mxu0  ;;  %17332 = vst [vmem:[#allocation10_spill] sm:$0xff] %v11930_v23  ;;  %v10319_v18 = vpack.c.bf16 %v11930_v23, %v11930_v23 }
 0x100   : > { %v11928_v22 = vmax.f32 %v1880_v16, 0.0  ;;  %v1872_v25 = vadd.f32 %v11886_v55, %v1871_v21  ;;  %v11949_v36 = vrot.slane %v3781_v27, 4  ;;  %v11951_v37 = vrot.slane %v3784_v28, 5 }
 0x101   : > { %v10785_v26 = vpop.f32.mrf.mxu0  ;;  %10880 = vmatmul.mubr.msk.bf16.gmra.mxu0 %vm1457_vm0, %v11193_v15  ;;  %v11199_v15 = vld [vmem:[%s17107_s0 + $0x1d8] sm:$0xff]   ;;  %v3799_v16 = vshrl.u32 %v10316_v0, 16  ;;  %v10317_v21 = vpack.c.bf16 %v11939_v31, %v11939_v31  ;;  %v12020_v27 = vshll.u32 %v10315_v9, 16 }
 0x102   : > { %17331 = vst [vmem:[#allocation9_spill] sm:$0xff] %v11928_v22  ;;  %10883 = vmatprep.mubr.msk.bf16.mxu0 %vm1457_vm0, %v11194_v17  ;;  %v11941_v32 = vmax.f32 %v1872_v25, 0.0  ;;  %17333 = vst [vmem:[#allocation11_spill] sm:$0xff] %v11949_v36  ;;  %v1893_v39 = vadd.f32 %v10785_v26, %v11886_v55  ;;  %v3802_v17 = vshll.u32 %v10316_v0, 16  ;;  %v10320_v28 = vpack.c.bf16 %v11928_v22, %v11928_v22 }
 0x103   : > { %v1884_v30 = vpop.f32.mrf.mxu0  ;;  %17334 = vst [vmem:[#allocation12_spill] sm:$0xff] %v11951_v37 }
 0x104   : > { %v3053_v38 = vpack.c.bf16 %v11941_v32, %v11939_v31  ;;  %v1885_v41 = vadd.f32 %v11886_v55, %v1884_v30  ;;  %v11965_v46 = vmax.f32 %v1893_v39, 0.0  ;;  %v3788_v39 = vshrl.u32 %v11926_v20, 16  ;;  %v11201_v20 = vld [vmem:[%s17107_s0 + $0x1e8] sm:$0xff]  }
 0x105   : > { %v10786_v33 = vpop.f32.mrf.mxu0 }
 0x106   : > { %v1896_v43 = vadd.f32 %v10786_v33, %v11886_v55  ;;  %v11973_v50 = vmax.f32 %v1885_v41, 0.0  ;;  %v3826_v41 = vshll.u32 %v10319_v18, 16  ;;  %v3790_v0 = vrot.slane %v3788_v39, 4 }
 0x107   : > { %v1887_v40 = vpop.f32.mrf.mxu0 }
 0x108   : > { %v1888_v45 = vadd.f32 %v11886_v55, %v1887_v40  ;;  %v11967_v47 = vmax.f32 %v1896_v43, 0.0  ;;  %v3823_v40 = vshrl.u32 %v10319_v18, 16  ;;  %v3808_v43 = vshll.u32 %v10317_v21, 16 }
 0x109   : > { %v10789_v44 = vpop.f32.mrf.mxu0  ;;  %10884 = vmatmul.mubr.msk.bf16.gmra.mxu0 %vm1457_vm0, %v11195_v34  ;;  %v3801_v34 = vrot.slane %v3799_v16, 4  ;;  %v10321_v39 = vpack.c.bf16 %v11973_v50, %v11973_v50 }
 0x10a   : > { %10887 = vmatprep.mubr.msk.bf16.mxu0 %vm1457_vm0, %v11196_v35  ;;  %v11975_v51 = vmax.f32 %v1888_v45, 0.0  ;;  %v3056_v52 = vpack.c.bf16 %v11967_v47, %v11965_v46  ;;  %v1909_v57 = vadd.f32 %v10789_v44, %v11886_v55  ;;  %v3804_v35 = vrot.slane %v3802_v17, 5 }
 0x10b   : > { %v1900_v48 = vpop.f32.mrf.mxu0  ;;  %v3825_v9 = vrot.slane %v3823_v40, 4  ;;  %v12086_v4 = vshll.u32 %v10321_v39, 16 }
 0x10c   : > { %v3055_v56 = vpack.c.bf16 %v11975_v51, %v11973_v50  ;;  %v1901_v61 = vadd.f32 %v11886_v55, %v1900_v48  ;;  %v11993_v1 = vmax.f32 %v1909_v57, 0.0  ;;  %v3832_v57 = vshll.u32 %v10320_v28, 16 }
 0x10d   : > { %v10790_v53 = vpop.f32.mrf.mxu0  ;;  %17346 = vst [vmem:[#allocation22_spill] sm:$0xff] %v12086_v4 }
 0x10e   : > { %v1912_v60 = vadd.f32 %v10790_v53, %v11886_v55  ;;  %v12003_v11 = vmax.f32 %v1901_v61, 0.0  ;;  %v3812_v53 = vshrl.u32 %v10317_v21, 16 }
 0x10f   : > { %v1903_v59 = vpop.f32.mrf.mxu0 }
 0x110   : > { %v11995_v3 = vmax.f32 %v1912_v60, 0.0  ;;  %v1904_v5 = vadd.f32 %v11886_v55, %v1903_v59  ;;  %17337 = vst [vmem:[#allocation13_spill] sm:$0xff] %v12003_v11  ;;  %v3814_v18 = vrot.slane %v3812_v53, 4 }
 0x111   : > { %v10793_v63 = vpop.f32.mrf.mxu0  ;;  %10888 = vmatmul.mubr.msk.bf16.gmra.mxu0 %vm1457_vm0, %v11197_v54 }
 0x112   : > { %10891 = vmatprep.mubr.msk.bf16.mxu0 %vm1457_vm0, %v11198_v58  ;;  %v12005_v13 = vmax.f32 %v1904_v5, 0.0  ;;  %v1925_v25 = vadd.f32 %v10793_v63, %v11886_v55  ;;  %v3836_v58 = vshrl.u32 %v10320_v28, 16  ;;  %v3805_v63 = vor.u32 %v3804_v35, %v3801_v34 }
 0x113   : > { %v1916_v6 = vpop.f32.mrf.mxu0 }
 0x114   : > { %17338 = vst [vmem:[#allocation14_spill] sm:$0xff] %v12005_v13  ;;  %v12028_v44 = vmax.f32 %v1925_v25, 0.0  ;;  %v1917_v54 = vadd.f32 %v11886_v55, %v1916_v6  ;;  %v11202_v6 = vld [vmem:[%s17107_s0 + $0x1f0] sm:$0xff]   ;;  %v3838_v28 = vrot.slane %v3836_v58, 4 }
 0x115   : > { %v10794_v14 = vpop.f32.mrf.mxu0 }
 0x116   : > { %v1928_v30 = vadd.f32 %v10794_v14, %v11886_v55  ;;  %17339 = vst [vmem:[#allocation15_spill] sm:$0xff] %v12028_v44  ;;  %v3828_v14 = vrot.slane %v3826_v41, 5  ;;  %v12048_v21 = vmax.f32 %v1917_v54, 0.0  ;;  %v10331_v50 = vpack.c.bf16 %v12028_v44, %v12028_v44 }
 0x117   : > { %v1919_v26 = vpop.f32.mrf.mxu0 }
 0x118   : > { %v12030_v45 = vmax.f32 %v1928_v30, 0.0  ;;  %v1920_v5 = vadd.f32 %v11886_v55, %v1919_v26  ;;  %v12052_v26 = vrot.slane %v3832_v57, 5  ;;  %v10318_v30 = vpack.c.bf16 %v11941_v32, %v11941_v32 }
 0x119   : > { %v10797_v33 = vpop.f32.mrf.mxu0  ;;  %10892 = vmatmul.mubr.msk.bf16.gmra.mxu0 %vm1457_vm0, %v11199_v15  ;;  %v12043_v15 = vrot.slane %v3808_v43, 5  ;;  %v3829_v43 = vor.u32 %v3828_v14, %v3825_v9 }
 0x11a   : > { %10895 = vmatprep.mubr.msk.bf16.mxu0 %vm1457_vm0, %v11200_v19  ;;  %17340 = vst [vmem:[#allocation16_spill] sm:$0xff] %v12030_v45  ;;  %v1941_v16 = vadd.f32 %v10797_v33, %v11886_v55  ;;  %v10323_v19 = vpack.c.bf16 %v11965_v46, %v11965_v46  ;;  %v12050_v25 = vmax.f32 %v1920_v5, 0.0  ;;  %17342 = vst [vmem:[#allocation18_spill] sm:$0xff] %v12052_v26  ;;  %v12079_v9 = vshll.u32 %v10318_v30, 16 }
 0x11b   : > { %v1932_v48 = vpop.f32.mrf.mxu0  ;;  %17341 = vst [vmem:[#allocation17_spill] sm:$0xff] %v12043_v15  ;;  %v3791_v33 = vor.u32 %v3790_v0, %v11951_v37  ;;  %v10322_v30 = vpack.c.bf16 %v11975_v51, %v11975_v51 }
 0x11c   : > { %v1933_v41 = vadd.f32 %v11886_v55, %v1932_v48  ;;  %v12065_v53 = vmax.f32 %v1941_v16, 0.0  ;;  %v3856_v0 = vshll.u32 %v10323_v19, 16  ;;  %v3860_v5 = vshrl.u32 %v10323_v19, 16  ;;  %17345 = vst [vmem:[#allocation21_spill] sm:$0xff] %v12079_v9 }
 0x11d   : > { %v10798_v60 = vpop.f32.mrf.mxu0  ;;  %v12076_v48 = vrot.slane %v3805_v63, 4  ;;  %v12097_v19 = vrot.slane %v3791_v33, 4  ;;  %v12115_v33 = vunpack.c.l.b16 %v3053_v38  ;;  %v3847_v31 = vshrl.u32 %v10322_v30, 16 }
 0x11e   : > { %v1944_v34 = vadd.f32 %v10798_v60, %v11886_v55  ;;  %v12073_v60 = vunpack.c.h.b16 %v3052_v7  ;;  %v10324_v7 = vpack.c.bf16 %v11967_v47, %v11967_v47  ;;  %v3850_v32 = vshll.u32 %v10322_v30, 16 }
 0x11f   : > { %v1935_v17 = vpop.f32.mrf.mxu0  ;;  %17344 = vst [vmem:[#allocation20_spill] sm:$0xff] %v12076_v48  ;;  %17351 = vst [vmem:[#allocation27_spill] sm:$0xff] %v12115_v33 }
 0x120   : > { %v12067_v54 = vmax.f32 %v1944_v34, 0.0  ;;  %v1936_v57 = vadd.f32 %v11886_v55, %v1935_v17  ;;  %17343 = vst [vmem:[#allocation19_spill] sm:$0xff] %v12073_v60  ;;  %v12090_v17 = vmax.f32 %v1933_v41, 0.0  ;;  %v12106_v41 = vrot.slane %v3856_v0, 5 }
 0x121   : > { %v10801_v35 = vpop.f32.mrf.mxu0  ;;  %10896 = vmatmul.mubr.msk.bf16.gmra.mxu0 %vm1457_vm0, %v11201_v20  ;;  %v3815_v20 = vor.u32 %v3814_v18, %v12043_v15  ;;  %v11204_v18 = vld [vmem:[%s17107_s0 + $0x200] sm:$0xff]   ;;  %v12123_v12 = vshll.u32 %v10324_v7, 16  ;;  %v10325_v7 = vpack.c.bf16 %v12003_v11, %v12003_v11  ;;  %v10329_v0 = vpack.c.bf16 %v12048_v21, %v12048_v21 }
 0x122   : > { %10899 = vmatprep.mubr.msk.bf16.mxu0 %vm1457_vm0, %v11202_v6  ;;  %v3839_v6 = vor.u32 %v3838_v28, %v12052_v26  ;;  %v12092_v63 = vmax.f32 %v1936_v57, 0.0  ;;  %v12099_v28 = vrot.slane %v3829_v43, 4  ;;  %v1957_v34 = vadd.f32 %v10801_v35, %v11886_v55  ;;  %17349 = vst [vmem:[#allocation25_spill] sm:$0xff] %v12106_v41 }
 0x123   : > { %v1948_v58 = vpop.f32.mrf.mxu0  ;;  %v12104_v59 = vrot.slane %v3815_v20, 4  ;;  %v3862_v57 = vrot.slane %v3860_v5, 4  ;;  %v10327_v43 = vpack.c.bf16 %v11993_v1, %v11993_v1  ;;  %17352 = vst [vmem:[#allocation28_spill] sm:$0xff] %v12123_v12  ;;  %v12168_v5 = vrot.slane %v3850_v32, 5 }
 0x124   : > { %17347 = vst [vmem:[#allocation23_spill] sm:$0xff] %v12099_v28  ;;  %v12110_v29 = vrot.slane %v3839_v6, 4  ;;  %v1949_v6 = vadd.f32 %v11886_v55, %v1948_v58  ;;  %v12127_v38 = vmax.f32 %v1957_v34, 0.0  ;;  %v10328_v34 = vpack.c.bf16 %v11995_v3, %v11995_v3 }
 0x125   : > { %v10802_v16 = vpop.f32.mrf.mxu0  ;;  %17348 = vst [vmem:[#allocation24_spill] sm:$0xff] %v12104_v59  ;;  %v3863_v61 = vor.u32 %v3862_v57, %v12106_v41  ;;  %v12145_v30 = vshll.u32 %v10327_v43, 16  ;;  %v11206_v57 = vld [vmem:[%s17107_s0 + $0x210] sm:$0xff]   ;;  %v3871_v24 = vshrl.u32 %v10325_v7, 16  ;;  %v3874_v14 = vshll.u32 %v10325_v7, 16 }
 0x126   : > { %17350 = vst [vmem:[#allocation26_spill] sm:$0xff] %v12110_v29  ;;  %v1960_v35 = vadd.f32 %v10802_v16, %v11886_v55  ;;  %v12158_v51 = vmax.f32 %v1949_v6, 0.0  ;;  %v3895_v43 = vshrl.u32 %v10328_v34, 16  ;;  %v3904_v6 = vshll.u32 %v10329_v0, 16 }
 0x127   : > { %v1951_v39 = vpop.f32.mrf.mxu0  ;;  %17355 = vst [vmem:[#allocation31_spill] sm:$0xff] %v12145_v30  ;;  %v12175_v40 = vrot.slane %v3863_v61, 4  ;;  %v3873_v8 = vrot.slane %v3871_v24, 4  ;;  %v3876_v30 = vrot.slane %v3874_v14, 5 }
 0x128   : > { %v12129_v49 = vmax.f32 %v1960_v35, 0.0  ;;  %v1952_v58 = vadd.f32 %v11886_v55, %v1951_v39  ;;  %v10326_v39 = vpack.c.bf16 %v12005_v13, %v12005_v13  ;;  %17356 = vst [vmem:[#allocation32_spill] sm:$0xff] %v12158_v51  ;;  %v12166_v35 = vrot.slane %v3847_v31, 4 }
 0x129   : > { %v10805_v20 = vpop.f32.mrf.mxu0  ;;  %10900 = vmatmul.mubr.msk.bf16.gmra.mxu0 %vm1457_vm0, %v11203_v2  ;;  %v12135_v2 = vunpack.c.l.b16 %v3056_v52  ;;  %v11205_v52 = vld [vmem:[%s17107_s0 + $0x208] sm:$0xff]   ;;  %17358 = vst [vmem:[#allocation34_spill] sm:$0xff] %v12175_v40  ;;  %v3898_v31 = vshll.u32 %v10328_v34, 16  ;;  %v3919_v13 = vshrl.u32 %v10331_v50, 16  ;;  %v10332_v34 = vpack.c.bf16 %v12030_v45, %v12030_v45 }
 0x12a   : > { %10903 = vmatprep.mubr.msk.bf16.mxu0 %vm1457_vm0, %v11204_v18  ;;  %v12143_v18 = vunpack.c.h.b16 %v3055_v56  ;;  %v12160_v56 = vmax.f32 %v1952_v58, 0.0  ;;  %v1973_v58 = vadd.f32 %v10805_v20, %v11886_v55  ;;  %v3880_v32 = vshll.u32 %v10326_v39, 16 }
 0x12b   : > { %v1964_v16 = vpop.f32.mrf.mxu0  ;;  %17353 = vst [vmem:[#allocation29_spill] sm:$0xff] %v12135_v2  ;;  %v3884_v11 = vshrl.u32 %v10326_v39, 16  ;;  %v3922_v2 = vshll.u32 %v10331_v50, 16  ;;  %v3853_v7 = vor.u32 %v12168_v5, %v12166_v35  ;;  %v3908_v20 = vshrl.u32 %v10329_v0, 16  ;;  %v11207_v0 = vld [vmem:[%s17107_s0 + $0x218] sm:$0xff]   ;;  %v11208_v35 = vld [vmem:[%s17107_s0 + $0x220] sm:$0xff]  }
 0x12c   : > { %17354 = vst [vmem:[#allocation30_spill] sm:$0xff] %v12143_v18  ;;  %17357 = vst [vmem:[#allocation33_spill] sm:$0xff] %v12160_v56  ;;  %v3897_v39 = vrot.slane %v3895_v43, 4  ;;  %v3900_v40 = vrot.slane %v3898_v31, 5  ;;  %v1965_v50 = vadd.f32 %v11886_v55, %v1964_v16  ;;  %v12193_v5 = vrot.slane %v3880_v32, 5 }
 0x12d   : > { %v10806_v47 = vpop.f32.mrf.mxu0  ;;  %v3886_v24 = vrot.slane %v3884_v11, 4  ;;  %v3921_v14 = vrot.slane %v3919_v13, 4  ;;  %v12198_v43 = vrot.slane %v3904_v6, 5  ;;  %v3877_v45 = vor.u32 %v3876_v30, %v3873_v8 }
 0x12e   : > { %v1976_v61 = vadd.f32 %v10806_v47, %v11886_v55  ;;  %17359 = vst [vmem:[#allocation35_spill] sm:$0xff] %v12193_v5  ;;  %v3924_v47 = vrot.slane %v3922_v2, 5  ;;  %v3928_v23 = vshll.u32 %v10332_v34, 16  ;;  %v3932_v22 = vshrl.u32 %v10332_v34, 16 }
 0x12f   : > { %v1967_v46 = vpop.f32.mrf.mxu0  ;;  %17360 = vst [vmem:[#allocation36_spill] sm:$0xff] %v12198_v43  ;;  %v12204_v13 = vmax.f32 %v1965_v50, 0.0  ;;  %v17361_v8 = vpack.c.bf16 %v11995_v3, %v11993_v1  ;;  %v3901_v30 = vor.u32 %v3900_v40, %v3897_v39  ;;  %v12225_v29 = vrot.slane %v3853_v7, 4 }
 0x130   : > { %v1968_v16 = vadd.f32 %v11886_v55, %v1967_v46  ;;  %v3887_v46 = vor.u32 %v3886_v24, %v12193_v5  ;;  %v3925_v34 = vor.u32 %v3924_v47, %v3921_v14  ;;  %v12227_v1 = vrot.slane %v3877_v45, 4 }
 0x131   : > { %v10809_v44 = vpop.f32.mrf.mxu0  ;;  %10904 = vmatmul.mubr.msk.bf16.gmra.mxu0 %vm1457_vm0, %v11205_v52  ;;  %v12185_v52 = vmax.f32 %v1973_v58, 0.0  ;;  %v3910_v58 = vrot.slane %v3908_v20, 4  ;;  %17363 = vst [vmem:[#allocation38_spill] sm:$0xff] %v12225_v29  ;;  %v12229_v3 = vrot.slane %v3928_v23, 5  ;;  %v12231_v40 = vrot.slane %v3932_v22, 4  ;;  %v11210_v22 = vld [vmem:[%s17107_s0 + $0x230] sm:$0xff]  }
 0x132   : > { %10907 = vmatprep.mubr.msk.bf16.mxu0 %vm1457_vm0, %v11206_v57  ;;  %v12188_v57 = vmax.f32 %v1976_v61, 0.0  ;;  %v1989_v31 = vadd.f32 %v10809_v44, %v11886_v55  ;;  %v12208_v32 = vmax.f32 %v1968_v16, 0.0  ;;  %v12215_v44 = vunpack.c.h.b16 %v17361_v8  ;;  %17364 = vst [vmem:[#allocation39_spill] sm:$0xff] %v12227_v1 }
 0x133   : > { %v1980_v18 = vpop.f32.mrf.mxu0  ;;  %v10343_v11 = vpack.c.bf16 %v12185_v52, %v12185_v52  ;;  %v3911_v50 = vor.u32 %v3910_v58, %v12198_v43  ;;  %17365 = vst [vmem:[#allocation40_spill] sm:$0xff] %v12229_v3  ;;  %v11209_v58 = vld [vmem:[%s17107_s0 + $0x228] sm:$0xff]   ;;  %v12240_v7 = vrot.slane %v3887_v46, 4  ;;  %v12242_v45 = vrot.slane %v3925_v34, 4 }
 0x134   : > { %v10344_v2 = vpack.c.bf16 %v12188_v57, %v12188_v57  ;;  %v1981_v6 = vadd.f32 %v11886_v55, %v1980_v18  ;;  %17362 = vst [vmem:[#allocation37_spill] sm:$0xff] %v12215_v44  ;;  %v12222_v18 = vmax.f32 %v1989_v31, 0.0  ;;  %v12238_v31 = vrot.slane %v3901_v30, 4 }
 0x135   : > { %v10810_v12 = vpop.f32.mrf.mxu0  ;;  %v4207_v39 = vshrl.u32 %v10343_v11, 16  ;;  %v4210_v24 = vshll.u32 %v10343_v11, 16  ;;  %17367 = vst [vmem:[#allocation42_spill] sm:$0xff] %v12240_v7  ;;  %17368 = vst [vmem:[#allocation43_spill] sm:$0xff] %v12242_v45 }
 0x136   : > { %v4216_v14 = vshll.u32 %v10344_v2, 16  ;;  %v12233_v47 = vmax.f32 %v1981_v6, 0.0  ;;  %17366 = vst [vmem:[#allocation41_spill] sm:$0xff] %v12238_v31  ;;  %v1992_v23 = vadd.f32 %v10810_v12, %v11886_v55  ;;  %v4220_v11 = vshrl.u32 %v10344_v2, 16 }
 0x137   : > { %v1983_v61 = vpop.f32.mrf.mxu0  ;;  %v10347_v6 = vpack.c.bf16 %v12222_v18, %v12222_v18  ;;  %v12258_v12 = vpack.c.bf16 %v12065_v53, %v12065_v53  ;;  %v4212_v45 = vrot.slane %v4210_v24, 5 }
 0x138   : > { %v12261_v2 = vrot.slane %v4216_v14, 5  ;;  %v2846_v30 = vmax.f32 %v1992_v23, 0.0 }
 0x139   : > { %v10813_v20 = vpop.f32.mrf.mxu0  ;;  %10908 = vmatmul.mubr.msk.bf16.gmra.mxu0 %vm1457_vm0, %v11207_v0  ;;  %v1984_v0 = vadd.f32 %v11886_v55, %v1983_v61  ;;  %v12248_v61 = vrot.slane %v3911_v50, 4  ;;  %v4209_v50 = vrot.slane %v4207_v39, 4  ;;  %v4240_v39 = vshll.u32 %v10347_v6, 16 }
 0x13a   : > { %10911 = vmatprep.mubr.msk.bf16.mxu0 %vm1457_vm0, %v11208_v35  ;;  %v2005_v34 = vadd.f32 %v10813_v20, %v11886_v55  ;;  %v4222_v20 = vrot.slane %v4220_v11, 4  ;;  %v4244_v24 = vshrl.u32 %v10347_v6, 16  ;;  %v11211_v11 = vld [vmem:[%s17107_s0 + $0x238] sm:$0xff]   ;;  %v3068_v6 = vpack.c.bf16 %v2846_v30, %v12222_v18 }
 0x13b   : > { %v1996_v41 = vpop.f32.mrf.mxu0  ;;  %17369 = vst [vmem:[#allocation44_spill] sm:$0xff] %v12248_v61  ;;  %v2844_v8 = vmax.f32 %v1984_v0, 0.0  ;;  %v10345_v0 = vpack.c.bf16 %v12233_v47, %v12233_v47  ;;  %v4213_v23 = vor.u32 %v4212_v45, %v4209_v50 }
 0x13c   : > { %v1997_v61 = vadd.f32 %v11886_v55, %v1996_v41  ;;  %v12270_v7 = vmax.f32 %v2005_v34, 0.0  ;;  %v11212_v34 = vld [vmem:[%s17107_s0 + $0x240] sm:$0xff]   ;;  %v12293_v45 = vrot.slane %v4244_v24, 4 }
 0x13d   : > { %v10814_v35 = vpop.f32.mrf.mxu0  ;;  %v10346_v14 = vpack.c.bf16 %v2844_v8, %v2844_v8  ;;  %v4214_v24 = vrot.slane %v4213_v23, 4 }
 0x13e   : > { %v2008_v46 = vadd.f32 %v10814_v35, %v11886_v55  ;;  %v12272_v1 = vmax.f32 %v1997_v61, 0.0  ;;  %v4226_v35 = vshll.u32 %v10345_v0, 16  ;;  %v10348_v61 = vpack.c.bf16 %v2846_v30, %v2846_v30 }
 0x13f   : > { %v1999_v16 = vpop.f32.mrf.mxu0  ;;  %v4223_v0 = vor.u32 %v4222_v20, %v12261_v2  ;;  %v4231_v30 = vshrl.u32 %v10346_v14, 16  ;;  %v4234_v41 = vshll.u32 %v10346_v14, 16  ;;  %v12308_v20 = vunpack.c.l.b16 %v3068_v6 }
 0x140   : > { %v2000_v31 = vadd.f32 %v11886_v55, %v1999_v16  ;;  %v12279_v16 = vmax.f32 %v2008_v46, 0.0  ;;  %v12291_v46 = vrot.slane %v4240_v39, 5  ;;  %v4228_v29 = vrot.slane %v4226_v35, 5 }
 0x141   : > { %v10817_v44 = vpop.f32.mrf.mxu0  ;;  %10912 = vmatmul.mubr.msk.bf16.gmra.mxu0 %vm1457_vm0, %v11209_v58  ;;  %v12310_v26 = vshll.u32 %v10348_v61, 16  ;;  %v4224_v59 = vrot.slane %v4223_v0, 4  ;;  %v4233_v23 = vrot.slane %v4231_v30, 4  ;;  %v4219_v61 = vsel %vm11957_vm3, %v4214_v24, %v12261_v2  ;;  %v11214_v2 = vld [vmem:[%s17107_s0 + $0x250] sm:$0xff]  }
 0x142   : > { %10915 = vmatprep.mubr.msk.bf16.mxu0 %vm1457_vm0, %v11210_v22  ;;  %v12274_v5 = vmax.f32 %v2000_v31, 0.0  ;;  %v2021_v58 = vadd.f32 %v10817_v44, %v11886_v55  ;;  %v3067_v31 = vpack.c.bf16 %v2844_v8, %v12233_v47  ;;  %v10349_v44 = vpack.c.bf16 %v12272_v1, %v12272_v1 }
 0x143   : > { %v2012_v43 = vpop.f32.mrf.mxu0  ;;  %v10351_v47 = vpack.c.bf16 %v12270_v7, %v12270_v7  ;;  %v12304_v39 = vpack.c.bf16 %v12279_v16, %v12279_v16 }
 0x144   : > { %v10350_v50 = vpack.c.bf16 %v12274_v5, %v12274_v5  ;;  %v12300_v8 = vmax.f32 %v2021_v58, 0.0  ;;  %v2013_v4 = vadd.f32 %v11886_v55, %v2012_v43  ;;  %v4255_v14 = vshrl.u32 %v10349_v44, 16 }
 0x145   : > { %v10818_v22 = vpop.f32.mrf.mxu0  ;;  %v4258_v33 = vshll.u32 %v10349_v44, 16  ;;  %v12313_v58 = vunpack.c.h.b16 %v3067_v31  ;;  %v4236_v43 = vrot.slane %v4234_v41, 5  ;;  %v12317_v48 = vshll.u32 %v10351_v47, 16  ;;  %v11213_v41 = vld [vmem:[%s17107_s0 + $0x248] sm:$0xff]  }
 0x146   : > { %v4264_v35 = vshll.u32 %v10350_v50, 16  ;;  %v4268_v60 = vshrl.u32 %v10350_v50, 16  ;;  %v4279_v6 = vshrl.u32 %v12304_v39, 16  ;;  %v4229_v31 = vsel %vm11957_vm3, %v4224_v59, %v4228_v29 }
 0x147   : > { %v2015_v18 = vpop.f32.mrf.mxu0  ;;  %v12327_v44 = vmax.f32 %v2013_v4, 0.0  ;;  %v4257_v50 = vrot.slane %v4255_v14, 4  ;;  %v4260_v0 = vrot.slane %v4258_v33, 5  ;;  %v10019_v30 = vcombine.low %v4219_v61, %v4229_v31 }
 0x148   : > { %v2024_v47 = vadd.f32 %v10818_v22, %v11886_v55  ;;  %v12338_v24 = vrot.slane %v4264_v35, 5  ;;  %v4270_v29 = vrot.slane %v4268_v60, 4  ;;  %v2016_v4 = vadd.f32 %v11886_v55, %v2015_v18 }
 0x149   : > { %v10821_v28 = vpop.f32.mrf.mxu0  ;;  %10916 = vmatmul.mubr.msk.bf16.gmra.mxu0 %vm1457_vm0, %v11211_v11  ;;  %v10355_v11 = vpack.c.bf16 %v12300_v8, %v12300_v8  ;;  %v10353_v59 = vpack.c.bf16 %v12327_v44, %v12327_v44  ;;  %v4282_v62 = vshll.u32 %v12304_v39, 16  ;;  %5874 = vrot.lane.b32.xlu0 %v10019_v30, %s11528_s28  ;;  %v4237_v14 = vor.u32 %v4236_v43, %v4233_v23 }
 0x14a   : > { %10919 = vmatprep.mubr.msk.bf16.mxu0 %vm1457_vm0, %v11212_v34  ;;  %v12345_v33 = vmax.f32 %v2024_v47, 0.0  ;;  %v2037_v22 = vadd.f32 %v10821_v28, %v11886_v55  ;;  %v12348_v31 = vmax.f32 %v2016_v4, 0.0  ;;  %v4247_v60 = vor.u32 %v12293_v45, %v12291_v46 }
 0x14b   : > { %v12315_v9 = vpop.f32.mrf.mxu0  ;;  %v4288_v61 = vshll.u32 %v10353_v59, 16  ;;  %v4292_v35 = vshrl.u32 %v10353_v59, 16  ;;  %v4303_v18 = vshrl.u32 %v10355_v11, 16  ;;  %v4306_v39 = vshll.u32 %v10355_v11, 16 }
 0x14c   : > { %v10356_v30 = vpack.c.bf16 %v12345_v33, %v12345_v33  ;;  %v4238_v47 = vrot.slane %v4237_v14, 4  ;;  %v4252_v28 = vrot.slane %v12310_v26, 5  ;;  %v4261_v23 = vor.u32 %v4260_v0, %v4257_v50 }
 0x14d   : > { %v12329_v34 = vpop.f32.mrf.mxu0  ;;  %v3070_v43 = vpack.c.bf16 %v12279_v16, %v12270_v7  ;;  %v4271_v45 = vor.u32 %v4270_v29, %v12338_v24  ;;  %v4276_v4 = vrot.slane %v12317_v48, 5  ;;  %v12363_v37 = vrot.slane %v4288_v61, 5 }
 0x14e   : > { %v17370_v11 = vpack.c.bf16 %v12188_v57, %v12185_v52  ;;  %v4294_v26 = vrot.slane %v4292_v35, 4  ;;  %v10354_v50 = vpack.c.bf16 %v12348_v31, %v12348_v31  ;;  %v4243_v7 = vsel %vm11957_vm3, %v4238_v47, %v12291_v46 }
 0x14f   : > { %v2031_v15 = vpop.f32.mrf.mxu0  ;;  %v4248_v16 = vrot.slane %v4247_v60, 4  ;;  %v4284_v0 = vrot.slane %v4282_v62, 5  ;;  %v12381_v52 = vrot.slane %v4303_v18, 4  ;;  %v12383_v57 = vrot.slane %v4306_v39, 5 }
 0x150   : > { %5730 = vrot.lane.b32.xlu0 %v17370_v11, %s11528_s28  ;;  %v4312_v29 = vshll.u32 %v10356_v30, 16  ;;  %v4262_v14 = vrot.slane %v4261_v23, 4  ;;  %v4272_v61 = vrot.slane %v4271_v45, 4  ;;  %v2029_v35 = vadd.f32 %v11886_v55, %v12315_v9 }
 0x151   : > { %v12352_v10 = vpop.f32.mrf.mxu0  ;;  %10920 = vmatmul.mubr.msk.bf16.gmra.mxu0 %vm1457_vm0, %v11213_v41  ;;  %v4281_v41 = vrot.slane %v4279_v6, 4  ;;  %v11215_v6 = vld [vmem:[%s17107_s0 + $0x258] sm:$0xff]   ;;  %v4253_v46 = vsel %vm11957_vm3, %v4248_v16, %v4252_v28  ;;  %v12394_v62 = vunpack.c.h.b16 %v3070_v43  ;;  %v4316_v18 = vshrl.u32 %v10356_v30, 16 }
 0x152   : > { %10923 = vmatprep.mubr.msk.bf16.mxu0 %vm1457_vm0, %v11214_v2  ;;  %v12369_v2 = vmax.f32 %v2037_v22, 0.0  ;;  %v11216_v22 = vld [vmem:[%s17107_s0 + $0x260] sm:$0xff]   ;;  %v10020_v47 = vcombine.low %v4243_v7, %v4253_v46  ;;  %v4295_v11 = vor.u32 %v4294_v26, %v12363_v37  ;;  %v4298_v36 = vshll.u32 %v10354_v50, 16 }
 0x153   : > { %v2044_v59 = vpop.f32.mrf.mxu0  ;;  %v12399_v23 = vmax.f32 %v2029_v35, 0.0  ;;  %v2032_v45 = vadd.f32 %v11886_v55, %v2031_v15  ;;  %v4285_v9 = vor.u32 %v4284_v0, %v4281_v41  ;;  %v12407_v43 = vrot.slane %v4312_v29, 5  ;;  %v11243_v29 = vld [vmem:[%s11725_s25 + $0x1b8] sm:$0xff]  }
 0x154   : > { %v10359_v39 = vpack.c.bf16 %v12369_v2, %v12369_v2  ;;  %v3071_v26 = vpack.c.bf16 %v12348_v31, %v12327_v44  ;;  %5876 = vrot.lane.b32.xlu1 %v10020_v47, %s11528_s28  ;;  %v2040_v15 = vadd.f32 %v12329_v34, %v11886_v55  ;;  %v4267_v41 = vsel %vm11957_vm3, %v4262_v14, %v12338_v24  ;;  %v11224_v34 = vld [vmem:[%s11725_s25 + $0x38] sm:$0xff]  }
 0x155   : > { %v12376_v48 = vpop.f32.mrf.mxu0  ;;  %v12415_v50 = vmax.f32 %v2032_v45, 0.0  ;;  %v4277_v7 = vsel %vm11957_vm3, %v4272_v61, %v4276_v4  ;;  %v10357_v44 = vpack.c.bf16 %v12399_v23, %v12399_v23  ;;  %v5713_v31 = vpack.c.b16 %v12308_v20, %v12313_v58  ;;  %v11217_v4 = vld [vmem:[%s17107_s0 + $0x268] sm:$0xff]   ;;  %v11218_v58 = vld [vmem:[%s17107_s0 + $0x270] sm:$0xff]  }
 0x156   : > { %v10021_v0 = vcombine.low %v4267_v41, %v4277_v7  ;;  %v4300_v46 = vrot.slane %v4298_v36, 5  ;;  %v4336_v35 = vshll.u32 %v10359_v39, 16  ;;  %v4340_v47 = vshrl.u32 %v10359_v39, 16 }
 0x157   : > { %v12392_v60 = vpop.f32.mrf.mxu0  ;;  %v10358_v14 = vpack.c.bf16 %v12415_v50, %v12415_v50  ;;  %v2053_v20 = vadd.f32 %v12352_v10, %v11886_v55  ;;  %v2045_v36 = vadd.f32 %v11886_v55, %v2044_v59  ;;  %v4286_v61 = vrot.slane %v4285_v9, 4  ;;  %v11225_v9 = vld [vmem:[%s11725_s25 + $0x30] sm:$0xff]  }
 0x158   : > { %5732 = vrot.lane.b32.xlu1 %v5713_v31, %s11528_s28  ;;  %5878 = vrot.lane.b32.xlu0 %v10021_v0, %s11528_s28  ;;  %v12445_v39 = vmax.f32 %v2040_v15, 0.0  ;;  %v17140_v10 = vmov 0   ;;  %v4322_v59 = vshll.u32 %v10357_v44, 16  ;;  %v12458_v0 = vrot.slane %v4336_v35, 5 }
 0x159   : > { %v12402_v28 = vpop.f32.mrf.mxu0  ;;  %10924 = vmatmul.mubr.msk.bf16.gmra.mxu0 %vm1457_vm0, %v11215_v6  ;;  %v4318_v6 = vrot.slane %v4316_v18, 4  ;;  %v3331_v18 = vunpack.c.l.b16 %v3071_v26  ;;  %7013 = vmatprep.subr.bf16.mxu1 %v17140_v10  ;;  %v4327_v41 = vshrl.u32 %v10358_v14, 16  ;;  %v4330_v7 = vshll.u32 %v10358_v14, 16  ;;  %v11257_v26 = vld [vmem:[%s11725_s25 + $0x1b0] sm:$0xff]  }
 0x15a   : > { %10927 = vmatprep.mubr.msk.bf16.mxu0 %vm1457_vm0, %v11216_v22  ;;  %v4296_v22 = vrot.slane %v4295_v11, 4  ;;  %v3069_v11 = vpack.c.bf16 %v12274_v5, %v12272_v1  ;;  %7544 = vmatprep.subr.bf16.mxu0 %v17140_v10  ;;  %v12453_v31 = vmax.f32 %v2045_v36, 0.0  ;;  %v12460_v5 = vrot.slane %v4340_v47, 4  ;;  %v11228_v36 = vld [vmem:[%s11725_s25 + $0x28] sm:$0xff]  }
 0x15b   : > { %v12422_v16 = vpop.f32.mrf.mxu0  ;;  %7014 = vmatpush1.bf16.msra.mxu1 %v11224_v34  ;;  %7545 = vmatpush1.bf16.msra.mxu0 %v11243_v29  ;;  %v4319_v15 = vor.u32 %v4318_v6, %v12407_v43  ;;  %v4329_v44 = vrot.slane %v4327_v41, 4  ;;  %v12468_v34 = vmax.f32 %v2053_v20, 0.0  ;;  %v2056_v6 = vadd.f32 %v12376_v48, %v11886_v55 }
 0x15c   : > { %v4301_v1 = vsel %vm11957_vm3, %v4296_v22, %v4300_v46  ;;  %7015 = vmatprep.subr.bf16.mxu1 %v17140_v10  ;;  %5734 = vrot.lane.b32.xlu1 %v3069_v11, %s11528_s28  ;;  %v4291_v29 = vsel %vm11957_vm3, %v4286_v61, %v12363_v37  ;;  %v4332_v22 = vrot.slane %v4330_v7, 5  ;;  %v10361_v46 = vpack.c.bf16 %v12453_v31, %v12453_v31 }
 0x15d   : > { %v12430_v24 = vpop.f32.mrf.mxu0  ;;  %v10022_v35 = vcombine.low %v4291_v29, %v4301_v1  ;;  %v2048_v47 = vadd.f32 %v11886_v55, %v12392_v60  ;;  %7546 = vmatprep.subr.bf16.mxu0 %v17140_v10  ;;  %v4324_v14 = vrot.slane %v4322_v59, 5  ;;  %v3074_v48 = vpack.c.bf16 %v12445_v39, %v12369_v2  ;;  %v11229_v1 = vld [vmem:[%s11725_s25 + $0x20] sm:$0xff]  }
 0x15e   : > { %v3073_v37 = vpack.c.bf16 %v12415_v50, %v12399_v23  ;;  %v5715_v20 = vpack.c.b16 %v3331_v18, %v12394_v62  ;;  %v3072_v60 = vpack.c.bf16 %v12345_v33, %v12300_v8  ;;  %v4320_v61 = vrot.slane %v4319_v15, 4  ;;  %v11219_v62 = vld [vmem:[%s17107_s0 + $0x278] sm:$0xff]   ;;  %v11220_v23 = vld [vmem:[%s17107_s0 + $0x280] sm:$0xff]  }
 0x15f   : > { %v12449_v45 = vpop.f32.mrf.mxu0  ;;  %7016 = vmatpush1.bf16.msra.mxu1 %v11225_v9  ;;  %7547 = vmatpush1.bf16.msra.mxu0 %v11257_v26  ;;  %v12496_v11 = vmax.f32 %v2048_v47, 0.0  ;;  %v10360_v8 = vpack.c.bf16 %v12445_v39, %v12445_v39  ;;  %v10363_v33 = vpack.c.bf16 %v12468_v34, %v12468_v34  ;;  %v4333_v50 = vor.u32 %v4332_v22, %v4329_v44  ;;  %v12524_v15 = vld [vmem:[%s11880_s15] ss:$0 sm:$0xff] }
 0x160   : > { %5880 = vrot.lane.b32.xlu0 %v10022_v35, %s11528_s28  ;;  %7017 = vmatprep.subr.bf16.mxu1 %v17140_v10  ;;  %v4351_v18 = vshrl.u32 %v10361_v46, 16  ;;  %v4354_v59 = vshll.u32 %v10361_v46, 16  ;;  %v3337_v7 = vunpack.c.l.b16 %v3074_v48  ;;  %v3336_v9 = vunpack.c.h.b16 %v3073_v37 }
 0x161   : > { %v12464_v30 = vpop.f32.mrf.mxu0  ;;  %10928 = vmatmul.mubr.msk.bf16.gmra.mxu0 %vm1457_vm0, %v11217_v4  ;;  %5736 = vrot.lane.b32.xlu1 %v5715_v20, %s11528_s28  ;;  %v10362_v39 = vpack.c.bf16 %v12496_v11, %v12496_v11  ;;  %v4325_v26 = vsel %vm11957_vm3, %v4320_v61, %v4324_v14  ;;  %v2069_v29 = vadd.f32 %v12524_v15, %v12402_v28  ;;  %v4346_v35 = vshll.u32 %v10360_v8, 16 }
 0x162   : > { %10931 = vmatprep.mubr.msk.bf16.mxu0 %vm1457_vm0, %v11218_v58  ;;  %v17371_v58 = vor.u32 %v12383_v57, %v12381_v52  ;;  %v4343_v52 = vor.u32 %v12460_v5, %v12458_v0  ;;  %v12510_v57 = vmax.f32 %v2056_v6, 0.0  ;;  %7548 = vmatprep.subr.bf16.mxu0 %v17140_v10  ;;  %v2061_v5 = vadd.f32 %v12524_v15, %v12422_v16 }
 0x163   : > { %v12481_v4 = vpop.f32.mrf.mxu0  ;;  %7018 = vmatpush1.bf16.msra.mxu1 %v11228_v36  ;;  %v4360_v44 = vshll.u32 %v10362_v39, 16  ;;  %v4364_v6 = vshrl.u32 %v10362_v39, 16  ;;  %v12538_v47 = vshll.u32 %v10363_v33, 16  ;;  %v4334_v28 = vrot.slane %v4333_v50, 4 }
 0x164   : > { %v4310_v55 = vrot.slane %v17371_v58, 4  ;;  %7019 = vmatprep.subr.bf16.mxu1 %v17140_v10  ;;  %v10364_v16 = vpack.c.bf16 %v12510_v57, %v12510_v57  ;;  %v4356_v48 = vrot.slane %v4354_v59, 5  ;;  %v12544_v37 = vmax.f32 %v2061_v5, 0.0 }
 0x165   : > { %v12498_v2 = vpop.f32.mrf.mxu0  ;;  %5738 = vrot.lane.b32.xlu1 %v3072_v60, %s11528_s28  ;;  %v12548_v36 = vrot.slane %v4360_v44, 5  ;;  %v4366_v58 = vrot.slane %v4364_v6, 4  ;;  %v5717_v61 = vpack.c.b16 %v3337_v7, %v3336_v9  ;;  %v11232_v60 = vld [vmem:[%s11725_s25 + $0x18] sm:$0xff]   ;;  %v12556_v8 = vmax.f32 %v2069_v29, 0.0  ;;  %v11233_v29 = vld [vmem:[%s11725_s25 + $0x10] sm:$0xff]  }
 0x166   : > { %v4315_v22 = vsel %vm11957_vm3, %v4310_v55, %v12407_v43  ;;  %v4353_v43 = vrot.slane %v4351_v18, 4  ;;  %v2072_v55 = vadd.f32 %v12524_v15, %v12430_v24  ;;  %v10365_v33 = vpack.c.bf16 %v12544_v37, %v12544_v37  ;;  %v11221_v24 = vld [vmem:[%s17107_s0 + $0x288] sm:$0xff]  }
 0x167   : > { %v12519_v41 = vpop.f32.mrf.mxu0  ;;  %v10023_v14 = vcombine.low %v4315_v22, %v4325_v26  ;;  %7020 = vmatpush1.bf16.msra.mxu1 %v11229_v1  ;;  %v17372_v18 = vpack.c.bf16 %v12050_v25, %v12048_v21  ;;  %v4348_v59 = vrot.slane %v4346_v35, 5  ;;  %v4375_v7 = vshrl.u32 %v10364_v16, 16 }
 0x168   : > { %7021 = vmatprep.subr.bf16.mxu1 %v17140_v10  ;;  %v12573_v39 = vmax.f32 %v2072_v55, 0.0  ;;  %v4384_v9 = vshll.u32 %v10365_v33, 16  ;;  %v4388_v26 = vshrl.u32 %v10365_v33, 16  ;;  %v4357_v21 = vor.u32 %v4356_v48, %v4353_v43 }
 0x169   : > { %v12534_v46 = vpop.f32.mrf.mxu0  ;;  %10932 = vmatmul.mubr.msk.bf16.gmra.mxu0 %vm1457_vm0, %v11219_v62  ;;  %5882 = vrot.lane.b32.xlu0 %v10023_v14, %s11528_s28  ;;  %v3076_v62 = vpack.c.bf16 %v12510_v57, %v12468_v34  ;;  %v12571_v34 = vunpack.c.l.b16 %v17372_v18  ;;  %v4344_v57 = vrot.slane %v4343_v52, 4  ;;  %v4378_v44 = vshll.u32 %v10364_v16, 16 }
 0x16a   : > { %10935 = vmatprep.mubr.msk.bf16.mxu0 %vm1457_vm0, %v11220_v23  ;;  %v2064_v23 = vadd.f32 %v12524_v15, %v12449_v45  ;;  %5740 = vrot.lane.b32.xlu1 %v5717_v61, %s11528_s28  ;;  %v11222_v45 = vld [vmem:[%s17107_s0 + $0x290] sm:$0xff]   ;;  %v4367_v6 = vor.u32 %v4366_v58, %v12548_v36  ;;  %v4339_v52 = vsel %vm11957_vm3, %v4334_v28, %v12458_v0  ;;  %v4372_v14 = vrot.slane %v12538_v47, 5 }
 0x16b   : > { %v12546_v20 = vpop.f32.mrf.mxu0  ;;  %7022 = vmatpush1.bf16.msra.mxu1 %v11232_v60  ;;  %v17373_v22 = vpack.c.bf16 %v12050_v25, %v12050_v25  ;;  %v12592_v55 = vunpack.c.h.b16 %v3076_v62  ;;  %v10367_v16 = vpack.c.bf16 %v12556_v8, %v12556_v8  ;;  %v10368_v0 = vpack.c.bf16 %v12573_v39, %v12573_v39 }
 0x16c   : > { %v2864_v5 = vmax.f32 %v2064_v23, 0.0  ;;  %7023 = vmatprep.subr.bf16.mxu1 %v17140_v10  ;;  %v2085_v47 = vadd.f32 %v12524_v15, %v12464_v30  ;;  %v4349_v28 = vsel %vm11957_vm3, %v4344_v57, %v4348_v59  ;;  %v12608_v48 = vrot.slane %v4384_v9, 5 }
 0x16d   : > { %v12562_v50 = vpop.f32.mrf.mxu0  ;;  %v12589_v35 = vshll.u32 %v17373_v22, 16  ;;  %v4390_v58 = vrot.slane %v4388_v26, 4  ;;  %v10024_v60 = vcombine.low %v4339_v52, %v4349_v28  ;;  %v4358_v33 = vrot.slane %v4357_v21, 4 }
 0x16e   : > { %v3077_v25 = vpack.c.bf16 %v2864_v5, %v12544_v37  ;;  %v10366_v61 = vpack.c.bf16 %v2864_v5, %v2864_v5  ;;  %v4377_v23 = vrot.slane %v4375_v7, 4  ;;  %v4368_v18 = vrot.slane %v4367_v6, 4  ;;  %v11236_v37 = vld [vmem:[%s11725_s25 + $0x8] sm:$0xff]   ;;  %v11223_v7 = vld [vmem:[%s17107_s0 + $0x298] sm:$0xff]  }
 0x16f   : > { %v12579_v1 = vpop.f32.mrf.mxu0  ;;  %7024 = vmatpush1.bf16.msra.mxu1 %v11233_v29  ;;  %v4399_v22 = vshrl.u32 %v10367_v16, 16  ;;  %v4402_v30 = vshll.u32 %v10367_v16, 16  ;;  %5884 = vrot.lane.b32.xlu0 %v10024_v60, %s11528_s28  ;;  %v3075_v57 = vpack.c.bf16 %v12496_v11, %v12453_v31  ;;  %v2077_v59 = vadd.f32 %v12524_v15, %v12481_v4  ;;  %v11226_v31 = vld [vmem:[%s17107_s0 + $0x2a0] sm:$0xff]  }
 0x170   : > { %7025 = vmatprep.subr.bf16.mxu1 %v17140_v10  ;;  %v4408_v9 = vshll.u32 %v10368_v0, 16  ;;  %v3343_v26 = vunpack.c.l.b16 %v3077_v25  ;;  %v12624_v5 = vmax.f32 %v2085_v47, 0.0  ;;  %v2088_v21 = vadd.f32 %v12524_v15, %v12498_v2  ;;  %v11237_v47 = vld [vmem:[%s11725_s25] sm:$0xff]  }
 0x171   : > { %v12596_v43 = vpop.f32.mrf.mxu0  ;;  %10936 = vmatmul.mubr.msk.bf16.gmra.mxu0 %vm1457_vm0, %v11221_v24  ;;  %v4380_v24 = vrot.slane %v4378_v44, 5  ;;  %v4391_v4 = vor.u32 %v4390_v58, %v12608_v48  ;;  %v4394_v11 = vshll.u32 %v10366_v61, 16  ;;  %5742 = vrot.lane.b32.xlu1 %v3075_v57, %s11528_s28  ;;  %v12633_v44 = vmax.f32 %v2077_v59, 0.0 }
 0x172   : > { %10939 = vmatprep.mubr.msk.bf16.mxu0 %vm1457_vm0, %v11222_v45  ;;  %v2080_v6 = vadd.f32 %v12524_v15, %v12519_v41  ;;  %v4412_v29 = vshrl.u32 %v10368_v0, 16  ;;  %v12639_v16 = vmax.f32 %v2088_v21, 0.0  ;;  %v4363_v2 = vsel %vm11957_vm3, %v4358_v33, %v12548_v36 }
 0x173   : > { %v12610_v62 = vpop.f32.mrf.mxu0  ;;  %v4373_v25 = vsel %vm11957_vm3, %v4368_v18, %v4372_v14  ;;  %7026 = vmatpush1.bf16.msra.mxu1 %v11236_v37  ;;  %v4381_v28 = vor.u32 %v4380_v24, %v4377_v23  ;;  %v4401_v58 = vrot.slane %v4399_v22, 4  ;;  %v10369_v0 = vpack.c.bf16 %v12633_v44, %v12633_v44 }
 0x174   : > { %v12647_v61 = vmax.f32 %v2080_v6, 0.0  ;;  %v10025_v60 = vcombine.low %v4363_v2, %v4373_v25  ;;  %7027 = vmatprep.subr.bf16.mxu1 %v17140_v10  ;;  %v2101_v14 = vadd.f32 %v12524_v15, %v12534_v46  ;;  %v5719_v33 = vpack.c.b16 %v3343_v26, %v12592_v55 }
 0x175   : > { %v12618_v45 = vpop.f32.mrf.mxu0  ;;  %v4404_v23 = vrot.slane %v4402_v30, 5  ;;  %v4392_v24 = vrot.slane %v4391_v4, 4  ;;  %v4396_v18 = vrot.slane %v4394_v11, 5  ;;  %v10333_v57 = vpack.c.bf16 %v12090_v17, %v12090_v17  ;;  %v11240_v30 = vld [vmem:[%s11725_s25 + $0x78] sm:$0xff]   ;;  %v11227_v11 = vld [vmem:[%s17107_s0 + $0x2a8] sm:$0xff]  }
 0x176   : > { %5886 = vrot.lane.b32.xlu0 %v10025_v60, %s11528_s28  ;;  %v12668_v59 = vrot.slane %v4408_v9, 5  ;;  %v4414_v46 = vrot.slane %v4412_v29, 4  ;;  %5744 = vrot.lane.b32.xlu1 %v5719_v33, %s11528_s28  ;;  %v2104_v55 = vadd.f32 %v12524_v15, %v12562_v50  ;;  %v3952_v21 = vshll.u32 %v12258_v12, 16 }
 0x177   : > { %v12637_v52 = vpop.f32.mrf.mxu0  ;;  %7028 = vmatpush1.bf16.msra.mxu1 %v11237_v47  ;;  %v4382_v4 = vrot.slane %v4381_v28, 4  ;;  %v3078_v50 = vpack.c.bf16 %v12573_v39, %v12556_v8  ;;  %v12689_v6 = vmax.f32 %v2101_v14, 0.0  ;;  %v10334_v2 = vpack.c.bf16 %v12092_v63, %v12092_v63 }
 0x178   : > { %7029 = vmatprep.subr.bf16.mxu1 %v17140_v10  ;;  %v12691_v29 = vmax.f32 %v2104_v55, 0.0  ;;  %v4405_v25 = vor.u32 %v4404_v23, %v4401_v58  ;;  %v2093_v47 = vadd.f32 %v12524_v15, %v12546_v20  ;;  %v4397_v8 = vsel %vm11957_vm3, %v4392_v24, %v4396_v18  ;;  %v11241_v20 = vld [vmem:[%s11725_s25 + $0x70] sm:$0xff]  }
 0x179   : > { %v12649_v41 = vpop.f32.mrf.mxu0  ;;  %10940 = vmatmul.mubr.msk.bf16.gmra.mxu0 %vm1457_vm0, %v11223_v7  ;;  %v17374_v7 = vor.u32 %v12231_v40, %v12229_v3  ;;  %v4418_v40 = vshll.u32 %v10369_v0, 16  ;;  %v4415_v60 = vor.u32 %v4414_v46, %v12668_v59  ;;  %v4387_v14 = vsel %vm11957_vm3, %v4382_v4, %v12608_v48 }
 0x17a   : > { %10943 = vmatprep.mubr.msk.bf16.mxu0 %vm1457_vm0, %v11226_v31  ;;  %v3956_v31 = vshrl.u32 %v12258_v12, 16  ;;  %v11230_v12 = vld [vmem:[%s17107_s0 + $0x2b0] sm:$0xff]   ;;  %5746 = vrot.lane.b32.xlu1 %v3078_v50, %s11528_s28  ;;  %v12713_v58 = vshll.u32 %v10333_v57, 16  ;;  %v10337_v33 = vpack.c.bf16 %v12158_v51, %v12158_v51  ;;  %v10026_v23 = vcombine.low %v4387_v14, %v4397_v8 }
 0x17b   : > { %v12664_v22 = vpop.f32.mrf.mxu0  ;;  %v12677_v26 = vrot.slane %v17374_v7, 4  ;;  %7030 = vmatpush2.bf16.msra.mxu1 %v11240_v30  ;;  %v2096_v24 = vadd.f32 %v12524_v15, %v12579_v1  ;;  %v12722_v46 = vrot.slane %v3952_v21, 5  ;;  %v10336_v48 = vpack.c.bf16 %v12067_v54, %v12067_v54 }
 0x17c   : > { %17376 = vst [vmem:[#allocation46_spill] sm:$0xff] %v12713_v58  ;;  %v10340_v57 = vpack.c.bf16 %v12129_v49, %v12129_v49  ;;  %v4420_v55 = vrot.slane %v4418_v40, 5  ;;  %7031 = vmatprep.subr.bf16.mxu1 %v17140_v10  ;;  %v10338_v1 = vpack.c.bf16 %v12160_v56, %v12160_v56  ;;  %v4406_v30 = vrot.slane %v4405_v25, 4  ;;  %5888 = vrot.lane.b32.xlu0 %v10026_v23, %s11528_s28  ;;  %v11245_v25 = vld [vmem:[%s11725_s25 + $0x68] sm:$0xff]  }
 0x17d   : > { %17375 = vst [vmem:[#allocation45_spill] sm:$0xff] %v12677_v26  ;;  %v12681_v9 = vpop.f32.mrf.mxu0  ;;  %17377 = vst [vmem:[#allocation47_spill] sm:$0xff] %v12722_v46  ;;  %v12732_v7 = vmax.f32 %v2093_v47, 0.0  ;;  %v12735_v21 = vmax.f32 %v2096_v24, 0.0  ;;  %v17380_v50 = vpack.c.bf16 %v12067_v54, %v12065_v53  ;;  %v4416_v8 = vrot.slane %v4415_v60, 4 }
 0x17e   : > { %v3946_v47 = vshll.u32 %v10334_v2, 16  ;;  %v3967_v14 = vshrl.u32 %v10337_v33, 16  ;;  %v3970_v28 = vshll.u32 %v10337_v33, 16  ;;  %v5503_v53 = vshrl.u32 %v10340_v57, 16  ;;  %v11266_v33 = vld [vmem:[%s11725_s25 + $0x1a8] sm:$0xff]  }
 0x17f   : > { %v12702_v39 = vpop.f32.mrf.mxu0  ;;  %17378 = vst [vmem:[#allocation48_spill] sm:$0xff] %v12732_v7  ;;  %17379 = vst [vmem:[#allocation49_spill] sm:$0xff] %v12735_v21  ;;  %v12744_v40 = vunpack.c.l.b16 %v17380_v50  ;;  %7032 = vmatpush2.bf16.msra.mxu1 %v11241_v20  ;;  %v2117_v54 = vadd.f32 %v12524_v15, %v12596_v43  ;;  %v2120_v60 = vadd.f32 %v12524_v15, %v12618_v45  ;;  %v11234_v20 = vld [vmem:[%s17107_s0 + $0x2c0] sm:$0xff]   ;;  %v5506_v50 = vshll.u32 %v10340_v57, 16 }
 0x180   : > { %7033 = vmatprep.subr.bf16.mxu1 %v17140_v10  ;;  %v3976_v23 = vshll.u32 %v10338_v1, 16  ;;  %v3980_v0 = vshrl.u32 %v10338_v1, 16  ;;  %v4411_v37 = vsel %vm11957_vm3, %v4406_v30, %v12668_v59  ;;  %v12770_v43 = vshll.u32 %v10336_v48, 16  ;;  %v11246_v10 = vld [vmem:[%s11725_s25 + $0x60] sm:$0xff]   ;;  %7549 = vmatpush1.bf16.msra.mxu0 %v11266_v33 }
 0x181   : > { %v12719_v18 = vpop.f32.mrf.mxu0  ;;  %10944 = vmatmul.mubr.msk.bf16.gmra.mxu0 %vm1457_vm0, %v11227_v11  ;;  %v12739_v11 = vrot.slane %v3956_v31, 4  ;;  %17381 = vst [vmem:[#allocation50_spill] sm:$0xff] %v12744_v40  ;;  %v11231_v31 = vld [vmem:[%s17107_s0 + $0x2b8] sm:$0xff]   ;;  %v10341_v45 = vpack.c.bf16 %v12204_v13, %v12204_v13  ;;  %v3948_v1 = vrot.slane %v3946_v47, 5  ;;  %v3969_v51 = vrot.slane %v3967_v14, 4 }
 0x182   : > { %10947 = vmatprep.mubr.msk.bf16.mxu0 %vm1457_vm0, %v11230_v12  ;;  %v3943_v12 = vshrl.u32 %v10334_v2, 16  ;;  %v4421_v2 = vsel %vm11957_vm3, %v4416_v8, %v4420_v55  ;;  %17382 = vst [vmem:[#allocation51_spill] sm:$0xff] %v12770_v43  ;;  %v10339_v55 = vpack.c.bf16 %v12127_v38, %v12127_v38  ;;  %v2109_v59 = vadd.f32 %v12524_v15, %v12610_v62 }
 0x183   : > { %v12737_v4 = vpop.f32.mrf.mxu0  ;;  %v10027_v8 = vcombine.low %v4411_v37, %v4421_v2  ;;  %7034 = vmatpush2.bf16.msra.mxu1 %v11245_v25  ;;  %v17383_v48 = vmov 0   ;;  %v3972_v56 = vrot.slane %v3970_v28, 5  ;;  %v12783_v40 = vmax.f32 %v2117_v54, 0.0 }
 0x184   : > { %v3945_v57 = vrot.slane %v3943_v12, 4  ;;  %7035 = vmatprep.subr.bf16.mxu1 %v17383_v48  ;;  %v12786_v37 = vmax.f32 %v2120_v60, 0.0  ;;  %v2112_v12 = vadd.f32 %v12524_v15, %v12637_v52  ;;  %v5505_v62 = vrot.slane %v5503_v53, 4  ;;  %7550 = vmatprep.subr.bf16.mxu0 %v17383_v48  ;;  %v11249_v52 = vld [vmem:[%s11725_s25 + $0x58] sm:$0xff]  }
 0x185   : > { %v12749_v24 = vpop.f32.mrf.mxu0  ;;  %17384 = vst [vmem:[#allocation52_spill] sm:$0xff] %v12783_v40  ;;  %5890 = vrot.lane.b32.xlu0 %v10027_v8, %s11528_s28  ;;  %v5508_v25 = vrot.slane %v5506_v50, 5  ;;  %v12791_v47 = vrot.slane %v3976_v23, 5  ;;  %v3982_v14 = vrot.slane %v3980_v0, 4  ;;  %v5512_v28 = vshll.u32 %v10341_v45, 16  ;;  %v11235_v50 = vld [vmem:[%s17107_s0 + $0x2c8] sm:$0xff]  }
 0x186   : > { %17385 = vst [vmem:[#allocation53_spill] sm:$0xff] %v12786_v37  ;;  %v5516_v54 = vshrl.u32 %v10341_v45, 16  ;;  %v2136_v60 = vadd.f32 %v12524_v15, %v12681_v9  ;;  %v10371_v53 = vpack.c.bf16 %v12624_v5, %v12624_v5  ;;  %v12803_v23 = vmax.f32 %v2109_v59, 0.0 }
 0x187   : > { %v12768_v36 = vpop.f32.mrf.mxu0  ;;  %17386 = vst [vmem:[#allocation54_spill] sm:$0xff] %v12791_v47  ;;  %7036 = vmatpush2.bf16.msra.mxu1 %v11246_v10  ;;  %v12805_v0 = vmax.f32 %v2112_v12, 0.0  ;;  %v3959_v10 = vor.u32 %v12739_v11, %v12722_v46  ;;  %v12819_v8 = vshll.u32 %v10339_v55, 16  ;;  %v3949_v59 = vor.u32 %v3948_v1, %v3945_v57  ;;  %v11250_v55 = vld [vmem:[%s11725_s25 + $0x50] sm:$0xff]  }
 0x188   : > { %7037 = vmatprep.subr.bf16.mxu1 %v17383_v48  ;;  %v3973_v12 = vor.u32 %v3972_v56, %v3969_v51  ;;  %v5509_v2 = vor.u32 %v5508_v25, %v5505_v62  ;;  %v3983_v11 = vor.u32 %v3982_v14, %v12791_v47  ;;  %v12829_v46 = vrot.slane %v5512_v28, 5 }
 0x189   : > { %v12779_v30 = vpop.f32.mrf.mxu0  ;;  %10948 = vmatmul.mubr.msk.bf16.gmra.mxu0 %vm1457_vm0, %v11231_v31  ;;  %17387 = vst [vmem:[#allocation55_spill] sm:$0xff] %v12819_v8  ;;  %v5518_v9 = vrot.slane %v5516_v54, 4  ;;  %v12831_v45 = vmax.f32 %v2136_v60, 0.0  ;;  %v17389_v43 = vpack.c.bf16 %v12092_v63, %v12090_v17  ;;  %v5560_v51 = vshll.u32 %v10371_v53, 16 }
 0x18a   : > { %10951 = vmatprep.mubr.msk.bf16.mxu0 %vm1457_vm0, %v11234_v20  ;;  %v2133_v20 = vadd.f32 %v12524_v15, %v12649_v41  ;;  %v11238_v41 = vld [vmem:[%s17107_s0 + $0x2d0] sm:$0xff]   ;;  %17388 = vst [vmem:[#allocation56_spill] sm:$0xff] %v12829_v46  ;;  %v5564_v56 = vshrl.u32 %v10371_v53, 16  ;;  %v12845_v25 = vrot.slane %v3959_v10, 4  ;;  %v17392_v17 = vpack.c.bf16 %v12129_v49, %v12127_v38 }
 0x18b   : > { %v12793_v31 = vpop.f32.mrf.mxu0  ;;  %7038 = vmatpush2.bf16.msra.mxu1 %v11249_v52  ;;  %v12837_v57 = vunpack.c.h.b16 %v17389_v43  ;;  %v2125_v43 = vadd.f32 %v12524_v15, %v12664_v22  ;;  %v12856_v28 = vrot.slane %v3949_v59, 4  ;;  %v12858_v54 = vrot.slane %v3973_v12, 4 }
 0x18c   : > { %v12839_v1 = vmax.f32 %v2133_v20, 0.0  ;;  %7039 = vmatprep.subr.bf16.mxu1 %v17383_v48  ;;  %17391 = vst [vmem:[#allocation58_spill] sm:$0xff] %v12845_v25  ;;  %v12851_v63 = vunpack.c.h.b16 %v17392_v17  ;;  %v10370_v60 = vpack.c.bf16 %v12647_v61, %v12647_v61  ;;  %v12866_v49 = vrot.slane %v5509_v2, 4 }
 0x18d   : > { %v12809_v33 = vpop.f32.mrf.mxu0  ;;  %17390 = vst [vmem:[#allocation57_spill] sm:$0xff] %v12837_v57  ;;  %17394 = vst [vmem:[#allocation60_spill] sm:$0xff] %v12856_v28  ;;  %v12868_v38 = vrot.slane %v3983_v11, 4  ;;  %v5519_v22 = vor.u32 %v5518_v9, %v12829_v46  ;;  %v2128_v20 = vadd.f32 %v12524_v15, %v12702_v39  ;;  %v10342_v10 = vpack.c.bf16 %v12208_v32, %v12208_v32  ;;  %v11239_v9 = vld [vmem:[%s17107_s0 + $0x2d8] sm:$0xff]  }
 0x18e   : > { %17393 = vst [vmem:[#allocation59_spill] sm:$0xff] %v12851_v63  ;;  %17395 = vst [vmem:[#allocation61_spill] sm:$0xff] %v12858_v54  ;;  %v5566_v59 = vrot.slane %v5564_v56, 4  ;;  %v2149_v12 = vadd.f32 %v12524_v15, %v12719_v18  ;;  %v12886_v39 = vmax.f32 %v2125_v43, 0.0  ;;  %v11242_v18 = vld [vmem:[%s17107_s0 + $0x2e0] sm:$0xff]   ;;  %v10372_v56 = vpack.c.bf16 %v12639_v16, %v12639_v16 }
 0x18f   : > { %v12826_v3 = vpop.f32.mrf.mxu0  ;;  %17396 = vst [vmem:[#allocation62_spill] sm:$0xff] %v12866_v49  ;;  %17397 = vst [vmem:[#allocation63_spill] sm:$0xff] %v12868_v38  ;;  %7040 = vmatpush2.bf16.msra.mxu1 %v11250_v55  ;;  %v12888_v11 = vmax.f32 %v2128_v20, 0.0  ;;  %v2141_v55 = vadd.f32 %v12524_v15, %v12737_v4  ;;  %v5551_v17 = vshrl.u32 %v10370_v60, 16  ;;  %v10375_v43 = vpack.c.bf16 %v12689_v6, %v12689_v6  ;;  %v11254_v49 = vld [vmem:[%s11725_s25 + $0x40] sm:$0xff]  }
 0x190   : > { %7041 = vmatprep.subr.bf16.mxu1 %v17383_v48  ;;  %v2144_v20 = vadd.f32 %v12524_v15, %v12768_v36  ;;  %v5554_v4 = vshll.u32 %v10370_v60, 16  ;;  %v10376_v52 = vpack.c.bf16 %v12691_v29, %v12691_v29  ;;  %v12912_v46 = vmax.f32 %v2149_v12, 0.0 }
 0x191   : > { %v12841_v62 = vpop.f32.mrf.mxu0  ;;  %10952 = vmatmul.mubr.msk.bf16.gmra.mxu0 %vm1457_vm0, %v11235_v50  ;;  %v11253_v50 = vld [vmem:[%s11725_s25 + $0x48] sm:$0xff]   ;;  %v12914_v63 = vmax.f32 %v2141_v55, 0.0  ;;  %v12926_v8 = vshll.u32 %v10342_v10, 16  ;;  %v10374_v12 = vpack.c.bf16 %v12735_v21, %v12735_v21  ;;  %v17403_v55 = vpack.c.bf16 %v12208_v32, %v12204_v13 }
 0x192   : > { %10955 = vmatprep.mubr.msk.bf16.mxu0 %vm1457_vm0, %v11238_v41  ;;  %v12876_v41 = vrot.slane %v5560_v51, 5  ;;  %v2152_v51 = vadd.f32 %v12524_v15, %v12749_v24  ;;  %v10373_v24 = vpack.c.bf16 %v12732_v7, %v12732_v7  ;;  %v12918_v36 = vmax.f32 %v2144_v20, 0.0  ;;  %v11244_v10 = vld [vmem:[%s17107_s0 + $0x2e8] sm:$0xff]  }
 0x193   : > { %v12864_v53 = vpop.f32.mrf.mxu0  ;;  %7042 = vmatpush2.bf16.msra.mxu1 %v11253_v50  ;;  %17399 = vst [vmem:[#allocation65_spill] sm:$0xff] %v12914_v63  ;;  %v12924_v7 = vrot.slane %v5519_v22, 4  ;;  %17402 = vst [vmem:[#allocation68_spill] sm:$0xff] %v12926_v8  ;;  %v12937_v20 = vshll.u32 %v10372_v56, 16  ;;  %v5556_v26 = vrot.slane %v5554_v4, 5  ;;  %v4663_v13 = vshrl.u32 %v10376_v52, 16 }
 0x194   : > { %17398 = vst [vmem:[#allocation64_spill] sm:$0xff] %v12876_v41  ;;  %v12916_v38 = vmax.f32 %v2152_v51, 0.0  ;;  %17400 = vst [vmem:[#allocation66_spill] sm:$0xff] %v12918_v36  ;;  %7043 = vmatprep.subr.bf16.mxu1 %v17383_v48  ;;  %v5567_v50 = vor.u32 %v5566_v59, %v12876_v41  ;;  %v12935_v51 = vunpack.c.l.b16 %v17403_v55  ;;  %v5553_v59 = vrot.slane %v5551_v17, 4 }
 0x195   : > { %v12880_v2 = vpop.f32.mrf.mxu0  ;;  %17401 = vst [vmem:[#allocation67_spill] sm:$0xff] %v12924_v7  ;;  %17405 = vst [vmem:[#allocation70_spill] sm:$0xff] %v12937_v20  ;;  %v12945_v7 = vshll.u32 %v10375_v43, 16  ;;  %v4642_v21 = vshll.u32 %v10373_v24, 16  ;;  %v4666_v32 = vshll.u32 %v10376_v52, 16  ;;  %v10379_v56 = vpack.c.bf16 %v12783_v40, %v12783_v40 }
 0x196   : > { %17404 = vst [vmem:[#allocation69_spill] sm:$0xff] %v12935_v51  ;;  %v12956_v43 = vrot.slane %v5567_v50, 4  ;;  %v4648_v52 = vshll.u32 %v10374_v12, 16  ;;  %v17410_v51 = vpack.c.bf16 %v12647_v61, %v12633_v44  ;;  %v4652_v17 = vshrl.u32 %v10374_v12, 16 }
 0x197   : > { %v12903_v14 = vpop.f32.mrf.mxu0  ;;  %17406 = vst [vmem:[#allocation71_spill] sm:$0xff] %v12945_v7  ;;  %7044 = vmatpush2.bf16.msra.mxu1 %v11254_v49  ;;  %v17408_v49 = vpack.c.bf16 %v12639_v16, %v12624_v5  ;;  %v10377_v50 = vpack.c.bf16 %v12803_v23, %v12803_v23  ;;  %v5557_v5 = vor.u32 %v5556_v26, %v5553_v59  ;;  %v4644_v41 = vrot.slane %v4642_v21, 5 }
 0x198   : > { %7190 = vmatprep.subr.bf16.mxu1 %v17383_v48  ;;  %17407 = vst [vmem:[#allocation72_spill] sm:$0xff] %v12956_v43  ;;  %v12970_v40 = vunpack.c.h.b16 %v17410_v51  ;;  %v2165_v43 = vadd.f32 %v12524_v15, %v12779_v30  ;;  %v4665_v22 = vrot.slane %v4663_v13, 4  ;;  %v4668_v20 = vrot.slane %v4666_v32, 5 }
 0x199   : > { %v12920_v60 = vpop.f32.mrf.mxu0  ;;  %10956 = vmatmul.mubr.msk.bf16.gmra.mxu0 %vm1457_vm0, %v11239_v9  ;;  %v12961_v4 = vunpack.c.l.b16 %v17408_v49  ;;  %v12982_v61 = vrot.slane %v4648_v52, 5  ;;  %v4690_v12 = vshll.u32 %v10379_v56, 16  ;;  %v2157_v26 = vadd.f32 %v12524_v15, %v12793_v31 }
 0x19a   : > { %10959 = vmatprep.mubr.msk.bf16.mxu0 %vm1457_vm0, %v11242_v18  ;;  %v4639_v18 = vshrl.u32 %v10373_v24, 16  ;;  %v11247_v24 = vld [vmem:[%s17107_s0 + $0x2f0] sm:$0xff]   ;;  %17411 = vst [vmem:[#allocation74_spill] sm:$0xff] %v12970_v40  ;;  %v2168_v51 = vadd.f32 %v12524_v15, %v12809_v33  ;;  %v4654_v30 = vrot.slane %v4652_v17, 4  ;;  %v4672_v21 = vshll.u32 %v10377_v50, 16 }
 0x19b   : > { %v12943_v9 = vpop.f32.mrf.mxu0  ;;  %17409 = vst [vmem:[#allocation73_spill] sm:$0xff] %v12961_v4  ;;  %v4687_v4 = vshrl.u32 %v10379_v56, 16  ;;  %17412 = vst [vmem:[#allocation75_spill] sm:$0xff] %v12982_v61  ;;  %v4676_v59 = vshrl.u32 %v10377_v50, 16  ;;  %v12998_v56 = vmax.f32 %v2165_v43, 0.0  ;;  %v2160_v33 = vadd.f32 %v12524_v15, %v12826_v3  ;;  %v11251_v3 = vld [vmem:[%s17107_s0 + $0x300] sm:$0xff]  }
 0x19c   : > { %v4641_v49 = vrot.slane %v4639_v18, 4  ;;  %v10380_v18 = vpack.c.bf16 %v12786_v37, %v12786_v37  ;;  %v13000_v31 = vmax.f32 %v2168_v51, 0.0  ;;  %v4669_v52 = vor.u32 %v4668_v20, %v4665_v22 }
 0x19d   : > { %v12949_v55 = vpop.f32.mrf.mxu0  ;;  %17415 = vst [vmem:[#allocation77_spill] sm:$0xff] %v12998_v56  ;;  %v10383_v50 = vpack.c.bf16 %v12839_v1, %v12839_v1  ;;  %v13011_v43 = vmax.f32 %v2157_v26, 0.0  ;;  %v13021_v20 = vrot.slane %v4672_v21, 5  ;;  %v4678_v22 = vrot.slane %v4676_v59, 4 }
 0x19e   : > { %17416 = vst [vmem:[#allocation78_spill] sm:$0xff] %v13000_v31  ;;  %v4645_v17 = vor.u32 %v4644_v41, %v4641_v49  ;;  %v4655_v41 = vor.u32 %v4654_v30, %v12982_v61  ;;  %v4700_v26 = vshrl.u32 %v10380_v18, 16  ;;  %v2181_v51 = vadd.f32 %v12524_v15, %v12841_v62 }
 0x19f   : > { %v12974_v8 = vpop.f32.mrf.mxu0  ;;  %17417 = vst [vmem:[#allocation79_spill] sm:$0xff] %v13021_v20  ;;  %v10378_v30 = vpack.c.bf16 %v12805_v0, %v12805_v0  ;;  %v4720_v21 = vshll.u32 %v10383_v50, 16  ;;  %v2184_v59 = vadd.f32 %v12524_v15, %v12880_v2  ;;  %v2173_v62 = vadd.f32 %v12524_v15, %v12864_v53 }
 0x1a0   : > { %v13031_v37 = vrot.slane %v4645_v17, 4  ;;  %v11275_v17 = vld [vmem:[%s11725_s25 + $0x1a0] sm:$0xff]   ;;  %v4679_v61 = vor.u32 %v4678_v22, %v13021_v20  ;;  %v10381_v2 = vpack.c.bf16 %v12886_v39, %v12886_v39  ;;  %v2176_v53 = vadd.f32 %v12524_v15, %v12903_v14 }
 0x1a1   : > { %v12979_v44 = vpop.f32.mrf.mxu0  ;;  %10960 = vmatmul.mubr.msk.bf16.gmra.mxu0 %vm1457_vm0, %v11244_v10  ;;  %v17413_v10 = vpack.c.bf16 %v12691_v29, %v12689_v6  ;;  %v11248_v6 = vld [vmem:[%s17107_s0 + $0x2f8] sm:$0xff]   ;;  %v4692_v29 = vrot.slane %v4690_v12, 5  ;;  %v13025_v12 = vrot.slane %v5557_v5, 4  ;;  %v13040_v5 = vrot.slane %v4669_v52, 4 }
 0x1a2   : > { %10963 = vmatprep.mubr.msk.bf16.mxu0 %vm1457_vm0, %v11247_v24  ;;  %v4689_v24 = vrot.slane %v4687_v4, 4  ;;  %v4696_v4 = vshll.u32 %v10380_v18, 16  ;;  %17419 = vst [vmem:[#allocation81_spill] sm:$0xff] %v13031_v37  ;;  %v13046_v37 = vrot.slane %v4655_v41, 4  ;;  %v4702_v52 = vrot.slane %v4700_v26, 4  ;;  %7551 = vmatpush1.bf16.msra.mxu0 %v11275_v17 }
 0x1a3   : > { %v12991_v13 = vpop.f32.mrf.mxu0  ;;  %v12996_v32 = vunpack.c.h.b16 %v17413_v10  ;;  %v13015_v10 = vmax.f32 %v2160_v33, 0.0  ;;  %17418 = vst [vmem:[#allocation80_spill] sm:$0xff] %v13025_v12  ;;  %17420 = vst [vmem:[#allocation82_spill] sm:$0xff] %v13040_v5  ;;  %v4724_v33 = vshrl.u32 %v10383_v50, 16  ;;  %v13057_v50 = vmax.f32 %v2184_v59, 0.0  ;;  %7552 = vmatprep.subr.bf16.mxu0 %v17383_v48  ;;  %v11255_v59 = vld [vmem:[%s17107_s0 + $0x310] sm:$0xff]  }
 0x1a4   : > { %v4693_v18 = vor.u32 %v4692_v29, %v4689_v24  ;;  %17421 = vst [vmem:[#allocation83_spill] sm:$0xff] %v13046_v37  ;;  %v13049_v12 = vrot.slane %v4696_v4, 5  ;;  %v13055_v24 = vmax.f32 %v2181_v51, 0.0  ;;  %v13061_v29 = vshll.u32 %v10378_v30, 16  ;;  %v11252_v51 = vld [vmem:[%s17107_s0 + $0x308] sm:$0xff]  }
 0x1a5   : > { %17414 = vst [vmem:[#allocation76_spill] sm:$0xff] %v12996_v32  ;;  %v13006_v16 = vpop.f32.mrf.mxu0  ;;  %v10384_v41 = vpack.c.bf16 %v12831_v45, %v12831_v45  ;;  %v10382_v22 = vpack.c.bf16 %v12888_v11, %v12888_v11  ;;  %v4726_v14 = vrot.slane %v4724_v33, 4  ;;  %v13075_v26 = vmax.f32 %v2173_v62, 0.0 }
 0x1a6   : > { %17422 = vst [vmem:[#allocation84_spill] sm:$0xff] %v13049_v12  ;;  %17423 = vst [vmem:[#allocation85_spill] sm:$0xff] %v13061_v29  ;;  %v13084_v17 = vrot.slane %v4693_v18, 4  ;;  %v17426_v37 = vpack.c.bf16 %v12805_v0, %v12803_v23  ;;  %v10387_v33 = vpack.c.bf16 %v12912_v46, %v12912_v46  ;;  %v2197_v62 = vadd.f32 %v12524_v15, %v12920_v60 }
 0x1a7   : > { %v13023_v49 = vpop.f32.mrf.mxu0  ;;  %v4703_v20 = vor.u32 %v4702_v52, %v13049_v12  ;;  %v13100_v40 = vshll.u32 %v10381_v2, 16  ;;  %v13104_v23 = vshll.u32 %v10384_v41, 16  ;;  %v4714_v0 = vshll.u32 %v10382_v22, 16 }
 0x1a8   : > { %17425 = vst [vmem:[#allocation87_spill] sm:$0xff] %v13084_v17  ;;  %v13089_v5 = vunpack.c.l.b16 %v17426_v37  ;;  %v4711_v37 = vshrl.u32 %v10382_v22, 16  ;;  %v2200_v17 = vadd.f32 %v12524_v15, %v12949_v55  ;;  %v10385_v2 = vpack.c.bf16 %v12914_v63, %v12914_v63 }
 0x1a9   : > { %v13037_v7 = vpop.f32.mrf.mxu0  ;;  %10964 = vmatmul.mubr.msk.bf16.gmra.mxu0 %vm1457_vm0, %v11248_v6  ;;  %17429 = vst [vmem:[#allocation90_spill] sm:$0xff] %v13100_v40  ;;  %17430 = vst [vmem:[#allocation91_spill] sm:$0xff] %v13104_v23  ;;  %v2189_v52 = vadd.f32 %v12524_v15, %v12943_v9  ;;  %v13118_v41 = vshll.u32 %v10387_v33, 16  ;;  %v13120_v22 = vmax.f32 %v2197_v62, 0.0  ;;  %v17433_v9 = vpack.c.bf16 %v12831_v45, %v12839_v1  ;;  %v11256_v45 = vld [vmem:[%s17107_s0 + $0x318] sm:$0xff]  }
 0x1aa   : > { %10967 = vmatprep.mubr.msk.bf16.mxu0 %vm1457_vm0, %v11251_v3  ;;  %v13063_v3 = vrot.slane %v4720_v21, 5  ;;  %v13079_v21 = vmax.f32 %v2176_v53, 0.0  ;;  %17427 = vst [vmem:[#allocation88_spill] sm:$0xff] %v13089_v5  ;;  %v13097_v53 = vrot.slane %v4679_v61, 4  ;;  %v13122_v55 = vmax.f32 %v2200_v17, 0.0 }
 0x1ab   : > { %v13053_v6 = vpop.f32.mrf.mxu0  ;;  %17431 = vst [vmem:[#allocation92_spill] sm:$0xff] %v13118_v41  ;;  %v13134_v63 = vunpack.c.l.b16 %v17433_v9  ;;  %v13139_v33 = vrot.slane %v4711_v37, 4  ;;  %v13141_v62 = vrot.slane %v4714_v0, 5  ;;  %v4735_v1 = vshrl.u32 %v10385_v2, 16  ;;  %v11258_v37 = vld [vmem:[%s17107_s0 + $0x320] sm:$0xff]  }
 0x1ac   : > { %17424 = vst [vmem:[#allocation86_spill] sm:$0xff] %v13063_v3  ;;  %17428 = vst [vmem:[#allocation89_spill] sm:$0xff] %v13097_v53  ;;  %v4727_v61 = vor.u32 %v4726_v14, %v13063_v3  ;;  %v13128_v14 = vrot.slane %v4703_v20, 4  ;;  %v10386_v9 = vpack.c.bf16 %v12918_v36, %v12918_v36  ;;  %v13152_v18 = vmax.f32 %v2189_v52, 0.0 }
 0x1ad   : > { %v13069_v4 = vpop.f32.mrf.mxu0  ;;  %17434 = vst [vmem:[#allocation94_spill] sm:$0xff] %v13134_v63  ;;  %v17440_v52 = vpack.c.bf16 %v12916_v38, %v12912_v46  ;;  %v10392_v3 = vpack.c.bf16 %v13000_v31, %v13000_v31  ;;  %v10395_v31 = vpack.c.bf16 %v13055_v24, %v13055_v24  ;;  %v11260_v63 = vld [vmem:[%s17107_s0 + $0x330] sm:$0xff]  }
 0x1ae   : > { %17432 = vst [vmem:[#allocation93_spill] sm:$0xff] %v13128_v14  ;;  %17435 = vst [vmem:[#allocation95_spill] sm:$0xff] %v13152_v18  ;;  %v13159_v0 = vrot.slane %v4727_v61, 4  ;;  %v4738_v14 = vshll.u32 %v10385_v2, 16  ;;  %v10391_v61 = vpack.c.bf16 %v12998_v56, %v12998_v56  ;;  %v10389_v2 = vpack.c.bf16 %v13011_v43, %v13011_v43 }
 0x1af   : > { %v13095_v30 = vpop.f32.mrf.mxu0  ;;  %v4820_v32 = vshrl.u32 %v10395_v31, 16 }
 0x1b0   : > { %17437 = vst [vmem:[#allocation97_spill] sm:$0xff] %v13159_v0  ;;  %v2216_v0 = vadd.f32 %v12524_v15, %v13006_v16  ;;  %v4786_v41 = vshll.u32 %v10391_v61, 16  ;;  %v4772_v16 = vshrl.u32 %v10389_v2, 16 }
 0x1b1   : > { %v13108_v5 = vpop.f32.mrf.mxu0  ;;  %10968 = vmatmul.mubr.msk.bf16.gmra.mxu0 %vm1457_vm0, %v11252_v51  ;;  %v2192_v51 = vadd.f32 %v12524_v15, %v12974_v8  ;;  %v17438_v8 = vpack.c.bf16 %v12888_v11, %v12886_v39  ;;  %v4717_v39 = vor.u32 %v13141_v62, %v13139_v33  ;;  %v4748_v33 = vshrl.u32 %v10386_v9, 16 }
 0x1b2   : > { %10971 = vmatprep.mubr.msk.bf16.mxu0 %vm1457_vm0, %v11255_v59  ;;  %v10388_v59 = vpack.c.bf16 %v12916_v38, %v12916_v38  ;;  %v4737_v38 = vrot.slane %v4735_v1, 4  ;;  %v2205_v62 = vadd.f32 %v12524_v15, %v12991_v13  ;;  %v4783_v1 = vshrl.u32 %v10391_v61, 16  ;;  %v11259_v13 = vld [vmem:[%s17107_s0 + $0x328] sm:$0xff]  }
 0x1b3   : > { %v13126_v60 = vpop.f32.mrf.mxu0  ;;  %v13154_v17 = vmax.f32 %v2192_v51, 0.0  ;;  %v13164_v23 = vunpack.c.h.b16 %v17438_v8  ;;  %v13172_v51 = vunpack.c.h.b16 %v17440_v52  ;;  %v2213_v8 = vadd.f32 %v12524_v15, %v12979_v44 }
 0x1b4   : > { %v4759_v36 = vshrl.u32 %v10388_v59, 16  ;;  %v4762_v11 = vshll.u32 %v10388_v59, 16  ;;  %v4744_v52 = vshll.u32 %v10386_v9, 16  ;;  %v4740_v59 = vrot.slane %v4738_v14, 5 }
 0x1b5   : > { %v13145_v20 = vpop.f32.mrf.mxu0  ;;  %17436 = vst [vmem:[#allocation96_spill] sm:$0xff] %v13154_v17  ;;  %17439 = vst [vmem:[#allocation98_spill] sm:$0xff] %v13164_v23  ;;  %v2208_v44 = vadd.f32 %v12524_v15, %v13023_v49  ;;  %v13200_v12 = vmax.f32 %v2213_v8, 0.0  ;;  %v13202_v14 = vmax.f32 %v2216_v0, 0.0  ;;  %v4796_v61 = vshrl.u32 %v10392_v3, 16 }
 0x1b6   : > { %17441 = vst [vmem:[#allocation99_spill] sm:$0xff] %v13172_v51  ;;  %v4768_v51 = vshll.u32 %v10389_v2, 16  ;;  %v4764_v49 = vrot.slane %v4762_v11, 5  ;;  %v4750_v2 = vrot.slane %v4748_v33, 4  ;;  %v13214_v8 = vmax.f32 %v2205_v62, 0.0 }
 0x1b7   : > { %v13167_v40 = vpop.f32.mrf.mxu0  ;;  %17442 = vst [vmem:[#allocation100_spill] sm:$0xff] %v13200_v12  ;;  %17443 = vst [vmem:[#allocation101_spill] sm:$0xff] %v13202_v14  ;;  %v13218_v23 = vmax.f32 %v2208_v44, 0.0  ;;  %v4741_v29 = vor.u32 %v4740_v59, %v4737_v38  ;;  %v4785_v11 = vrot.slane %v4783_v1, 4  ;;  %v4774_v47 = vrot.slane %v4772_v16, 4 }
 0x1b8   : > { %v13222_v54 = vrot.slane %v4768_v51, 5  ;;  %v4798_v0 = vrot.slane %v4796_v61, 4  ;;  %v10390_v38 = vpack.c.bf16 %v13015_v10, %v13015_v10  ;;  %v10393_v59 = vpack.c.bf16 %v13075_v26, %v13075_v26  ;;  %v13240_v1 = vld [vmem:[%s11880_s15] ss:$0 sm:$0xff] }
 0x1b9   : > { %v13184_v46 = vpop.f32.mrf.mxu0  ;;  %10972 = vmatmul.mubr.msk.bf16.gmra.mxu0 %vm1457_vm0, %v11256_v45  ;;  %v4761_v45 = vrot.slane %v4759_v36, 4  ;;  %v4792_v36 = vshll.u32 %v10392_v3, 16  ;;  %v4788_v3 = vrot.slane %v4786_v41, 5  ;;  %v2221_v16 = vadd.f32 %v13240_v1, %v13053_v6  ;;  %v11261_v6 = vld [vmem:[%s17107_s0 + $0x338] sm:$0xff]  }
 0x1ba   : > { %10975 = vmatprep.mubr.msk.bf16.mxu0 %vm1457_vm0, %v11258_v37  ;;  %v13209_v37 = vrot.slane %v4744_v52, 5  ;;  %v4816_v52 = vshll.u32 %v10395_v31, 16  ;;  %17445 = vst [vmem:[#allocation103_spill] sm:$0xff] %v13222_v54  ;;  %v2229_v31 = vadd.f32 %v12524_v15, %v13037_v7  ;;  %v4822_v61 = vrot.slane %v4820_v32, 4 }
 0x1bb   : > { %v13196_v56 = vpop.f32.mrf.mxu0  ;;  %v13229_v44 = vrot.slane %v4792_v36, 5  ;;  %v4765_v41 = vor.u32 %v4764_v49, %v4761_v45  ;;  %v2232_v15 = vadd.f32 %v13240_v1, %v13069_v4  ;;  %v2224_v7 = vadd.f32 %v13240_v1, %v13095_v30 }
 0x1bc   : > { %17444 = vst [vmem:[#allocation102_spill] sm:$0xff] %v13209_v37  ;;  %v4751_v51 = vor.u32 %v4750_v2, %v13209_v37  ;;  %v13246_v36 = vrot.slane %v4816_v52, 5  ;;  %v13254_v45 = vrot.slane %v4741_v29, 4  ;;  %v4789_v49 = vor.u32 %v4788_v3, %v4785_v11  ;;  %v11262_v29 = vld [vmem:[%s17107_s0 + $0x340] sm:$0xff]  }
 0x1bd   : > { %v13204_v9 = vpop.f32.mrf.mxu0  ;;  %17446 = vst [vmem:[#allocation104_spill] sm:$0xff] %v13229_v44  ;;  %v4775_v2 = vor.u32 %v4774_v47, %v13222_v54  ;;  %v4799_v32 = vor.u32 %v4798_v0, %v13229_v44  ;;  %v13263_v52 = vshll.u32 %v10390_v38, 16  ;;  %v13265_v4 = vmax.f32 %v2229_v31, 0.0  ;;  %v5875_v54 = vpop.permute.xlu0 %5874 }
 0x1be   : > { %17447 = vst [vmem:[#allocation105_spill] sm:$0xff] %v13246_v36  ;;  %17449 = vst [vmem:[#allocation107_spill] sm:$0xff] %v13254_v45  ;;  %v13267_v30 = vmax.f32 %v2232_v15, 0.0  ;;  %v13274_v47 = vshll.u32 %v10393_v59, 16  ;;  %v13276_v11 = vmax.f32 %v2221_v16, 0.0  ;;  %v13278_v3 = vmax.f32 %v2224_v7, 0.0 }
 0x1bf   : > { %v13220_v53 = vpop.f32.mrf.mxu0  ;;  %17450 = vst [vmem:[#allocation108_spill] sm:$0xff] %v13263_v52  ;;  %v13282_v38 = vrot.slane %v4751_v51, 4  ;;  %v4823_v31 = vor.u32 %v4822_v61, %v13246_v36  ;;  %v10396_v15 = vpack.c.bf16 %v13057_v50, %v13057_v50  ;;  %v13289_v44 = vrot.slane %v4789_v49, 4 }
 0x1c0   : > { %17452 = vst [vmem:[#allocation110_spill] sm:$0xff] %v13274_v47  ;;  %v17455_v59 = vpack.c.bf16 %v13015_v10, %v13011_v43  ;;  %v10394_v51 = vpack.c.bf16 %v13079_v21, %v13079_v21  ;;  %v13303_v36 = vrot.slane %v4775_v2, 4  ;;  %v13305_v49 = vrot.slane %v4799_v32, 4 }
 0x1c1   : > { %v13226_v62 = vpop.f32.mrf.mxu0  ;;  %10976 = vmatmul.mubr.msk.bf16.gmra.mxu0 %vm1457_vm0, %v11259_v13  ;;  %17453 = vst [vmem:[#allocation111_spill] sm:$0xff] %v13282_v38  ;;  %17454 = vst [vmem:[#allocation112_spill] sm:$0xff] %v13289_v44  ;;  %v2245_v43 = vadd.f32 %v13240_v1, %v13108_v5  ;;  %v10397_v2 = vpack.c.bf16 %v13152_v18, %v13152_v18  ;;  %v13326_v5 = vshll.u32 %v10396_v15, 16  ;;  %v17463_v18 = vrot.slane %v12020_v27, 5  ;;  %v17464_v27 = vld [vmem:[#allocation11_spill] sm:$0xff] }
 0x1c2   : > { %10979 = vmatprep.mubr.msk.bf16.mxu0 %vm1457_vm0, %v11260_v63  ;;  %v13252_v63 = vrot.slane %v4717_v39, 4  ;;  %v13272_v39 = vrot.slane %v4765_v41, 4  ;;  %v13294_v16 = vunpack.c.l.b16 %v17455_v59  ;;  %17457 = vst [vmem:[#allocation114_spill] sm:$0xff] %v13303_v36  ;;  %17458 = vst [vmem:[#allocation115_spill] sm:$0xff] %v13305_v49  ;;  %v17459_v59 = vpack.c.bf16 %v13057_v50, %v13055_v24  ;;  %v11280_v41 = vld [vmem:[%s11725_s25 + $0x198] sm:$0xff]   ;;  %v5731_v15 = vpop.permute.xlu0 %5730  ;;  %v17465_v36 = vld [vmem:[#allocation12_spill] sm:$0xff] }
 0x1c3   : > { %v13244_v13 = vpop.f32.mrf.mxu0  ;;  %v13324_v49 = vrot.slane %v4823_v31, 4  ;;  %17462 = vst [vmem:[#allocation118_spill] sm:$0xff] %v13326_v5  ;;  %v2248_v24 = vadd.f32 %v13240_v1, %v13145_v20  ;;  %v4807_v50 = vshrl.u32 %v10394_v51, 16  ;;  %v10403_v10 = vpack.c.bf16 %v13200_v12, %v13200_v12  ;;  %v11263_v20 = vld [vmem:[%s17107_s0 + $0x348] sm:$0xff]   ;;  %7553 = vmatpush1.bf16.msra.mxu0 %v11280_v41 }
 0x1c4   : > { %17448 = vst [vmem:[#allocation106_spill] sm:$0xff] %v13252_v63  ;;  %17451 = vst [vmem:[#allocation109_spill] sm:$0xff] %v13272_v39  ;;  %v13315_v61 = vunpack.c.l.b16 %v17459_v59  ;;  %v10399_v59 = vpack.c.bf16 %v13120_v22, %v13120_v22  ;;  %v3797_v31 = vsel %vm11957_vm3, %v12097_v19, %v17463_v18  ;;  %v13346_v47 = vmax.f32 %v2245_v43, 0.0  ;;  %v11264_v19 = vld [vmem:[%s17107_s0 + $0x350] sm:$0xff]   ;;  %7554 = vmatprep.subr.bf16.mxu0 %v17383_v48 }
 0x1c5   : > { %v13257_v33 = vpop.f32.mrf.mxu0  ;;  %17456 = vst [vmem:[#allocation113_spill] sm:$0xff] %v13294_v16  ;;  %17461 = vst [vmem:[#allocation117_spill] sm:$0xff] %v13324_v49  ;;  %v13348_v44 = vmax.f32 %v2248_v24, 0.0  ;;  %v17466_v52 = vsel %vm11957_vm3, %v17464_v27, %v17465_v36  ;;  %v4831_v18 = vshrl.u32 %v10397_v2, 16  ;;  %v10401_v38 = vpack.c.bf16 %v13214_v8, %v13214_v8 }
 0x1c6   : > { %17460 = vst [vmem:[#allocation116_spill] sm:$0xff] %v13315_v61  ;;  %v10001_v39 = vcombine.low %v17466_v52, %v3797_v31  ;;  %v4834_v61 = vshll.u32 %v10397_v2, 16  ;;  %v17467_v52 = vld [vmem:[#allocation8_spill] sm:$0xff]  ;;  %v17468_v31 = vld [vmem:[#allocation7_spill] sm:$0xff]  ;;  %v5071_v16 = vshrl.u32 %v10403_v10, 16  ;;  %v5074_v63 = vshll.u32 %v10403_v10, 16 }
 0x1c7   : > { %v13280_v0 = vpop.f32.mrf.mxu0  ;;  %v17469_v27 = vpack.c.bf16 %v17467_v52, %v17468_v31  ;;  %v4809_v12 = vrot.slane %v4807_v50, 4  ;;  %v13373_v25 = vshll.u32 %v10399_v59, 16  ;;  %v2261_v36 = vadd.f32 %v13240_v1, %v13184_v46  ;;  %v17471_v59 = vld [vmem:[#allocation17_spill] sm:$0xff] }
 0x1c8   : > { %v6248_v2 = vsel %vm1457_vm0, %v10001_v39, %v5875_v54  ;;  %v2264_v54 = vadd.f32 %v13240_v1, %v13204_v9  ;;  %v5608_v50 = vshll.u32 %v10401_v38, 16  ;;  %v11265_v9 = vld [vmem:[%s17107_s0 + $0x358] sm:$0xff]  }
 0x1c9   : > { %v13300_v7 = vpop.f32.mrf.mxu0  ;;  %10980 = vmatmul.mubr.msk.bf16.gmra.mxu0 %vm1457_vm0, %v11261_v6  ;;  %v10400_v6 = vpack.c.bf16 %v13122_v55, %v13122_v55  ;;  %v6176_v45 = vsel %vm1457_vm0, %v17469_v27, %v5731_v15  ;;  %17470 = vst [vmem:[#allocation11_spill] sm:$0xff] %v13373_v25  ;;  %7045 = vmatprep.mubr.bf16.mxu1 %v6248_v2  ;;  %v4833_v15 = vrot.slane %v4831_v18, 4  ;;  %v5073_v18 = vrot.slane %v5071_v16, 4  ;;  %v17476_v2 = vld [vmem:[#allocation21_spill] sm:$0xff]  ;;  %v17517_v25 = vld [vmem:[#allocation34_spill] sm:$0xff] }
 0x1ca   : > { %10983 = vmatprep.mubr.msk.bf16.mxu0 %vm1457_vm0, %v11262_v29  ;;  %v10398_v29 = vpack.c.bf16 %v13154_v17, %v13154_v17  ;;  %v4810_v17 = vshll.u32 %v10394_v51, 16  ;;  %7046 = vmatmul.mubr.bf16.vlgmr.msra.gmra.mxu1 %v6176_v45  ;;  %v10404_v45 = vpack.c.bf16 %v13202_v14, %v13202_v14  ;;  %v13397_v27 = vmax.f32 %v2264_v54, 0.0  ;;  %v5879_v58 = vpop.permute.xlu0 %5878 }
 0x1cb   : > { %v13321_v32 = vpop.f32.mrf.mxu0  ;;  %v5599_v41 = vshrl.u32 %v10400_v6, 16  ;;  %v5602_v51 = vshll.u32 %v10400_v6, 16  ;;  %v17481_v16 = vpack.c.bf16 %v13122_v55, %v13120_v22 }
 0x1cc   : > { %v4840_v24 = vshll.u32 %v10398_v29, 16  ;;  %v4844_v37 = vshrl.u32 %v10398_v29, 16  ;;  %v4812_v57 = vrot.slane %v4810_v17, 5  ;;  %v4836_v29 = vrot.slane %v4834_v61, 5  ;;  %17475 = vst [vmem:[#allocation7_spill] sm:$0xff] %v13397_v27 }
 0x1cd   : > { %v13341_v49 = vpop.f32.mrf.mxu0  ;;  %v5601_v52 = vrot.slane %v5599_v41, 4  ;;  %v5604_v10 = vrot.slane %v5602_v51, 5  ;;  %v5612_v17 = vshrl.u32 %v10401_v38, 16  ;;  %v5076_v61 = vrot.slane %v5074_v63, 5  ;;  %v5877_v51 = vpop.permute.xlu1 %5876  ;;  %v11267_v63 = vld [vmem:[%s17107_s0 + $0x360] sm:$0xff]  }
 0x1ce   : > { %v13386_v46 = vrot.slane %v4840_v24, 5  ;;  %v13395_v38 = vmax.f32 %v2261_v36, 0.0  ;;  %v17477_v24 = vrot.slane %v17476_v2, 5  ;;  %v2253_v2 = vadd.f32 %v13240_v1, %v13196_v56 }
 0x1cf   : > { %v13359_v43 = vpop.f32.mrf.mxu0  ;;  %v4813_v28 = vor.u32 %v4812_v57, %v4809_v12  ;;  %v13423_v5 = vunpack.c.h.b16 %v17481_v16  ;;  %v5077_v12 = vor.u32 %v5076_v61, %v5073_v18  ;;  %v5084_v22 = vshrl.u32 %v10404_v45, 16  ;;  %v11268_v16 = vld [vmem:[%s17107_s0 + $0x368] sm:$0xff]  }
 0x1d0   : > { %17473 = vst [vmem:[#allocation12_spill] sm:$0xff] %v13386_v46  ;;  %17474 = vst [vmem:[#allocation8_spill] sm:$0xff] %v13395_v38  ;;  %v13434_v55 = vmax.f32 %v2253_v2, 0.0  ;;  %v10407_v61 = vpack.c.bf16 %v13265_v4, %v13265_v4 }
 0x1d1   : > { %v13370_v6 = vpop.f32.mrf.mxu0  ;;  %10984 = vmatmul.mubr.msk.bf16.gmra.mxu0 %vm1457_vm0, %v11263_v20  ;;  %v17472_v20 = vld [vmem:[#allocation20_spill] sm:$0xff]  ;;  %v5733_v18 = vpop.permute.xlu1 %5732 }
 0x1d2   : > { %10987 = vmatprep.mubr.msk.bf16.mxu0 %vm1457_vm0, %v11264_v19  ;;  %v3811_v31 = vsel %vm11957_vm3, %v17472_v20, %v17471_v59  ;;  %v4846_v19 = vrot.slane %v4844_v37, 4  ;;  %v17478_v59 = vld [vmem:[#allocation24_spill] sm:$0xff]  ;;  %v17479_v20 = vpack.c.bf16 %v13079_v21, %v13075_v26  ;;  %17482 = vst [vmem:[#allocation20_spill] sm:$0xff] %v13423_v5  ;;  %v13425_v26 = vrot.slane %v5608_v50, 5 }
 0x1d3   : > { %v13380_v39 = vpop.f32.mrf.mxu0  ;;  %v3821_v37 = vsel %vm11957_vm3, %v17478_v59, %v17477_v24  ;;  %v4837_v24 = vor.u32 %v4836_v29, %v4833_v15  ;;  %v5605_v59 = vor.u32 %v5604_v10, %v5601_v52  ;;  %v5614_v15 = vrot.slane %v5612_v17, 4 }
 0x1d4   : > { %v13411_v36 = vunpack.c.h.b16 %v17479_v20  ;;  %17483 = vst [vmem:[#allocation21_spill] sm:$0xff] %v13425_v26  ;;  %v10002_v21 = vcombine.low %v3811_v31, %v3821_v37  ;;  %v2256_v20 = vadd.f32 %v13240_v1, %v13220_v53  ;;  %v4847_v57 = vor.u32 %v4846_v19, %v13386_v46 }
 0x1d5   : > { %v13388_v41 = vpop.f32.mrf.mxu0  ;;  %v5080_v29 = vshll.u32 %v10404_v45, 16  ;;  %v13443_v50 = vrot.slane %v4813_v28, 4  ;;  %v13445_v31 = vrot.slane %v4837_v24, 4  ;;  %v13447_v19 = vrot.slane %v5605_v59, 4  ;;  %v17488_v45 = vld [vmem:[#allocation19_spill] sm:$0xff] }
 0x1d6   : > { %17480 = vst [vmem:[#allocation17_spill] sm:$0xff] %v13411_v36  ;;  %v13437_v52 = vsel %vm1457_vm0, %v10002_v21, %v5877_v51  ;;  %v13439_v10 = vmax.f32 %v2256_v20, 0.0  ;;  %v10402_v17 = vpack.c.bf16 %v13218_v23, %v13218_v23  ;;  %v2277_v28 = vadd.f32 %v13240_v1, %v13226_v62  ;;  %v17489_v51 = vld [vmem:[#allocation27_spill] sm:$0xff]  ;;  %v11269_v62 = vld [vmem:[%s17107_s0 + $0x370] sm:$0xff]  }
 0x1d7   : > { %v13416_v14 = vpop.f32.mrf.mxu0  ;;  %17484 = vst [vmem:[#allocation24_spill] sm:$0xff] %v13437_v52  ;;  %17485 = vst [vmem:[#allocation119_spill] sm:$0xff] %v13443_v50  ;;  %7053 = vmatprep.mubr.bf16.mxu1 %v13437_v52  ;;  %v5695_v37 = vpack.c.b16 %v17489_v51, %v17488_v45  ;;  %v13465_v2 = vrot.slane %v4847_v57, 4  ;;  %v13467_v24 = vrot.slane %v5077_v12, 4  ;;  %v5615_v59 = vor.u32 %v5614_v15, %v13425_v26 }
 0x1d8   : > { %17486 = vst [vmem:[#allocation120_spill] sm:$0xff] %v13445_v31  ;;  %17487 = vst [vmem:[#allocation121_spill] sm:$0xff] %v13447_v19  ;;  %v2280_v21 = vadd.f32 %v13240_v1, %v13257_v33  ;;  %v13475_v20 = vrot.slane %v5080_v29, 5  ;;  %v5086_v45 = vrot.slane %v5084_v22, 4  ;;  %v2237_v51 = vadd.f32 %v13240_v1, %v13126_v60  ;;  %v17499_v19 = vld [vmem:[#allocation26_spill] sm:$0xff] }
 0x1d9   : > { %v13429_v56 = vpop.f32.mrf.mxu0  ;;  %10988 = vmatmul.mubr.msk.bf16.gmra.mxu0 %vm1457_vm0, %v11265_v9  ;;  %17490 = vst [vmem:[#allocation19_spill] sm:$0xff] %v13465_v2  ;;  %17491 = vst [vmem:[#allocation27_spill] sm:$0xff] %v13467_v24  ;;  %v13480_v57 = vsel %vm1457_vm0, %v5695_v37, %v5733_v18  ;;  %v13484_v54 = vshll.u32 %v10402_v17, 16  ;;  %v10405_v33 = vpack.c.bf16 %v13276_v11, %v13276_v11  ;;  %v13488_v15 = vmax.f32 %v2277_v28, 0.0  ;;  %v17495_v18 = vld [vmem:[#allocation18_spill] sm:$0xff]  ;;  %v17496_v37 = vld [vmem:[#allocation23_spill] sm:$0xff] }
 0x1da   : > { %10991 = vmatprep.mubr.msk.bf16.mxu0 %vm1457_vm0, %v11267_v63  ;;  %17492 = vst [vmem:[#allocation122_spill] sm:$0xff] %v13475_v20  ;;  %17493 = vst [vmem:[#allocation123_spill] sm:$0xff] %v13480_v57  ;;  %7054 = vmatmul.mubr.bf16.gmra.mxu1 %v13480_v57  ;;  %v13491_v29 = vmax.f32 %v2280_v21, 0.0  ;;  %v5104_v22 = vshll.u32 %v10407_v61, 16  ;;  %v2269_v60 = vadd.f32 %v13240_v1, %v13244_v13  ;;  %v17497_v9 = vld [vmem:[#allocation22_spill] sm:$0xff]  ;;  %v5108_v21 = vshrl.u32 %v10407_v61, 16 }
 0x1db   : > { %v13441_v53 = vpop.f32.mrf.mxu0  ;;  %17494 = vst [vmem:[#allocation124_spill] sm:$0xff] %v13484_v54  ;;  %v3835_v17 = vsel %vm11957_vm3, %v17496_v37, %v17495_v18  ;;  %v17498_v52 = vrot.slane %v17497_v9, 5  ;;  %v2240_v13 = vadd.f32 %v13240_v1, %v13167_v40  ;;  %v13512_v18 = vrot.slane %v5615_v59, 4  ;;  %v5735_v59 = vpop.permute.xlu1 %5734  ;;  %v17510_v57 = vld [vmem:[#allocation9_spill] sm:$0xff] }
 0x1dc   : > { %v17501_v9 = vpack.c.bf16 %v13218_v23, %v13214_v8  ;;  %v2272_v61 = vadd.f32 %v13240_v1, %v13280_v0  ;;  %v5087_v40 = vor.u32 %v5086_v45, %v13475_v20  ;;  %v13532_v23 = vrot.slane %v5104_v22, 5  ;;  %v17508_v22 = vld [vmem:[#allocation25_spill] sm:$0xff]  ;;  %v5881_v54 = vpop.permute.xlu0 %5880  ;;  %v11282_v20 = vld [vmem:[%s11725_s25 + $0x188] sm:$0xff]  }
 0x1dd   : > { %v13460_v63 = vpop.f32.mrf.mxu0  ;;  %v3845_v28 = vsel %vm11957_vm3, %v17499_v19, %v17498_v52  ;;  %17500 = vst [vmem:[#allocation18_spill] sm:$0xff] %v13512_v18  ;;  %v13519_v19 = vmax.f32 %v2237_v51, 0.0  ;;  %v10406_v8 = vpack.c.bf16 %v13278_v3, %v13278_v3  ;;  %v13536_v51 = vmax.f32 %v2269_v60, 0.0 }
 0x1de   : > { %v10003_v5 = vcombine.low %v3835_v17, %v3845_v28  ;;  %v13517_v52 = vunpack.c.l.b16 %v17501_v9  ;;  %v13527_v17 = vshll.u32 %v10405_v33, 16  ;;  %17506 = vst [vmem:[#allocation126_spill] sm:$0xff] %v13532_v23  ;;  %v13539_v0 = vmax.f32 %v2272_v61, 0.0  ;;  %v11270_v33 = vld [vmem:[%s17107_s0 + $0x378] sm:$0xff]   ;;  %v11271_v61 = vld [vmem:[%s17107_s0 + $0x380] sm:$0xff]  }
 0x1df   : > { %v13482_v12 = vpop.f32.mrf.mxu0  ;;  %17503 = vst [vmem:[#allocation22_spill] sm:$0xff] %v13519_v19  ;;  %v5110_v28 = vrot.slane %v5108_v21, 4  ;;  %v17509_v9 = vld [vmem:[#allocation38_spill] sm:$0xff]  ;;  %v10408_v37 = vpack.c.bf16 %v13267_v30, %v13267_v30  ;;  %v10409_v21 = vpack.c.bf16 %v13519_v19, %v13519_v19 }
 0x1e0   : > { %17502 = vst [vmem:[#allocation23_spill] sm:$0xff] %v13517_v52  ;;  %17504 = vst [vmem:[#allocation26_spill] sm:$0xff] %v13527_v17  ;;  %v3859_v60 = vsel %vm11957_vm3, %v17509_v9, %v17508_v22  ;;  %v13571_v9 = vrot.slane %v5087_v40, 4  ;;  %v17515_v52 = vld [vmem:[#allocation28_spill] sm:$0xff]  ;;  %v10412_v40 = vpack.c.bf16 %v13348_v44, %v13348_v44 }
 0x1e1   : > { %v13504_v26 = vpop.f32.mrf.mxu0  ;;  %10992 = vmatmul.mubr.msk.bf16.gmra.mxu0 %vm1457_vm0, %v11268_v16  ;;  %v17516_v2 = vrot.slane %v17515_v52, 5  ;;  %v13602_v50 = vshll.u32 %v10408_v37, 16 }
 0x1e2   : > { %10995 = vmatprep.mubr.msk.bf16.mxu0 %vm1457_vm0, %v11269_v62  ;;  %v13530_v62 = vsel %vm1457_vm0, %v10003_v5, %v5879_v58  ;;  %v13546_v58 = vmax.f32 %v2240_v13, 0.0  ;;  %v2293_v5 = vadd.f32 %v13240_v1, %v13300_v7  ;;  %v17511_v7 = vld [vmem:[#allocation10_spill] sm:$0xff]  ;;  %17514 = vst [vmem:[#allocation38_spill] sm:$0xff] %v13571_v9 }
 0x1e3   : > { %v13523_v16 = vpop.f32.mrf.mxu0  ;;  %17505 = vst [vmem:[#allocation125_spill] sm:$0xff] %v13530_v62  ;;  %7061 = vmatprep.mubr.bf16.mxu1 %v13530_v62  ;;  %v17512_v62 = vpack.c.bf16 %v17510_v57, %v17511_v7  ;;  %v3869_v13 = vsel %vm11957_vm3, %v17517_v25, %v17516_v2  ;;  %v2296_v57 = vadd.f32 %v13240_v1, %v13341_v49  ;;  %v5095_v7 = vshrl.u32 %v10406_v8, 16 }
 0x1e4   : > { %17507 = vst [vmem:[#allocation127_spill] sm:$0xff] %v13546_v58  ;;  %v10410_v52 = vpack.c.bf16 %v13546_v58, %v13546_v58  ;;  %v13591_v25 = vmax.f32 %v2293_v5, 0.0  ;;  %v10004_v2 = vcombine.low %v3859_v60, %v3869_v13  ;;  %17520 = vst [vmem:[#allocation10_spill] sm:$0xff] %v13602_v50  ;;  %v5122_v5 = vshll.u32 %v10409_v21, 16 }
 0x1e5   : > { %v13541_v45 = vpop.f32.mrf.mxu0  ;;  %v13567_v18 = vsel %vm1457_vm0, %v17512_v62, %v5735_v59  ;;  %v5098_v59 = vshll.u32 %v10406_v8, 16  ;;  %v10411_v62 = vpack.c.bf16 %v13346_v47, %v13346_v47  ;;  %v13593_v49 = vmax.f32 %v2296_v57, 0.0  ;;  %v11281_v57 = vld [vmem:[%s11725_s25 + $0x190] sm:$0xff]  }
 0x1e6   : > { %17513 = vst [vmem:[#allocation25_spill] sm:$0xff] %v13567_v18  ;;  %7062 = vmatmul.mubr.bf16.gmra.mxu1 %v13567_v18  ;;  %v5111_v8 = vor.u32 %v5110_v28, %v13532_v23  ;;  %v17518_v18 = vpack.c.bf16 %v13267_v30, %v13265_v4  ;;  %v10415_v60 = vpack.c.bf16 %v13395_v38, %v13395_v38  ;;  %v5143_v30 = vshrl.u32 %v10412_v40, 16  ;;  %v17522_v38 = vld [vmem:[#allocation30_spill] sm:$0xff] }
 0x1e7   : > { %v13569_v22 = vpop.f32.mrf.mxu0  ;;  %v13609_v13 = vsel %vm1457_vm0, %v10004_v2, %v5881_v54  ;;  %v13615_v4 = vrot.slane %v5098_v59, 5  ;;  %v5128_v54 = vshll.u32 %v10410_v52, 16  ;;  %v5132_v2 = vshrl.u32 %v10410_v52, 16  ;;  %v17523_v59 = vld [vmem:[#allocation29_spill] sm:$0xff]  ;;  %7555 = vmatpush1.bf16.msra.mxu0 %v11281_v57 }
 0x1e8   : > { %v13600_v46 = vunpack.c.l.b16 %v17518_v18  ;;  %17521 = vst [vmem:[#allocation28_spill] sm:$0xff] %v13609_v13  ;;  %v5146_v18 = vshll.u32 %v10412_v40, 16  ;;  %7069 = vmatprep.mubr.bf16.mxu1 %v13609_v13  ;;  %v10413_v28 = vpack.c.bf16 %v13434_v55, %v13434_v55  ;;  %v5697_v58 = vpack.c.b16 %v17523_v59, %v17522_v38  ;;  %v11273_v40 = vld [vmem:[%s17107_s0 + $0x390] sm:$0xff]   ;;  %7556 = vmatprep.subr.bf16.mxu0 %v17383_v48 }
 0x1e9   : > { %v13586_v31 = vpop.f32.mrf.mxu0  ;;  %10996 = vmatmul.mubr.msk.bf16.gmra.mxu0 %vm1457_vm0, %v11270_v33  ;;  %v5119_v33 = vshrl.u32 %v10409_v21, 16  ;;  %v11272_v21 = vld [vmem:[%s17107_s0 + $0x388] sm:$0xff]   ;;  %v13631_v13 = vrot.slane %v5111_v8, 4  ;;  %v17525_v23 = vpack.c.bf16 %v13278_v3, %v13276_v11  ;;  %v13639_v52 = vshll.u32 %v10411_v62, 16 }
 0x1ea   : > { %10999 = vmatprep.mubr.msk.bf16.mxu0 %vm1457_vm0, %v11271_v61  ;;  %17519 = vst [vmem:[#allocation9_spill] sm:$0xff] %v13600_v46  ;;  %v13613_v61 = vrot.slane %v5095_v7, 4  ;;  %v5737_v7 = vpop.permute.xlu1 %5736  ;;  %v13645_v38 = vrot.slane %v5122_v5, 5  ;;  %v5167_v59 = vshrl.u32 %v10415_v60, 16  ;;  %v5170_v24 = vshll.u32 %v10415_v60, 16 }
 0x1eb   : > { %v13604_v36 = vpop.f32.mrf.mxu0  ;;  %17524 = vst [vmem:[#allocation34_spill] sm:$0xff] %v13631_v13  ;;  %v13637_v46 = vunpack.c.h.b16 %v17525_v23  ;;  %17527 = vst [vmem:[#allocation29_spill] sm:$0xff] %v13639_v52  ;;  %v13643_v17 = vrot.slane %v5119_v33, 4  ;;  %v5145_v19 = vrot.slane %v5143_v30, 4  ;;  %v10416_v11 = vpack.c.bf16 %v13397_v27, %v13397_v27  ;;  %v17530_v30 = vld [vmem:[#allocation35_spill] sm:$0xff]  ;;  %v5883_v27 = vpop.permute.xlu0 %5882  ;;  %v17587_v52 = vld [vmem:[#allocation58_spill] sm:$0xff]  ;;  %7557 = vmatpush1.bf16.msra.mxu0 %v11282_v20 }
 0x1ec   : > { %v5101_v8 = vor.u32 %v13615_v4, %v13613_v61  ;;  %v13653_v3 = vsel %vm1457_vm0, %v5697_v58, %v5737_v7  ;;  %v5148_v62 = vrot.slane %v5146_v18, 5  ;;  %v13658_v33 = vrot.slane %v5128_v54, 5  ;;  %v17531_v58 = vld [vmem:[#allocation39_spill] sm:$0xff]  ;;  %v17534_v18 = vld [vmem:[#allocation42_spill] sm:$0xff]  ;;  %7558 = vmatprep.subr.bf16.mxu0 %v17383_v48 }
 0x1ed   : > { %v13618_v37 = vpop.f32.mrf.mxu0  ;;  %17526 = vst [vmem:[#allocation30_spill] sm:$0xff] %v13637_v46  ;;  %17528 = vst [vmem:[#allocation128_spill] sm:$0xff] %v13653_v3  ;;  %v5134_v5 = vrot.slane %v5132_v2, 4  ;;  %v5152_v60 = vshll.u32 %v10413_v28, 16  ;;  %v5156_v61 = vshrl.u32 %v10413_v28, 16  ;;  %v2309_v4 = vadd.f32 %v13240_v1, %v13370_v6  ;;  %v17532_v7 = vld [vmem:[#allocation31_spill] sm:$0xff] }
 0x1ee   : > { %17529 = vst [vmem:[#allocation129_spill] sm:$0xff] %v13658_v33  ;;  %7070 = vmatmul.mubr.bf16.gmra.mxu1 %v13653_v3  ;;  %v3883_v57 = vsel %vm11957_vm3, %v17531_v58, %v17530_v30  ;;  %v5169_v28 = vrot.slane %v5167_v59, 4  ;;  %v5172_v3 = vrot.slane %v5170_v24, 5  ;;  %v2301_v6 = vadd.f32 %v13240_v1, %v13380_v39  ;;  %v17543_v46 = vld [vmem:[#allocation13_spill] sm:$0xff] }
 0x1ef   : > { %v13641_v9 = vpop.f32.mrf.mxu0  ;;  %v5176_v13 = vshll.u32 %v10416_v11, 16  ;;  %v5180_v50 = vshrl.u32 %v10416_v11, 16  ;;  %v2312_v58 = vadd.f32 %v13240_v1, %v13388_v41  ;;  %v13687_v24 = vrot.slane %v5152_v60, 5  ;;  %v17539_v60 = vld [vmem:[#allocation36_spill] sm:$0xff] }
 0x1f0   : > { %v2304_v39 = vadd.f32 %v13240_v1, %v13416_v14  ;;  %v5158_v59 = vrot.slane %v5156_v61, 4  ;;  %v13691_v11 = vmax.f32 %v2309_v4, 0.0  ;;  %v17540_v61 = vld [vmem:[#allocation41_spill] sm:$0xff]  ;;  %v2349_v20 = vadd.f32 %v13240_v1, %v13604_v36 }
 0x1f1   : > { %v13655_v23 = vpop.f32.mrf.mxu0  ;;  %11000 = vmatmul.mubr.msk.bf16.gmra.mxu0 %vm1457_vm0, %v11272_v21  ;;  %v17533_v21 = vrot.slane %v17532_v7, 5  ;;  %17535 = vst [vmem:[#allocation35_spill] sm:$0xff] %v13687_v24  ;;  %v13712_v4 = vrot.slane %v5176_v13, 5  ;;  %v10419_v13 = vpack.c.bf16 %v13488_v15, %v13488_v15 }
 0x1f2   : > { %11003 = vmatprep.mubr.msk.bf16.mxu0 %vm1457_vm0, %v11273_v40  ;;  %v5125_v40 = vor.u32 %v13645_v38, %v13643_v17  ;;  %v5135_v17 = vor.u32 %v5134_v5, %v13658_v33  ;;  %v5739_v38 = vpop.permute.xlu1 %5738  ;;  %17536 = vst [vmem:[#allocation39_spill] sm:$0xff] %v13691_v11  ;;  %v13704_v5 = vmax.f32 %v2301_v6, 0.0  ;;  %v13706_v14 = vmax.f32 %v2304_v39, 0.0  ;;  %v17542_v33 = vld [vmem:[#allocation14_spill] sm:$0xff] }
 0x1f3   : > { %v3893_v54 = vsel %vm11957_vm3, %v17534_v18, %v17533_v21  ;;  %v13673_v2 = vpop.f32.mrf.mxu0  ;;  %v11274_v21 = vld [vmem:[%s17107_s0 + $0x398] sm:$0xff]   ;;  %v5149_v18 = vor.u32 %v5148_v62, %v5145_v19  ;;  %v11276_v19 = vld [vmem:[%s17107_s0 + $0x3a0] sm:$0xff]   ;;  %v5173_v62 = vor.u32 %v5172_v3, %v5169_v28  ;;  %17541 = vst [vmem:[#allocation36_spill] sm:$0xff] %v13712_v4  ;;  %v17544_v3 = vpack.c.bf16 %v17542_v33, %v17543_v46  ;;  %v17547_v33 = vld [vmem:[#allocation44_spill] sm:$0xff] }
 0x1f4   : > { %v10005_v30 = vcombine.low %v3883_v57, %v3893_v54  ;;  %v13696_v57 = vmax.f32 %v2312_v58, 0.0  ;;  %v10414_v39 = vpack.c.bf16 %v13439_v10, %v13439_v10  ;;  %v17546_v46 = vrot.slane %v12589_v35, 5 }
 0x1f5   : > { %v13681_v7 = vpop.f32.mrf.mxu0  ;;  %v13720_v28 = vsel %vm1457_vm0, %v17544_v3, %v5739_v38  ;;  %v5159_v58 = vor.u32 %v5158_v59, %v13687_v24  ;;  %v13749_v35 = vrot.slane %v5125_v40, 4  ;;  %v11277_v40 = vld [vmem:[%s17107_s0 + $0x3a8] sm:$0xff]  }
 0x1f6   : > { %v13694_v41 = vsel %vm1457_vm0, %v10005_v30, %v5883_v27  ;;  %17538 = vst [vmem:[#allocation42_spill] sm:$0xff] %v13696_v57  ;;  %v3907_v27 = vsel %vm11957_vm3, %v17540_v61, %v17539_v60  ;;  %v5182_v30 = vrot.slane %v5180_v50, 4  ;;  %17545 = vst [vmem:[#allocation41_spill] sm:$0xff] %v13720_v28  ;;  %v3917_v38 = vsel %vm11957_vm3, %v17547_v33, %v17546_v46  ;;  %v5885_v33 = vpop.permute.xlu0 %5884  ;;  %v17580_v24 = vld [vmem:[#allocation60_spill] sm:$0xff] }
 0x1f7   : > { %17537 = vst [vmem:[#allocation31_spill] sm:$0xff] %v13694_v41  ;;  %v13698_v54 = vpop.f32.mrf.mxu0  ;;  %7077 = vmatprep.mubr.bf16.mxu1 %v13694_v41  ;;  %v13737_v60 = vrot.slane %v5101_v8, 4  ;;  %v17549_v61 = vpack.c.bf16 %v13348_v44, %v13346_v47  ;;  %17551 = vst [vmem:[#allocation44_spill] sm:$0xff] %v13749_v35  ;;  %v13753_v46 = vrot.slane %v5135_v17, 4  ;;  %v2285_v8 = vadd.f32 %v13240_v1, %v13321_v32  ;;  %v5741_v41 = vpop.permute.xlu1 %5740 }
 0x1f8   : > { %7078 = vmatmul.mubr.bf16.gmra.mxu1 %v13720_v28  ;;  %v13751_v28 = vrot.slane %v5149_v18, 4  ;;  %v5183_v44 = vor.u32 %v5182_v30, %v13712_v4  ;;  %v2325_v47 = vadd.f32 %v13240_v1, %v13429_v56  ;;  %v10006_v59 = vcombine.low %v3907_v27, %v3917_v38  ;;  %v11278_v56 = vld [vmem:[%s17107_s0 + $0x3b0] sm:$0xff]   ;;  %v17563_v4 = vld [vmem:[#allocation43_spill] sm:$0xff] }
 0x1f9   : > { %v13722_v6 = vpop.f32.mrf.mxu0  ;;  %11004 = vmatmul.mubr.msk.bf16.gmra.mxu0 %vm1457_vm0, %v11274_v21  ;;  %17548 = vst [vmem:[#allocation14_spill] sm:$0xff] %v13737_v60  ;;  %v13743_v3 = vunpack.c.h.b16 %v17549_v61  ;;  %17553 = vst [vmem:[#allocation131_spill] sm:$0xff] %v13753_v46  ;;  %v13757_v21 = vrot.slane %v5173_v62, 4  ;;  %v17555_v18 = vpack.c.bf16 %v13439_v10, %v13434_v55  ;;  %v13772_v32 = vshll.u32 %v10414_v39, 16 }
 0x1fa   : > { %11007 = vmatprep.mubr.msk.bf16.mxu0 %vm1457_vm0, %v11276_v19  ;;  %17552 = vst [vmem:[#allocation130_spill] sm:$0xff] %v13751_v28  ;;  %v5200_v19 = vshll.u32 %v10419_v13, 16  ;;  %v2317_v62 = vadd.f32 %v13240_v1, %v13441_v53  ;;  %v13779_v27 = vrot.slane %v5159_v58, 4  ;;  %v5204_v30 = vshrl.u32 %v10419_v13, 16  ;;  %v5887_v28 = vpop.permute.xlu0 %5886 }
 0x1fb   : > { %17550 = vst [vmem:[#allocation13_spill] sm:$0xff] %v13743_v3  ;;  %v13746_v50 = vpop.f32.mrf.mxu0  ;;  %17554 = vst [vmem:[#allocation132_spill] sm:$0xff] %v13757_v21  ;;  %v13770_v17 = vunpack.c.l.b16 %v17555_v18  ;;  %v13782_v38 = vsel %vm1457_vm0, %v10006_v59, %v5885_v33  ;;  %v2328_v55 = vadd.f32 %v13240_v1, %v13460_v63  ;;  %v10417_v39 = vpack.c.bf16 %v13536_v51, %v13536_v51  ;;  %v17561_v63 = vld [vmem:[#allocation37_spill] sm:$0xff]  ;;  %v17562_v21 = vld [vmem:[#allocation40_spill] sm:$0xff] }
 0x1fc   : > { %17557 = vst [vmem:[#allocation134_spill] sm:$0xff] %v13772_v32  ;;  %17558 = vst [vmem:[#allocation135_spill] sm:$0xff] %v13779_v27  ;;  %v13790_v18 = vmax.f32 %v2285_v8, 0.0  ;;  %v2288_v53 = vadd.f32 %v13240_v1, %v13359_v43  ;;  %7085 = vmatprep.mubr.bf16.mxu1 %v13782_v38  ;;  %v2320_v58 = vadd.f32 %v13240_v1, %v13482_v12  ;;  %v13797_v13 = vmax.f32 %v2325_v47, 0.0 }
 0x1fd   : > { %v13762_v61 = vpop.f32.mrf.mxu0  ;;  %17556 = vst [vmem:[#allocation133_spill] sm:$0xff] %v13770_v17  ;;  %17559 = vst [vmem:[#allocation136_spill] sm:$0xff] %v13782_v38  ;;  %v13799_v33 = vmax.f32 %v2328_v55, 0.0  ;;  %v5699_v59 = vpack.c.b16 %v12571_v34, %v17561_v63  ;;  %v3931_v8 = vsel %vm11957_vm3, %v17563_v4, %v17562_v21  ;;  %v13810_v43 = vrot.slane %v5200_v19, 5  ;;  %v17568_v63 = vld [vmem:[#allocation45_spill] sm:$0xff] }
 0x1fe   : > { %17560 = vst [vmem:[#allocation137_spill] sm:$0xff] %v13790_v18  ;;  %v10420_v12 = vpack.c.bf16 %v13491_v29, %v13491_v29  ;;  %v13814_v47 = vmax.f32 %v2317_v62, 0.0  ;;  %v13816_v55 = vmax.f32 %v2320_v58, 0.0  ;;  %v13819_v34 = vrot.slane %v5204_v30, 4 }
 0x1ff   : > { %v13786_v10 = vpop.f32.mrf.mxu0  ;;  %17564 = vst [vmem:[#allocation37_spill] sm:$0xff] %v13810_v43  ;;  %v13824_v21 = vsel %vm1457_vm0, %v5699_v59, %v5741_v41  ;;  %v13833_v58 = vrot.slane %v5183_v44, 4  ;;  %v10418_v30 = vpack.c.bf16 %v13539_v0, %v13539_v0  ;;  %v10421_v59 = vpack.c.bf16 %v13790_v18, %v13790_v18 }
 0x200   : > { %17565 = vst [vmem:[#allocation40_spill] sm:$0xff] %v13824_v21  ;;  %7086 = vmatmul.mubr.bf16.gmra.mxu1 %v13824_v21  ;;  %v2341_v44 = vadd.f32 %v13240_v1, %v13504_v26  ;;  %v13852_v4 = vshll.u32 %v10417_v39, 16  ;;  %v17572_v41 = vpack.c.bf16 %v13491_v29, %v13488_v15  ;;  %v13859_v18 = vshll.u32 %v10420_v12, 16 }
 0x201   : > { %v13807_v27 = vpop.f32.mrf.mxu0  ;;  %11008 = vmatmul.mubr.msk.bf16.gmra.mxu0 %vm1457_vm0, %v11277_v40  ;;  %v17566_v40 = vld [vmem:[#allocation46_spill] sm:$0xff]  ;;  %17569 = vst [vmem:[#allocation43_spill] sm:$0xff] %v13833_v58  ;;  %v5207_v26 = vor.u32 %v13819_v34, %v13810_v43  ;;  %v10424_v39 = vpack.c.bf16 %v13593_v49, %v13593_v49  ;;  %v5191_v29 = vshrl.u32 %v10418_v30, 16  ;;  %v5194_v12 = vshll.u32 %v10418_v30, 16 }
 0x202   : > { %11011 = vmatprep.mubr.msk.bf16.mxu0 %vm1457_vm0, %v11278_v56  ;;  %v17567_v19 = vrot.slane %v17566_v40, 5  ;;  %v13843_v40 = vmax.f32 %v2288_v53, 0.0  ;;  %v11279_v56 = vld [vmem:[%s17107_s0 + $0x3b8] sm:$0xff]   ;;  %17571 = vst [vmem:[#allocation45_spill] sm:$0xff] %v13852_v4  ;;  %v13857_v21 = vunpack.c.l.b16 %v17572_v41  ;;  %17574 = vst [vmem:[#allocation139_spill] sm:$0xff] %v13859_v18  ;;  %v2333_v53 = vadd.f32 %v13240_v1, %v13523_v16  ;;  %v5743_v41 = vpop.permute.xlu1 %5742 }
 0x203   : > { %v13831_v62 = vpop.f32.mrf.mxu0  ;;  %v2344_v16 = vadd.f32 %v13240_v1, %v13541_v45  ;;  %v2336_v34 = vadd.f32 %v13240_v1, %v13569_v22  ;;  %v5215_v43 = vshrl.u32 %v10421_v59, 16  ;;  %v17579_v45 = vld [vmem:[#allocation47_spill] sm:$0xff]  ;;  %v5242_v17 = vshll.u32 %v10424_v39, 16 }
 0x204   : > { %v3941_v38 = vsel %vm11957_vm3, %v17568_v63, %v17567_v19  ;;  %17570 = vst [vmem:[#allocation46_spill] sm:$0xff] %v13843_v40  ;;  %17573 = vst [vmem:[#allocation138_spill] sm:$0xff] %v13857_v21  ;;  %v5218_v21 = vshll.u32 %v10421_v59, 16  ;;  %v10422_v58 = vpack.c.bf16 %v13843_v40, %v13843_v40  ;;  %v13886_v30 = vmax.f32 %v2333_v53, 0.0  ;;  %v17581_v40 = vld [vmem:[#allocation16_spill] sm:$0xff] }
 0x205   : > { %v10007_v19 = vcombine.low %v3931_v8, %v3941_v38  ;;  %v13847_v63 = vpop.f32.mrf.mxu0  ;;  %v10423_v38 = vpack.c.bf16 %v13591_v25, %v13591_v25  ;;  %v13890_v32 = vmax.f32 %v2336_v34, 0.0  ;;  %v3955_v22 = vsel %vm11957_vm3, %v17580_v24, %v17579_v45 }
 0x206   : > { %17577 = vst [vmem:[#allocation142_spill] sm:$0xff] %v13886_v30  ;;  %v5239_v59 = vshrl.u32 %v10424_v39, 16  ;;  %v13909_v35 = vrot.slane %v5191_v29, 4  ;;  %v10427_v24 = vpack.c.bf16 %v13691_v11, %v13691_v11  ;;  %v5196_v39 = vrot.slane %v5194_v12, 5 }
 0x207   : > { %v13870_v8 = vsel %vm1457_vm0, %v10007_v19, %v5887_v28  ;;  %v13872_v15 = vpop.f32.mrf.mxu0  ;;  %v13881_v28 = vmax.f32 %v2341_v44, 0.0  ;;  %17578 = vst [vmem:[#allocation143_spill] sm:$0xff] %v13890_v32  ;;  %v17582_v44 = vld [vmem:[#allocation15_spill] sm:$0xff]  ;;  %v5220_v45 = vrot.slane %v5218_v21, 5  ;;  %v5228_v11 = vshrl.u32 %v10422_v58, 16 }
 0x208   : > { %17575 = vst [vmem:[#allocation140_spill] sm:$0xff] %v13870_v8  ;;  %17576 = vst [vmem:[#allocation141_spill] sm:$0xff] %v13872_v15  ;;  %7093 = vmatprep.mubr.bf16.mxu1 %v13870_v8  ;;  %v13888_v8 = vmax.f32 %v2344_v16, 0.0  ;;  %v17583_v3 = vpack.c.bf16 %v17581_v40, %v17582_v44  ;;  %v5889_v44 = vpop.permute.xlu0 %5888  ;;  %v13923_v40 = vrot.slane %v5207_v26, 4  ;;  %v5244_v21 = vrot.slane %v5242_v17, 5 }
 0x209   : > { %v13883_v19 = vpop.f32.mrf.mxu0  ;;  %11012 = vmatmul.mubr.msk.bf16.gmra.mxu0 %vm1457_vm0, %v11279_v56  ;;  %v17585_v56 = vld [vmem:[#allocation51_spill] sm:$0xff]  ;;  %v5263_v15 = vshrl.u32 %v10427_v24, 16  ;;  %v5197_v26 = vor.u32 %v5196_v39, %v13909_v35  ;;  %v17596_v39 = vld [vmem:[#allocation50_spill] sm:$0xff] }
 0x20a   : > { %v13900_v46 = vsel %vm1457_vm0, %v17583_v3, %v5743_v41  ;;  %v17586_v53 = vrot.slane %v17585_v56, 5  ;;  %v5217_v41 = vrot.slane %v5215_v43, 4  ;;  %17589 = vst [vmem:[#allocation16_spill] sm:$0xff] %v13923_v40  ;;  %v17590_v3 = vpack.c.bf16 %v13539_v0, %v13536_v51 }
 0x20b   : > { %17584 = vst [vmem:[#allocation47_spill] sm:$0xff] %v13900_v46  ;;  %v13907_v34 = vpop.f32.mrf.mxu0  ;;  %7094 = vmatmul.mubr.bf16.gmra.mxu1 %v13900_v46  ;;  %v5241_v43 = vrot.slane %v5239_v59, 4  ;;  %v5266_v0 = vshll.u32 %v10427_v24, 16  ;;  %v5745_v59 = vpop.permute.xlu1 %5744  ;;  %v2352_v24 = vadd.f32 %v13240_v1, %v13641_v9  ;;  %v13990_v18 = vrot.slane %v5197_v26, 4 }
 0x20c   : > { %v3965_v16 = vsel %vm11957_vm3, %v17587_v52, %v17586_v53  ;;  %17588 = vst [vmem:[#allocation60_spill] sm:$0xff] %v13907_v34  ;;  %v5224_v52 = vshll.u32 %v10422_v58, 16  ;;  %v13928_v46 = vunpack.c.h.b16 %v17590_v3  ;;  %v13932_v34 = vshll.u32 %v10423_v38, 16  ;;  %v17595_v3 = vld [vmem:[#allocation57_spill] sm:$0xff] }
 0x20d   : > { %v13918_v56 = vpop.f32.mrf.mxu0  ;;  %v10008_v60 = vcombine.low %v3955_v22, %v3965_v16  ;;  %v2357_v53 = vadd.f32 %v13240_v1, %v13586_v31  ;;  %v5221_v22 = vor.u32 %v5220_v45, %v5217_v41  ;;  %v5230_v38 = vrot.slane %v5228_v11, 4 }
 0x20e   : > { %17591 = vst [vmem:[#allocation15_spill] sm:$0xff] %v13928_v46  ;;  %17592 = vst [vmem:[#allocation51_spill] sm:$0xff] %v13932_v34  ;;  %v13940_v51 = vrot.slane %v5224_v52, 5  ;;  %v10425_v31 = vpack.c.bf16 %v13704_v5, %v13704_v5  ;;  %v5245_v35 = vor.u32 %v5244_v21, %v5241_v43  ;;  %v10428_v16 = vpack.c.bf16 %v13696_v57, %v13696_v57 }
 0x20f   : > { %v13930_v12 = vpop.f32.mrf.mxu0  ;;  %v13937_v58 = vsel %vm1457_vm0, %v10008_v60, %v5889_v44  ;;  %v2360_v60 = vadd.f32 %v13240_v1, %v13618_v37  ;;  %v5701_v11 = vpack.c.b16 %v17596_v39, %v17595_v3  ;;  %v5265_v45 = vrot.slane %v5263_v15, 4 }
 0x210   : > { %17593 = vst [vmem:[#allocation58_spill] sm:$0xff] %v13937_v58  ;;  %17594 = vst [vmem:[#allocation144_spill] sm:$0xff] %v13940_v51  ;;  %7101 = vmatprep.mubr.bf16.mxu1 %v13937_v58  ;;  %v10431_v52 = vpack.c.bf16 %v13797_v13, %v13797_v13  ;;  %v13962_v36 = vmax.f32 %v2357_v53, 0.0  ;;  %v5268_v37 = vrot.slane %v5266_v0, 5  ;;  %v13966_v43 = vmax.f32 %v2349_v20, 0.0 }
 0x211   : > { %v13943_v17 = vpop.f32.mrf.mxu0  ;;  %v13964_v44 = vmax.f32 %v2360_v60, 0.0  ;;  %v13968_v21 = vmax.f32 %v2352_v24, 0.0  ;;  %v13971_v9 = vsel %vm1457_vm0, %v5701_v11, %v5745_v59  ;;  %v5248_v3 = vshll.u32 %v10425_v31, 16  ;;  %v17600_v24 = vld [vmem:[#allocation54_spill] sm:$0xff]  ;;  %v17601_v59 = vld [vmem:[#allocation61_spill] sm:$0xff] }
 0x212   : > { %17597 = vst [vmem:[#allocation57_spill] sm:$0xff] %v13962_v36  ;;  %17599 = vst [vmem:[#allocation145_spill] sm:$0xff] %v13971_v9  ;;  %v5252_v39 = vshrl.u32 %v10425_v31, 16  ;;  %v10426_v15 = vpack.c.bf16 %v13706_v14, %v13706_v14  ;;  %v5272_v0 = vshll.u32 %v10428_v16, 16  ;;  %v5276_v20 = vshrl.u32 %v10428_v16, 16 }
 0x213   : > { %v13958_v41 = vpop.f32.mrf.mxu0  ;;  %17598 = vst [vmem:[#allocation50_spill] sm:$0xff] %v13964_v44  ;;  %7102 = vmatmul.mubr.bf16.gmra.mxu1 %v13971_v9  ;;  %v3979_v11 = vsel %vm11957_vm3, %v17601_v59, %v17600_v24  ;;  %v5231_v57 = vor.u32 %v5230_v38, %v13940_v51  ;;  %v5656_v40 = vshll.u32 %v10431_v52, 16  ;;  %v5660_v53 = vshrl.u32 %v10431_v52, 16  ;;  %17602 = vst [vmem:[#allocation54_spill] sm:$0xff] %v13990_v18 }
 0x214   : > { %v13992_v9 = vrot.slane %v5221_v22, 4  ;;  %v17604_v16 = vpack.c.bf16 %v13593_v49, %v13591_v25  ;;  %v5269_v46 = vor.u32 %v5268_v37, %v5265_v45  ;;  %v14001_v24 = vrot.slane %v5245_v35, 4  ;;  %v5891_v22 = vpop.permute.xlu0 %5890  ;;  %v17610_v49 = vld [vmem:[#allocation55_spill] sm:$0xff] }
 0x215   : > { %v13973_v29 = vpop.f32.mrf.mxu0  ;;  %v14003_v59 = vrot.slane %v5248_v3, 5  ;;  %v5254_v31 = vrot.slane %v5252_v39, 4  ;;  %v14005_v38 = vshll.u32 %v10426_v15, 16  ;;  %v14007_v52 = vrot.slane %v5272_v0, 5  ;;  %v17612_v45 = vld [vmem:[#allocation63_spill] sm:$0xff] }
 0x216   : > { %17603 = vst [vmem:[#allocation61_spill] sm:$0xff] %v13992_v9  ;;  %v13997_v60 = vunpack.c.h.b16 %v17604_v16  ;;  %17606 = vst [vmem:[#allocation147_spill] sm:$0xff] %v14001_v24  ;;  %v5278_v26 = vrot.slane %v5276_v20, 4  ;;  %v2373_v25 = vadd.f32 %v13240_v1, %v13655_v23  ;;  %v17611_v16 = vrot.slane %v17610_v49, 5  ;;  %v5747_v49 = vpop.permute.xlu1 %5746 }
 0x217   : > { %v13986_v58 = vpop.f32.mrf.mxu0  ;;  %17607 = vst [vmem:[#allocation148_spill] sm:$0xff] %v14003_v59  ;;  %17608 = vst [vmem:[#allocation149_spill] sm:$0xff] %v14005_v38  ;;  %v14018_v3 = vrot.slane %v5231_v57, 4  ;;  %v14020_v39 = vrot.slane %v5656_v40, 5  ;;  %v5662_v15 = vrot.slane %v5660_v53, 4  ;;  %v14022_v24 = vrot.slane %v5269_v46, 4 }
 0x218   : > { %17605 = vst [vmem:[#allocation146_spill] sm:$0xff] %v13997_v60  ;;  %17609 = vst [vmem:[#allocation150_spill] sm:$0xff] %v14007_v52  ;;  %v3989_v35 = vsel %vm11957_vm3, %v17612_v45, %v17611_v16  ;;  %v10429_v20 = vpack.c.bf16 %v13814_v47, %v13814_v47  ;;  %v10430_v23 = vpack.c.bf16 %v13816_v55, %v13816_v55  ;;  %v11283_v57 = vld [vmem:[%s11725_s25 + $0xb8] sm:$0xff]   ;;  %v14044_v60 = vmax.f32 %v2373_v25, 0.0 }
 0x219   : > { %v13999_v4 = vpop.f32.mrf.mxu0  ;;  %17614 = vst [vmem:[#allocation63_spill] sm:$0xff] %v14018_v3  ;;  %17615 = vst [vmem:[#allocation151_spill] sm:$0xff] %v14020_v39  ;;  %v10009_v0 = vcombine.low %v3979_v11, %v3989_v35  ;;  %v2376_v16 = vadd.f32 %v13240_v1, %v13681_v7  ;;  %v5255_v40 = vor.u32 %v5254_v31, %v14003_v59  ;;  %7191 = vmatpush1.bf16.msra.mxu1 %v11283_v57 }
 0x21a   : > { %17616 = vst [vmem:[#allocation152_spill] sm:$0xff] %v14022_v24  ;;  %v17617_v53 = vpack.c.bf16 %v13706_v14, %v13704_v5  ;;  %v5279_v24 = vor.u32 %v5278_v26, %v14007_v52  ;;  %v2389_v31 = vadd.f32 %v13240_v1, %v13722_v6  ;;  %v5663_v5 = vor.u32 %v5662_v15, %v14020_v39 }
 0x21b   : > { %v14016_v37 = vpop.f32.mrf.mxu0  ;;  %v14041_v35 = vsel %vm1457_vm0, %v10009_v0, %v5891_v22  ;;  %v14047_v7 = vmax.f32 %v2376_v16, 0.0  ;;  %v10432_v14 = vpack.c.bf16 %v13799_v33, %v13799_v33  ;;  %v17621_v22 = vld [vmem:[#allocation33_spill] sm:$0xff]  ;;  %v17622_v0 = vld [vmem:[#allocation32_spill] sm:$0xff]  ;;  %v2392_v16 = vadd.f32 %v13240_v1, %v13762_v61  ;;  %7192 = vmatprep.subr.bf16.mxu1 %v17383_v48 }
 0x21c   : > { %17613 = vst [vmem:[#allocation55_spill] sm:$0xff] %v14016_v37  ;;  %v14037_v46 = vunpack.c.l.b16 %v17617_v53  ;;  %17619 = vst [vmem:[#allocation154_spill] sm:$0xff] %v14041_v35  ;;  %7109 = vmatprep.mubr.bf16.mxu1 %v14041_v35  ;;  %v17623_v26 = vpack.c.bf16 %v17621_v22, %v17622_v0  ;;  %v14065_v6 = vshll.u32 %v10429_v20, 16  ;;  %v5647_v53 = vshrl.u32 %v10430_v23, 16 }
 0x21d   : > { %v14030_v45 = vpop.f32.mrf.mxu0  ;;  %v5650_v57 = vshll.u32 %v10430_v23, 16  ;;  %v14072_v22 = vrot.slane %v5255_v40, 4  ;;  %v10436_v1 = vpack.c.bf16 %v13888_v8, %v13888_v8  ;;  %v14078_v61 = vmax.f32 %v2392_v16, 0.0 }
 0x21e   : > { %17618 = vst [vmem:[#allocation153_spill] sm:$0xff] %v14037_v46  ;;  %v14060_v25 = vsel %vm1457_vm0, %v17623_v26, %v5747_v49  ;;  %17625 = vst [vmem:[#allocation32_spill] sm:$0xff] %v14065_v6  ;;  %v10433_v49 = vpack.c.bf16 %v13886_v30, %v13886_v30  ;;  %v14080_v20 = vrot.slane %v5279_v24, 4  ;;  %v10434_v23 = vpack.c.bf16 %v13890_v32, %v13890_v32 }
 0x21f   : > { %v14051_v59 = vpop.f32.mrf.mxu0  ;;  %17624 = vst [vmem:[#allocation33_spill] sm:$0xff] %v14060_v25  ;;  %7110 = vmatmul.mubr.bf16.gmra.mxu1 %v14060_v25  ;;  %17626 = vst [vmem:[#allocation156_spill] sm:$0xff] %v14072_v22  ;;  %v10439_v0 = vpack.c.bf16 %v13962_v36, %v13962_v36  ;;  %v14086_v26 = vmax.f32 %v2389_v31, 0.0  ;;  %v14090_v15 = vrot.slane %v5663_v5, 4  ;;  %v17629_v25 = vpack.c.bf16 %v13799_v33, %v13797_v13 }
 0x220   : > { %17620 = vst [vmem:[#allocation155_spill] sm:$0xff] %v14051_v59  ;;  %17627 = vst [vmem:[#allocation157_spill] sm:$0xff] %v14080_v20  ;;  %v14097_v16 = vshll.u32 %v10432_v14, 16  ;;  %v10435_v24 = vpack.c.bf16 %v13881_v28, %v13881_v28  ;;  %v5649_v36 = vrot.slane %v5647_v53, 4  ;;  %v5652_v31 = vrot.slane %v5650_v57, 5  ;;  %v11284_v57 = vld [vmem:[%s11725_s25 + $0xb0] sm:$0xff]  }
 0x221   : > { %v14070_v11 = vpop.f32.mrf.mxu0  ;;  %17628 = vst [vmem:[#allocation158_spill] sm:$0xff] %v14090_v15  ;;  %v14095_v35 = vunpack.c.l.b16 %v17629_v25  ;;  %v17632_v13 = vpack.c.bf16 %v13816_v55, %v13814_v47  ;;  %v3991_v14 = vshrl.u32 %v10433_v49, 16  ;;  %v3994_v25 = vshll.u32 %v10433_v49, 16  ;;  %v14120_v47 = vld [vmem:[%s11880_s15] ss:$0 sm:$0xff]  ;;  %7193 = vmatpush1.bf16.msra.mxu1 %v11284_v57 }
 0x222   : > { %17631 = vst [vmem:[#allocation160_spill] sm:$0xff] %v14097_v16  ;;  %v4018_v30 = vshll.u32 %v10436_v1, 16  ;;  %v4000_v32 = vshll.u32 %v10434_v23, 16  ;;  %v4004_v20 = vshrl.u32 %v10434_v23, 16  ;;  %v4039_v39 = vshrl.u32 %v10439_v0, 16  ;;  %7194 = vmatprep.subr.bf16.mxu1 %v17383_v48 }
 0x223   : > { %v14088_v40 = vpop.f32.mrf.mxu0  ;;  %17630 = vst [vmem:[#allocation159_spill] sm:$0xff] %v14095_v35  ;;  %v14109_v33 = vunpack.c.h.b16 %v17632_v13  ;;  %v4015_v35 = vshrl.u32 %v10436_v1, 16  ;;  %v14115_v5 = vshll.u32 %v10435_v24, 16  ;;  %v10437_v52 = vpack.c.bf16 %v13966_v43, %v13966_v43 }
 0x224   : > { %v2405_v55 = vadd.f32 %v14120_v47, %v13807_v27  ;;  %v5653_v49 = vor.u32 %v5652_v31, %v5649_v36  ;;  %v4042_v1 = vshll.u32 %v10439_v0, 16  ;;  %v10440_v23 = vpack.c.bf16 %v13964_v44, %v13964_v44 }
 0x225   : > { %v14104_v15 = vpop.f32.mrf.mxu0  ;;  %17633 = vst [vmem:[#allocation161_spill] sm:$0xff] %v14109_v33  ;;  %17634 = vst [vmem:[#allocation162_spill] sm:$0xff] %v14115_v5  ;;  %v10443_v13 = vpack.c.bf16 %v14044_v60, %v14044_v60  ;;  %v3993_v24 = vrot.slane %v3991_v14, 4  ;;  %v3996_v6 = vrot.slane %v3994_v25, 5  ;;  %v4017_v16 = vrot.slane %v4015_v35, 4 }
 0x226   : > { %v2408_v22 = vadd.f32 %v14120_v47, %v13847_v63  ;;  %v4020_v27 = vrot.slane %v4018_v30, 5  ;;  %v14133_v36 = vrot.slane %v4000_v32, 5  ;;  %v4006_v0 = vrot.slane %v4004_v20, 4 }
 0x227   : > { %v14111_v53 = vpop.f32.mrf.mxu0  ;;  %v4041_v31 = vrot.slane %v4039_v39, 4  ;;  %v4024_v38 = vshll.u32 %v10437_v52, 16  ;;  %v4028_v46 = vshrl.u32 %v10437_v52, 16  ;;  %v14137_v3 = vmax.f32 %v2405_v55, 0.0 }
 0x228   : > { %17635 = vst [vmem:[#allocation163_spill] sm:$0xff] %v14133_v36  ;;  %v14139_v57 = vmax.f32 %v2408_v22, 0.0  ;;  %v4044_v14 = vrot.slane %v4042_v1, 5  ;;  %v4048_v35 = vshll.u32 %v10440_v23, 16  ;;  %v4052_v25 = vshrl.u32 %v10440_v23, 16 }
 0x229   : > { %v14128_v33 = vpop.f32.mrf.mxu0  ;;  %17636 = vst [vmem:[#allocation164_spill] sm:$0xff] %v14137_v3  ;;  %v4072_v34 = vshll.u32 %v10443_v13, 16  ;;  %v4076_v9 = vshrl.u32 %v10443_v13, 16  ;;  %v2365_v32 = vadd.f32 %v14120_v47, %v13673_v2  ;;  %v2368_v30 = vadd.f32 %v14120_v47, %v13698_v54 }
 0x22a   : > { %17637 = vst [vmem:[#allocation165_spill] sm:$0xff] %v14139_v57  ;;  %v14149_v39 = vrot.slane %v5653_v49, 4  ;;  %v3997_v20 = vor.u32 %v3996_v6, %v3993_v24  ;;  %v2381_v55 = vadd.f32 %v14120_v47, %v13746_v50  ;;  %v4021_v23 = vor.u32 %v4020_v27, %v4017_v16 }
 0x22b   : > { %v14135_v44 = vpop.f32.mrf.mxu0  ;;  %v14156_v13 = vrot.slane %v4024_v38, 5  ;;  %v4030_v2 = vrot.slane %v4028_v46, 4  ;;  %v10438_v54 = vpack.c.bf16 %v13968_v21, %v13968_v21  ;;  %v4007_v51 = vor.u32 %v4006_v0, %v14133_v36 }
 0x22c   : > { %17638 = vst [vmem:[#allocation166_spill] sm:$0xff] %v14149_v39  ;;  %v4045_v52 = vor.u32 %v4044_v14, %v4041_v31  ;;  %v14161_v49 = vrot.slane %v4048_v35, 5  ;;  %v4054_v39 = vrot.slane %v4052_v25, 4  ;;  %v14165_v6 = vrot.slane %v4072_v34, 5 }
 0x22d   : > { %v14141_v63 = vpop.f32.mrf.mxu0  ;;  %17639 = vst [vmem:[#allocation167_spill] sm:$0xff] %v14156_v13  ;;  %v4078_v50 = vrot.slane %v4076_v9, 4  ;;  %v2939_v24 = vmax.f32 %v2365_v32, 0.0  ;;  %v2940_v16 = vmax.f32 %v2368_v30, 0.0  ;;  %v17642_v38 = vpack.c.bf16 %v13888_v8, %v13881_v28  ;;  %v11285_v30 = vld [vmem:[%s11725_s25 + $0xa8] sm:$0xff]  }
 0x22e   : > { %17640 = vst [vmem:[#allocation168_spill] sm:$0xff] %v14161_v49  ;;  %17641 = vst [vmem:[#allocation169_spill] sm:$0xff] %v14165_v6  ;;  %v14172_v27 = vmax.f32 %v2381_v55, 0.0  ;;  %v2384_v0 = vadd.f32 %v14120_v47, %v13786_v10  ;;  %v2421_v31 = vadd.f32 %v14120_v47, %v13883_v19  ;;  %v14180_v9 = vrot.slane %v3997_v20, 4  ;;  %v11286_v20 = vld [vmem:[%s11725_s25 + $0x180] sm:$0xff]   ;;  %7195 = vmatpush1.bf16.msra.mxu1 %v11285_v30 }
 0x22f   : > { %v14154_v1 = vpop.f32.mrf.mxu0  ;;  %v14170_v46 = vunpack.c.h.b16 %v17642_v38  ;;  %v14182_v14 = vrot.slane %v4021_v23, 4  ;;  %v4031_v35 = vor.u32 %v4030_v2, %v14156_v13  ;;  %v14185_v8 = vshll.u32 %v10438_v54, 16  ;;  %7559 = vmatpush1.bf16.msra.mxu0 %v11286_v20  ;;  %7196 = vmatprep.subr.bf16.mxu1 %v17383_v48 }
 0x230   : > { %17644 = vst [vmem:[#allocation171_spill] sm:$0xff] %v14172_v27  ;;  %17645 = vst [vmem:[#allocation172_spill] sm:$0xff] %v14180_v9  ;;  %v14187_v28 = vrot.slane %v4007_v51, 4  ;;  %v14189_v25 = vrot.slane %v4045_v52, 4  ;;  %v2397_v10 = vadd.f32 %v14120_v47, %v13831_v62  ;;  %v2424_v19 = vadd.f32 %v14120_v47, %v13918_v56  ;;  %7560 = vmatprep.subr.bf16.mxu0 %v17383_v48 }
 0x231   : > { %v14163_v22 = vpop.f32.mrf.mxu0  ;;  %17643 = vst [vmem:[#allocation170_spill] sm:$0xff] %v14170_v46  ;;  %17646 = vst [vmem:[#allocation173_spill] sm:$0xff] %v14182_v14  ;;  %v4055_v55 = vor.u32 %v4054_v39, %v14161_v49  ;;  %v4079_v23 = vor.u32 %v4078_v50, %v14165_v6  ;;  %v10441_v2 = vpack.c.bf16 %v2939_v24, %v2939_v24  ;;  %v14203_v52 = vmax.f32 %v2384_v0, 0.0 }
 0x232   : > { %17647 = vst [vmem:[#allocation174_spill] sm:$0xff] %v14185_v8  ;;  %17648 = vst [vmem:[#allocation175_spill] sm:$0xff] %v14187_v28  ;;  %v10442_v54 = vpack.c.bf16 %v2940_v16, %v2940_v16  ;;  %v10445_v51 = vpack.c.bf16 %v14172_v27, %v14172_v27  ;;  %v14205_v38 = vmax.f32 %v2421_v31, 0.0  ;;  %v14207_v62 = vmax.f32 %v2424_v19, 0.0 }
 0x233   : > { %v14178_v34 = vpop.f32.mrf.mxu0  ;;  %17649 = vst [vmem:[#allocation176_spill] sm:$0xff] %v14189_v25  ;;  %17650 = vst [vmem:[#allocation177_spill] sm:$0xff] %v14203_v52  ;;  %v14211_v25 = vrot.slane %v4031_v35, 4  ;;  %v17652_v39 = vpack.c.bf16 %v13968_v21, %v13966_v43  ;;  %v10444_v0 = vpack.c.bf16 %v14047_v7, %v14047_v7  ;;  %v3115_v31 = vpack.c.bf16 %v2940_v16, %v2939_v24 }
 0x234   : > { %v10447_v19 = vpack.c.bf16 %v14086_v26, %v14086_v26  ;;  %v14225_v35 = vmax.f32 %v2397_v10, 0.0  ;;  %v14231_v30 = vrot.slane %v4055_v55, 4  ;;  %v4063_v20 = vshrl.u32 %v10442_v54, 16 }
 0x235   : > { %v14195_v32 = vpop.f32.mrf.mxu0  ;;  %17651 = vst [vmem:[#allocation178_spill] sm:$0xff] %v14211_v25  ;;  %v14216_v50 = vunpack.c.l.b16 %v17652_v39  ;;  %v4066_v39 = vshll.u32 %v10442_v54, 16  ;;  %v10448_v6 = vpack.c.bf16 %v14078_v61, %v14078_v61  ;;  %v14235_v49 = vrot.slane %v4079_v23, 4 }
 0x236   : > { %17654 = vst [vmem:[#allocation180_spill] sm:$0xff] %v14231_v30  ;;  %v14237_v24 = vshll.u32 %v10441_v2, 16  ;;  %v4087_v16 = vshrl.u32 %v10445_v51, 16  ;;  %v10446_v10 = vpack.c.bf16 %v14203_v52, %v14203_v52  ;;  %v17657_v43 = vpack.c.bf16 %v14047_v7, %v14044_v60 }
 0x237   : > { %v14209_v56 = vpop.f32.mrf.mxu0  ;;  %17653 = vst [vmem:[#allocation179_spill] sm:$0xff] %v14216_v50  ;;  %17655 = vst [vmem:[#allocation181_spill] sm:$0xff] %v14235_v49  ;;  %v14248_v30 = vshll.u32 %v10444_v0, 16  ;;  %v4090_v54 = vshll.u32 %v10445_v51, 16  ;;  %v2437_v23 = vadd.f32 %v14120_v47, %v13943_v17  ;;  %v14252_v49 = vunpack.c.h.b16 %v3115_v31 }
 0x238   : > { %17656 = vst [vmem:[#allocation182_spill] sm:$0xff] %v14237_v24  ;;  %v14246_v55 = vunpack.c.l.b16 %v17657_v43  ;;  %v14254_v2 = vshll.u32 %v10447_v19, 16  ;;  %v10451_v46 = vpack.c.bf16 %v14137_v3, %v14137_v3  ;;  %v10449_v25 = vpack.c.bf16 %v14225_v35, %v14225_v35 }
 0x239   : > { %v14229_v21 = vpop.f32.mrf.mxu0  ;;  %17659 = vst [vmem:[#allocation184_spill] sm:$0xff] %v14248_v30  ;;  %17660 = vst [vmem:[#allocation185_spill] sm:$0xff] %v14252_v49  ;;  %v4065_v7 = vrot.slane %v4063_v20, 4  ;;  %v4068_v0 = vrot.slane %v4066_v39, 5  ;;  %v4111_v43 = vshrl.u32 %v10448_v6, 16  ;;  %v2440_v51 = vadd.f32 %v14120_v47, %v13973_v29  ;;  %v11287_v20 = vld [vmem:[%s11725_s25 + $0xa0] sm:$0xff]  }
 0x23a   : > { %17658 = vst [vmem:[#allocation183_spill] sm:$0xff] %v14246_v55  ;;  %17661 = vst [vmem:[#allocation186_spill] sm:$0xff] %v14254_v2  ;;  %v4089_v17 = vrot.slane %v4087_v16, 4  ;;  %v4114_v31 = vshll.u32 %v10448_v6, 16  ;;  %v4096_v55 = vshll.u32 %v10446_v10, 16  ;;  %v4100_v19 = vshrl.u32 %v10446_v10, 16  ;;  %7197 = vmatpush1.bf16.msra.mxu1 %v11287_v20 }
 0x23b   : > { %v14241_v50 = vpop.f32.mrf.mxu0  ;;  %v4092_v8 = vrot.slane %v4090_v54, 5  ;;  %v14266_v3 = vmax.f32 %v2437_v23, 0.0  ;;  %v14268_v14 = vmax.f32 %v2440_v51, 0.0  ;;  %v2453_v13 = vadd.f32 %v14120_v47, %v13999_v4  ;;  %7198 = vmatprep.subr.bf16.mxu1 %v17383_v48  ;;  %v17665_v10 = vld [vmem:[#allocation141_spill] sm:$0xff] }
 0x23c   : > { %v4135_v39 = vshrl.u32 %v10451_v46, 16  ;;  %v4138_v28 = vshll.u32 %v10451_v46, 16  ;;  %v4120_v5 = vshll.u32 %v10449_v25, 16  ;;  %v10452_v29 = vpack.c.bf16 %v14139_v57, %v14139_v57 }
 0x23d   : > { %v14260_v60 = vpop.f32.mrf.mxu0  ;;  %17662 = vst [vmem:[#allocation187_spill] sm:$0xff] %v14266_v3  ;;  %17663 = vst [vmem:[#allocation188_spill] sm:$0xff] %v14268_v14  ;;  %v4124_v16 = vshrl.u32 %v10449_v25, 16  ;;  %v2961_v54 = vmax.f32 %v2453_v13, 0.0  ;;  %v2456_v23 = vadd.f32 %v14120_v47, %v14030_v45  ;;  %v4113_v51 = vrot.slane %v4111_v43, 4 }
 0x23e   : > { %v4116_v4 = vrot.slane %v4114_v31, 5  ;;  %v14281_v9 = vrot.slane %v4096_v55, 5  ;;  %v4102_v46 = vrot.slane %v4100_v19, 4  ;;  %v4069_v18 = vor.u32 %v4068_v0, %v4065_v7 }
 0x23f   : > { %v14264_v49 = vpop.f32.mrf.mxu0  ;;  %v2400_v13 = vadd.f32 %v14120_v47, %v17665_v10  ;;  %v4137_v14 = vrot.slane %v4135_v39, 4  ;;  %v4140_v45 = vrot.slane %v4138_v28, 5  ;;  %v4144_v20 = vshll.u32 %v10452_v29, 16 }
 0x240   : > { %17664 = vst [vmem:[#allocation189_spill] sm:$0xff] %v14281_v9  ;;  %v10463_v43 = vpack.c.bf16 %v2961_v54, %v2961_v54  ;;  %v14292_v55 = vrot.slane %v4120_v5, 5  ;;  %v4126_v19 = vrot.slane %v4124_v16, 4  ;;  %v4148_v59 = vshrl.u32 %v10452_v29, 16 }
 0x241   : > { %v14275_v6 = vpop.f32.mrf.mxu0  ;;  %v2962_v37 = vmax.f32 %v2456_v23, 0.0  ;;  %v4093_v57 = vor.u32 %v4092_v8, %v4089_v17  ;;  %v4117_v24 = vor.u32 %v4116_v4, %v4113_v51  ;;  %v4103_v7 = vor.u32 %v4102_v46, %v14281_v9 }
 0x242   : > { %17666 = vst [vmem:[#allocation141_spill] sm:$0xff] %v14292_v55  ;;  %v14298_v10 = vrot.slane %v4069_v18, 4  ;;  %v17668_v28 = vpack.c.bf16 %v14078_v61, %v14086_v26  ;;  %v2948_v5 = vmax.f32 %v2400_v13, 0.0  ;;  %v4141_v16 = vor.u32 %v4140_v45, %v4137_v14 }
 0x243   : > { %v14283_v36 = vpop.f32.mrf.mxu0  ;;  %v3126_v25 = vpack.c.bf16 %v2962_v37, %v2961_v54  ;;  %v4423_v29 = vshrl.u32 %v10463_v43, 16  ;;  %v4426_v23 = vshll.u32 %v10463_v43, 16  ;;  %v10464_v30 = vpack.c.bf16 %v2962_v37, %v2962_v37  ;;  %v11288_v43 = vld [vmem:[%s11725_s25 + $0x98] sm:$0xff]  }
 0x244   : > { %17667 = vst [vmem:[#allocation190_spill] sm:$0xff] %v14298_v10  ;;  %v14303_v39 = vunpack.c.h.b16 %v17668_v28  ;;  %v4127_v18 = vor.u32 %v4126_v19, %v14292_v55  ;;  %v14310_v51 = vrot.slane %v4144_v20, 5  ;;  %v4150_v4 = vrot.slane %v4148_v59, 4  ;;  %7199 = vmatpush1.bf16.msra.mxu1 %v11288_v43 }
 0x245   : > { %v14290_v31 = vpop.f32.mrf.mxu0  ;;  %5748 = vrot.lane.b32.xlu1 %v3126_v25, %s11528_s28  ;;  %v14313_v61 = vrot.slane %v4093_v57, 4  ;;  %v14315_v26 = vrot.slane %v4117_v24, 4  ;;  %v14317_v14 = vrot.slane %v4103_v7, 4  ;;  %v4432_v37 = vshll.u32 %v10464_v30, 16  ;;  %7200 = vmatprep.subr.bf16.mxu1 %v17383_v48 }
 0x246   : > { %17669 = vst [vmem:[#allocation191_spill] sm:$0xff] %v14303_v39  ;;  %17670 = vst [vmem:[#allocation192_spill] sm:$0xff] %v14310_v51  ;;  %v3119_v46 = vpack.c.bf16 %v2948_v5, %v14225_v35  ;;  %v10450_v13 = vpack.c.bf16 %v2948_v5, %v2948_v5  ;;  %v4436_v45 = vshrl.u32 %v10464_v30, 16  ;;  %v2469_v20 = vadd.f32 %v14120_v47, %v14070_v11  ;;  %v17676_v35 = vld [vmem:[#allocation60_spill] sm:$0xff] }
 0x247   : > { %v14296_v0 = vpop.f32.mrf.mxu0  ;;  %17671 = vst [vmem:[#allocation193_spill] sm:$0xff] %v14313_v61  ;;  %17672 = vst [vmem:[#allocation194_spill] sm:$0xff] %v14315_v26  ;;  %v14325_v59 = vrot.slane %v4141_v16, 4  ;;  %v4425_v25 = vrot.slane %v4423_v29, 4  ;;  %v4428_v57 = vrot.slane %v4426_v23, 5  ;;  %v2461_v24 = vadd.f32 %v14120_v47, %v14088_v40 }
 0x248   : > { %17673 = vst [vmem:[#allocation195_spill] sm:$0xff] %v14317_v14  ;;  %v14331_v7 = vrot.slane %v4127_v18, 4  ;;  %v4151_v28 = vor.u32 %v4150_v4, %v14310_v51  ;;  %v2413_v30 = vadd.f32 %v14120_v47, %v17676_v35  ;;  %v2965_v5 = vmax.f32 %v2469_v20, 0.0 }
 0x249   : > { %v14305_v8 = vpop.f32.mrf.mxu0  ;;  %17674 = vst [vmem:[#allocation196_spill] sm:$0xff] %v14325_v59  ;;  %v14336_v11 = vrot.slane %v4432_v37, 5  ;;  %v2963_v16 = vmax.f32 %v2461_v24, 0.0  ;;  %v2472_v29 = vadd.f32 %v14120_v47, %v14104_v15  ;;  %v2464_v40 = vadd.f32 %v14120_v47, %v14111_v53 }
 0x24a   : > { %17675 = vst [vmem:[#allocation197_spill] sm:$0xff] %v14331_v7  ;;  %v4438_v18 = vrot.slane %v4436_v45, 4  ;;  %v10467_v4 = vpack.c.bf16 %v2965_v5, %v2965_v5  ;;  %v2485_v35 = vadd.f32 %v14120_v47, %v14128_v33  ;;  %v2477_v37 = vadd.f32 %v14120_v47, %v14135_v44 }
 0x24b   : > { %v14319_v54 = vpop.f32.mrf.mxu0  ;;  %v4429_v20 = vor.u32 %v4428_v57, %v4425_v25  ;;  %v10465_v43 = vpack.c.bf16 %v2963_v16, %v2963_v16  ;;  %v2966_v24 = vmax.f32 %v2472_v29, 0.0  ;;  %v2964_v17 = vmax.f32 %v2464_v40, 0.0 }
 0x24c   : > { %v14351_v3 = vunpack.c.l.b16 %v3119_v46  ;;  %v14353_v53 = vshll.u32 %v10450_v13, 16  ;;  %v4456_v59 = vshll.u32 %v10467_v4, 16  ;;  %v4460_v51 = vshrl.u32 %v10467_v4, 16 }
 0x24d   : > { %v14329_v19 = vpop.f32.mrf.mxu0  ;;  %v14355_v45 = vrot.slane %v4151_v28, 4  ;;  %v4442_v39 = vshll.u32 %v10465_v43, 16  ;;  %v14357_v7 = vmax.f32 %v2485_v35, 0.0  ;;  %v14359_v33 = vmax.f32 %v2477_v37, 0.0 }
 0x24e   : > { %17677 = vst [vmem:[#allocation60_spill] sm:$0xff] %v14351_v3  ;;  %17678 = vst [vmem:[#allocation198_spill] sm:$0xff] %v14353_v53  ;;  %v14365_v25 = vpack.c.bf16 %v14205_v38, %v14205_v38  ;;  %v4439_v46 = vor.u32 %v4438_v18, %v14336_v11  ;;  %v3128_v57 = vpack.c.bf16 %v2966_v24, %v2965_v5  ;;  %v4430_v29 = vrot.slane %v4429_v20, 4 }
 0x24f   : > { %v14342_v23 = vpop.f32.mrf.mxu0  ;;  %17679 = vst [vmem:[#allocation199_spill] sm:$0xff] %v14355_v45  ;;  %v10466_v13 = vpack.c.bf16 %v2964_v17, %v2964_v17  ;;  %v14368_v40 = vrot.slane %v4456_v59, 5  ;;  %v10468_v28 = vpack.c.bf16 %v2966_v24, %v2966_v24  ;;  %v3127_v4 = vpack.c.bf16 %v2964_v17, %v2963_v16  ;;  %v11289_v24 = vld [vmem:[%s11725_s25 + $0x90] sm:$0xff]  }
 0x250   : > { %v4462_v37 = vrot.slane %v4460_v51, 4  ;;  %v4444_v43 = vrot.slane %v4442_v39, 5  ;;  %v10471_v26 = vpack.c.bf16 %v14357_v7, %v14357_v7  ;;  %v10469_v18 = vpack.c.bf16 %v14359_v33, %v14359_v33  ;;  %7201 = vmatpush1.bf16.msra.mxu1 %v11289_v24 }
 0x251   : > { %v14349_v15 = vpop.f32.mrf.mxu0  ;;  %v4447_v45 = vshrl.u32 %v10466_v13, 16  ;;  %v4450_v3 = vshll.u32 %v10466_v13, 16  ;;  %v2488_v5 = vadd.f32 %v14120_v47, %v14141_v63  ;;  %v2480_v59 = vadd.f32 %v14120_v47, %v14154_v1  ;;  %7202 = vmatprep.subr.bf16.mxu1 %v17383_v48 }
 0x252   : > { %v14382_v17 = vmax.f32 %v2413_v30, 0.0  ;;  %v14386_v39 = vadd.f32 %v14120_v47, %v13930_v12  ;;  %v4440_v51 = vrot.slane %v4439_v46, 4  ;;  %v3445_v16 = vunpack.c.l.b16 %v3128_v57 }
 0x253   : > { %v14361_v44 = vpop.f32.mrf.mxu0  ;;  %v14389_v13 = vshll.u32 %v10468_v28, 16  ;;  %v4449_v55 = vrot.slane %v4447_v45, 4  ;;  %v4452_v27 = vrot.slane %v4450_v3, 5  ;;  %v2968_v63 = vmax.f32 %v2480_v59, 0.0 }
 0x254   : > { %v3444_v1 = vunpack.c.h.b16 %v3127_v4  ;;  %v14393_v61 = vmax.f32 %v2488_v5, 0.0  ;;  %v2501_v30 = vadd.f32 %v14120_v47, %v14163_v22  ;;  %v4445_v12 = vsel %vm11957_vm3, %v4440_v51, %v4444_v43  ;;  %v11290_v4 = vld [vmem:[%s11725_s25 + $0x1f8] sm:$0xff]  }
 0x255   : > { %v14370_v35 = vpop.f32.mrf.mxu0  ;;  %v4463_v46 = vor.u32 %v4462_v37, %v14368_v40  ;;  %v14400_v57 = vshll.u32 %v10471_v26, 16  ;;  %v4471_v28 = vshrl.u32 %v10469_v18, 16  ;;  %v4435_v3 = vsel %vm11957_vm3, %v4430_v29, %v14336_v11  ;;  %7561 = vmatpush2.bf16.msra.mxu0 %v11290_v4 }
 0x256   : > { %v4474_v5 = vshll.u32 %v10469_v18, 16  ;;  %v10470_v22 = vpack.c.bf16 %v2968_v63, %v2968_v63  ;;  %v14409_v59 = vmax.f32 %v2501_v30, 0.0  ;;  %v10028_v43 = vcombine.low %v4435_v3, %v4445_v12  ;;  %7562 = vmatprep.subr.bf16.mxu0 %v17383_v48 }
 0x257   : > { %v14380_v20 = vpop.f32.mrf.mxu0  ;;  %v14415_v37 = vadd.f32 %v14120_v47, %v13958_v41  ;;  %v4453_v24 = vor.u32 %v4452_v27, %v4449_v55  ;;  %v10472_v29 = vpack.c.bf16 %v14393_v61, %v14393_v61  ;;  %v5722_v30 = vpack.c.b16 %v3445_v16, %v3444_v1 }
 0x258   : > { %v4480_v18 = vshll.u32 %v10470_v22, 16  ;;  %v4484_v9 = vshrl.u32 %v10470_v22, 16  ;;  %5892 = vrot.lane.b32.xlu0 %v10028_v43, %s11528_s28  ;;  %v4464_v12 = vrot.slane %v4463_v46, 4  ;;  %v4468_v3 = vrot.slane %v14389_v13, 5 }
 0x259   : > { %v14391_v52 = vpop.f32.mrf.mxu0  ;;  %v10475_v41 = vpack.c.bf16 %v14409_v59, %v14409_v59  ;;  %v2493_v27 = vadd.f32 %v14120_v47, %v14178_v34  ;;  %v4473_v51 = vrot.slane %v4471_v28, 4  ;;  %v4476_v22 = vrot.slane %v4474_v5, 5  ;;  %5750 = vrot.lane.b32.xlu1 %v5722_v30, %s11528_s28 }
 0x25a   : > { %v14431_v26 = vrot.slane %v4480_v18, 5  ;;  %v4486_v16 = vrot.slane %v4484_v9, 4  ;;  %v2504_v13 = vadd.f32 %v14120_v47, %v14195_v32  ;;  %v3129_v46 = vpack.c.bf16 %v2968_v63, %v14359_v33  ;;  %v11291_v33 = vld [vmem:[%s11725_s25 + $0x88] sm:$0xff]  }
 0x25b   : > { %v14405_v45 = vpop.f32.mrf.mxu0  ;;  %v14434_v1 = vmax.f32 %v2493_v27, 0.0  ;;  %v4454_v43 = vrot.slane %v4453_v24, 4  ;;  %v4495_v53 = vshrl.u32 %v10472_v29, 16  ;;  %v4498_v4 = vshll.u32 %v10472_v29, 16  ;;  %7203 = vmatpush1.bf16.msra.mxu1 %v11291_v33 }
 0x25c   : > { %17680 = vst [vmem:[#allocation200_spill] sm:$0xff] %v14405_v45  ;;  %v2496_v28 = vadd.f32 %v14120_v47, %v14209_v56  ;;  %v4519_v5 = vshrl.u32 %v10475_v41, 16  ;;  %v14445_v9 = vmax.f32 %v2504_v13, 0.0  ;;  %v2517_v30 = vadd.f32 %v14120_v47, %v14229_v21  ;;  %7204 = vmatprep.subr.bf16.mxu1 %v17383_v48 }
 0x25d   : > { %v14417_v11 = vpop.f32.mrf.mxu0  ;;  %v10473_v18 = vpack.c.bf16 %v14434_v1, %v14434_v1  ;;  %v4477_v63 = vor.u32 %v4476_v22, %v4473_v51  ;;  %v3130_v24 = vpack.c.bf16 %v14393_v61, %v14357_v7  ;;  %v4522_v29 = vshll.u32 %v10475_v41, 16  ;;  %5752 = vrot.lane.b32.xlu1 %v3129_v46, %s11528_s28 }
 0x25e   : > { %v2972_v56 = vmax.f32 %v2496_v28, 0.0  ;;  %v4487_v27 = vor.u32 %v4486_v16, %v14431_v26  ;;  %v10476_v13 = vpack.c.bf16 %v14445_v9, %v14445_v9  ;;  %v4497_v21 = vrot.slane %v4495_v53, 4 }
 0x25f   : > { %v14428_v55 = vpop.f32.mrf.mxu0  ;;  %v4504_v14 = vshll.u32 %v10473_v18, 16  ;;  %v4508_v2 = vshrl.u32 %v10473_v18, 16  ;;  %v2977_v51 = vmax.f32 %v2517_v30, 0.0  ;;  %v4459_v61 = vsel %vm11957_vm3, %v4454_v43, %v14368_v40 }
 0x260   : > { %17681 = vst [vmem:[#allocation201_spill] sm:$0xff] %v14428_v55  ;;  %v4521_v7 = vrot.slane %v4519_v5, 4  ;;  %v4528_v41 = vshll.u32 %v10476_v13, 16  ;;  %v4532_v22 = vshrl.u32 %v10476_v13, 16  ;;  %v10474_v16 = vpack.c.bf16 %v2972_v56, %v2972_v56 }
 0x261   : > { %v14439_v34 = vpop.f32.mrf.mxu0  ;;  %v4524_v28 = vrot.slane %v4522_v29, 5  ;;  %v14466_v18 = vrot.slane %v4504_v14, 5  ;;  %v4510_v33 = vrot.slane %v4508_v2, 4  ;;  %v4469_v53 = vsel %vm11957_vm3, %v4464_v12, %v4468_v3  ;;  %v11292_v14 = vld [vmem:[%s11725_s25 + $0x80] sm:$0xff]  }
 0x262   : > { %v4488_v30 = vrot.slane %v4487_v27, 4  ;;  %v10479_v55 = vpack.c.bf16 %v2977_v51, %v2977_v51  ;;  %v10029_v40 = vcombine.low %v4459_v61, %v4469_v53  ;;  %v14472_v5 = vrot.slane %v4528_v41, 5  ;;  %7205 = vmatpush1.bf16.msra.mxu1 %v11292_v14 }
 0x263   : > { %v14449_v32 = vpop.f32.mrf.mxu0  ;;  %v4534_v13 = vrot.slane %v4532_v22, 4  ;;  %v3131_v45 = vpack.c.bf16 %v2972_v56, %v14434_v1  ;;  %v2509_v29 = vadd.f32 %v14120_v47, %v14241_v50  ;;  %v4514_v2 = vshll.u32 %v10474_v16, 16  ;;  %7206 = vmatprep.subr.bf16.mxu1 %v17383_v48 }
 0x264   : > { %17682 = vst [vmem:[#allocation202_spill] sm:$0xff] %v14449_v32  ;;  %v4500_v32 = vrot.slane %v4498_v4, 5  ;;  %v3450_v4 = vunpack.c.h.b16 %v3130_v24  ;;  %5894 = vrot.lane.b32.xlu0 %v10029_v40, %s11528_s28  ;;  %v2520_v12 = vadd.f32 %v14120_v47, %v14260_v60  ;;  %v2512_v3 = vadd.f32 %v14120_v47, %v14264_v49 }
 0x265   : > { %v14458_v10 = vpop.f32.mrf.mxu0  ;;  %v4525_v61 = vor.u32 %v4524_v28, %v4521_v7  ;;  %v4511_v1 = vor.u32 %v4510_v33, %v14466_v18  ;;  %v2975_v56 = vmax.f32 %v2509_v29, 0.0  ;;  %v4552_v50 = vshll.u32 %v10479_v55, 16 }
 0x266   : > { %v4501_v27 = vor.u32 %v4500_v32, %v4497_v21  ;;  %v4556_v41 = vshrl.u32 %v10479_v55, 16  ;;  %v2976_v22 = vmax.f32 %v2512_v3, 0.0  ;;  %v4535_v60 = vor.u32 %v4534_v13, %v14472_v5 }
 0x267   : > { %v14464_v46 = vpop.f32.mrf.mxu0  ;;  %v3451_v49 = vunpack.c.l.b16 %v3131_v45  ;;  %v10477_v53 = vpack.c.bf16 %v2975_v56, %v2975_v56  ;;  %v17685_v32 = vrot.slane %v14400_v57, 5  ;;  %v4516_v7 = vrot.slane %v4514_v2, 5 }
 0x268   : > { %17683 = vst [vmem:[#allocation203_spill] sm:$0xff] %v14464_v46  ;;  %v4478_v46 = vrot.slane %v4477_v63, 4  ;;  %v14486_v63 = vmax.f32 %v2520_v12, 0.0  ;;  %v3133_v55 = vpack.c.bf16 %v2976_v22, %v2975_v56  ;;  %v4512_v29 = vrot.slane %v4511_v1, 4 }
 0x269   : > { %v14470_v43 = vpop.f32.mrf.mxu0  ;;  %v4493_v21 = vsel %vm11957_vm3, %v4488_v30, %v17685_v32  ;;  %v4538_v14 = vshll.u32 %v10477_v53, 16  ;;  %v10478_v13 = vpack.c.bf16 %v2976_v22, %v2976_v22  ;;  %v4502_v12 = vrot.slane %v4501_v27, 4 }
 0x26a   : > { %v3134_v28 = vpack.c.bf16 %v14486_v63, %v2977_v51  ;;  %v4483_v33 = vsel %vm11957_vm3, %v4478_v46, %v14431_v26  ;;  %v4526_v3 = vrot.slane %v4525_v61, 4  ;;  %v14502_v57 = vrot.slane %v4552_v50, 5 }
 0x26b   : > { %v14483_v24 = vpop.f32.mrf.mxu0  ;;  %v10030_v45 = vcombine.low %v4483_v33, %v4493_v21  ;;  %v4536_v51 = vrot.slane %v4535_v60, 4  ;;  %v4540_v2 = vrot.slane %v4538_v14, 5  ;;  %v2533_v56 = vadd.f32 %v14120_v47, %v14275_v6  ;;  %v11293_v60 = vld [vmem:[%s11725_s25 + $0xf8] sm:$0xff]  }
 0x26c   : > { %17684 = vst [vmem:[#allocation204_spill] sm:$0xff] %v14483_v24  ;;  %v4558_v24 = vrot.slane %v4556_v41, 4  ;;  %v5724_v26 = vpack.c.b16 %v3451_v49, %v3450_v4  ;;  %v3457_v46 = vunpack.c.l.b16 %v3134_v28  ;;  %v3456_v1 = vunpack.c.h.b16 %v3133_v55  ;;  %7207 = vmatpush2.bf16.msra.mxu1 %v11293_v60 }
 0x26d   : > { %v14488_v16 = vpop.f32.mrf.mxu0  ;;  %5896 = vrot.lane.b32.xlu0 %v10030_v45, %s11528_s28  ;;  %v2525_v27 = vadd.f32 %v14120_v47, %v14283_v36  ;;  %v2536_v61 = vadd.f32 %v14120_v47, %v14290_v31  ;;  %v4543_v41 = vshrl.u32 %v10478_v13, 16  ;;  %v4546_v22 = vshll.u32 %v10478_v13, 16  ;;  %7208 = vmatprep.subr.bf16.mxu1 %v17383_v48 }
 0x26e   : > { %5754 = vrot.lane.b32.xlu1 %v5724_v26, %s11528_s28  ;;  %v4507_v6 = vsel %vm11957_vm3, %v4502_v12, %v14466_v18  ;;  %v4517_v4 = vsel %vm11957_vm3, %v4512_v29, %v4516_v7  ;;  %v2528_v31 = vadd.f32 %v14120_v47, %v14296_v0  ;;  %v3132_v21 = vpack.c.bf16 %v14445_v9, %v14409_v59 }
 0x26f   : > { %v14500_v40 = vpop.f32.mrf.mxu0  ;;  %v14522_v49 = vmax.f32 %v2525_v27, 0.0  ;;  %v14524_v36 = vmax.f32 %v2536_v61, 0.0  ;;  %v10031_v53 = vcombine.low %v4507_v6, %v4517_v4  ;;  %v14532_v28 = vmax.f32 %v2533_v56, 0.0 }
 0x270   : > { %v2549_v18 = vadd.f32 %v14120_v47, %v14305_v8  ;;  %v4541_v7 = vsel %vm11957_vm3, %v4536_v51, %v4540_v2  ;;  %v10480_v55 = vpack.c.bf16 %v14486_v63, %v14486_v63  ;;  %v2980_v33 = vmax.f32 %v2528_v31, 0.0 }
 0x271   : > { %v14504_v30 = vpop.f32.mrf.mxu0  ;;  %v10481_v0 = vpack.c.bf16 %v14522_v49, %v14522_v49  ;;  %5898 = vrot.lane.b32.xlu0 %v10031_v53, %s11528_s28  ;;  %v4531_v59 = vsel %vm11957_vm3, %v4526_v3, %v14472_v5  ;;  %v4545_v8 = vrot.slane %v4543_v41, 4  ;;  %v4548_v29 = vrot.slane %v4546_v22, 5 }
 0x272   : > { %5756 = vrot.lane.b32.xlu1 %v3132_v21, %s11528_s28  ;;  %v10032_v14 = vcombine.low %v4531_v59, %v4541_v7  ;;  %v5726_v63 = vpack.c.b16 %v3457_v46, %v3456_v1  ;;  %v4172_v13 = vshrl.u32 %v14365_v25, 16  ;;  %v4559_v45 = vor.u32 %v4558_v24, %v14502_v57 }
 0x273   : > { %v14513_v50 = vpop.f32.mrf.mxu0  ;;  %v10484_v12 = vpack.c.bf16 %v14524_v36, %v14524_v36  ;;  %v14554_v51 = vmax.f32 %v2549_v18, 0.0  ;;  %v4567_v5 = vshrl.u32 %v10481_v0, 16  ;;  %v4570_v3 = vshll.u32 %v10481_v0, 16 }
 0x274   : > { %v10482_v2 = vpack.c.bf16 %v2980_v33, %v2980_v33  ;;  %v2541_v56 = vadd.f32 %v14120_v47, %v14319_v54  ;;  %v14561_v27 = vmax.f32 %v14386_v39, 0.0  ;;  %v14565_v46 = vadd.f32 %v14120_v47, %v13986_v58 }
 0x275   : > { %v14528_v32 = vpop.f32.mrf.mxu0  ;;  %v10483_v24 = vpack.c.bf16 %v14532_v28, %v14532_v28  ;;  %5900 = vrot.lane.b32.xlu0 %v10032_v14, %s11528_s28  ;;  %v2552_v1 = vadd.f32 %v14120_v47, %v14329_v19  ;;  %v4562_v61 = vshll.u32 %v10480_v55, 16  ;;  %v4549_v41 = vor.u32 %v4548_v29, %v4545_v8 }
 0x276   : > { %v4576_v54 = vshll.u32 %v10482_v2, 16  ;;  %v4580_v22 = vshrl.u32 %v10482_v2, 16  ;;  %5758 = vrot.lane.b32.xlu1 %v5726_v63, %s11528_s28  ;;  %v4560_v39 = vrot.slane %v4559_v45, 4  ;;  %v4591_v6 = vshrl.u32 %v10484_v12, 16  ;;  %v11294_v63 = vld [vmem:[%s11725_s25 + $0x1f0] sm:$0xff]  }
 0x277   : > { %v14546_v9 = vpop.f32.mrf.mxu0  ;;  %v2983_v4 = vmax.f32 %v2541_v56, 0.0  ;;  %v14573_v58 = vmax.f32 %v2552_v1, 0.0  ;;  %v4569_v60 = vrot.slane %v4567_v5, 4  ;;  %v4572_v53 = vrot.slane %v4570_v3, 5  ;;  %7563 = vmatpush2.bf16.msra.mxu0 %v11294_v63 }
 0x278   : > { %v4594_v31 = vshll.u32 %v10484_v12, 16  ;;  %v10487_v21 = vpack.c.bf16 %v14554_v51, %v14554_v51  ;;  %v14579_v19 = vshll.u32 %v10483_v24, 16  ;;  %v14581_v7 = vrot.slane %v4576_v54, 5  ;;  %7564 = vmatprep.subr.bf16.mxu0 %v17383_v48 }
 0x279   : > { %v14558_v26 = vpop.f32.mrf.mxu0  ;;  %v4582_v55 = vrot.slane %v4580_v22, 4  ;;  %v10485_v0 = vpack.c.bf16 %v2983_v4, %v2983_v4  ;;  %v4564_v59 = vrot.slane %v4562_v61, 5  ;;  %v4550_v8 = vrot.slane %v4549_v41, 4 }
 0x27a   : > { %v10488_v29 = vpack.c.bf16 %v14573_v58, %v14573_v58  ;;  %v3135_v14 = vpack.c.bf16 %v2980_v33, %v14522_v49  ;;  %v3136_v45 = vpack.c.bf16 %v14524_v36, %v14532_v28  ;;  %v2544_v3 = vadd.f32 %v14120_v47, %v14342_v23  ;;  %v11295_v36 = vld [vmem:[%s11725_s25 + $0xf0] sm:$0xff]  }
 0x27b   : > { %v14577_v18 = vpop.f32.mrf.mxu0  ;;  %v4600_v12 = vshll.u32 %v10485_v0, 16  ;;  %v4604_v5 = vshrl.u32 %v10485_v0, 16  ;;  %v4573_v2 = vor.u32 %v4572_v53, %v4569_v60  ;;  %v4593_v56 = vrot.slane %v4591_v6, 4  ;;  %7209 = vmatpush2.bf16.msra.mxu1 %v11295_v36 }
 0x27c   : > { %v4596_v24 = vrot.slane %v4594_v31, 5  ;;  %v4615_v1 = vshrl.u32 %v10487_v21, 16  ;;  %5760 = vrot.lane.b32.xlu1 %v3135_v14, %s11528_s28  ;;  %v4583_v49 = vor.u32 %v4582_v55, %v14581_v7  ;;  %v4618_v33 = vshll.u32 %v10487_v21, 16  ;;  %7210 = vmatprep.subr.bf16.mxu1 %v17383_v48 }
 0x27d   : > { %v14592_v61 = vpop.f32.mrf.mxu0  ;;  %v4624_v41 = vshll.u32 %v10488_v29, 16  ;;  %v2984_v54 = vmax.f32 %v2544_v3, 0.0  ;;  %v14597_v28 = vrot.slane %v4600_v12, 5  ;;  %v4628_v23 = vshrl.u32 %v10488_v29, 16 }
 0x27e   : > { %v2565_v22 = vadd.f32 %v14120_v47, %v14349_v15  ;;  %v4555_v6 = vsel %vm11957_vm3, %v4550_v8, %v14502_v57  ;;  %v4606_v60 = vrot.slane %v4604_v5, 4  ;;  %v4565_v21 = vsel %vm11957_vm3, %v4560_v39, %v4564_v59 }
 0x27f   : > { %v3137_v53 = vpack.c.bf16 %v2984_v54, %v2983_v4  ;;  %v10486_v31 = vpack.c.bf16 %v2984_v54, %v2984_v54  ;;  %v4597_v55 = vor.u32 %v4596_v24, %v4593_v56  ;;  %v4617_v0 = vrot.slane %v4615_v1, 4  ;;  %v14608_v63 = vpop.f32.mrf.mxu0 }
 0x280   : > { %v10033_v14 = vcombine.low %v4555_v6, %v4565_v21  ;;  %v2557_v29 = vadd.f32 %v14120_v47, %v14361_v44  ;;  %v4574_v15 = vrot.slane %v4573_v2, 4  ;;  %v4584_v12 = vrot.slane %v4583_v49, 4 }
 0x281   : > { %v4620_v57 = vrot.slane %v4618_v33, 5  ;;  %v2568_v4 = vadd.f32 %v14120_v47, %v14370_v35  ;;  %v14613_v8 = vrot.slane %v4624_v41, 5  ;;  %v4630_v39 = vrot.slane %v4628_v23, 4  ;;  %v14629_v33 = vpop.f32.mrf.mxu0 }
 0x282   : > { %v3463_v59 = vunpack.c.l.b16 %v3137_v53  ;;  %5902 = vrot.lane.b32.xlu0 %v10033_v14, %s11528_s28  ;;  %v14616_v5 = vmax.f32 %v2557_v29, 0.0  ;;  %v4607_v44 = vor.u32 %v4606_v60, %v14597_v28  ;;  %v4610_v3 = vshll.u32 %v10486_v31, 16 }
 0x283   : > { %v14619_v56 = vmax.f32 %v2565_v22, 0.0  ;;  %v14621_v24 = vmax.f32 %v2568_v4, 0.0  ;;  %v14624_v2 = vmax.f32 %v14415_v37, 0.0  ;;  %v4588_v35 = vrot.slane %v14579_v19, 5 }
 0x284   : > { %v3462_v1 = vunpack.c.h.b16 %v3136_v45  ;;  %v10489_v49 = vpack.c.bf16 %v14616_v5, %v14616_v5  ;;  %v14632_v41 = vmax.f32 %v14565_v46, 0.0  ;;  %v4598_v54 = vrot.slane %v4597_v55, 4 }
 0x285   : > { %17686 = vst [vmem:[#allocation205_spill] sm:$0xff] %v14624_v2  ;;  %v4621_v36 = vor.u32 %v4620_v57, %v4617_v0  ;;  %v4631_v22 = vor.u32 %v4630_v39, %v14613_v8  ;;  %v2581_v37 = vadd.f32 %v14120_v47, %v14391_v52  ;;  %v4589_v19 = vsel %vm11957_vm3, %v4584_v12, %v4588_v35  ;;  %v14653_v0 = vpop.f32.mrf.mxu0  ;;  %v11296_v39 = vld [vmem:[%s11725_s25 + $0xe8] sm:$0xff]  }
 0x286   : > { %17687 = vst [vmem:[#allocation206_spill] sm:$0xff] %v14632_v41  ;;  %v5728_v45 = vpack.c.b16 %v3463_v59, %v3462_v1  ;;  %v4608_v6 = vrot.slane %v4607_v44, 4  ;;  %v4612_v60 = vrot.slane %v4610_v3, 5  ;;  %v4634_v53 = vshll.u32 %v10489_v49, 16  ;;  %7211 = vmatpush2.bf16.msra.mxu1 %v11296_v39 }
 0x287   : > { %v4579_v46 = vsel %vm11957_vm3, %v4574_v15, %v14581_v7  ;;  %v17688_v31 = vshll.u32 %v14365_v25, 16  ;;  %v10453_v47 = vpack.c.bf16 %v14382_v17, %v14382_v17  ;;  %v10456_v52 = vpack.c.bf16 %v14207_v62, %v14207_v62  ;;  %v14671_v25 = vld [vmem:[%s11880_s15] ss:$0 sm:$0xff]  ;;  %7212 = vmatprep.subr.bf16.mxu1 %v17383_v48 }
 0x288   : > { %v10034_v55 = vcombine.low %v4579_v46, %v4589_v19  ;;  %5762 = vrot.lane.b32.xlu1 %v5728_v45, %s11528_s28  ;;  %v14657_v14 = vrot.slane %v4172_v13, 4  ;;  %v10454_v7 = vpack.c.bf16 %v14561_v27, %v14561_v27  ;;  %v10457_v29 = vpack.c.bf16 %v14624_v2, %v14624_v2 }
 0x289   : > { %v14646_v21 = vrot.slane %v17688_v31, 5  ;;  %v10458_v15 = vpack.c.bf16 %v14632_v41, %v14632_v41  ;;  %v4622_v12 = vrot.slane %v4621_v36, 4  ;;  %v3138_v57 = vpack.c.bf16 %v14573_v58, %v14554_v51 }
 0x28a   : > { %v14667_v4 = vmax.f32 %v2581_v37, 0.0  ;;  %5904 = vrot.lane.b32.xlu0 %v10034_v55, %s11528_s28  ;;  %v2584_v13 = vadd.f32 %v14671_v25, %v14417_v11  ;;  %v4632_v59 = vrot.slane %v4631_v22, 4  ;;  %v4636_v44 = vrot.slane %v4634_v53, 5  ;;  %v14688_v11 = vpop.f32.mrf.mxu0  ;;  %v14695_v19 = vpop.f32.mrf.mxu1 }
 0x28b   : > { %v4603_v3 = vsel %vm11957_vm3, %v4598_v54, %v14597_v28  ;;  %v4613_v35 = vsel %vm11957_vm3, %v4608_v6, %v4612_v60  ;;  %v14681_v51 = vshll.u32 %v10453_v47, 16  ;;  %v3121_v58 = vpack.c.bf16 %v14561_v27, %v14382_v17  ;;  %17690 = vst [vmem:[#allocation207_spill] sm:$0xff] %v14695_v19  ;;  %v17691_v27 = vld [vmem:[#allocation187_spill] sm:$0xff]  ;;  %v17710_v60 = vld [vmem:[#allocation9_spill] sm:$0xff] }
 0x28c   : > { %v14685_v1 = vmax.f32 %v2584_v13, 0.0  ;;  %v10035_v49 = vcombine.low %v4603_v3, %v4613_v35  ;;  %5764 = vrot.lane.b32.xlu1 %v3138_v57, %s11528_s28  ;;  %v17689_v36 = vpack.c.bf16 %v14207_v62, %v14205_v38  ;;  %v4159_v54 = vshrl.u32 %v10454_v7, 16  ;;  %v7049_v31 = vpop.f32.mrf.mxu1  ;;  %v17696_v3 = vld [vmem:[#allocation55_spill] sm:$0xff] }
 0x28d   : > { %v4162_v22 = vshll.u32 %v10454_v7, 16  ;;  %v4183_v37 = vshrl.u32 %v10457_v29, 16  ;;  %v14698_v17 = vshll.u32 %v10456_v52, 16  ;;  %v10459_v45 = vpack.c.bf16 %v17691_v27, %v17691_v27  ;;  %v17709_v52 = vld [vmem:[#allocation30_spill] sm:$0xff] }
 0x28e   : > { %v14693_v28 = vunpack.c.l.b16 %v17689_v36  ;;  %v4186_v6 = vshll.u32 %v10457_v29, 16  ;;  %5906 = vrot.lane.b32.xlu0 %v10035_v49, %s11528_s28  ;;  %v4192_v38 = vshll.u32 %v10458_v15, 16  ;;  %v4196_v62 = vshrl.u32 %v10458_v15, 16  ;;  %v17692_v29 = vld [vmem:[#allocation101_spill] sm:$0xff]  ;;  %v17693_v15 = vld [vmem:[#allocation100_spill] sm:$0xff] }
 0x28f   : > { %v4627_v53 = vsel %vm11957_vm3, %v4622_v12, %v14613_v8  ;;  %v4637_v46 = vsel %vm11957_vm3, %v4632_v59, %v4636_v44  ;;  %v4175_v47 = vor.u32 %v14657_v14, %v14646_v21  ;;  %v14713_v55 = vunpack.c.h.b16 %v3121_v58  ;;  %v14721_v8 = vpop.f32.mrf.mxu0  ;;  %v14725_v59 = vpop.f32.mrf.mxu1 }
 0x290   : > { %v10491_v7 = vpack.c.bf16 %v14619_v56, %v14619_v56  ;;  %v17694_v57 = vpack.c.bf16 %v17692_v29, %v17693_v15  ;;  %v4161_v12 = vrot.slane %v4159_v54, 4  ;;  %v4164_v13 = vrot.slane %v4162_v22, 5  ;;  %17695 = vst [vmem:[#allocation187_spill] sm:$0xff] %v14725_v59  ;;  %v17698_v22 = vld [vmem:[#allocation155_spill] sm:$0xff] }
 0x291   : > { %v4185_v39 = vrot.slane %v4183_v37, 4  ;;  %v2560_v14 = vadd.f32 %v14671_v25, %v14380_v20  ;;  %v4188_v44 = vrot.slane %v4186_v6, 5  ;;  %v2445_v35 = vadd.f32 %v14671_v25, %v17696_v3  ;;  %v7052_v29 = vpop.f32.mrf.mxu1  ;;  %v17701_v3 = vld [vmem:[#allocation27_spill] sm:$0xff] }
 0x292   : > { %5946 = vrot.lane.b32.xlu1 %v17694_v57, %s11528_s28  ;;  %v2597_v58 = vadd.f32 %v14671_v25, %v14439_v34  ;;  %v10036_v49 = vcombine.low %v4627_v53, %v4637_v46  ;;  %v14732_v31 = vrot.slane %v4192_v38, 5  ;;  %v4198_v54 = vrot.slane %v4196_v62, 4  ;;  %v14741_v34 = vpop.f32.mrf.mxu0  ;;  %v17700_v62 = vld [vmem:[#allocation122_spill] sm:$0xff] }
 0x293   : > { %v2448_v37 = vadd.f32 %v14671_v25, %v17698_v22  ;;  %v14736_v20 = vshll.u32 %v10459_v45, 16  ;;  %v5584_v15 = vshll.u32 %v10491_v7, 16  ;;  %v5588_v6 = vshrl.u32 %v10491_v7, 16 }
 0x294   : > { %17697 = vst [vmem:[#allocation101_spill] sm:$0xff] %v14732_v31  ;;  %5908 = vrot.lane.b32.xlu0 %v10036_v49, %s11528_s28  ;;  %v2600_v57 = vadd.f32 %v14671_v25, %v14458_v10  ;;  %v14743_v53 = vrot.slane %v4175_v47, 4  ;;  %v4165_v38 = vor.u32 %v4164_v13, %v4161_v12  ;;  %v14745_v46 = vmax.f32 %v2560_v14, 0.0  ;;  %v17706_v47 = vld [vmem:[#allocation26_spill] sm:$0xff] }
 0x295   : > { %17699 = vst [vmem:[#allocation100_spill] sm:$0xff] %v14736_v20  ;;  %v5083_v45 = vsel %vm11957_vm3, %v17701_v3, %v17700_v62  ;;  %v4189_v22 = vor.u32 %v4188_v44, %v4185_v39  ;;  %v14751_v29 = vmax.f32 %v2445_v35, 0.0  ;;  %v14753_v7 = vmax.f32 %v2597_v58, 0.0  ;;  %v17708_v13 = vld [vmem:[#allocation38_spill] sm:$0xff]  ;;  %v17712_v35 = vld [vmem:[#allocation200_spill] sm:$0xff] }
 0x296   : > { %v14755_v49 = vmax.f32 %v2600_v57, 0.0  ;;  %v4199_v10 = vor.u32 %v4198_v54, %v14732_v31  ;;  %v14758_v36 = vmax.f32 %v2448_v37, 0.0  ;;  %v17707_v12 = vrot.slane %v17706_v47, 5  ;;  %v14773_v37 = vpop.f32.mrf.mxu0 }
 0x297   : > { %17702 = vst [vmem:[#allocation55_spill] sm:$0xff] %v14751_v29  ;;  %17703 = vst [vmem:[#allocation155_spill] sm:$0xff] %v14753_v7  ;;  %v5929_v62 = vpack.c.b16 %v17710_v60, %v17709_v52  ;;  %v14767_v39 = vrot.slane %v5584_v15, 5  ;;  %v5590_v44 = vrot.slane %v5588_v6, 4  ;;  %v2573_v58 = vadd.f32 %v14671_v25, %v17712_v35  ;;  %v17713_v60 = vld [vmem:[#allocation126_spill] sm:$0xff]  ;;  %v17715_v35 = vld [vmem:[#allocation201_spill] sm:$0xff] }
 0x298   : > { %17704 = vst [vmem:[#allocation122_spill] sm:$0xff] %v14755_v49  ;;  %17705 = vst [vmem:[#allocation27_spill] sm:$0xff] %v14758_v36  ;;  %v5093_v14 = vsel %vm11957_vm3, %v17708_v13, %v17707_v12  ;;  %v10492_v57 = vpack.c.bf16 %v14621_v24, %v14621_v24  ;;  %v10490_v3 = vpack.c.bf16 %v14745_v46, %v14745_v46  ;;  %v17714_v52 = vld [vmem:[#allocation14_spill] sm:$0xff]  ;;  %v14784_v6 = vrot.slane %v4165_v38, 4 }
 0x299   : > { %17711 = vst [vmem:[#allocation26_spill] sm:$0xff] %v14767_v39  ;;  %v10055_v47 = vcombine.low %v5083_v45, %v5093_v14  ;;  %5948 = vrot.lane.b32.xlu1 %v5929_v62, %s11528_s28  ;;  %v5107_v15 = vsel %vm11957_vm3, %v17714_v52, %v17713_v60  ;;  %v2576_v54 = vadd.f32 %v14671_v25, %v17715_v35  ;;  %v11297_v45 = vld [vmem:[%s11725_s25 + $0xe0] sm:$0xff]   ;;  %v14794_v14 = vrot.slane %v4189_v22, 4  ;;  %v17718_v62 = vld [vmem:[#allocation188_spill] sm:$0xff] }
 0x29a   : > { %v14791_v23 = vpop.f32.mrf.mxu1  ;;  %v17719_v59 = vpack.c.bf16 %v17718_v62, %v17691_v27  ;;  %v3125_v38 = vpack.c.bf16 %v14758_v36, %v14751_v29  ;;  %v17721_v60 = vld [vmem:[#allocation10_spill] sm:$0xff]  ;;  %v10495_v22 = vpack.c.bf16 %v14667_v4, %v14667_v4  ;;  %v14811_v12 = vmax.f32 %v2573_v58, 0.0  ;;  %v14815_v62 = vpop.f32.mrf.mxu0  ;;  %7213 = vmatpush2.bf16.msra.mxu1 %v11297_v45 }
 0x29b   : > { %17716 = vst [vmem:[#allocation38_spill] sm:$0xff] %v14791_v23  ;;  %17717 = vst [vmem:[#allocation30_spill] sm:$0xff] %v14794_v14  ;;  %6090 = vrot.lane.b32.xlu0 %v10055_v47, %s11528_s28  ;;  %v17722_v52 = vrot.slane %v17721_v60, 5  ;;  %v17723_v13 = vld [vmem:[#allocation34_spill] sm:$0xff]  ;;  %v2613_v27 = vadd.f32 %v14671_v25, %v14470_v43  ;;  %v14817_v47 = vrot.slane %v4199_v10, 4  ;;  %v5591_v60 = vor.u32 %v5590_v44, %v14767_v39  ;;  %v17729_v43 = vld [vmem:[#allocation127_spill] sm:$0xff] }
 0x29c   : > { %v14799_v19 = vunpack.c.h.b16 %v17719_v59  ;;  %17724 = vst [vmem:[#allocation200_spill] sm:$0xff] %v14811_v12  ;;  %v7057_v23 = vpop.f32.mrf.mxu1  ;;  %v14820_v36 = vshll.u32 %v10492_v57, 16  ;;  %7214 = vmatprep.subr.bf16.mxu1 %v17383_v48  ;;  %v5578_v58 = vshll.u32 %v10490_v3, 16  ;;  %v17728_v29 = vld [vmem:[#allocation22_spill] sm:$0xff]  ;;  %v14831_v10 = vunpack.c.l.b16 %v3125_v38  ;;  %v17756_v39 = vld [vmem:[#allocation43_spill] sm:$0xff] }
 0x29d   : > { %v5117_v35 = vsel %vm11957_vm3, %v17723_v13, %v17722_v52  ;;  %17725 = vst [vmem:[#allocation126_spill] sm:$0xff] %v14817_v47  ;;  %v5575_v13 = vshrl.u32 %v10490_v3, 16  ;;  %v14823_v52 = vmax.f32 %v2576_v54, 0.0  ;;  %v2616_v23 = vadd.f32 %v14671_v25, %v14488_v16  ;;  %v17734_v54 = vld [vmem:[#allocation202_spill] sm:$0xff]  ;;  %v17758_v47 = vld [vmem:[#allocation7_spill] sm:$0xff] }
 0x29e   : > { %17720 = vst [vmem:[#allocation9_spill] sm:$0xff] %v14799_v19  ;;  %v10056_v59 = vcombine.low %v5107_v15, %v5117_v35  ;;  %17726 = vst [vmem:[#allocation14_spill] sm:$0xff] %v14820_v36  ;;  %v3099_v15 = vpack.c.bf16 %v17729_v43, %v17728_v29  ;;  %v14829_v45 = vpop.f32.mrf.mxu1  ;;  %v17732_v44 = vpack.c.bf16 %v14621_v24, %v14619_v56  ;;  %v11298_v29 = vld [vmem:[%s11725_s25 + $0x1e8] sm:$0xff]   ;;  %v14844_v43 = vshll.u32 %v10495_v22, 16 }
 0x29f   : > { %17727 = vst [vmem:[#allocation201_spill] sm:$0xff] %v14823_v52  ;;  %17730 = vst [vmem:[#allocation10_spill] sm:$0xff] %v14829_v45  ;;  %v3139_v3 = vpack.c.bf16 %v14745_v46, %v14616_v5  ;;  %v2589_v35 = vadd.f32 %v14671_v25, %v17734_v54  ;;  %v10493_v16 = vpack.c.bf16 %v14811_v12, %v14811_v12  ;;  %v14848_v38 = vmax.f32 %v2613_v27, 0.0  ;;  %v17738_v54 = vld [vmem:[#allocation44_spill] sm:$0xff] }
 0x2a0   : > { %17731 = vst [vmem:[#allocation34_spill] sm:$0xff] %v14831_v10  ;;  %v14836_v57 = vunpack.c.l.b16 %v17732_v44  ;;  %6092 = vrot.lane.b32.xlu0 %v10056_v59, %s11528_s28  ;;  %17735 = vst [vmem:[#allocation127_spill] sm:$0xff] %v14844_v43  ;;  %5950 = vrot.lane.b32.xlu1 %v3099_v15, %s11528_s28  ;;  %v14851_v56 = vmax.f32 %v2616_v23, 0.0  ;;  %v7060_v24 = vpop.f32.mrf.mxu1  ;;  %v14853_v44 = vpop.f32.mrf.mxu0  ;;  %v14855_v5 = vrot.slane %v5591_v60, 4  ;;  %v10496_v22 = vpack.c.bf16 %v14685_v1, %v14685_v1  ;;  %v17737_v59 = vld [vmem:[#allocation129_spill] sm:$0xff]  ;;  %v17748_v43 = vld [vmem:[#allocation134_spill] sm:$0xff] }
 0x2a1   : > { %v5131_v27 = vsel %vm11957_vm3, %v17738_v54, %v17737_v59  ;;  %7565 = vmatpush2.bf16.msra.mxu0 %v11298_v29  ;;  %v14864_v45 = vrot.slane %v5575_v13, 4  ;;  %v14866_v15 = vrot.slane %v5578_v58, 5  ;;  %v10494_v23 = vpack.c.bf16 %v14823_v52, %v14823_v52  ;;  %v17741_v59 = vld [vmem:[#allocation29_spill] sm:$0xff]  ;;  %v17743_v13 = vld [vmem:[#allocation131_spill] sm:$0xff] }
 0x2a2   : > { %17733 = vst [vmem:[#allocation22_spill] sm:$0xff] %v14836_v57  ;;  %17736 = vst [vmem:[#allocation202_spill] sm:$0xff] %v14855_v5  ;;  %7566 = vmatprep.subr.bf16.mxu0 %v17383_v48  ;;  %v14875_v46 = vunpack.c.h.b16 %v3139_v3  ;;  %v14877_v12 = vmax.f32 %v2589_v35, 0.0  ;;  %v17742_v29 = vrot.slane %v17741_v59, 5  ;;  %v17744_v54 = vld [vmem:[#allocation13_spill] sm:$0xff]  ;;  %v4855_v60 = vshrl.u32 %v10493_v16, 16  ;;  %v14889_v2 = vpop.f32.mrf.mxu0 }
 0x2a3   : > { %v17745_v10 = vld [vmem:[#allocation133_spill] sm:$0xff]  ;;  %v2629_v3 = vadd.f32 %v14671_v25, %v14504_v30  ;;  %v4879_v59 = vshrl.u32 %v10496_v22, 16  ;;  %v4882_v41 = vshll.u32 %v10496_v22, 16  ;;  %v4868_v19 = vshrl.u32 %v10494_v23, 16 }
 0x2a4   : > { %17740 = vst [vmem:[#allocation44_spill] sm:$0xff] %v14875_v46  ;;  %v5141_v58 = vsel %vm11957_vm3, %v17743_v13, %v17742_v29  ;;  %v5931_v52 = vpack.c.b16 %v17745_v10, %v17744_v54  ;;  %v17746_v29 = vld [vmem:[#allocation35_spill] sm:$0xff]  ;;  %v17747_v13 = vld [vmem:[#allocation130_spill] sm:$0xff]  ;;  %v5581_v54 = vor.u32 %v14866_v15, %v14864_v45  ;;  %v17749_v30 = vrot.slane %v17748_v43, 5 }
 0x2a5   : > { %v10057_v5 = vcombine.low %v5131_v27, %v5141_v58  ;;  %v5155_v10 = vsel %vm11957_vm3, %v17747_v13, %v17746_v29  ;;  %v11300_v27 = vld [vmem:[%s11725_s25 + $0x1e0] sm:$0xff]   ;;  %v10499_v58 = vpack.c.bf16 %v14753_v7, %v14753_v7  ;;  %v10497_v29 = vpack.c.bf16 %v14877_v12, %v14877_v12  ;;  %v17752_v13 = vld [vmem:[#allocation36_spill] sm:$0xff] }
 0x2a6   : > { %v14872_v24 = vpop.f32.mrf.mxu1  ;;  %5952 = vrot.lane.b32.xlu1 %v5931_v52, %s11528_s28  ;;  %v11299_v52 = vld [vmem:[%s11725_s25 + $0xd8] sm:$0xff]   ;;  %v10500_v45 = vpack.c.bf16 %v14755_v49, %v14755_v49  ;;  %v14914_v15 = vmax.f32 %v2629_v3, 0.0  ;;  %v4857_v3 = vrot.slane %v4855_v60, 4  ;;  %v14930_v46 = vrot.slane %v4879_v59, 4  ;;  %7567 = vmatpush2.bf16.msra.mxu0 %v11300_v27 }
 0x2a7   : > { %17739 = vst [vmem:[#allocation129_spill] sm:$0xff] %v14872_v24  ;;  %v4858_v24 = vshll.u32 %v10493_v16, 16  ;;  %v4864_v16 = vshll.u32 %v10494_v23, 16  ;;  %6094 = vrot.lane.b32.xlu0 %v10057_v5, %s11528_s28  ;;  %v2632_v23 = vadd.f32 %v14671_v25, %v14528_v32  ;;  %v14927_v5 = vpop.f32.mrf.mxu0  ;;  %7215 = vmatpush2.bf16.msra.mxu1 %v11299_v52  ;;  %v14932_v32 = vrot.slane %v4882_v41, 5  ;;  %v17762_v52 = vld [vmem:[#allocation138_spill] sm:$0xff] }
 0x2a8   : > { %v7065_v35 = vpop.f32.mrf.mxu1  ;;  %17757 = vst [vmem:[#allocation131_spill] sm:$0xff] %v14927_v5  ;;  %7568 = vmatprep.subr.bf16.mxu0 %v17383_v48  ;;  %7216 = vmatprep.subr.bf16.mxu1 %v17383_v48  ;;  %v14947_v41 = vrot.slane %v4868_v19, 4  ;;  %v4906_v59 = vshll.u32 %v10499_v58, 16  ;;  %v4916_v19 = vshrl.u32 %v10500_v45, 16  ;;  %v17769_v5 = vld [vmem:[#allocation16_spill] sm:$0xff]  ;;  %v17770_v14 = vpack.c.bf16 %v14685_v1, %v14667_v4 }
 0x2a9   : > { %v17750_v35 = vld [vmem:[#allocation135_spill] sm:$0xff]  ;;  %v14939_v20 = vrot.slane %v4864_v16, 5  ;;  %v4888_v16 = vshll.u32 %v10497_v29, 16  ;;  %v4885_v31 = vor.u32 %v14932_v32, %v14930_v46 }
 0x2aa   : > { %v5165_v36 = vsel %vm11957_vm3, %v17750_v35, %v17749_v30  ;;  %v14903_v22 = vpop.f32.mrf.mxu1  ;;  %v17753_v30 = vld [vmem:[#allocation132_spill] sm:$0xff] }
 0x2ab   : > { %17751 = vst [vmem:[#allocation29_spill] sm:$0xff] %v14903_v22  ;;  %v10058_v43 = vcombine.low %v5155_v10, %v5165_v36  ;;  %v5179_v35 = vsel %vm11957_vm3, %v17753_v30, %v17752_v13  ;;  %v17754_v22 = vld [vmem:[#allocation45_spill] sm:$0xff]  ;;  %v4860_v10 = vrot.slane %v4858_v24, 5  ;;  %v17759_v13 = vld [vmem:[#allocation8_spill] sm:$0xff]  ;;  %v4903_v24 = vshrl.u32 %v10499_v58, 16 }
 0x2ac   : > { %v17755_v7 = vrot.slane %v17754_v22, 5  ;;  %v7068_v57 = vpop.f32.mrf.mxu1  ;;  %v11303_v36 = vld [vmem:[%s11725_s25 + $0xd0] sm:$0xff]   ;;  %v17760_v30 = vpack.c.bf16 %v17758_v47, %v17759_v13  ;;  %v11301_v22 = vld [vmem:[%s11725_s25 + $0x1d8] sm:$0xff]   ;;  %v17763_v47 = vld [vmem:[#allocation203_spill] sm:$0xff]  ;;  %v10503_v58 = vpack.c.bf16 %v14848_v38, %v14848_v38  ;;  %v4871_v4 = vor.u32 %v14947_v41, %v14939_v20 }
 0x2ad   : > { %v17761_v57 = vld [vmem:[#allocation15_spill] sm:$0xff]  ;;  %v2592_v27 = vadd.f32 %v14671_v25, %v17763_v47  ;;  %6096 = vrot.lane.b32.xlu0 %v10058_v43, %s11528_s28  ;;  %7217 = vmatpush2.bf16.msra.mxu1 %v11303_v36  ;;  %v14971_v36 = vrot.slane %v5581_v54, 4  ;;  %v14987_v1 = vrot.slane %v4888_v16, 5  ;;  %v2645_v16 = vadd.f32 %v14671_v25, %v14558_v26 }
 0x2ae   : > { %v5189_v49 = vsel %vm11957_vm3, %v17756_v39, %v17755_v7  ;;  %5954 = vrot.lane.b32.xlu1 %v17760_v30, %s11528_s28  ;;  %v14941_v7 = vmax.f32 %v2632_v23, 0.0  ;;  %v5933_v60 = vpack.c.b16 %v17762_v52, %v17761_v57  ;;  %v4892_v23 = vshrl.u32 %v10497_v29, 16  ;;  %v14954_v13 = vpop.f32.mrf.mxu1  ;;  %v14956_v30 = vpop.f32.mrf.mxu0  ;;  %v17765_v57 = vld [vmem:[#allocation37_spill] sm:$0xff]  ;;  %v17766_v52 = vld [vmem:[#allocation54_spill] sm:$0xff]  ;;  %v17767_v43 = vld [vmem:[#allocation139_spill] sm:$0xff]  ;;  %7569 = vmatpush2.bf16.msra.mxu0 %v11301_v22 }
 0x2af   : > { %v10059_v39 = vcombine.low %v5179_v35, %v5189_v49  ;;  %v4912_v49 = vshll.u32 %v10500_v45, 16  ;;  %17764 = vst [vmem:[#allocation13_spill] sm:$0xff] %v14954_v13  ;;  %v5203_v29 = vsel %vm11957_vm3, %v17766_v52, %v17765_v57  ;;  %v17768_v47 = vrot.slane %v17767_v43, 5  ;;  %v11302_v13 = vld [vmem:[%s11725_s25 + $0x1d0] sm:$0xff]   ;;  %7570 = vmatprep.subr.bf16.mxu0 %v17383_v48  ;;  %7218 = vmatprep.subr.bf16.mxu1 %v17383_v48  ;;  %v11306_v43 = vld [vmem:[%s11725_s25 + $0xc8] sm:$0xff]  }
 0x2b0   : > { %v4861_v45 = vor.u32 %v4860_v10, %v4857_v3  ;;  %v7073_v57 = vpop.f32.mrf.mxu1  ;;  %v4905_v52 = vrot.slane %v4903_v24, 4  ;;  %v2996_v54 = vmax.f32 %v2592_v27, 0.0  ;;  %v2608_v3 = vadd.f32 %v14671_v25, %v14500_v40  ;;  %17771 = vst [vmem:[#allocation133_spill] sm:$0xff] %v14987_v1  ;;  %v14993_v32 = vpop.f32.mrf.mxu0 }
 0x2b1   : > { %v5213_v35 = vsel %vm11957_vm3, %v17769_v5, %v17768_v47  ;;  %v4908_v5 = vrot.slane %v4906_v59, 5  ;;  %6098 = vrot.lane.b32.xlu0 %v10059_v39, %s11528_s28  ;;  %v14989_v46 = vrot.slane %v4912_v49, 5  ;;  %17774 = vst [vmem:[#allocation134_spill] sm:$0xff] %v14993_v32  ;;  %v4918_v22 = vrot.slane %v4916_v19, 4  ;;  %v17775_v59 = vld [vmem:[#allocation204_spill] sm:$0xff]  ;;  %v17777_v49 = vld [vmem:[#allocation46_spill] sm:$0xff]  ;;  %7219 = vmatpush2.bf16.msra.mxu1 %v11306_v43 }
 0x2b2   : > { %5956 = vrot.lane.b32.xlu1 %v5933_v60, %s11528_s28  ;;  %v14976_v60 = vunpack.c.h.b16 %v17770_v14  ;;  %v4894_v14 = vrot.slane %v4892_v23, 4  ;;  %v14991_v10 = vpop.f32.mrf.mxu1  ;;  %v4936_v24 = vshll.u32 %v10503_v58, 16  ;;  %v2605_v27 = vadd.f32 %v14671_v25, %v17775_v59  ;;  %7571 = vmatpush2.bf16.msra.mxu0 %v11302_v13  ;;  %v11304_v39 = vld [vmem:[%s11725_s25 + $0x1c8] sm:$0xff]   ;;  %v17776_v23 = vld [vmem:[#allocation137_spill] sm:$0xff] }
 0x2b3   : > { %17772 = vst [vmem:[#allocation35_spill] sm:$0xff] %v14989_v46  ;;  %17773 = vst [vmem:[#allocation130_spill] sm:$0xff] %v14991_v10  ;;  %v10060_v40 = vcombine.low %v5203_v29, %v5213_v35  ;;  %v14999_v47 = vrot.slane %v4861_v45, 4  ;;  %v4940_v41 = vshrl.u32 %v10503_v58, 16  ;;  %v3105_v57 = vpack.c.bf16 %v17777_v49, %v17776_v23  ;;  %7572 = vmatprep.subr.bf16.mxu0 %v17383_v48  ;;  %v17785_v43 = vld [vmem:[#allocation51_spill] sm:$0xff] }
 0x2b4   : > { %v7076_v10 = vpop.f32.mrf.mxu1  ;;  %v4909_v19 = vor.u32 %v4908_v5, %v4905_v52  ;;  %v3143_v32 = vpack.c.bf16 %v2996_v54, %v14877_v12  ;;  %v10498_v59 = vpack.c.bf16 %v2996_v54, %v2996_v54  ;;  %v15007_v35 = vmax.f32 %v2608_v3, 0.0  ;;  %v15018_v12 = vpop.f32.mrf.mxu0  ;;  %7220 = vmatprep.subr.bf16.mxu1 %v17383_v48  ;;  %v17781_v54 = vld [vmem:[#allocation144_spill] sm:$0xff] }
 0x2b5   : > { %6100 = vrot.lane.b32.xlu0 %v10060_v40, %s11528_s28  ;;  %v15010_v13 = vrot.slane %v4885_v31, 4  ;;  %v4895_v26 = vor.u32 %v4894_v14, %v14987_v1  ;;  %v2621_v58 = vadd.f32 %v14671_v25, %v14513_v50  ;;  %v2648_v29 = vadd.f32 %v14671_v25, %v14592_v61  ;;  %v17782_v50 = vld [vmem:[#allocation61_spill] sm:$0xff]  ;;  %v11305_v61 = vld [vmem:[%s11725_s25 + $0x1c0] sm:$0xff]  }
 0x2b6   : > { %5958 = vrot.lane.b32.xlu1 %v3105_v57, %s11528_s28  ;;  %v4919_v52 = vor.u32 %v4918_v22, %v14989_v46  ;;  %v15024_v31 = vrot.slane %v4936_v24, 5  ;;  %v15026_v5 = vmax.f32 %v2605_v27, 0.0  ;;  %v5227_v3 = vsel %vm11957_vm3, %v17782_v50, %v17781_v54  ;;  %7573 = vmatpush2.bf16.msra.mxu0 %v11304_v39  ;;  %v17787_v22 = vld [vmem:[#allocation63_spill] sm:$0xff] }
 0x2b7   : > { %17778 = vst [vmem:[#allocation135_spill] sm:$0xff] %v15010_v13  ;;  %v4942_v14 = vrot.slane %v4940_v41, 4  ;;  %v15033_v10 = vmax.f32 %v2645_v16, 0.0  ;;  %v15035_v40 = vmax.f32 %v2648_v29, 0.0  ;;  %v17786_v23 = vrot.slane %v17785_v43, 5  ;;  %7574 = vmatprep.subr.bf16.mxu0 %v17383_v48  ;;  %v11307_v16 = vld [vmem:[%s11725_s25 + $0xc0] sm:$0xff]  }
 0x2b8   : > { %v15020_v45 = vpop.f32.mrf.mxu1  ;;  %17780 = vst [vmem:[#allocation132_spill] sm:$0xff] %v15024_v31  ;;  %v15043_v49 = vrot.slane %v4871_v4, 4  ;;  %v15045_v57 = vshll.u32 %v10498_v59, 16  ;;  %v10502_v39 = vpack.c.bf16 %v15007_v35, %v15007_v35  ;;  %v15050_v29 = vrot.slane %v4909_v19, 4  ;;  %v17792_v43 = vld [vmem:[#allocation146_spill] sm:$0xff]  ;;  %v17798_v50 = vld [vmem:[#allocation147_spill] sm:$0xff]  ;;  %7221 = vmatpush2.bf16.msra.mxu1 %v11307_v16 }
 0x2b9   : > { %17779 = vst [vmem:[#allocation36_spill] sm:$0xff] %v15020_v45  ;;  %17783 = vst [vmem:[#allocation45_spill] sm:$0xff] %v15033_v10  ;;  %v5237_v24 = vsel %vm11957_vm3, %v17787_v22, %v17786_v23  ;;  %v15052_v54 = vmax.f32 %v2621_v58, 0.0  ;;  %v17793_v23 = vld [vmem:[#allocation153_spill] sm:$0xff]  ;;  %v15062_v59 = vunpack.c.l.b16 %v3143_v32  ;;  %v10504_v19 = vpack.c.bf16 %v14851_v56, %v14851_v56  ;;  %v17797_v32 = vld [vmem:[#allocation148_spill] sm:$0xff]  ;;  %7367 = vmatprep.subr.bf16.mxu1 %v17383_v48 }
 0x2ba   : > { %17784 = vst [vmem:[#allocation43_spill] sm:$0xff] %v15035_v40  ;;  %v7081_v27 = vpop.f32.mrf.mxu1  ;;  %17788 = vst [vmem:[#allocation7_spill] sm:$0xff] %v15043_v49  ;;  %v10061_v41 = vcombine.low %v5227_v3, %v5237_v24  ;;  %v5935_v22 = vpack.c.b16 %v17793_v23, %v17792_v43  ;;  %v10501_v3 = vpack.c.bf16 %v15026_v5, %v15026_v5  ;;  %7575 = vmatpush2.bf16.msra.mxu0 %v11305_v61 }
 0x2bb   : > { %17789 = vst [vmem:[#allocation8_spill] sm:$0xff] %v15045_v57  ;;  %17790 = vst [vmem:[#allocation15_spill] sm:$0xff] %v15050_v29  ;;  %v15058_v27 = vpop.f32.mrf.mxu0  ;;  %v2624_v58 = vadd.f32 %v14671_v25, %v14546_v9  ;;  %v15071_v24 = vrot.slane %v4895_v26, 4  ;;  %v15073_v43 = vrot.slane %v4919_v52, 4  ;;  %v4943_v23 = vor.u32 %v4942_v14, %v15024_v31 }
 0x2bc   : > { %17791 = vst [vmem:[#allocation138_spill] sm:$0xff] %v15052_v54  ;;  %v15060_v4 = vpop.f32.mrf.mxu1  ;;  %6102 = vrot.lane.b32.xlu0 %v10061_v41, %s11528_s28  ;;  %5960 = vrot.lane.b32.xlu1 %v5935_v22, %s11528_s28  ;;  %v4927_v29 = vshrl.u32 %v10502_v39, 16  ;;  %v4930_v41 = vshll.u32 %v10502_v39, 16  ;;  %v10507_v26 = vpack.c.bf16 %v14914_v15, %v14914_v15  ;;  %v10505_v52 = vpack.c.bf16 %v15052_v54, %v15052_v54 }
 0x2bd   : > { %17794 = vst [vmem:[#allocation203_spill] sm:$0xff] %v15060_v4  ;;  %17795 = vst [vmem:[#allocation37_spill] sm:$0xff] %v15071_v24  ;;  %v5251_v4 = vsel %vm11957_vm3, %v17798_v50, %v17797_v32  ;;  %v2637_v61 = vadd.f32 %v14671_v25, %v14577_v18  ;;  %v2661_v14 = vadd.f32 %v14671_v25, %v14629_v33  ;;  %v17801_v50 = vld [vmem:[#allocation156_spill] sm:$0xff]  ;;  %v15096_v22 = vpop.f32.mrf.mxu0  ;;  %v15098_v32 = vshll.u32 %v10501_v3, 16 }
 0x2be   : > { %17796 = vst [vmem:[#allocation54_spill] sm:$0xff] %v15073_v43  ;;  %v7084_v45 = vpop.f32.mrf.mxu1  ;;  %v17803_v9 = vpack.c.bf16 %v14851_v56, %v14848_v38  ;;  %v15105_v48 = vshll.u32 %v10504_v19, 16  ;;  %v15107_v18 = vmax.f32 %v2624_v58, 0.0  ;;  %v15109_v33 = vrot.slane %v4943_v23, 4 }
 0x2bf   : > { %v17799_v45 = vld [vmem:[#allocation149_spill] sm:$0xff]  ;;  %17802 = vst [vmem:[#allocation139_spill] sm:$0xff] %v15098_v32  ;;  %v2664_v38 = vadd.f32 %v14671_v25, %v14688_v11  ;;  %v15121_v19 = vrot.slane %v4927_v29, 4  ;;  %v15123_v58 = vrot.slane %v4930_v41, 5  ;;  %v15125_v23 = vshll.u32 %v10507_v26, 16  ;;  %v15136_v11 = vpop.f32.mrf.mxu0  ;;  %v17812_v26 = vld [vmem:[#allocation150_spill] sm:$0xff] }
 0x2c0   : > { %v17800_v16 = vrot.slane %v17799_v45, 5  ;;  %v15103_v54 = vunpack.c.l.b16 %v17803_v9  ;;  %17804 = vst [vmem:[#allocation16_spill] sm:$0xff] %v15105_v48  ;;  %17805 = vst [vmem:[#allocation204_spill] sm:$0xff] %v15107_v18  ;;  %v3145_v45 = vpack.c.bf16 %v15007_v35, %v15026_v5  ;;  %v15119_v56 = vpop.f32.mrf.mxu1  ;;  %v10508_v35 = vpack.c.bf16 %v14941_v7, %v14941_v7 }
 0x2c1   : > { %17806 = vst [vmem:[#allocation137_spill] sm:$0xff] %v15109_v33  ;;  %17810 = vst [vmem:[#allocation46_spill] sm:$0xff] %v15119_v56  ;;  %v4951_v5 = vshrl.u32 %v10505_v52, 16  ;;  %v15131_v9 = vmax.f32 %v2661_v14, 0.0  ;;  %v10506_v41 = vpack.c.bf16 %v15107_v18, %v15107_v18  ;;  %v17816_v14 = vld [vmem:[#allocation157_spill] sm:$0xff] }
 0x2c2   : > { %v5261_v39 = vsel %vm11957_vm3, %v17801_v50, %v17800_v16  ;;  %v17807_v16 = vld [vmem:[#allocation42_spill] sm:$0xff]  ;;  %v17808_v50 = vld [vmem:[#allocation39_spill] sm:$0xff]  ;;  %17811 = vst [vmem:[#allocation144_spill] sm:$0xff] %v15125_v23  ;;  %v7089_v29 = vpop.f32.mrf.mxu1  ;;  %v4975_v43 = vshrl.u32 %v10508_v35, 16  ;;  %v15159_v46 = vunpack.c.h.b16 %v3145_v45 }
 0x2c3   : > { %v10062_v31 = vcombine.low %v5251_v4, %v5261_v39  ;;  %v17809_v3 = vpack.c.bf16 %v17807_v16, %v17808_v50  ;;  %v15129_v4 = vmax.f32 %v2637_v61, 0.0  ;;  %v15134_v39 = vmax.f32 %v2664_v38, 0.0  ;;  %v17813_v50 = vld [vmem:[#allocation152_spill] sm:$0xff]  ;;  %v15166_v38 = vpop.f32.mrf.mxu0 }
 0x2c4   : > { %v4954_v16 = vshll.u32 %v10505_v52, 16  ;;  %v17814_v61 = vld [vmem:[#allocation32_spill] sm:$0xff]  ;;  %v10511_v52 = vpack.c.bf16 %v15033_v10, %v15033_v10  ;;  %v15155_v18 = vpop.f32.mrf.mxu1 }
 0x2c5   : > { %5962 = vrot.lane.b32.xlu1 %v17809_v3, %s11528_s28  ;;  %6104 = vrot.lane.b32.xlu0 %v10062_v31, %s11528_s28  ;;  %v5275_v3 = vsel %vm11957_vm3, %v17813_v50, %v17812_v26  ;;  %v17815_v56 = vrot.slane %v17814_v61, 5  ;;  %17817 = vst [vmem:[#allocation61_spill] sm:$0xff] %v15155_v18  ;;  %v4978_v26 = vshll.u32 %v10508_v35, 16  ;;  %v2677_v61 = vadd.f32 %v14671_v25, %v14741_v34 }
 0x2c6   : > { %v10509_v33 = vpack.c.bf16 %v15129_v4, %v15129_v4  ;;  %v7092_v29 = vpop.f32.mrf.mxu1  ;;  %v4953_v18 = vrot.slane %v4951_v5, 4  ;;  %v4956_v10 = vrot.slane %v4954_v16, 5  ;;  %v4960_v35 = vshll.u32 %v10506_v41, 16 }
 0x2c7   : > { %v5285_v31 = vsel %vm11957_vm3, %v17816_v14, %v17815_v56  ;;  %v4933_v56 = vor.u32 %v15123_v58, %v15121_v19  ;;  %v4999_v34 = vshrl.u32 %v10511_v52, 16  ;;  %v5002_v45 = vshll.u32 %v10511_v52, 16 }
 0x2c8   : > { %v10063_v50 = vcombine.low %v5275_v3, %v5285_v31  ;;  %v4964_v3 = vshrl.u32 %v10506_v41, 16  ;;  %v15169_v31 = vmax.f32 %v2677_v61, 0.0  ;;  %v2680_v19 = vadd.f32 %v14671_v25, %v14815_v62  ;;  %v15183_v61 = vpop.f32.mrf.mxu0 }
 0x2c9   : > { %v4977_v14 = vrot.slane %v4975_v43, 4  ;;  %v4980_v23 = vrot.slane %v4978_v26, 5  ;;  %v10512_v29 = vpack.c.bf16 %v15035_v40, %v15035_v40  ;;  %v2669_v5 = vadd.f32 %v14671_v25, %v14773_v37 }
 0x2ca   : > { %6106 = vrot.lane.b32.xlu0 %v10063_v50, %s11528_s28  ;;  %17818 = vst [vmem:[#allocation51_spill] sm:$0xff] %v15169_v31  ;;  %v4984_v16 = vshll.u32 %v10509_v33, 16  ;;  %v4988_v41 = vshrl.u32 %v10509_v33, 16  ;;  %v15179_v50 = vmax.f32 %v2680_v19, 0.0  ;;  %v2672_v52 = vadd.f32 %v14671_v25, %v14853_v44 }
 0x2cb   : > { %v15173_v58 = vpop.f32.mrf.mxu1  ;;  %v15185_v48 = vrot.slane %v4960_v35, 5  ;;  %v4966_v43 = vrot.slane %v4964_v3, 4  ;;  %v2640_v26 = vadd.f32 %v14671_v25, %v14608_v63  ;;  %v5001_v37 = vrot.slane %v4999_v34, 4 }
 0x2cc   : > { %17819 = vst [vmem:[#allocation63_spill] sm:$0xff] %v15173_v58  ;;  %17820 = vst [vmem:[#allocation146_spill] sm:$0xff] %v15179_v50  ;;  %v10515_v58 = vpack.c.bf16 %v15131_v9, %v15131_v9  ;;  %v5004_v40 = vrot.slane %v5002_v45, 5  ;;  %v2653_v33 = vadd.f32 %v14671_v25, %v14653_v0  ;;  %v5012_v35 = vshrl.u32 %v10512_v29, 16  ;;  %v15203_v45 = vpop.f32.mrf.mxu0 }
 0x2cd   : > { %v7097_v62 = vpop.f32.mrf.mxu1  ;;  %17821 = vst [vmem:[#allocation153_spill] sm:$0xff] %v15185_v48  ;;  %v15197_v32 = vmax.f32 %v2669_v5, 0.0  ;;  %v15199_v3 = vmax.f32 %v2672_v52, 0.0  ;;  %v4957_v63 = vor.u32 %v4956_v10, %v4953_v18  ;;  %v4981_v24 = vor.u32 %v4980_v23, %v4977_v14 }
 0x2ce   : > { %v5008_v62 = vshll.u32 %v10512_v29, 16  ;;  %v15201_v57 = vrot.slane %v4984_v16, 5  ;;  %v4990_v34 = vrot.slane %v4988_v41, 4  ;;  %v3008_v0 = vmax.f32 %v2640_v26, 0.0  ;;  %v15225_v26 = vpop.f32.mrf.mxu0 }
 0x2cf   : > { %v15195_v19 = vpop.f32.mrf.mxu1  ;;  %17823 = vst [vmem:[#allocation147_spill] sm:$0xff] %v15197_v32  ;;  %v5032_v1 = vshll.u32 %v10515_v58, 16  ;;  %v5036_v49 = vshrl.u32 %v10515_v58, 16  ;;  %v17825_v29 = vpack.c.bf16 %v14941_v7, %v14914_v15  ;;  %v4967_v10 = vor.u32 %v4966_v43, %v15185_v48 }
 0x2d0   : > { %17822 = vst [vmem:[#allocation148_spill] sm:$0xff] %v15195_v19  ;;  %17824 = vst [vmem:[#allocation149_spill] sm:$0xff] %v15201_v57  ;;  %v3011_v18 = vmax.f32 %v2653_v33, 0.0  ;;  %v2693_v23 = vadd.f32 %v14671_v25, %v14889_v2  ;;  %v5005_v14 = vor.u32 %v5004_v40, %v5001_v37  ;;  %v15215_v16 = vrot.slane %v5008_v62, 5 }
 0x2d1   : > { %v7100_v13 = vpop.f32.mrf.mxu1  ;;  %v15210_v5 = vunpack.c.h.b16 %v17825_v29  ;;  %v2656_v58 = vadd.f32 %v14671_v25, %v14721_v8  ;;  %v15219_v41 = vrot.slane %v4933_v56, 4  ;;  %v15221_v52 = vrot.slane %v4957_v63, 4 }
 0x2d2   : > { %17827 = vst [vmem:[#allocation42_spill] sm:$0xff] %v15215_v16  ;;  %v5014_v13 = vrot.slane %v5012_v35, 4  ;;  %v15223_v15 = vrot.slane %v4981_v24, 4  ;;  %v10510_v7 = vpack.c.bf16 %v3008_v0, %v3008_v0  ;;  %v4991_v2 = vor.u32 %v4990_v34, %v15201_v57 }
 0x2d3   : > { %17826 = vst [vmem:[#allocation156_spill] sm:$0xff] %v15210_v5  ;;  %17828 = vst [vmem:[#allocation39_spill] sm:$0xff] %v15219_v41  ;;  %v15227_v43 = vpop.f32.mrf.mxu1  ;;  %v3149_v40 = vpack.c.bf16 %v3008_v0, %v15129_v4  ;;  %v15231_v37 = vrot.slane %v5032_v1, 5  ;;  %v5038_v33 = vrot.slane %v5036_v49, 4  ;;  %v10513_v62 = vpack.c.bf16 %v3011_v18, %v3011_v18 }
 0x2d4   : > { %17829 = vst [vmem:[#allocation150_spill] sm:$0xff] %v15221_v52  ;;  %17830 = vst [vmem:[#allocation152_spill] sm:$0xff] %v15223_v15  ;;  %v10516_v8 = vpack.c.bf16 %v15134_v39, %v15134_v39  ;;  %v3021_v56 = vmax.f32 %v2693_v23, 0.0  ;;  %v2696_v24 = vadd.f32 %v14671_v25, %v14956_v30  ;;  %v15237_v63 = vrot.slane %v4967_v10, 4  ;;  %v17852_v15 = vld [vmem:[#allocation175_spill] sm:$0xff] }
 0x2d5   : > { %17831 = vst [vmem:[#allocation32_spill] sm:$0xff] %v15227_v43  ;;  %17832 = vst [vmem:[#allocation157_spill] sm:$0xff] %v15231_v37  ;;  %v7105_v35 = vpop.f32.mrf.mxu1  ;;  %v15239_v29 = vrot.slane %v5005_v14, 4  ;;  %v5015_v34 = vor.u32 %v5014_v13, %v15215_v16  ;;  %v3012_v44 = vmax.f32 %v2656_v58, 0.0  ;;  %v15242_v4 = vshll.u32 %v10510_v7, 16  ;;  %v15246_v43 = vpop.f32.mrf.mxu0 }
 0x2d6   : > { %17833 = vst [vmem:[#allocation208_spill] sm:$0xff] %v15237_v63  ;;  %v10523_v1 = vpack.c.bf16 %v3021_v56, %v3021_v56  ;;  %v3022_v49 = vmax.f32 %v2696_v24, 0.0  ;;  %v2709_v0 = vadd.f32 %v14671_v25, %v15018_v12  ;;  %v15250_v30 = vrot.slane %v4991_v2, 4  ;;  %v5749_v63 = vpop.permute.xlu1 %5748 }
 0x2d7   : > { %17834 = vst [vmem:[#allocation209_spill] sm:$0xff] %v15239_v29  ;;  %17835 = vst [vmem:[#allocation210_spill] sm:$0xff] %v15242_v4  ;;  %v15248_v23 = vpop.f32.mrf.mxu1  ;;  %v15252_v10 = vunpack.c.l.b16 %v3149_v40  ;;  %v5039_v14 = vor.u32 %v5038_v33, %v15231_v37  ;;  %v2701_v13 = vadd.f32 %v14671_v25, %v15058_v27  ;;  %v15257_v58 = vshll.u32 %v10513_v62, 16  ;;  %v15269_v62 = vpop.f32.mrf.mxu0 }
 0x2d8   : > { %17836 = vst [vmem:[#allocation211_spill] sm:$0xff] %v15248_v23  ;;  %17837 = vst [vmem:[#allocation212_spill] sm:$0xff] %v15250_v30  ;;  %v15259_v7 = vshll.u32 %v10516_v8, 16  ;;  %v3156_v24 = vpack.c.bf16 %v3022_v49, %v3021_v56  ;;  %v10524_v35 = vpack.c.bf16 %v3022_v49, %v3022_v49  ;;  %v15261_v19 = vrot.slane %v5015_v34, 4 }
 0x2d9   : > { %17838 = vst [vmem:[#allocation213_spill] sm:$0xff] %v15252_v10  ;;  %17839 = vst [vmem:[#allocation214_spill] sm:$0xff] %v15257_v58  ;;  %v7108_v12 = vpop.f32.mrf.mxu1  ;;  %v3151_v50 = vpack.c.bf16 %v3012_v44, %v3011_v18  ;;  %v10514_v23 = vpack.c.bf16 %v3012_v44, %v3012_v44  ;;  %v15263_v2 = vmax.f32 %v2709_v0, 0.0  ;;  %v10519_v33 = vpack.c.bf16 %v15169_v31, %v15169_v31 }
 0x2da   : > { %17840 = vst [vmem:[#allocation215_spill] sm:$0xff] %v15259_v7  ;;  %17841 = vst [vmem:[#allocation216_spill] sm:$0xff] %v15261_v19  ;;  %v5287_v37 = vshrl.u32 %v10523_v1, 16  ;;  %v5290_v27 = vshll.u32 %v10523_v1, 16  ;;  %5964 = vrot.lane.b32.xlu1 %v3156_v24, %s11528_s28  ;;  %v5296_v8 = vshll.u32 %v10524_v35, 16  ;;  %v5300_v56 = vshrl.u32 %v10524_v35, 16 }
 0x2db   : > { %v10527_v34 = vpack.c.bf16 %v15263_v2, %v15263_v2  ;;  %v15273_v18 = vmax.f32 %v2701_v13, 0.0  ;;  %v15275_v44 = vrot.slane %v5039_v14, 4  ;;  %v17843_v0 = vpack.c.bf16 %v15134_v39, %v15131_v9 }
 0x2dc   : > { %v15284_v24 = vunpack.c.h.b16 %v3151_v50  ;;  %v5023_v40 = vshrl.u32 %v10514_v23, 16  ;;  %v5026_v13 = vshll.u32 %v10514_v23, 16  ;;  %v5289_v29 = vrot.slane %v5287_v37, 4 }
 0x2dd   : > { %17842 = vst [vmem:[#allocation217_spill] sm:$0xff] %v15275_v44  ;;  %v15281_v12 = vunpack.c.l.b16 %v17843_v0  ;;  %v5320_v35 = vshll.u32 %v10527_v34, 16  ;;  %v5324_v31 = vshrl.u32 %v10527_v34, 16  ;;  %v5292_v14 = vrot.slane %v5290_v27, 5  ;;  %v15290_v44 = vpop.f32.mrf.mxu0 }
 0x2de   : > { %17845 = vst [vmem:[#allocation219_spill] sm:$0xff] %v15284_v24  ;;  %v2712_v49 = vadd.f32 %v14671_v25, %v15096_v22  ;;  %v15292_v9 = vshll.u32 %v10519_v33, 16  ;;  %v15294_v39 = vrot.slane %v5296_v8, 5  ;;  %v5302_v0 = vrot.slane %v5300_v56, 4 }
 0x2df   : > { %17844 = vst [vmem:[#allocation218_spill] sm:$0xff] %v15281_v12  ;;  %v15286_v19 = vpop.f32.mrf.mxu1  ;;  %v10525_v50 = vpack.c.bf16 %v15273_v18, %v15273_v18  ;;  %v15298_v34 = vrot.slane %v5320_v35, 5  ;;  %v2704_v37 = vadd.f32 %v14671_v25, %v15136_v11  ;;  %v15302_v27 = vrot.slane %v5023_v40, 4  ;;  %v15316_v40 = vpop.f32.mrf.mxu0 }
 0x2e0   : > { %17846 = vst [vmem:[#allocation220_spill] sm:$0xff] %v15286_v19  ;;  %v5326_v19 = vrot.slane %v5324_v31, 4  ;;  %v3026_v23 = vmax.f32 %v2712_v49, 0.0  ;;  %v15306_v22 = vpack.c.bf16 %v15197_v32, %v15197_v32  ;;  %v2725_v33 = vadd.f32 %v14671_v25, %v15166_v38 }
 0x2e1   : > { %v7113_v1 = vpop.f32.mrf.mxu1  ;;  %v2717_v8 = vadd.f32 %v14671_v25, %v15183_v61  ;;  %v3024_v49 = vmax.f32 %v2704_v37, 0.0  ;;  %v2728_v11 = vadd.f32 %v14671_v25, %v15203_v45  ;;  %v5303_v35 = vor.u32 %v5302_v0, %v15294_v39  ;;  %v17848_v0 = vld [vmem:[#allocation163_spill] sm:$0xff] }
 0x2e2   : > { %v5293_v1 = vor.u32 %v5292_v14, %v5289_v29  ;;  %v10528_v31 = vpack.c.bf16 %v3026_v23, %v3026_v23  ;;  %v5306_v32 = vshll.u32 %v10525_v50, 16  ;;  %v15319_v7 = vmax.f32 %v2725_v33, 0.0  ;;  %v17849_v50 = vld [vmem:[#allocation172_spill] sm:$0xff] }
 0x2e3   : > { %v15312_v56 = vpop.f32.mrf.mxu1  ;;  %v15321_v58 = vmax.f32 %v2717_v8, 0.0  ;;  %v5327_v61 = vor.u32 %v5326_v19, %v15298_v34  ;;  %v10526_v14 = vpack.c.bf16 %v3024_v49, %v3024_v49  ;;  %v3157_v37 = vpack.c.bf16 %v3024_v49, %v15273_v18  ;;  %v5893_v18 = vpop.permute.xlu0 %5892 }
 0x2e4   : > { %17847 = vst [vmem:[#allocation221_spill] sm:$0xff] %v15312_v56  ;;  %v3158_v56 = vpack.c.bf16 %v3026_v23, %v15263_v2  ;;  %v15325_v29 = vshll.u32 %v10528_v31, 16  ;;  %v15330_v16 = vmax.f32 %v2728_v11, 0.0  ;;  %v4003_v33 = vsel %vm11957_vm3, %v17849_v50, %v17848_v0  ;;  %v15339_v31 = vpop.f32.mrf.mxu0 }
 0x2e5   : > { %v7116_v38 = vpop.f32.mrf.mxu1  ;;  %v10529_v45 = vpack.c.bf16 %v15321_v58, %v15321_v58  ;;  %v15336_v8 = vrot.slane %v5026_v13, 5  ;;  %v5311_v2 = vshrl.u32 %v10526_v14, 16  ;;  %v5314_v23 = vshll.u32 %v10526_v14, 16  ;;  %v17850_v13 = vld [vmem:[#allocation162_spill] sm:$0xff] }
 0x2e6   : > { %v5294_v49 = vrot.slane %v5293_v1, 4  ;;  %v5308_v38 = vrot.slane %v5306_v32, 5  ;;  %v10531_v11 = vpack.c.bf16 %v15319_v7, %v15319_v7  ;;  %v5304_v30 = vrot.slane %v5303_v35, 4  ;;  %v15354_v12 = vpop.f32.mrf.mxu0 }
 0x2e7   : > { %v5335_v4 = vshrl.u32 %v10529_v45, 16  ;;  %v10532_v0 = vpack.c.bf16 %v15330_v16, %v15330_v16  ;;  %v17851_v50 = vrot.slane %v17850_v13, 5  ;;  %v15351_v19 = vrot.slane %v5327_v61, 4 }
 0x2e8   : > { %v3505_v57 = vunpack.c.l.b16 %v3158_v56  ;;  %v3504_v32 = vunpack.c.h.b16 %v3157_v37  ;;  %v5313_v52 = vrot.slane %v5311_v2, 4  ;;  %v5316_v35 = vrot.slane %v5314_v23, 5  ;;  %v17854_v23 = vld [vmem:[#allocation142_spill] sm:$0xff] }
 0x2e9   : > { %v4013_v14 = vsel %vm11957_vm3, %v17852_v15, %v17851_v50  ;;  %v5338_v48 = vshll.u32 %v10529_v45, 16  ;;  %v15356_v24 = vshll.u32 %v10531_v11, 16  ;;  %v5359_v13 = vshrl.u32 %v10532_v0, 16 }
 0x2ea   : > { %v10010_v41 = vcombine.low %v4003_v33, %v4013_v14  ;;  %v2720_v15 = vadd.f32 %v14671_v25, %v15225_v26  ;;  %v2741_v56 = vadd.f32 %v14671_v25, %v15246_v43  ;;  %v15362_v61 = vrot.slane %v5335_v4, 4  ;;  %v17853_v33 = vld [vmem:[#allocation143_spill] sm:$0xff] }
 0x2eb   : > { %v5362_v2 = vshll.u32 %v10532_v0, 16  ;;  %v17855_v11 = vpack.c.bf16 %v17853_v33, %v17854_v23  ;;  %v5299_v25 = vsel %vm11957_vm3, %v5294_v49, %v15294_v39  ;;  %v5317_v43 = vor.u32 %v5316_v35, %v5313_v52  ;;  %v15378_v0 = vpop.f32.mrf.mxu0 }
 0x2ec   : > { %v6284_v45 = vsel %vm1457_vm0, %v10010_v41, %v5893_v18  ;;  %v3028_v14 = vmax.f32 %v2720_v15, 0.0  ;;  %v15371_v26 = vmax.f32 %v2741_v56, 0.0  ;;  %v5340_v4 = vrot.slane %v5338_v48, 5  ;;  %v15387_v48 = vld [vmem:[%s11880_s15] ss:$0 sm:$0xff] }
 0x2ed   : > { %7117 = vmatprep.mubr.bf16.mxu1 %v6284_v45  ;;  %v6212_v50 = vsel %vm1457_vm0, %v17855_v11, %v5749_v63  ;;  %v5309_v41 = vsel %vm11957_vm3, %v5304_v30, %v5308_v38  ;;  %v5938_v18 = vpack.c.b16 %v3505_v57, %v3504_v32  ;;  %v15380_v45 = vrot.slane %v5359_v13, 4  ;;  %v17857_v13 = vld [vmem:[#allocation173_spill] sm:$0xff]  ;;  %v17858_v11 = vld [vmem:[#allocation174_spill] sm:$0xff] }
 0x2ee   : > { %7118 = vmatmul.mubr.bf16.gmra.mxu1 %v6212_v50  ;;  %v10530_v63 = vpack.c.bf16 %v3028_v14, %v3028_v14  ;;  %v10535_v15 = vpack.c.bf16 %v15371_v26, %v15371_v26  ;;  %v10064_v56 = vcombine.low %v5299_v25, %v5309_v41  ;;  %v5364_v33 = vrot.slane %v5362_v2, 5  ;;  %v17860_v50 = vld [vmem:[#allocation178_spill] sm:$0xff] }
 0x2ef   : > { %v3159_v23 = vpack.c.bf16 %v3028_v14, %v15321_v58  ;;  %5966 = vrot.lane.b32.xlu1 %v5938_v18, %s11528_s28  ;;  %v2733_v52 = vadd.f32 %v15387_v48, %v15269_v62  ;;  %v2744_v57 = vadd.f32 %v15387_v48, %v15290_v44  ;;  %v17856_v58 = vld [vmem:[#allocation167_spill] sm:$0xff]  ;;  %v17859_v62 = vrot.slane %v17858_v11, 5  ;;  %v15407_v14 = vpop.f32.mrf.mxu0 }
 0x2f0   : > { %v5344_v30 = vshll.u32 %v10530_v63, 16  ;;  %v5348_v39 = vshrl.u32 %v10530_v63, 16  ;;  %v5383_v49 = vshrl.u32 %v10535_v15, 16  ;;  %v5386_v38 = vshll.u32 %v10535_v15, 16  ;;  %6108 = vrot.lane.b32.xlu0 %v10064_v56, %s11528_s28  ;;  %v5751_v56 = vpop.permute.xlu1 %5750 }
 0x2f1   : > { %v15394_v32 = vmax.f32 %v2733_v52, 0.0  ;;  %v15396_v35 = vmax.f32 %v2744_v57, 0.0  ;;  %v4027_v2 = vsel %vm11957_vm3, %v17857_v13, %v17856_v58  ;;  %v4037_v44 = vsel %vm11957_vm3, %v17860_v50, %v17859_v62  ;;  %v5895_v57 = vpop.permute.xlu0 %5894  ;;  %v17861_v62 = vld [vmem:[#allocation170_spill] sm:$0xff]  ;;  %v11005_v1 = vpop.f32.mrf.mxu0 }
 0x2f2   : > { %v15409_v25 = vrot.slane %v5344_v30, 5  ;;  %v5350_v41 = vrot.slane %v5348_v39, 4  ;;  %v5385_v18 = vrot.slane %v5383_v49, 4  ;;  %v5388_v63 = vrot.slane %v5386_v38, 5  ;;  %v17862_v39 = vld [vmem:[#allocation179_spill] sm:$0xff] }
 0x2f3   : > { %v5341_v15 = vor.u32 %v5340_v4, %v15362_v61  ;;  %v10533_v52 = vpack.c.bf16 %v15394_v32, %v15394_v32  ;;  %v10536_v58 = vpack.c.bf16 %v15396_v35, %v15396_v35  ;;  %v10011_v13 = vcombine.low %v4027_v2, %v4037_v44  ;;  %5968 = vrot.lane.b32.xlu1 %v3159_v23, %s11528_s28 }
 0x2f4   : > { %v5318_v11 = vrot.slane %v5317_v43, 4  ;;  %v5365_v30 = vor.u32 %v5364_v33, %v15380_v45  ;;  %v5704_v49 = vpack.c.b16 %v17862_v39, %v17861_v62  ;;  %v2736_v61 = vadd.f32 %v15387_v48, %v15316_v40 }
 0x2f5   : > { %v5368_v4 = vshll.u32 %v10533_v52, 16  ;;  %v5372_v38 = vshrl.u32 %v10533_v52, 16  ;;  %v5392_v50 = vshll.u32 %v10536_v58, 16  ;;  %v5396_v37 = vshrl.u32 %v10536_v58, 16 }
 0x2f6   : > { %v5351_v10 = vor.u32 %v5350_v41, %v15409_v25  ;;  %v5389_v5 = vor.u32 %v5388_v63, %v5385_v18  ;;  %v15424_v2 = vsel %vm1457_vm0, %v10011_v13, %v5895_v57  ;;  %v15427_v43 = vsel %vm1457_vm0, %v5704_v49, %v5751_v56 }
 0x2f7   : > { %17863 = vst [vmem:[#allocation163_spill] sm:$0xff] %v15427_v43  ;;  %v15429_v45 = vrot.slane %v5368_v4, 5  ;;  %v5374_v33 = vrot.slane %v5372_v38, 4  ;;  %v15431_v23 = vrot.slane %v5392_v50, 5  ;;  %v5398_v40 = vrot.slane %v5396_v37, 4  ;;  %7125 = vmatprep.mubr.bf16.mxu1 %v15424_v2  ;;  %v17866_v4 = vld [vmem:[#allocation168_spill] sm:$0xff] }
 0x2f8   : > { %7126 = vmatmul.mubr.bf16.gmra.mxu1 %v15427_v43  ;;  %v3032_v44 = vmax.f32 %v2736_v61, 0.0  ;;  %v2757_v41 = vadd.f32 %v15387_v48, %v15339_v31  ;;  %v5323_v18 = vsel %vm11957_vm3, %v5318_v11, %v15298_v34  ;;  %v17864_v63 = vrot.slane %v15325_v29, 5  ;;  %v15451_v31 = vpop.f32.mrf.mxu0  ;;  %v17868_v50 = vld [vmem:[#allocation182_spill] sm:$0xff] }
 0x2f9   : > { %v5356_v37 = vrot.slane %v15356_v24, 5  ;;  %v5342_v52 = vrot.slane %v5341_v15, 4  ;;  %v17865_v57 = vpack.c.bf16 %v15330_v16, %v15319_v7  ;;  %v5375_v62 = vor.u32 %v5374_v33, %v15429_v45 }
 0x2fa   : > { %v5333_v56 = vsel %vm11957_vm3, %v15351_v19, %v17864_v63  ;;  %v10534_v34 = vpack.c.bf16 %v3032_v44, %v3032_v44  ;;  %v3037_v11 = vmax.f32 %v2757_v41, 0.0  ;;  %v2749_v29 = vadd.f32 %v15387_v48, %v15354_v12  ;;  %v17870_v41 = vld [vmem:[#allocation180_spill] sm:$0xff] }
 0x2fb   : > { %v15449_v58 = vunpack.c.h.b16 %v17865_v57  ;;  %v10065_v13 = vcombine.low %v5323_v18, %v5333_v56  ;;  %v15456_v39 = vrot.slane %v5365_v30, 4  ;;  %v5352_v19 = vrot.slane %v5351_v10, 4  ;;  %v17867_v10 = vld [vmem:[#allocation176_spill] sm:$0xff]  ;;  %v5897_v57 = vpop.permute.xlu0 %5896 }
 0x2fc   : > { %v2760_v16 = vadd.f32 %v15387_v48, %v15378_v0  ;;  %v15463_v7 = vrot.slane %v5389_v5, 4  ;;  %v5399_v15 = vor.u32 %v5398_v40, %v15431_v23  ;;  %v10539_v49 = vpack.c.bf16 %v3037_v11, %v3037_v11  ;;  %v11006_v0 = vpop.f32.mrf.mxu0 }
 0x2fd   : > { %6110 = vrot.lane.b32.xlu0 %v10065_v13, %s11528_s28  ;;  %v15466_v61 = vmax.f32 %v2749_v29, 0.0  ;;  %v3161_v12 = vpack.c.bf16 %v3032_v44, %v15394_v32  ;;  %v4051_v38 = vsel %vm11957_vm3, %v17867_v10, %v17866_v4  ;;  %v17869_v33 = vrot.slane %v17868_v50, 5  ;;  %v5753_v13 = vpop.permute.xlu1 %5752 }
 0x2fe   : > { %v3038_v30 = vmax.f32 %v2760_v16, 0.0  ;;  %v5376_v18 = vrot.slane %v5375_v62, 4  ;;  %v5378_v40 = vshll.u32 %v10534_v34, 16  ;;  %v5416_v63 = vshll.u32 %v10539_v49, 16  ;;  %v2767_v24 = vpop.f32.mrf.mxu0 }
 0x2ff   : > { %v4061_v5 = vsel %vm11957_vm3, %v17870_v41, %v17869_v33  ;;  %v5420_v56 = vshrl.u32 %v10539_v49, 16  ;;  %v10537_v32 = vpack.c.bf16 %v15466_v61, %v15466_v61  ;;  %v2752_v16 = vadd.f32 %v15387_v48, %v15407_v14 }
 0x300   : > { %v3164_v44 = vpack.c.bf16 %v3038_v30, %v3037_v11  ;;  %v10012_v29 = vcombine.low %v4051_v38, %v4061_v5  ;;  %v15482_v4 = vrot.slane %v5416_v63, 5  ;;  %v10540_v50 = vpack.c.bf16 %v3038_v30, %v3038_v30  ;;  %v17871_v11 = vld [vmem:[#allocation50_spill] sm:$0xff]  ;;  %v17872_v38 = vld [vmem:[#allocation57_spill] sm:$0xff] }
 0x301   : > { %v5422_v10 = vrot.slane %v5420_v56, 4  ;;  %v2773_v33 = vadd.f32 %v15387_v48, %v11005_v1  ;;  %v15485_v62 = vrot.slane %v5399_v15, 4  ;;  %v3511_v34 = vunpack.c.l.b16 %v3161_v12 }
 0x302   : > { %v15488_v49 = vsel %vm1457_vm0, %v10012_v29, %v5897_v57  ;;  %v3036_v41 = vmax.f32 %v2752_v16, 0.0  ;;  %v5380_v43 = vrot.slane %v5378_v40, 5  ;;  %v17873_v14 = vpack.c.bf16 %v17871_v11, %v17872_v38  ;;  %v11009_v38 = vpop.f32.mrf.mxu0 }
 0x303   : > { %7133 = vmatprep.mubr.bf16.mxu1 %v15488_v49  ;;  %v15497_v30 = vmax.f32 %v2773_v33, 0.0  ;;  %v5347_v1 = vsel %vm11957_vm3, %v5342_v52, %v15409_v25  ;;  %v15502_v15 = vshll.u32 %v10537_v32, 16  ;;  %v15504_v12 = vunpack.c.l.b16 %v3164_v44  ;;  %v17874_v44 = vld [vmem:[#allocation169_spill] sm:$0xff]  ;;  %v17875_v33 = vld [vmem:[#allocation190_spill] sm:$0xff] }
 0x304   : > { %v15495_v5 = vsel %vm1457_vm0, %v17873_v14, %v5753_v13  ;;  %v10538_v40 = vpack.c.bf16 %v3036_v41, %v3036_v41  ;;  %v5357_v63 = vsel %vm11957_vm3, %v5352_v19, %v5356_v37  ;;  %v5423_v56 = vor.u32 %v5422_v10, %v15482_v4  ;;  %v5899_v13 = vpop.permute.xlu0 %5898  ;;  %v5755_v37 = vpop.permute.xlu1 %5754  ;;  %v17876_v10 = vld [vmem:[#allocation184_spill] sm:$0xff]  ;;  %v17878_v14 = vld [vmem:[#allocation181_spill] sm:$0xff] }
 0x305   : > { %7134 = vmatmul.mubr.bf16.gmra.mxu1 %v15495_v5  ;;  %v15510_v57 = vshll.u32 %v10540_v50, 16  ;;  %v10543_v29 = vpack.c.bf16 %v15497_v30, %v15497_v30  ;;  %v10066_v16 = vcombine.low %v5347_v1, %v5357_v63  ;;  %v3163_v25 = vpack.c.bf16 %v3036_v41, %v15466_v61 }
 0x306   : > { %v5407_v52 = vshrl.u32 %v10538_v40, 16  ;;  %v5410_v32 = vshll.u32 %v10538_v40, 16  ;;  %v4075_v11 = vsel %vm11957_vm3, %v17875_v33, %v17874_v44  ;;  %v17877_v50 = vrot.slane %v17876_v10, 5 }
 0x307   : > { %v15519_v19 = vshll.u32 %v10543_v29, 16  ;;  %6112 = vrot.lane.b32.xlu0 %v10066_v16, %s11528_s28  ;;  %v5940_v61 = vpack.c.b16 %v3511_v34, %v15449_v58  ;;  %v2765_v41 = vadd.f32 %v15387_v48, %v15451_v31  ;;  %v2776_v33 = vadd.f32 %v15387_v48, %v11006_v0 }
 0x308   : > { %v4085_v1 = vsel %vm11957_vm3, %v17878_v14, %v17877_v50  ;;  %v5409_v40 = vrot.slane %v5407_v52, 4  ;;  %v5412_v63 = vrot.slane %v5410_v32, 5  ;;  %v5404_v29 = vrot.slane %v15502_v15, 5  ;;  %v2780_v15 = vpop.f32.mrf.mxu0  ;;  %v5901_v50 = vpop.permute.xlu0 %5900  ;;  %v17880_v14 = vld [vmem:[#allocation185_spill] sm:$0xff] }
 0x309   : > { %v10013_v44 = vcombine.low %v4075_v11, %v4085_v1  ;;  %5970 = vrot.lane.b32.xlu1 %v5940_v61, %s11528_s28  ;;  %v15533_v16 = vmax.f32 %v2765_v41, 0.0  ;;  %v5371_v10 = vsel %vm11957_vm3, %v15456_v39, %v15429_v45  ;;  %v5381_v58 = vsel %vm11957_vm3, %v5376_v18, %v5380_v43  ;;  %v17881_v45 = vld [vmem:[#allocation183_spill] sm:$0xff]  ;;  %v5757_v41 = vpop.permute.xlu1 %5756 }
 0x30a   : > { %v3042_v0 = vmax.f32 %v2776_v33, 0.0  ;;  %v10067_v52 = vcombine.low %v5371_v10, %v5381_v58  ;;  %v5413_v32 = vor.u32 %v5412_v63, %v5409_v40  ;;  %v5706_v39 = vpack.c.b16 %v17881_v45, %v17880_v14  ;;  %v17884_v58 = vld [vmem:[#allocation186_spill] sm:$0xff]  ;;  %v17886_v14 = vld [vmem:[#allocation195_spill] sm:$0xff]  ;;  %v11010_v45 = vpop.f32.mrf.mxu0 }
 0x30b   : > { %v15543_v34 = vsel %vm1457_vm0, %v10013_v44, %v5899_v13  ;;  %v10541_v11 = vpack.c.bf16 %v15533_v16, %v15533_v16  ;;  %v2768_v43 = vadd.f32 %v15387_v48, %v2767_v24  ;;  %v15551_v18 = vrot.slane %v5423_v56, 4 }
 0x30c   : > { %17879 = vst [vmem:[#allocation172_spill] sm:$0xff] %v15543_v34  ;;  %7141 = vmatprep.mubr.bf16.mxu1 %v15543_v34  ;;  %v3516_v1 = vunpack.c.h.b16 %v3163_v25  ;;  %v10544_v61 = vpack.c.bf16 %v3042_v0, %v3042_v0  ;;  %6114 = vrot.lane.b32.xlu0 %v10067_v52, %s11528_s28  ;;  %v17882_v44 = vpack.c.bf16 %v15396_v35, %v15371_v26  ;;  %v17885_v52 = vrot.slane %v17884_v58, 5 }
 0x30d   : > { %v5431_v40 = vshrl.u32 %v10541_v11, 16  ;;  %v5434_v63 = vshll.u32 %v10541_v11, 16  ;;  %v15560_v33 = vsel %vm1457_vm0, %v5706_v39, %v5755_v37  ;;  %v15562_v24 = vmax.f32 %v2768_v43, 0.0  ;;  %v17887_v39 = vld [vmem:[#allocation189_spill] sm:$0xff] }
 0x30e   : > { %5972 = vrot.lane.b32.xlu1 %v17882_v44, %s11528_s28  ;;  %17883 = vst [vmem:[#allocation162_spill] sm:$0xff] %v15560_v33  ;;  %v3166_v56 = vpack.c.bf16 %v3042_v0, %v15497_v30  ;;  %v5455_v25 = vshrl.u32 %v10544_v61, 16  ;;  %v5458_v10 = vshll.u32 %v10544_v61, 16  ;;  %7142 = vmatmul.mubr.bf16.gmra.mxu1 %v15560_v33  ;;  %v4109_v11 = vsel %vm11957_vm3, %v17886_v14, %v17885_v52  ;;  %v17888_v43 = vld [vmem:[#allocation193_spill] sm:$0xff]  ;;  %v5903_v0 = vpop.permute.xlu0 %5902 }
 0x30f   : > { %v15571_v26 = vrot.slane %v5413_v32, 4  ;;  %v5433_v35 = vrot.slane %v5431_v40, 4  ;;  %v10542_v37 = vpack.c.bf16 %v15562_v24, %v15562_v24  ;;  %v4099_v30 = vsel %vm11957_vm3, %v17888_v43, %v17887_v39  ;;  %v17891_v43 = vld [vmem:[#allocation171_spill] sm:$0xff] }
 0x310   : > { %v5436_v61 = vrot.slane %v5434_v63, 5  ;;  %v5457_v44 = vrot.slane %v5455_v25, 4  ;;  %v10014_v58 = vcombine.low %v4099_v30, %v4109_v11  ;;  %v2789_v13 = vadd.f32 %v15387_v48, %v11009_v38  ;;  %v2783_v38 = vpop.f32.mrf.mxu0  ;;  %v15594_v25 = vpop.permute.xlu1 %5758 }
 0x311   : > { %v5460_v31 = vrot.slane %v5458_v10, 5  ;;  %v5440_v52 = vshll.u32 %v10542_v37, 16  ;;  %v5444_v14 = vshrl.u32 %v10542_v37, 16  ;;  %v5395_v32 = vsel %vm11957_vm3, %v15463_v7, %v15431_v23 }
 0x312   : > { %v15584_v40 = vunpack.c.h.b16 %v3166_v56  ;;  %v15587_v33 = vsel %vm1457_vm0, %v10014_v58, %v5901_v50  ;;  %v15589_v39 = vmax.f32 %v2789_v13, 0.0  ;;  %v5405_v63 = vsel %vm11957_vm3, %v15485_v62, %v5404_v29  ;;  %v15601_v50 = vpop.permute.xlu0 %5904 }
 0x313   : > { %17889 = vst [vmem:[#allocation175_spill] sm:$0xff] %v15587_v33  ;;  %v3165_v10 = vpack.c.bf16 %v15562_v24, %v15533_v16  ;;  %v15598_v11 = vrot.slane %v5440_v52, 5  ;;  %v5446_v23 = vrot.slane %v5444_v14, 4  ;;  %7149 = vmatprep.mubr.bf16.mxu1 %v15587_v33  ;;  %v10068_v7 = vcombine.low %v5395_v32, %v5405_v63  ;;  %v17890_v24 = vld [vmem:[#allocation177_spill] sm:$0xff]  ;;  %v17896_v14 = vld [vmem:[#allocation198_spill] sm:$0xff] }
 0x314   : > { %v5437_v13 = vor.u32 %v5436_v61, %v5433_v35  ;;  %v10547_v56 = vpack.c.bf16 %v15589_v39, %v15589_v39  ;;  %v5942_v62 = vpack.c.b16 %v15504_v12, %v3516_v1  ;;  %v2781_v29 = vadd.f32 %v15387_v48, %v2780_v15  ;;  %v17895_v15 = vld [vmem:[#allocation194_spill] sm:$0xff]  ;;  %v17898_v63 = vld [vmem:[#allocation197_spill] sm:$0xff] }
 0x315   : > { %v5461_v37 = vor.u32 %v5460_v31, %v5457_v44  ;;  %6116 = vrot.lane.b32.xlu0 %v10068_v7, %s11528_s28  ;;  %v2792_v16 = vadd.f32 %v15387_v48, %v11010_v45  ;;  %v17892_v30 = vpack.c.bf16 %v17890_v24, %v17891_v43  ;;  %v2784_v35 = vadd.f32 %v15387_v48, %v2783_v38  ;;  %v17894_v31 = vld [vmem:[#allocation141_spill] sm:$0xff]  ;;  %v11013_v7 = vpop.f32.mrf.mxu0 }
 0x316   : > { %v5479_v61 = vshrl.u32 %v10547_v56, 16  ;;  %v5482_v52 = vshll.u32 %v10547_v56, 16  ;;  %5974 = vrot.lane.b32.xlu1 %v5942_v62, %s11528_s28  ;;  %v3043_v12 = vmax.f32 %v2781_v29, 0.0  ;;  %v4123_v1 = vsel %vm11957_vm3, %v17895_v15, %v17894_v31 }
 0x317   : > { %v15613_v58 = vsel %vm1457_vm0, %v17892_v30, %v5757_v41  ;;  %v5447_v45 = vor.u32 %v5446_v23, %v15598_v11  ;;  %v15623_v44 = vmax.f32 %v2792_v16, 0.0  ;;  %v3044_v41 = vmax.f32 %v2784_v35, 0.0  ;;  %v15630_v30 = vpop.permute.xlu1 %5760  ;;  %v15634_v35 = vpop.permute.xlu0 %5906 }
 0x318   : > { %17893 = vst [vmem:[#allocation143_spill] sm:$0xff] %v15613_v58  ;;  %7150 = vmatmul.mubr.bf16.gmra.mxu1 %v15613_v58  ;;  %v17897_v32 = vrot.slane %v17896_v14, 5  ;;  %v5481_v56 = vrot.slane %v5479_v61, 4  ;;  %v5484_v62 = vrot.slane %v5482_v52, 5  ;;  %v10545_v29 = vpack.c.bf16 %v3043_v12, %v3043_v12 }
 0x319   : > { %v5438_v43 = vrot.slane %v5437_v13, 4  ;;  %v10548_v23 = vpack.c.bf16 %v15623_v44, %v15623_v44  ;;  %v3167_v16 = vpack.c.bf16 %v3044_v41, %v3043_v12  ;;  %v10546_v31 = vpack.c.bf16 %v3044_v41, %v3044_v41 }
 0x31a   : > { %v4133_v38 = vsel %vm11957_vm3, %v17898_v63, %v17897_v32  ;;  %v15636_v15 = vrot.slane %v5461_v37, 4  ;;  %v5464_v14 = vshll.u32 %v10545_v29, 16  ;;  %v5468_v58 = vshrl.u32 %v10545_v29, 16  ;;  %5976 = vrot.lane.b32.xlu1 %v3165_v10, %s11528_s28  ;;  %v2796_v63 = vpop.f32.mrf.mxu0 }
 0x31b   : > { %v10015_v24 = vcombine.low %v4123_v1, %v4133_v38  ;;  %v5448_v52 = vrot.slane %v5447_v45, 4  ;;  %v5488_v13 = vshll.u32 %v10548_v23, 16  ;;  %v5492_v1 = vshrl.u32 %v10548_v23, 16  ;;  %v15650_v10 = vpop.permute.xlu1 %5762 }
 0x31c   : > { %v5474_v32 = vshll.u32 %v10546_v31, 16  ;;  %v5485_v12 = vor.u32 %v5484_v62, %v5481_v56  ;;  %v5466_v41 = vrot.slane %v5464_v14, 5  ;;  %v5470_v38 = vrot.slane %v5468_v58, 4  ;;  %v17901_v31 = vld [vmem:[#allocation60_spill] sm:$0xff] }
 0x31d   : > { %v15640_v61 = vsel %vm1457_vm0, %v10015_v24, %v5903_v0  ;;  %v2805_v37 = vadd.f32 %v15387_v48, %v11013_v7  ;;  %v15644_v33 = vrot.slane %v5488_v13, 5  ;;  %v5494_v29 = vrot.slane %v5492_v1, 4  ;;  %v17902_v13 = vld [vmem:[#allocation192_spill] sm:$0xff]  ;;  %v15666_v1 = vpop.permute.xlu0 %5908 }
 0x31e   : > { %7157 = vmatprep.mubr.bf16.mxu1 %v15640_v61  ;;  %v3523_v34 = vunpack.c.l.b16 %v3167_v16  ;;  %v5419_v0 = vsel %vm11957_vm3, %v15571_v26, %v15482_v4  ;;  %v5471_v45 = vor.u32 %v5470_v38, %v5466_v41  ;;  %v17899_v56 = vrot.slane %v15510_v57, 5  ;;  %v17900_v16 = vld [vmem:[#allocation191_spill] sm:$0xff]  ;;  %v17903_v4 = vld [vmem:[#allocation196_spill] sm:$0xff] }
 0x31f   : > { %v15652_v24 = vmax.f32 %v2805_v37, 0.0  ;;  %v2797_v7 = vadd.f32 %v15387_v48, %v2796_v63  ;;  %v5476_v62 = vrot.slane %v5474_v32, 5  ;;  %v5708_v14 = vpack.c.b16 %v17901_v31, %v17900_v16  ;;  %v17905_v63 = vld [vmem:[#allocation199_spill] sm:$0xff] }
 0x320   : > { %v5429_v58 = vsel %vm11957_vm3, %v15551_v18, %v17899_v56  ;;  %v4147_v26 = vsel %vm11957_vm3, %v17903_v4, %v17902_v13  ;;  %v5495_v57 = vor.u32 %v5494_v29, %v15644_v33  ;;  %v17904_v32 = vrot.slane %v14681_v51, 5 }
 0x321   : > { %v10069_v23 = vcombine.low %v5419_v0, %v5429_v58  ;;  %v10551_v38 = vpack.c.bf16 %v15652_v24, %v15652_v24  ;;  %v15671_v18 = vmax.f32 %v2797_v7, 0.0  ;;  %v11014_v0 = vpop.f32.mrf.mxu0  ;;  %v5472_v56 = vrot.slane %v5471_v45, 4 }
 0x322   : > { %v4157_v37 = vsel %vm11957_vm3, %v17905_v63, %v17904_v32  ;;  %v15681_v58 = vsel %vm1457_vm0, %v5708_v14, %v15594_v25  ;;  %v5443_v7 = vsel %vm11957_vm3, %v5438_v43, %v15598_v11  ;;  %v17907_v45 = vrot.slane %v15519_v19, 5  ;;  %v15701_v11 = vpop.permute.xlu1 %5764 }
 0x323   : > { %6118 = vrot.lane.b32.xlu0 %v10069_v23, %s11528_s28  ;;  %17906 = vst [vmem:[#allocation142_spill] sm:$0xff] %v15681_v58  ;;  %v10016_v29 = vcombine.low %v4147_v26, %v4157_v37  ;;  %v5680_v16 = vshll.u32 %v10551_v38, 16  ;;  %v5684_v31 = vshrl.u32 %v10551_v38, 16  ;;  %v10549_v51 = vpack.c.bf16 %v15671_v18, %v15671_v18  ;;  %7158 = vmatmul.mubr.bf16.gmra.mxu1 %v15681_v58  ;;  %v2799_v38 = vpop.f32.mrf.mxu0  ;;  %v18065_v58 = vld [vmem:[#allocation67_spill] sm:$0xff] }
 0x324   : > { %v5453_v23 = vsel %vm11957_vm3, %v5448_v52, %v17907_v45  ;;  %v15695_v25 = vpack.c.bf16 %v15199_v3, %v15199_v3  ;;  %v5944_v13 = vpack.c.b16 %v3523_v34, %v15584_v40  ;;  %v5486_v4 = vrot.slane %v5485_v12, 4 }
 0x325   : > { %v15699_v14 = vsel %vm1457_vm0, %v10016_v29, %v15601_v50  ;;  %v10070_v43 = vcombine.low %v5443_v7, %v5453_v23  ;;  %v3168_v19 = vpack.c.bf16 %v15623_v44, %v15589_v39  ;;  %v5498_v26 = vshll.u32 %v10549_v51, 16  ;;  %v15717_v39 = vpop.permute.xlu0 %6090 }
 0x326   : > { %17908 = vst [vmem:[#allocation167_spill] sm:$0xff] %v15699_v14  ;;  %7165 = vmatprep.mubr.bf16.mxu1 %v15699_v14  ;;  %v2808_v52 = vadd.f32 %v15387_v48, %v11014_v0  ;;  %v5496_v32 = vrot.slane %v5495_v57, 4  ;;  %v15708_v63 = vrot.slane %v5680_v16, 5  ;;  %5978 = vrot.lane.b32.xlu1 %v5944_v13, %s11528_s28  ;;  %v5467_v34 = vsel %vm11957_vm3, %v15636_v15, %v5466_v41  ;;  %v17910_v41 = vld [vmem:[#allocation76_spill] sm:$0xff]  ;;  %v15734_v51 = vpop.permute.xlu1 %5946 }
 0x327   : > { %6120 = vrot.lane.b32.xlu0 %v10070_v43, %s11528_s28  ;;  %v5477_v40 = vsel %vm11957_vm3, %v5472_v56, %v5476_v62  ;;  %v5686_v50 = vrot.slane %v5684_v31, 4  ;;  %v5500_v44 = vrot.slane %v5498_v26, 5  ;;  %v2800_v57 = vadd.f32 %v15387_v48, %v2799_v38  ;;  %v17911_v62 = vld [vmem:[#allocation88_spill] sm:$0xff] }
 0x328   : > { %v3050_v12 = vmax.f32 %v2808_v52, 0.0  ;;  %v10071_v37 = vcombine.low %v5467_v34, %v5477_v40  ;;  %v4171_v0 = vsel %vm11957_vm3, %v14784_v6, %v14646_v21  ;;  %v17909_v29 = vrot.slane %v14698_v17, 5  ;;  %v17912_v21 = vld [vmem:[#allocation165_spill] sm:$0xff]  ;;  %v17913_v17 = vld [vmem:[#allocation164_spill] sm:$0xff] }
 0x329   : > { %v5911_v56 = vpack.c.b16 %v17911_v62, %v17910_v41  ;;  %v5029_v7 = vor.u32 %v15336_v8, %v15302_v27  ;;  %v3048_v45 = vmax.f32 %v2800_v57, 0.0  ;;  %v5501_v23 = vsel %vm11957_vm3, %v5496_v32, %v5500_v44  ;;  %v17919_v32 = vld [vmem:[#allocation73_spill] sm:$0xff]  ;;  %v6093_v40 = vpop.permute.xlu0 %6092  ;;  %v17922_v57 = vld [vmem:[#allocation70_spill] sm:$0xff] }
 0x32a   : > { %v4181_v15 = vsel %vm11957_vm3, %v14743_v53, %v17909_v29  ;;  %v3170_v16 = vpack.c.bf16 %v3050_v12, %v15652_v24  ;;  %v10552_v48 = vpack.c.bf16 %v3050_v12, %v3050_v12  ;;  %5980 = vrot.lane.b32.xlu1 %v3168_v19, %s11528_s28  ;;  %v17914_v53 = vpack.c.bf16 %v17912_v21, %v17913_v17  ;;  %v17920_v12 = vld [vmem:[#allocation64_spill] sm:$0xff]  ;;  %v17926_v41 = vld [vmem:[#allocation82_spill] sm:$0xff]  ;;  %v17927_v17 = vld [vmem:[#allocation85_spill] sm:$0xff] }
 0x32b   : > { %v10017_v31 = vcombine.low %v4171_v0, %v4181_v15  ;;  %6122 = vrot.lane.b32.xlu0 %v10071_v37, %s11528_s28  ;;  %v5491_v24 = vsel %vm11957_vm3, %v5486_v4, %v15644_v33  ;;  %v17916_v43 = vshrl.u32 %v15306_v22, 16  ;;  %v5056_v19 = vshll.u32 %v15695_v25, 16  ;;  %v17918_v4 = vld [vmem:[#allocation74_spill] sm:$0xff]  ;;  %v17921_v37 = vld [vmem:[#allocation80_spill] sm:$0xff]  ;;  %v17925_v15 = vld [vmem:[#allocation79_spill] sm:$0xff] }
 0x32c   : > { %v15743_v6 = vsel %vm1457_vm0, %v17914_v53, %v15630_v30  ;;  %v10072_v26 = vcombine.low %v5491_v24, %v5501_v23  ;;  %v5687_v52 = vor.u32 %v5686_v50, %v15708_v63  ;;  %v15761_v38 = vunpack.c.l.b16 %v3170_v16  ;;  %v17924_v29 = vld [vmem:[#allocation72_spill] sm:$0xff]  ;;  %v17929_v24 = vld [vmem:[#allocation89_spill] sm:$0xff] }
 0x32d   : > { %17915 = vst [vmem:[#allocation173_spill] sm:$0xff] %v15743_v6  ;;  %v15752_v13 = vrot.slane %v17916_v43, 4  ;;  %7166 = vmatmul.mubr.bf16.gmra.mxu1 %v15743_v6  ;;  %v15758_v30 = vsel %vm1457_vm0, %v10017_v31, %v15634_v35  ;;  %v10550_v33 = vpack.c.bf16 %v3048_v45, %v3048_v45  ;;  %v6128_v34 = vpack.c.b16 %v17919_v32, %v17918_v4  ;;  %v17930_v43 = vld [vmem:[#allocation161_spill] sm:$0xff]  ;;  %v17931_v4 = vld [vmem:[#allocation159_spill] sm:$0xff] }
 0x32e   : > { %17917 = vst [vmem:[#allocation174_spill] sm:$0xff] %v15758_v30  ;;  %7173 = vmatprep.mubr.bf16.mxu1 %v15758_v30  ;;  %v15766_v44 = vshll.u32 %v10552_v48, 16  ;;  %v5563_v35 = vsel %vm11957_vm3, %v17921_v37, %v17920_v12  ;;  %v17923_v0 = vrot.slane %v17922_v57, 5  ;;  %v4675_v62 = vsel %vm11957_vm3, %v17926_v41, %v17925_v15  ;;  %v5949_v37 = vpop.permute.xlu1 %5948  ;;  %v17934_v57 = vld [vmem:[#allocation100_spill] sm:$0xff]  ;;  %v17939_v41 = vld [vmem:[#allocation94_spill] sm:$0xff] }
 0x32f   : > { %v3169_v16 = vpack.c.bf16 %v3048_v45, %v15671_v18  ;;  %v5671_v48 = vshrl.u32 %v10550_v33, 16  ;;  %v5674_v31 = vshll.u32 %v10550_v33, 16  ;;  %6124 = vrot.lane.b32.xlu0 %v10072_v26, %s11528_s28  ;;  %6130 = vrot.lane.b32.xlu1 %v6128_v34, %s11528_s28  ;;  %v17928_v53 = vrot.slane %v17927_v17, 5  ;;  %v17932_v18 = vld [vmem:[#allocation101_spill] sm:$0xff]  ;;  %v17933_v45 = vld [vmem:[#allocation30_spill] sm:$0xff]  ;;  %v18050_v30 = vld [vmem:[#allocation212_spill] sm:$0xff] }
 0x330   : > { %v5573_v50 = vsel %vm11957_vm3, %v17924_v29, %v17923_v0  ;;  %v6152_v32 = vpack.c.b16 %v17931_v4, %v17930_v43  ;;  %v5710_v12 = vpack.c.b16 %v14693_v28, %v14713_v55  ;;  %v4195_v26 = vsel %vm11957_vm3, %v17933_v45, %v17932_v18  ;;  %v17936_v29 = vld [vmem:[#allocation126_spill] sm:$0xff]  ;;  %v17942_v43 = vld [vmem:[#allocation160_spill] sm:$0xff] }
 0x331   : > { %v10075_v21 = vcombine.low %v5563_v35, %v5573_v50  ;;  %v4685_v23 = vsel %vm11957_vm3, %v17929_v24, %v17928_v53  ;;  %v5673_v33 = vrot.slane %v5671_v48, 4  ;;  %v5676_v34 = vrot.slane %v5674_v31, 5  ;;  %v17938_v55 = vld [vmem:[#allocation98_spill] sm:$0xff]  ;;  %v17940_v53 = vld [vmem:[#allocation151_spill] sm:$0xff] }
 0x332   : > { %v10038_v35 = vcombine.low %v4675_v62, %v4685_v23  ;;  %v17935_v0 = vrot.slane %v17934_v57, 5  ;;  %v15804_v15 = vsel %vm1457_vm0, %v5710_v12, %v15650_v10  ;;  %v5913_v17 = vpack.c.b16 %v17939_v41, %v17938_v55  ;;  %v17941_v24 = vld [vmem:[#allocation166_spill] sm:$0xff]  ;;  %v6095_v10 = vpop.permute.xlu0 %6094  ;;  %v17951_v57 = vld [vmem:[#allocation44_spill] sm:$0xff] }
 0x333   : > { %17937 = vst [vmem:[#allocation178_spill] sm:$0xff] %v15804_v15  ;;  %v5659_v48 = vsel %vm11957_vm3, %v17941_v24, %v17940_v53  ;;  %v3528_v62 = vunpack.c.h.b16 %v3169_v16  ;;  %v5677_v31 = vor.u32 %v5676_v34, %v5673_v33  ;;  %6146 = vrot.lane.b32.xlu0 %v10075_v21, %s11528_s28  ;;  %6154 = vrot.lane.b32.xlu1 %v6152_v32, %s11528_s28  ;;  %v17943_v4 = vrot.slane %v17942_v43, 5  ;;  %v17944_v12 = vld [vmem:[#allocation158_spill] sm:$0xff]  ;;  %v17946_v32 = vld [vmem:[#allocation84_spill] sm:$0xff]  ;;  %v17947_v33 = vld [vmem:[#allocation87_spill] sm:$0xff] }
 0x334   : > { %v4205_v50 = vsel %vm11957_vm3, %v17936_v29, %v17935_v0  ;;  %v15814_v23 = vsel %vm1457_vm0, %v10038_v35, %v6093_v40  ;;  %v5688_v45 = vrot.slane %v5687_v52, 4  ;;  %v17948_v52 = vld [vmem:[#allocation90_spill] sm:$0xff]  ;;  %v5692_v29 = vrot.slane %v15766_v44, 5 }
 0x335   : > { %v10018_v28 = vcombine.low %v4195_v26, %v4205_v50  ;;  %v5669_v18 = vsel %vm11957_vm3, %v17944_v12, %v17943_v4  ;;  %v15823_v26 = vsel %vm1457_vm0, %v5911_v56, %v5949_v37  ;;  %7576 = vmatprep.mubr.bf16.mxu0 %v15814_v23  ;;  %7174 = vmatmul.mubr.bf16.gmra.mxu1 %v15804_v15  ;;  %v5678_v21 = vrot.slane %v5677_v31, 4  ;;  %v17950_v37 = vld [vmem:[#allocation93_spill] sm:$0xff]  ;;  %v17954_v24 = vld [vmem:[#allocation14_spill] sm:$0xff] }
 0x336   : > { %v10079_v16 = vcombine.low %v5659_v48, %v5669_v18  ;;  %7577 = vmatmul.mubr.bf16.vlgmr.msra.gmra.mxu0 %v15823_v26  ;;  %v4699_v56 = vsel %vm11957_vm3, %v17947_v33, %v17946_v32  ;;  %v17949_v34 = vrot.slane %v17948_v52, 5  ;;  %v17955_v48 = vrot.slane %v17954_v24, 5  ;;  %v17956_v31 = vld [vmem:[#allocation202_spill] sm:$0xff]  ;;  %v17959_v52 = vld [vmem:[#allocation81_spill] sm:$0xff]  ;;  %v17968_v24 = vld [vmem:[#allocation99_spill] sm:$0xff] }
 0x337   : > { %v15829_v40 = vsel %vm1457_vm0, %v10018_v28, %v15666_v1  ;;  %v17952_v1 = vld [vmem:[#allocation22_spill] sm:$0xff]  ;;  %v17957_v4 = vshll.u32 %v15306_v22, 16  ;;  %v5060_v18 = vshrl.u32 %v15695_v25, 16  ;;  %v6153_v32 = vpack.c.b16 %v15761_v38, %v3528_v62  ;;  %v6097_v62 = vpop.permute.xlu0 %6096 }
 0x338   : > { %17945 = vst [vmem:[#allocation170_spill] sm:$0xff] %v15829_v40  ;;  %7181 = vmatprep.mubr.bf16.mxu1 %v15829_v40  ;;  %v4709_v35 = vsel %vm11957_vm3, %v17950_v37, %v17949_v34  ;;  %v6129_v0 = vpack.c.b16 %v17952_v1, %v17951_v57  ;;  %v17953_v28 = vld [vmem:[#allocation26_spill] sm:$0xff]  ;;  %v5597_v43 = vsel %vm11957_vm3, %v17956_v31, %v17955_v48  ;;  %v17960_v34 = vld [vmem:[#allocation71_spill] sm:$0xff]  ;;  %v17969_v48 = vld [vmem:[#allocation113_spill] sm:$0xff] }
 0x339   : > { %v10039_v50 = vcombine.low %v4699_v56, %v4709_v35  ;;  %v5587_v53 = vsel %vm11957_vm3, %v14971_v36, %v17953_v28  ;;  %v15856_v12 = vrot.slane %v17957_v4, 5  ;;  %6170 = vrot.lane.b32.xlu0 %v10079_v16, %s11528_s28  ;;  %v5951_v36 = vpop.permute.xlu1 %5950  ;;  %v17958_v56 = vld [vmem:[#allocation75_spill] sm:$0xff]  ;;  %v17961_v37 = vrot.slane %v17960_v34, 5  ;;  %v17963_v57 = vld [vmem:[#allocation86_spill] sm:$0xff]  ;;  %v17967_v28 = vld [vmem:[#allocation97_spill] sm:$0xff] }
 0x33a   : > { %6132 = vrot.lane.b32.xlu1 %v6129_v0, %s11528_s28  ;;  %v10076_v44 = vcombine.low %v5587_v53, %v5597_v43  ;;  %v4651_v22 = vsel %vm11957_vm3, %v17959_v52, %v17958_v56  ;;  %v17962_v35 = vld [vmem:[#allocation83_spill] sm:$0xff]  ;;  %v17964_v1 = vld [vmem:[#allocation106_spill] sm:$0xff]  ;;  %v5683_v43 = vsel %vm11957_vm3, %v5678_v21, %v15708_v63  ;;  %v15891_v4 = vrot.slane %v5056_v19, 5  ;;  %v17976_v63 = vld [vmem:[#allocation205_spill] sm:$0xff] }
 0x33b   : > { %v15863_v33 = vsel %vm1457_vm0, %v10039_v50, %v6095_v10  ;;  %v4661_v16 = vsel %vm11957_vm3, %v17962_v35, %v17961_v37  ;;  %v4723_v38 = vsel %vm11957_vm3, %v17964_v1, %v17963_v57  ;;  %v17965_v0 = vld [vmem:[#allocation91_spill] sm:$0xff]  ;;  %v5693_v52 = vsel %vm11957_vm3, %v5688_v45, %v5692_v29  ;;  %v17973_v57 = vld [vmem:[#allocation52_spill] sm:$0xff]  ;;  %v17975_v25 = vld [vmem:[#allocation206_spill] sm:$0xff] }
 0x33c   : > { %7584 = vmatprep.mubr.bf16.mxu0 %v15863_v33  ;;  %v10037_v10 = vcombine.low %v4651_v22, %v4661_v16  ;;  %v17966_v50 = vrot.slane %v17965_v0, 5  ;;  %v17970_v22 = vld [vmem:[#allocation102_spill] sm:$0xff]  ;;  %v17971_v34 = vld [vmem:[#allocation107_spill] sm:$0xff]  ;;  %v5062_v35 = vrot.slane %v5060_v18, 4  ;;  %v17972_v16 = vld [vmem:[#allocation53_spill] sm:$0xff]  ;;  %v17977_v19 = vpack.c.bf16 %v17975_v25, %v17976_v63 }
 0x33d   : > { %v4747_v37 = vsel %vm11957_vm3, %v17971_v34, %v17970_v22  ;;  %v17974_v1 = vpack.c.bf16 %v17972_v16, %v17973_v57  ;;  %6148 = vrot.lane.b32.xlu0 %v10076_v44, %s11528_s28  ;;  %v10080_v21 = vcombine.low %v5683_v43, %v5693_v52  ;;  %v17984_v52 = vld [vmem:[#allocation103_spill] sm:$0xff]  ;;  %v17988_v22 = vld [vmem:[#allocation114_spill] sm:$0xff]  ;;  %v15941_v16 = vrot.slane %v5029_v7, 4  ;;  %v17989_v57 = vld [vmem:[#allocation104_spill] sm:$0xff]  ;;  %v5953_v8 = vpop.permute.xlu1 %5952 }
 0x33e   : > { %v4733_v53 = vsel %vm11957_vm3, %v17967_v28, %v17966_v50  ;;  %6156 = vrot.lane.b32.xlu1 %v6153_v32, %s11528_s28  ;;  %v15912_v45 = vsel %vm1457_vm0, %v17977_v19, %v15701_v11  ;;  %v6392_v29 = vsel %vm1457_vm0, %v10037_v10, %v15717_v39  ;;  %v17982_v50 = vld [vmem:[#allocation17_spill] sm:$0xff]  ;;  %v17983_v28 = vld [vmem:[#allocation116_spill] sm:$0xff]  ;;  %v17991_v63 = vld [vmem:[#allocation110_spill] sm:$0xff]  ;;  %v5053_v27 = vor.u32 %v15856_v12, %v15752_v13 }
 0x33f   : > { %v10040_v56 = vcombine.low %v4723_v38, %v4733_v53  ;;  %v15903_v0 = vsel %vm1457_vm0, %v17974_v1, %v5951_v36  ;;  %17978 = vst [vmem:[#allocation179_spill] sm:$0xff] %v15912_v45  ;;  %7182 = vmatmul.mubr.bf16.gmra.mxu1 %v15912_v45  ;;  %v17979_v36 = vld [vmem:[#allocation92_spill] sm:$0xff]  ;;  %v17981_v38 = vld [vmem:[#allocation111_spill] sm:$0xff]  ;;  %v17985_v39 = vld [vmem:[#allocation109_spill] sm:$0xff]  ;;  %v17992_v19 = vrot.slane %v17991_v63, 5 }
 0x340   : > { %v17980_v44 = vrot.slane %v17979_v36, 5  ;;  %7585 = vmatmul.mubr.bf16.gmra.mxu0 %v15903_v0  ;;  %7222 = vmatprep.mubr.bf16.mxu1 %v6392_v29  ;;  %v17986_v10 = vld [vmem:[#allocation108_spill] sm:$0xff]  ;;  %v17993_v29 = vld [vmem:[#allocation115_spill] sm:$0xff]  ;;  %v18041_v53 = vld [vmem:[#allocation21_spill] sm:$0xff] }
 0x341   : > { %v15918_v18 = vsel %vm1457_vm0, %v10040_v56, %v6097_v62  ;;  %v4771_v62 = vsel %vm11957_vm3, %v17985_v39, %v17984_v52  ;;  %v17987_v56 = vrot.slane %v17986_v10, 5  ;;  %v17990_v1 = vld [vmem:[#allocation112_spill] sm:$0xff]  ;;  %v4805_v36 = vsel %vm11957_vm3, %v17993_v29, %v17992_v19  ;;  %6172 = vrot.lane.b32.xlu0 %v10080_v21, %s11528_s28  ;;  %v17996_v52 = vld [vmem:[#allocation118_spill] sm:$0xff]  ;;  %v18004_v19 = vld [vmem:[#allocation49_spill] sm:$0xff] }
 0x342   : > { %v4757_v32 = vsel %vm11957_vm3, %v17981_v38, %v17980_v44  ;;  %7592 = vmatprep.mubr.bf16.mxu0 %v15918_v18  ;;  %v4795_v25 = vsel %vm11957_vm3, %v17990_v1, %v17989_v57  ;;  %v17994_v44 = vld [vmem:[#allocation105_spill] sm:$0xff]  ;;  %v17995_v38 = vld [vmem:[#allocation119_spill] sm:$0xff]  ;;  %v17997_v39 = vrot.slane %v17996_v52, 5  ;;  %v17999_v12 = vld [vmem:[#allocation12_spill] sm:$0xff] }
 0x343   : > { %v10041_v43 = vcombine.low %v4747_v37, %v4757_v32  ;;  %v4781_v34 = vsel %vm11957_vm3, %v17988_v22, %v17987_v56  ;;  %v15958_v7 = vcombine.low %v4795_v25, %v4805_v36  ;;  %v4819_v32 = vsel %vm11957_vm3, %v17995_v38, %v17994_v44  ;;  %v6099_v22 = vpop.permute.xlu0 %6098  ;;  %v18000_v21 = vld [vmem:[#allocation120_spill] sm:$0xff]  ;;  %v18001_v57 = vld [vmem:[#allocation11_spill] sm:$0xff]  ;;  %v11308_v44 = vld [vmem:[%s11725_s25 + $0x138] sm:$0xff]  }
 0x344   : > { %v15944_v37 = vcombine.low %v4771_v62, %v4781_v34  ;;  %v17998_v62 = vld [vmem:[#allocation117_spill] sm:$0xff]  ;;  %v5063_v56 = vor.u32 %v5062_v35, %v15891_v4  ;;  %v4843_v34 = vsel %vm11957_vm3, %v18000_v21, %v17999_v12  ;;  %v18002_v1 = vrot.slane %v18001_v57, 5  ;;  %v18003_v25 = vld [vmem:[#allocation19_spill] sm:$0xff]  ;;  %v18005_v29 = vld [vmem:[#allocation48_spill] sm:$0xff] }
 0x345   : > { %v4829_v10 = vsel %vm11957_vm3, %v17998_v62, %v17997_v39  ;;  %v18006_v36 = vpack.c.bf16 %v18004_v19, %v18005_v29  ;;  %v15997_v39 = vsel %vm1457_vm0, %v5913_v17, %v5953_v8  ;;  %v18007_v62 = vld [vmem:[#allocation127_spill] sm:$0xff]  ;;  %v18011_v57 = vld [vmem:[#allocation213_spill] sm:$0xff]  ;;  %v16011_v55 = vsel %vm1457_vm0, %v10041_v43, %v6099_v22  ;;  %v18043_v11 = vld [vmem:[#allocation124_spill] sm:$0xff] }
 0x346   : > { %v15970_v13 = vcombine.low %v4819_v32, %v4829_v10  ;;  %v4853_v63 = vsel %vm11957_vm3, %v18003_v25, %v18002_v1  ;;  %v18008_v10 = vrot.slane %v18007_v62, 5  ;;  %v18009_v12 = vld [vmem:[#allocation7_spill] sm:$0xff]  ;;  %v18012_v17 = vld [vmem:[#allocation133_spill] sm:$0xff]  ;;  %v18032_v1 = vld [vmem:[#allocation150_spill] sm:$0xff] }
 0x347   : > { %v6320_v35 = vsel %vm1457_vm0, %v18006_v36, %v15734_v51  ;;  %v15987_v38 = vcombine.low %v4843_v34, %v4853_v63  ;;  %v4867_v51 = vsel %vm11957_vm3, %v14999_v47, %v14939_v20  ;;  %v18010_v34 = vld [vmem:[#allocation156_spill] sm:$0xff]  ;;  %v18013_v8 = vld [vmem:[#allocation135_spill] sm:$0xff]  ;;  %v18016_v63 = vld [vmem:[#allocation37_spill] sm:$0xff] }
 0x348   : > { %v4877_v21 = vsel %vm11957_vm3, %v18009_v12, %v18008_v10  ;;  %v4891_v25 = vsel %vm11957_vm3, %v18013_v8, %v18012_v17  ;;  %v18014_v20 = vld [vmem:[#allocation8_spill] sm:$0xff]  ;;  %7223 = vmatmul.mubr.bf16.vlgmr.msra.gmra.mxu1 %v6320_v35  ;;  %v18017_v36 = vld [vmem:[#allocation35_spill] sm:$0xff]  ;;  %v18021_v10 = vld [vmem:[#allocation54_spill] sm:$0xff]  ;;  %7593 = vmatmul.mubr.bf16.gmra.mxu0 %v15997_v39 }
 0x349   : > { %v16013_v41 = vcombine.low %v4867_v51, %v4877_v21  ;;  %v18015_v47 = vrot.slane %v18014_v20, 5  ;;  %v18018_v62 = vld [vmem:[#allocation15_spill] sm:$0xff]  ;;  %v18023_v17 = vld [vmem:[#allocation218_spill] sm:$0xff]  ;;  %v5054_v20 = vrot.slane %v5053_v27, 4  ;;  %7368 = vmatpush1.bf16.msra.mxu1 %v11308_v44  ;;  %v11309_v35 = vld [vmem:[%s11725_s25 + $0x130] sm:$0xff]   ;;  %7230 = vmatprep.mubr.bf16.mxu1 %v15814_v23 }
 0x34a   : > { %v4915_v43 = vsel %vm11957_vm3, %v18018_v62, %v18017_v36  ;;  %v18019_v22 = vld [vmem:[#allocation139_spill] sm:$0xff]  ;;  %v18026_v36 = vld [vmem:[#allocation16_spill] sm:$0xff]  ;;  %7600 = vmatprep.mubr.bf16.mxu0 %v16011_v55  ;;  %v18031_v8 = vld [vmem:[#allocation153_spill] sm:$0xff] }
 0x34b   : > { %v4901_v19 = vsel %vm11957_vm3, %v18016_v63, %v18015_v47  ;;  %v18020_v51 = vrot.slane %v18019_v22, 5  ;;  %v18022_v21 = vld [vmem:[#allocation219_spill] sm:$0xff]  ;;  %v18024_v47 = vld [vmem:[#allocation132_spill] sm:$0xff]  ;;  %v18027_v62 = vrot.slane %v18026_v36, 5  ;;  %v18028_v22 = vld [vmem:[#allocation137_spill] sm:$0xff] }
 0x34c   : > { %v16024_v29 = vcombine.low %v4891_v25, %v4901_v19  ;;  %v18025_v63 = vld [vmem:[#allocation39_spill] sm:$0xff]  ;;  %v18034_v36 = vld [vmem:[#allocation144_spill] sm:$0xff]  ;;  %v18040_v32 = vld [vmem:[#allocation34_spill] sm:$0xff] }
 0x34d   : > { %v4925_v12 = vsel %vm11957_vm3, %v18021_v10, %v18020_v51  ;;  %v4939_v19 = vsel %vm11957_vm3, %v18025_v63, %v18024_v47  ;;  %v4949_v51 = vsel %vm11957_vm3, %v18028_v22, %v18027_v62  ;;  %v5064_v10 = vrot.slane %v5063_v56, 4  ;;  %v18029_v44 = vld [vmem:[#allocation59_spill] sm:$0xff]  ;;  %v18036_v62 = vld [vmem:[#allocation208_spill] sm:$0xff]  ;;  %v18042_v31 = vld [vmem:[#allocation121_spill] sm:$0xff] }
 0x34e   : > { %v16039_v25 = vcombine.low %v4915_v43, %v4925_v12  ;;  %v16052_v27 = vcombine.low %v4939_v19, %v4949_v51  ;;  %v18030_v43 = vld [vmem:[#allocation69_spill] sm:$0xff]  ;;  %v4963_v47 = vsel %vm11957_vm3, %v18032_v1, %v18031_v8  ;;  %v18033_v63 = vmov 0   ;;  %v18037_v56 = vld [vmem:[#allocation20_spill] sm:$0xff]  ;;  %v18038_v22 = vld [vmem:[#allocation23_spill] sm:$0xff] }
 0x34f   : > { %7369 = vmatprep.subr.bf16.mxu1 %v18033_v63  ;;  %v18035_v52 = vrot.slane %v18034_v36, 5  ;;  %v18039_v51 = vld [vmem:[#allocation9_spill] sm:$0xff]  ;;  %v5611_v1 = vsel %vm11957_vm3, %v18042_v31, %v18041_v53  ;;  %v18044_v36 = vrot.slane %v18043_v11, 5  ;;  %v18045_v45 = vld [vmem:[#allocation18_spill] sm:$0xff]  ;;  %v18047_v40 = vld [vmem:[#allocation152_spill] sm:$0xff]  ;;  %v5955_v31 = vpop.permute.xlu1 %5954 }
 0x350   : > { %v18048_v15 = vld [vmem:[#allocation210_spill] sm:$0xff]  ;;  %7370 = vmatpush1.bf16.msra.mxu1 %v11309_v35 }
 0x351   : > { %v4973_v23 = vsel %vm11957_vm3, %v18036_v62, %v18035_v52  ;;  %v5621_v52 = vsel %vm11957_vm3, %v18045_v45, %v18044_v36  ;;  %v18046_v62 = vld [vmem:[#allocation149_spill] sm:$0xff]  ;;  %v18049_v12 = vrot.slane %v18048_v15, 5  ;;  %v18053_v36 = vld [vmem:[#allocation214_spill] sm:$0xff]  ;;  %7371 = vmatprep.subr.bf16.mxu1 %v18033_v63  ;;  %7231 = vmatmul.mubr.bf16.gmra.mxu1 %v15823_v26 }
 0x352   : > { %v16074_v8 = vcombine.low %v4963_v47, %v4973_v23  ;;  %v4987_v19 = vsel %vm11957_vm3, %v18047_v40, %v18046_v62  ;;  %v16090_v53 = vcombine.low %v5611_v1, %v5621_v52  ;;  %v18051_v47 = vld [vmem:[#allocation42_spill] sm:$0xff]  ;;  %v18052_v23 = vld [vmem:[#allocation209_spill] sm:$0xff]  ;;  %v18054_v14 = vrot.slane %v18053_v36, 5  ;;  %v18055_v40 = vld [vmem:[#allocation216_spill] sm:$0xff]  ;;  %v6101_v62 = vpop.permute.xlu0 %6100  ;;  %7238 = vmatprep.mubr.bf16.mxu1 %v15863_v33 }
 0x353   : > { %v4997_v6 = vsel %vm11957_vm3, %v18050_v30, %v18049_v12  ;;  %v5011_v45 = vsel %vm11957_vm3, %v18052_v23, %v18051_v47  ;;  %v11310_v30 = vld [vmem:[%s11725_s25 + $0x128] sm:$0xff]   ;;  %v18056_v12 = vld [vmem:[#allocation157_spill] sm:$0xff] }
 0x354   : > { %v16092_v11 = vcombine.low %v4987_v19, %v4997_v6  ;;  %v5021_v15 = vsel %vm11957_vm3, %v18055_v40, %v18054_v14  ;;  %v5035_v6 = vsel %vm11957_vm3, %v15941_v16, %v18056_v12  ;;  %v18057_v19 = vld [vmem:[#allocation215_spill] sm:$0xff]  ;;  %v18059_v52 = vld [vmem:[#allocation217_spill] sm:$0xff]  ;;  %v5059_v14 = vsel %vm11957_vm3, %v5054_v20, %v15891_v4  ;;  %v18061_v40 = vld [vmem:[#allocation56_spill] sm:$0xff]  ;;  %7372 = vmatpush1.bf16.msra.mxu1 %v11310_v30 }
 0x355   : > { %v16105_v35 = vcombine.low %v5011_v45, %v5021_v15  ;;  %v18058_v1 = vrot.slane %v18057_v19, 5  ;;  %v18060_v45 = vrot.slane %v15292_v9, 5  ;;  %v18062_v16 = vld [vmem:[#allocation62_spill] sm:$0xff]  ;;  %v18063_v12 = vld [vmem:[#allocation68_spill] sm:$0xff]  ;;  %v18067_v20 = vld [vmem:[#allocation65_spill] sm:$0xff]  ;;  %7373 = vmatprep.subr.bf16.mxu1 %v18033_v63 }
 0x356   : > { %v5515_v15 = vsel %vm11957_vm3, %v18062_v16, %v18061_v40  ;;  %v18064_v19 = vrot.slane %v18063_v12, 5  ;;  %v18066_v4 = vld [vmem:[#allocation66_spill] sm:$0xff] }
 0x357   : > { %v5045_v47 = vsel %vm11957_vm3, %v18059_v52, %v18058_v1  ;;  %v5069_v36 = vsel %vm11957_vm3, %v5064_v10, %v18060_v45  ;;  %v5957_v45 = vpop.permute.xlu1 %5956  ;;  %v11312_v26 = vld [vmem:[%s11725_s25 + $0x118] sm:$0xff]   ;;  %v11315_v16 = vld [vmem:[%s11725_s25 + $0x100] sm:$0xff]  }
 0x358   : > { %v16119_v23 = vcombine.low %v5035_v6, %v5045_v47  ;;  %v5525_v1 = vsel %vm11957_vm3, %v18065_v58, %v18064_v19  ;;  %v18068_v6 = vpack.c.bf16 %v18066_v4, %v18067_v20  ;;  %v16139_v10 = vcombine.low %v5059_v14, %v5069_v36  ;;  %v11311_v58 = vld [vmem:[%s11725_s25 + $0x120] sm:$0xff]   ;;  %v11316_v19 = vld [vmem:[%s11725_s25 + $0x178] sm:$0xff]   ;;  %v11318_v20 = vld [vmem:[%s11725_s25 + $0x168] sm:$0xff]  }
 0x359   : > { %v16141_v52 = vcombine.low %v5515_v15, %v5525_v1  ;;  %v6412_v47 = vsel %vm1457_vm0, %v15944_v37, %v6101_v62  ;;  %7374 = vmatpush1.bf16.msra.mxu1 %v11311_v58  ;;  %v18069_v14 = vpack.c.b16 %v17969_v48, %v17968_v24  ;;  %v11313_v62 = vld [vmem:[%s11725_s25 + $0x110] sm:$0xff]   ;;  %v11314_v24 = vld [vmem:[%s11725_s25 + $0x108] sm:$0xff]   ;;  %v18070_v48 = vld [vmem:[#allocation78_spill] sm:$0xff] }
 0x35a   : > { %v6336_v9 = vsel %vm1457_vm0, %v18068_v6, %v5955_v31  ;;  %v6103_v31 = vpop.permute.xlu0 %6102  ;;  %7375 = vmatprep.subr.bf16.mxu1 %v18033_v63  ;;  %7239 = vmatmul.mubr.bf16.gmra.mxu1 %v15903_v0  ;;  %v18071_v0 = vld [vmem:[#allocation77_spill] sm:$0xff] }
 0x35b   : > { %7601 = vmatmul.mubr.bf16.gmra.mxu0 %v6336_v9  ;;  %v6340_v33 = vsel %vm1457_vm0, %v18069_v14, %v5957_v45  ;;  %7246 = vmatprep.mubr.bf16.mxu1 %v15918_v18  ;;  %v6416_v37 = vsel %vm1457_vm0, %v15958_v7, %v6103_v31  ;;  %v5959_v30 = vpop.permute.xlu1 %5958  ;;  %v18072_v40 = vpack.c.bf16 %v18070_v48, %v18071_v0  ;;  %v11317_v1 = vld [vmem:[%s11725_s25 + $0x170] sm:$0xff]  }
 0x35c   : > { %7608 = vmatprep.mubr.bf16.mxu0 %v6412_v47  ;;  %v11321_v45 = vld [vmem:[%s11725_s25 + $0x150] sm:$0xff]  }
 0x35d   : > { %7376 = vmatpush1.bf16.msra.mxu1 %v11312_v26  ;;  %v6344_v18 = vsel %vm1457_vm0, %v18072_v40, %v5959_v30  ;;  %v11322_v26 = vld [vmem:[%s11725_s25 + $0x148] sm:$0xff]   ;;  %v18078_v0 = vld [vmem:[#allocation201_spill] sm:$0xff] }
 0x35e   : > { %7377 = vmatprep.subr.bf16.mxu1 %v18033_v63  ;;  %v6105_v36 = vpop.permute.xlu0 %6104  ;;  %v18077_v48 = vld [vmem:[#allocation200_spill] sm:$0xff] }
 0x35f   : > { %v6420_v7 = vsel %vm1457_vm0, %v15970_v13, %v6105_v36  ;;  %v5961_v15 = vpop.permute.xlu1 %5960  ;;  %v3141_v40 = vpack.c.bf16 %v18078_v0, %v18077_v48  ;;  %v18090_v0 = vpack.c.b16 %v18038_v22, %v18037_v56 }
 0x361   : > { %7378 = vmatpush1.bf16.msra.mxu1 %v11313_v62 }
 0x362   : > { %7379 = vmatprep.subr.bf16.mxu1 %v18033_v63  ;;  %7247 = vmatmul.mubr.bf16.gmra.mxu1 %v15997_v39  ;;  %v6107_v12 = vpop.permute.xlu0 %6106  ;;  %v18073_v39 = vpack.c.b16 %v17983_v28, %v17982_v50  ;;  %v18074_v50 = vld [vmem:[#allocation96_spill] sm:$0xff]  ;;  %v18075_v28 = vld [vmem:[#allocation95_spill] sm:$0xff] }
 0x363   : > { %7609 = vmatmul.mubr.bf16.gmra.mxu0 %v6340_v33  ;;  %7254 = vmatprep.mubr.bf16.mxu1 %v16011_v55  ;;  %v6424_v13 = vsel %vm1457_vm0, %v15987_v38, %v6107_v12  ;;  %v5963_v4 = vpop.permute.xlu1 %5962  ;;  %v18076_v6 = vpack.c.bf16 %v18074_v50, %v18075_v28  ;;  %v11319_v38 = vld [vmem:[%s11725_s25 + $0x160] sm:$0xff]  }
 0x364   : > { %7616 = vmatprep.mubr.bf16.mxu0 %v6416_v37  ;;  %v6348_v55 = vsel %vm1457_vm0, %v18073_v39, %v5961_v15 }
 0x365   : > { %7380 = vmatpush1.bf16.msra.mxu1 %v11314_v24 }
 0x366   : > { %7381 = vmatprep.subr.bf16.mxu1 %v18033_v63  ;;  %v6109_v14 = vpop.permute.xlu0 %6108 }
 0x367   : > { %v5965_v58 = vpop.permute.xlu1 %5964  ;;  %v6428_v36 = vsel %vm1457_vm0, %v16013_v41, %v6109_v14 }
 0x369   : > { %7382 = vmatpush1.bf16.msra.mxu1 %v11315_v16  ;;  %v6356_v16 = vsel %vm1457_vm0, %v3141_v40, %v5965_v58  ;;  %v18084_v58 = vpack.c.b16 %v15103_v54, %v15159_v46  ;;  %v18087_v46 = vld [vmem:[#allocation204_spill] sm:$0xff] }
 0x36a   : > { %7383 = vmatprep.subr.bf16.mxu1 %v18033_v63  ;;  %7255 = vmatmul.mubr.bf16.gmra.mxu1 %v6336_v9  ;;  %v6352_v9 = vsel %vm1457_vm0, %v18076_v6, %v5963_v4 }
 0x36b   : > { %7617 = vmatmul.mubr.bf16.gmra.mxu0 %v6344_v18  ;;  %7262 = vmatprep.mubr.bf16.mxu1 %v6412_v47  ;;  %v11320_v47 = vld [vmem:[%s11725_s25 + $0x158] sm:$0xff]   ;;  %v5967_v31 = vpop.permute.xlu1 %5966 }
 0x36c   : > { %7624 = vmatprep.mubr.bf16.mxu0 %v6420_v7 }
 0x36d   : > { %7384 = vmatpush2.bf16.msra.mxu1 %v11316_v19  ;;  %v18079_v19 = vpack.c.b16 %v15062_v59, %v14976_v60 }
 0x36e   : > { %7385 = vmatprep.subr.bf16.mxu1 %v18033_v63 }
 0x36f   : > { %v6111_v62 = vpop.permute.xlu0 %6110  ;;  %v6360_v41 = vsel %vm1457_vm0, %v18079_v19, %v5967_v31 }
 0x371   : > { %7386 = vmatpush2.bf16.msra.mxu1 %v11317_v1 }
 0x372   : > { %7387 = vmatprep.subr.bf16.mxu1 %v18033_v63  ;;  %7263 = vmatmul.mubr.bf16.gmra.mxu1 %v6340_v33  ;;  %v11323_v33 = vld [vmem:[%s11725_s25 + $0x140] sm:$0xff]  }
 0x373   : > { %7625 = vmatmul.mubr.bf16.gmra.mxu0 %v6348_v55  ;;  %7270 = vmatprep.mubr.bf16.mxu1 %v6416_v37  ;;  %v5969_v37 = vpop.permute.xlu1 %5968 }
 0x374   : > { %7632 = vmatprep.mubr.bf16.mxu0 %v6424_v13 }
 0x375   : > { %7388 = vmatpush2.bf16.msra.mxu1 %v11318_v20  ;;  %v18080_v20 = vld [vmem:[#allocation122_spill] sm:$0xff] }
 0x376   : > { %7389 = vmatprep.subr.bf16.mxu1 %v18033_v63 }
 0x379   : > { %7390 = vmatpush2.bf16.msra.mxu1 %v11319_v38  ;;  %v6113_v24 = vpop.permute.xlu0 %6112  ;;  %v18083_v38 = vpack.c.b16 %v18030_v43, %v18029_v44  ;;  %v18085_v43 = vld [vmem:[#allocation188_spill] sm:$0xff] }
 0x37a   : > { %7391 = vmatprep.subr.bf16.mxu1 %v18033_v63  ;;  %7271 = vmatmul.mubr.bf16.gmra.mxu1 %v6344_v18  ;;  %v6436_v39 = vsel %vm1457_vm0, %v16039_v25, %v6113_v24  ;;  %v10460_v14 = vpack.c.bf16 %v18085_v43, %v18085_v43  ;;  %v18089_v24 = vld [vmem:[#allocation55_spill] sm:$0xff] }
 0x37b   : > { %7633 = vmatmul.mubr.bf16.gmra.mxu0 %v6352_v9  ;;  %7278 = vmatprep.mubr.bf16.mxu1 %v6420_v7  ;;  %v5971_v30 = vpop.permute.xlu1 %5970 }
 0x37d   : > { %7392 = vmatpush2.bf16.msra.mxu1 %v11320_v47 }
 0x37e   : > { %7393 = vmatprep.subr.bf16.mxu1 %v18033_v63  ;;  %v6115_v7 = vpop.permute.xlu0 %6114 }
 0x37f   : > { %v6440_v60 = vsel %vm1457_vm0, %v16052_v27, %v6115_v7  ;;  %v5530_v7 = vshll.u32 %v10460_v14, 16 }
 0x380   : > { %v5973_v18 = vpop.permute.xlu1 %5972 }
 0x381   : > { %7394 = vmatpush2.bf16.msra.mxu1 %v11321_v45  ;;  %v6368_v45 = vsel %vm1457_vm0, %v18084_v58, %v5971_v30  ;;  %v5532_v19 = vrot.slane %v5530_v7, 5 }
 0x382   : > { %7395 = vmatprep.subr.bf16.mxu1 %v18033_v63  ;;  %7279 = vmatmul.mubr.bf16.gmra.mxu1 %v6348_v55 }
 0x383   : > { %7286 = vmatprep.mubr.bf16.mxu1 %v6424_v13 }
 0x385   : > { %7396 = vmatpush2.bf16.msra.mxu1 %v11322_v26 }
 0x386   : > { %7397 = vmatprep.subr.bf16.mxu1 %v18033_v63  ;;  %v6432_v63 = vsel %vm1457_vm0, %v16024_v29, %v6111_v62  ;;  %v18081_v29 = vld [vmem:[#allocation155_spill] sm:$0xff] }
 0x387   : > { %v6117_v12 = vpop.permute.xlu0 %6116  ;;  %v18082_v50 = vpack.c.bf16 %v18080_v20, %v18081_v29  ;;  %v18091_v29 = vld [vmem:[#allocation27_spill] sm:$0xff] }
 0x388   : > { %v5975_v15 = vpop.permute.xlu1 %5974  ;;  %v16235_v27 = vsel %vm1457_vm0, %v16074_v8, %v6117_v12  ;;  %v18088_v8 = vpack.c.b16 %v18040_v32, %v18039_v51  ;;  %v5527_v51 = vshrl.u32 %v10460_v14, 16 }
 0x389   : > { %7398 = vmatpush2.bf16.msra.mxu1 %v11323_v33  ;;  %v6364_v28 = vsel %vm1457_vm0, %v18082_v50, %v5969_v37  ;;  %v18086_v33 = vld [vmem:[#allocation138_spill] sm:$0xff]  ;;  %v10462_v50 = vpack.c.bf16 %v18091_v29, %v18091_v29 }
 0x38a   : > { %7287 = vmatmul.mubr.bf16.gmra.mxu1 %v6352_v9  ;;  %v3147_v54 = vpack.c.bf16 %v18087_v46, %v18086_v33  ;;  %v18093_v46 = vld [vmem:[#allocation43_spill] sm:$0xff] }
 0x38b   : > { %7294 = vmatprep.mubr.bf16.mxu1 %v6428_v36 }
 0x38c   : > { %v5977_v55 = vpop.permute.xlu1 %5976  ;;  %v6372_v48 = vsel %vm1457_vm0, %v3147_v54, %v5973_v18  ;;  %v5529_v18 = vrot.slane %v5527_v51, 4 }
 0x392   : > { %7295 = vmatmul.mubr.bf16.gmra.mxu1 %v6356_v16 }
 0x393   : > { %7302 = vmatprep.mubr.bf16.mxu1 %v6432_v63 }
 0x395   : > { %v6119_v13 = vpop.permute.xlu0 %6118 }
 0x396   : > { %v6448_v32 = vsel %vm1457_vm0, %v16092_v11, %v6119_v13 }
 0x398   : > { %v16211_v4 = vpop.permute.xlu1 %5978 }
 0x399   : > { %v6121_v1 = vpop.permute.xlu0 %6120 }
 0x39a   : > { %7303 = vmatmul.mubr.bf16.gmra.mxu1 %v6360_v41 }
 0x39b   : > { %7310 = vmatprep.mubr.bf16.mxu1 %v6436_v39 }
 0x39c   : > { %v16219_v6 = vpop.permute.xlu1 %5980 }
 0x39d   : > { %v6123_v59 = vpop.permute.xlu0 %6122 }
 0x3a1   : > { %v16221_v25 = vpop.permute.xlu0 %6124  ;;  %v6131_v9 = vpop.permute.xlu1 %6130 }
 0x3a2   : > { %7311 = vmatmul.mubr.bf16.gmra.mxu1 %v6364_v28  ;;  %v16227_v47 = vsel %vm1457_vm0, %v18083_v38, %v6131_v9  ;;  %v18092_v9 = vpack.c.b16 %v18011_v57, %v18010_v34  ;;  %v5533_v38 = vor.u32 %v5532_v19, %v5529_v18  ;;  %v18094_v34 = vld [vmem:[#allocation45_spill] sm:$0xff]  ;;  %v18102_v18 = vld [vmem:[#allocation123_spill] sm:$0xff] }
 0x3a3   : > { %7318 = vmatprep.mubr.bf16.mxu1 %v6440_v60  ;;  %v18095_v57 = vpack.c.bf16 %v18093_v46, %v18094_v34  ;;  %v18104_v19 = vld [vmem:[#allocation125_spill] sm:$0xff]  ;;  %v18106_v46 = vld [vmem:[#allocation28_spill] sm:$0xff] }
 0x3a4   : > { %v6376_v11 = vsel %vm1457_vm0, %v18092_v9, %v5975_v15  ;;  %v5534_v43 = vrot.slane %v5533_v38, 4 }
 0x3a5   : > { %v6147_v31 = vpop.permute.xlu0 %6146  ;;  %v6155_v26 = vpop.permute.xlu1 %6154  ;;  %v6380_v15 = vsel %vm1457_vm0, %v18095_v57, %v5977_v55 }
 0x3a6   : > { %v16240_v44 = vsel %vm1457_vm0, %v16141_v52, %v6147_v31  ;;  %v10461_v52 = vpack.c.bf16 %v18089_v24, %v18089_v24  ;;  %v6480_v40 = vsel %vm1457_vm0, %v18090_v0, %v6155_v26  ;;  %v5546_v26 = vshll.u32 %v10462_v50, 16  ;;  %v11449_v24 = vld [vmem:[%s11880_s15] ss:$0 sm:$0xff]  ;;  %s559_s15 = scalar_lea.vmem %s17113_s6, %s11653_s14 }
 0x3a8   : > { %v5540_v16 = vshrl.u32 %v10461_v52, 16  ;;  %v5548_v33 = vrot.slane %v5546_v26, 5 }
 0x3aa   : > { %7319 = vmatmul.mubr.bf16.gmra.mxu1 %v6368_v45  ;;  %v5542_v22 = vrot.slane %v5540_v16, 4 }
 0x3ab   : > { %7326 = vmatprep.mubr.bf16.mxu1 %v16235_v27  ;;  %v6171_v37 = vpop.permute.xlu0 %6170 }
 0x3ac   : > { %v6133_v62 = vpop.permute.xlu1 %6132  ;;  %v6488_v36 = vsel %vm1457_vm0, %v16090_v53, %v6171_v37  ;;  %v5536_v53 = vshll.u32 %v10461_v52, 16  ;;  %v18097_v52 = vld [vmem:[#allocation131_spill] sm:$0xff] }
 0x3ad   : > { %v16250_v30 = vsel %vm1457_vm0, %v18088_v8, %v6133_v62  ;;  %7640 = vmatprep.mubr.bf16.mxu0 %v6488_v36  ;;  %v18096_v8 = vpack.c.b16 %v18023_v17, %v18022_v21  ;;  %v2685_v0 = vadd.f32 %v11449_v24, %v18097_v52  ;;  %v18098_v21 = vld [vmem:[#allocation147_spill] sm:$0xff] }
 0x3ae   : > { %7641 = vmatmul.mubr.bf16.gmra.mxu0 %v6480_v40  ;;  %v16263_v12 = vpop.f32.mrf.mxu1  ;;  %v5538_v56 = vrot.slane %v5536_v53, 5  ;;  %v18099_v17 = vpack.c.bf16 %v15199_v3, %v18098_v21  ;;  %v18101_v40 = vld [vmem:[#allocation146_spill] sm:$0xff] }
 0x3af   : > { %7648 = vmatprep.mubr.bf16.mxu0 %v6432_v63  ;;  %v6452_v63 = vsel %vm1457_vm0, %v16105_v35, %v6121_v1  ;;  %v10520_v51 = vpack.c.bf16 %v18101_v40, %v18101_v40  ;;  %v6149_v7 = vpop.permute.xlu0 %6148 }
 0x3b0   : > { %v7121_v20 = vpop.f32.mrf.mxu1  ;;  %v5543_v31 = vor.u32 %v5542_v22, %v5538_v56  ;;  %v5539_v35 = vsel %vm11957_vm3, %v5534_v43, %v5538_v56 }
 0x3b1   : > { %v5623_v20 = vshrl.u32 %v10520_v51, 16  ;;  %v5626_v22 = vshll.u32 %v10520_v51, 16 }
 0x3b2   : > { %7327 = vmatmul.mubr.bf16.gmra.mxu1 %v6372_v48  ;;  %v16273_v13 = vpop.f32.mrf.mxu1  ;;  %v5544_v14 = vrot.slane %v5543_v31, 4 }
 0x3b3   : > { %7334 = vmatprep.mubr.bf16.mxu1 %v6448_v32  ;;  %v5628_v31 = vrot.slane %v5626_v22, 5 }
 0x3b4   : > { %v7124_v58 = vpop.f32.mrf.mxu1  ;;  %v5549_v37 = vsel %vm11957_vm3, %v5544_v14, %v5548_v33  ;;  %v18105_v33 = vld [vmem:[#allocation25_spill] sm:$0xff] }
 0x3b5   : > { %v10074_v55 = vcombine.low %v5539_v35, %v5549_v37  ;;  %v5625_v58 = vrot.slane %v5623_v20, 4 }
 0x3b6   : > { %7649 = vmatmul.mubr.bf16.gmra.mxu0 %v6360_v41 }
 0x3b7   : > { %7656 = vmatprep.mubr.bf16.mxu0 %v6436_v39  ;;  %v6456_v39 = vsel %vm1457_vm0, %v16119_v23, %v6123_v59  ;;  %v6460_v23 = vsel %vm1457_vm0, %v16139_v10, %v16221_v25  ;;  %v18100_v25 = vld [vmem:[#allocation24_spill] sm:$0xff]  ;;  %v5629_v57 = vor.u32 %v5628_v31, %v5625_v58 }
 0x3b8   : > { %v16279_v41 = vpop.f32.mrf.mxu1 }
 0x3b9   : > { %v5630_v37 = vrot.slane %v5629_v57, 4 }
 0x3ba   : > { %7335 = vmatmul.mubr.bf16.gmra.mxu1 %v6376_v11  ;;  %v7129_v1 = vpop.f32.mrf.mxu1 }
 0x3bb   : > { %7342 = vmatprep.mubr.bf16.mxu1 %v6452_v63 }
 0x3bc   : > { %v16285_v54 = vpop.f32.mrf.mxu1 }
 0x3be   : > { %7657 = vmatmul.mubr.bf16.gmra.mxu0 %v6364_v28  ;;  %v7132_v62 = vpop.f32.mrf.mxu1  ;;  %v6384_v28 = vsel %vm1457_vm0, %v18096_v8, %v16211_v4  ;;  %v6388_v4 = vsel %vm1457_vm0, %v18099_v17, %v16219_v6  ;;  %v18103_v6 = vld [vmem:[#allocation134_spill] sm:$0xff]  ;;  %v6173_v17 = vpop.permute.xlu0 %6172 }
 0x3bf   : > { %7664 = vmatprep.mubr.bf16.mxu0 %v6440_v60 }
 0x3c2   : > { %7343 = vmatmul.mubr.bf16.gmra.mxu1 %v6380_v15 }
 0x3c3   : > { %7350 = vmatprep.mubr.bf16.mxu1 %v6456_v39 }
 0x3c5   : > { %v16298_v60 = vpop.f32.mrf.mxu1 }
 0x3c6   : > { %7665 = vmatmul.mubr.bf16.gmra.mxu0 %v6368_v45  ;;  %v3019_v45 = vmax.f32 %v2685_v0, 0.0 }
 0x3c7   : > { %7672 = vmatprep.mubr.bf16.mxu0 %v16235_v27  ;;  %v7137_v59 = vpop.f32.mrf.mxu1 }
 0x3c8   : > { %v10521_v16 = vpack.c.bf16 %v3019_v45, %v3019_v45  ;;  %v18107_v59 = vld [vmem:[#allocation128_spill] sm:$0xff] }
 0x3c9   : > { %v16300_v36 = vpop.f32.mrf.mxu1 }
 0x3ca   : > { %7351 = vmatmul.mubr.bf16.gmra.mxu1 %v6384_v28  ;;  %v5632_v29 = vshll.u32 %v10521_v16, 16  ;;  %v5636_v50 = vshrl.u32 %v10521_v16, 16 }
 0x3cb   : > { %7358 = vmatprep.mubr.bf16.mxu1 %v6460_v23  ;;  %v7140_v10 = vpop.f32.mrf.mxu1 }
 0x3cc   : > { %v5634_v26 = vrot.slane %v5632_v29, 5  ;;  %v5638_v43 = vrot.slane %v5636_v50, 4  ;;  %v18113_v29 = vld [vmem:[#allocation40_spill] sm:$0xff] }
 0x3cd   : > { %v18114_v50 = vld [vmem:[#allocation140_spill] sm:$0xff] }
 0x3ce   : > { %7673 = vmatmul.mubr.bf16.gmra.mxu0 %v6372_v48  ;;  %v16310_v27 = vpop.f32.mrf.mxu1  ;;  %v2688_v48 = vadd.f32 %v11449_v24, %v18103_v6  ;;  %v5639_v35 = vor.u32 %v5638_v43, %v5634_v26  ;;  %v18108_v24 = vld [vmem:[#allocation31_spill] sm:$0xff]  ;;  %v5635_v52 = vsel %vm11957_vm3, %v5630_v37, %v5634_v26  ;;  %v18112_v6 = vld [vmem:[#allocation136_spill] sm:$0xff] }
 0x3cf   : > { %7680 = vmatprep.mubr.bf16.mxu0 %v6448_v32  ;;  %v16320_v32 = vsel %vm1457_vm0, %v10074_v55, %v6149_v7  ;;  %v18109_v7 = vld [vmem:[#allocation41_spill] sm:$0xff] }
 0x3d0   : > { %v7145_v53 = vpop.f32.mrf.mxu1  ;;  %v3020_v38 = vmax.f32 %v2688_v48, 0.0  ;;  %v5640_v55 = vrot.slane %v5639_v35, 4 }
 0x3d2   : > { %7359 = vmatmul.mubr.bf16.gmra.mxu1 %v6388_v4  ;;  %v16315_v3 = vpop.f32.mrf.mxu1  ;;  %v10522_v14 = vpack.c.bf16 %v3020_v38, %v3020_v38  ;;  %v3155_v21 = vpack.c.bf16 %v3020_v38, %v3019_v45  ;;  %v6157_v45 = vpop.permute.xlu1 %6156 }
 0x3d3   : > { %7399 = vmatprep.mubr.bf16.mxu1 %v18100_v25 }
 0x3d4   : > { %v7148_v56 = vpop.f32.mrf.mxu1  ;;  %v5642_v1 = vshll.u32 %v10522_v14, 16 }
 0x3d6   : > { %7681 = vmatmul.mubr.bf16.gmra.mxu0 %v6376_v11  ;;  %v5644_v62 = vrot.slane %v5642_v1, 5  ;;  %v16369_v1 = vld [vmem:[%s551_s21] ss:$0 sm:$0xff] }
 0x3d7   : > { %7688 = vmatprep.mubr.bf16.mxu0 %v6452_v63 }
 0x3d8   : > { %v16322_v9 = vpop.f32.mrf.mxu1 }
 0x3da   : > { %7400 = vmatmul.mubr.bf16.vlgmr.msra.gmra.mxu1 %v18102_v18  ;;  %v7153_v11 = vpop.f32.mrf.mxu1  ;;  %v3499_v18 = vunpack.c.l.b16 %v3155_v21 }
 0x3db   : > { %7407 = vmatprep.mubr.bf16.mxu1 %v18104_v19 }
 0x3dc   : > { %v16325_v63 = vpop.f32.mrf.mxu1 }
 0x3de   : > { %7689 = vmatmul.mubr.bf16.gmra.mxu0 %v6380_v15  ;;  %v7156_v34 = vpop.f32.mrf.mxu1 }
 0x3df   : > { %7696 = vmatprep.mubr.bf16.mxu0 %v6456_v39  ;;  %v5645_v39 = vsel %vm11957_vm3, %v5640_v55, %v5644_v62  ;;  %v18116_v34 = vld [vmem:[#allocation58_spill] sm:$0xff] }
 0x3e0   : > { %v10078_v25 = vcombine.low %v5635_v52, %v5645_v39  ;;  %v18118_v39 = vld [vmem:[#allocation145_spill] sm:$0xff] }
 0x3e2   : > { %7408 = vmatmul.mubr.bf16.gmra.mxu1 %v18105_v33  ;;  %v18115_v33 = vld [vmem:[#allocation47_spill] sm:$0xff] }
 0x3e3   : > { %7415 = vmatprep.mubr.bf16.mxu1 %v18106_v46  ;;  %v16328_v8 = vpop.f32.mrf.mxu1 }
 0x3e5   : > { %v7161_v15 = vpop.f32.mrf.mxu1 }
 0x3e6   : > { %7697 = vmatmul.mubr.bf16.gmra.mxu0 %v6384_v28  ;;  %v6492_v28 = vsel %vm1457_vm0, %v10078_v25, %v6173_v17 }
 0x3e7   : > { %7704 = vmatprep.mubr.bf16.mxu0 %v6460_v23  ;;  %v16336_v0 = vpop.f32.mrf.mxu1  ;;  %v18110_v23 = vld [vmem:[#allocation51_spill] sm:$0xff] }
 0x3e8   : > { %v18111_v53 = vpack.c.bf16 %v18101_v40, %v18110_v23 }
 0x3e9   : > { %v7164_v10 = vpop.f32.mrf.mxu1 }
 0x3ea   : > { %7416 = vmatmul.mubr.bf16.gmra.mxu1 %v18107_v59  ;;  %v3498_v16 = vunpack.c.h.b16 %v18111_v53  ;;  %v18117_v59 = vld [vmem:[#allocation207_spill] sm:$0xff]  ;;  %v18119_v10 = vld [vmem:[#allocation154_spill] sm:$0xff] }
 0x3eb   : > { %7423 = vmatprep.mubr.bf16.mxu1 %v18108_v24  ;;  %v7048_v24 = vadd.f32 %v16369_v1, %v18117_v59 }
 0x3ec   : > { %v6151_v20 = vpack.c.b16 %v3499_v18, %v3498_v16 }
 0x3ed   : > { %v16338_v51 = vpop.f32.mrf.mxu1 }
 0x3ee   : > { %7705 = vmatmul.mubr.bf16.gmra.mxu0 %v6388_v4  ;;  %v6484_v22 = vsel %vm1457_vm0, %v6151_v20, %v6157_v45 }
 0x3ef   : > { %7712 = vmatprep.mubr.bf16.mxu0 %v6492_v28  ;;  %v7169_v48 = vpop.f32.mrf.mxu1 }
 0x3f0   : > { %v18121_v48 = vld [vmem:[#allocation38_spill] sm:$0xff] }
 0x3f1   : > { %v16346_v19 = vpop.f32.mrf.mxu1  ;;  %v7056_v45 = vadd.f32 %v16369_v1, %v18121_v48  ;;  %v18126_v48 = vld [vmem:[#allocation13_spill] sm:$0xff] }
 0x3f2   : > { %7424 = vmatmul.mubr.bf16.gmra.mxu1 %v18109_v7  ;;  %v18120_v7 = vld [vmem:[#allocation187_spill] sm:$0xff] }
 0x3f3   : > { %7431 = vmatprep.mubr.bf16.mxu1 %v18112_v6  ;;  %v7172_v56 = vpop.f32.mrf.mxu1  ;;  %v7051_v28 = vadd.f32 %v16369_v1, %v18120_v7 }
 0x3f5   : > { %v16349_v4 = vpop.f32.mrf.mxu1 }
 0x3f6   : > { %7713 = vmatmul.mubr.bf16.gmra.mxu0 %v6484_v22  ;;  %v16352_v40 = vpop.f32.mrf.mxu0  ;;  %v18122_v22 = vld [vmem:[#allocation33_spill] sm:$0xff] }
 0x3f7   : > { %v7177_v38 = vpop.f32.mrf.mxu1 }
 0x3f8   : > { %v7580_v58 = vpop.f32.mrf.mxu0 }
 0x3f9   : > { %v16355_v11 = vpop.f32.mrf.mxu1  ;;  %v18123_v58 = vld [vmem:[#allocation10_spill] sm:$0xff] }
 0x3fa   : > { %7432 = vmatmul.mubr.bf16.gmra.mxu1 %v18113_v29  ;;  %v16357_v31 = vpop.f32.mrf.mxu0 }
 0x3fb   : > { %7439 = vmatprep.mubr.bf16.mxu1 %v18114_v50  ;;  %v7180_v26 = vpop.f32.mrf.mxu1 }
 0x3fc   : > { %v7583_v43 = vpop.f32.mrf.mxu0  ;;  %v7059_v26 = vadd.f32 %v16369_v1, %v18123_v58  ;;  %v18128_v58 = vld [vmem:[#allocation130_spill] sm:$0xff] }
 0x3ff   : > { %v16359_v14 = vpop.f32.mrf.mxu1 }
 0x400   : > { %v16366_v46 = vpop.f32.mrf.mxu0 }
 0x401   : > { %v7185_v57 = vpop.f32.mrf.mxu1 }
 0x402   : > { %7440 = vmatmul.mubr.bf16.gmra.mxu1 %v18115_v33  ;;  %v7588_v35 = vpop.f32.mrf.mxu0 }
 0x403   : > { %7447 = vmatprep.mubr.bf16.mxu1 %v18116_v34  ;;  %v16371_v37 = vpop.f32.mrf.mxu1 }
 0x404   : > { %v16373_v55 = vpop.f32.mrf.mxu0 }
 0x405   : > { %v7188_v62 = vpop.f32.mrf.mxu1 }
 0x406   : > { %v7591_v15 = vpop.f32.mrf.mxu0  ;;  %v18124_v62 = vld [vmem:[#allocation129_spill] sm:$0xff] }
 0x407   : > { %v7064_v59 = vadd.f32 %v16369_v1, %v18124_v62 }
 0x408   : > { %v7224_v52 = vpop.f32.mrf.mxu1  ;;  %v16380_v17 = vpop.f32.mrf.mxu0 }
 0x409   : > { %v16378_v21 = vadd.f32 %v7224_v52, %v7048_v24 }
 0x40a   : > { %7448 = vmatmul.mubr.bf16.gmra.mxu1 %v18118_v39  ;;  %v7226_v25 = vpop.f32.mrf.mxu1  ;;  %v7596_v23 = vpop.f32.mrf.mxu0 }
 0x40b   : > { %7455 = vmatprep.mubr.bf16.mxu1 %v18119_v10  ;;  %v18125_v10 = vld [vmem:[#allocation29_spill] sm:$0xff] }
 0x40c   : > { %v7227_v53 = vpop.f32.mrf.mxu1  ;;  %v16387_v18 = vpop.f32.mrf.mxu0  ;;  %v7067_v25 = vadd.f32 %v16369_v1, %v18125_v10 }
 0x40d   : > { %v16385_v16 = vadd.f32 %v7227_v53, %v7051_v28 }
 0x40e   : > { %v7229_v6 = vpop.f32.mrf.mxu1  ;;  %v7599_v20 = vpop.f32.mrf.mxu0 }
 0x411   : > { %v7232_v56 = vpop.f32.mrf.mxu1 }
 0x412   : > { %7456 = vmatmul.mubr.bf16.gmra.mxu1 %v18122_v22  ;;  %v16392_v29 = vadd.f32 %v7232_v56, %v7056_v45  ;;  %v18127_v56 = vld [vmem:[#allocation163_spill] sm:$0xff] }
 0x413   : > { %7463 = vmatprep.mubr.bf16.mxu1 %v16240_v44  ;;  %v7234_v38 = vpop.f32.mrf.mxu1 }
 0x415   : > { %v7235_v33 = vpop.f32.mrf.mxu1 }
 0x416   : > { %v16399_v34 = vadd.f32 %v7235_v33, %v7059_v26  ;;  %v7075_v26 = vadd.f32 %v16369_v1, %v18128_v58  ;;  %v18133_v58 = vld [vmem:[#allocation46_spill] sm:$0xff] }
 0x417   : > { %v7237_v35 = vpop.f32.mrf.mxu1 }
 0x41a   : > { %v7240_v15 = vpop.f32.mrf.mxu1  ;;  %7464 = vmatmul.mubr.bf16.gmra.mxu1 %v16227_v47  ;;  %v7072_v47 = vadd.f32 %v16369_v1, %v18126_v48 }
 0x41b   : > { %v16394_v50 = vpop.f32.mrf.mxu0  ;;  %v16406_v52 = vadd.f32 %v7240_v15, %v7064_v59  ;;  %7471 = vmatprep.mubr.bf16.mxu1 %v15424_v2 }
 0x41c   : > { %v7242_v39 = vpop.f32.mrf.mxu1 }
 0x41d   : > { %v7604_v43 = vpop.f32.mrf.mxu0 }
 0x41e   : > { %v7243_v28 = vpop.f32.mrf.mxu1 }
 0x41f   : > { %v16401_v57 = vpop.f32.mrf.mxu0  ;;  %v16413_v23 = vadd.f32 %v7243_v28, %v7067_v25 }
 0x420   : > { %v7245_v6 = vpop.f32.mrf.mxu1 }
 0x421   : > { %v7607_v24 = vpop.f32.mrf.mxu0  ;;  %v18131_v6 = vld [vmem:[#allocation203_spill] sm:$0xff] }
 0x422   : > { %v7248_v20 = vpop.f32.mrf.mxu1  ;;  %7472 = vmatmul.mubr.bf16.gmra.mxu1 %v18127_v56  ;;  %v18129_v24 = vld [vmem:[#allocation36_spill] sm:$0xff]  ;;  %v7083_v48 = vadd.f32 %v16369_v1, %v18131_v6 }
 0x423   : > { %v16408_v44 = vpop.f32.mrf.mxu0  ;;  %v16420_v22 = vadd.f32 %v7248_v20, %v7072_v47  ;;  %7479 = vmatprep.mubr.bf16.mxu1 %v15488_v49  ;;  %v7080_v15 = vadd.f32 %v16369_v1, %v18129_v24 }
 0x424   : > { %v7250_v38 = vpop.f32.mrf.mxu1 }
 0x425   : > { %v7612_v7 = vpop.f32.mrf.mxu0 }
 0x426   : > { %v7251_v33 = vpop.f32.mrf.mxu1  ;;  %v18130_v7 = vld [vmem:[#allocation172_spill] sm:$0xff] }
 0x427   : > { %v16415_v53 = vpop.f32.mrf.mxu0  ;;  %v16427_v35 = vadd.f32 %v7251_v33, %v7075_v26  ;;  %v18134_v33 = vld [vmem:[#allocation162_spill] sm:$0xff] }
 0x428   : > { %v7253_v59 = vpop.f32.mrf.mxu1 }
 0x429   : > { %v7615_v45 = vpop.f32.mrf.mxu0 }
 0x42a   : > { %v7256_v10 = vpop.f32.mrf.mxu1  ;;  %7480 = vmatmul.mubr.bf16.gmra.mxu1 %v15495_v5  ;;  %v7088_v5 = vadd.f32 %v16369_v1, %v18133_v58 }
 0x42b   : > { %v16422_v2 = vpop.f32.mrf.mxu0  ;;  %v16434_v25 = vadd.f32 %v7256_v10, %v7080_v15  ;;  %7487 = vmatprep.mubr.bf16.mxu1 %v18130_v7  ;;  %v18136_v15 = vld [vmem:[#allocation175_spill] sm:$0xff]  ;;  %v18137_v10 = vld [vmem:[#allocation61_spill] sm:$0xff] }
 0x42c   : > { %v7258_v28 = vpop.f32.mrf.mxu1  ;;  %v7091_v7 = vadd.f32 %v16369_v1, %v18137_v10 }
 0x42d   : > { %v7620_v43 = vpop.f32.mrf.mxu0 }
 0x42e   : > { %v7259_v45 = vpop.f32.mrf.mxu1 }
 0x42f   : > { %v16429_v62 = vpop.f32.mrf.mxu0  ;;  %v16441_v20 = vadd.f32 %v7259_v45, %v7083_v48 }
 0x430   : > { %v7261_v38 = vpop.f32.mrf.mxu1 }
 0x431   : > { %v7623_v39 = vpop.f32.mrf.mxu0  ;;  %v18139_v38 = vld [vmem:[#allocation63_spill] sm:$0xff] }
 0x432   : > { %v7264_v43 = vpop.f32.mrf.mxu1  ;;  %7488 = vmatmul.mubr.bf16.gmra.mxu1 %v18134_v33  ;;  %v7096_v58 = vadd.f32 %v16369_v1, %v18139_v38 }
 0x433   : > { %v16436_v49 = vpop.f32.mrf.mxu0  ;;  %v16448_v59 = vadd.f32 %v7264_v43, %v7088_v5  ;;  %7495 = vmatprep.mubr.bf16.mxu1 %v18136_v15  ;;  %v18140_v43 = vld [vmem:[#allocation143_spill] sm:$0xff] }
 0x434   : > { %v7266_v39 = vpop.f32.mrf.mxu1 }
 0x435   : > { %v7628_v47 = vpop.f32.mrf.mxu0  ;;  %v18141_v39 = vld [vmem:[#allocation148_spill] sm:$0xff] }
 0x436   : > { %v7267_v6 = vpop.f32.mrf.mxu1  ;;  %v7099_v10 = vadd.f32 %v16369_v1, %v18141_v39 }
 0x437   : > { %v16443_v56 = vpop.f32.mrf.mxu0  ;;  %v16455_v48 = vadd.f32 %v7267_v6, %v7091_v7 }
 0x438   : > { %18132 = vst [vmem:[#allocation168_spill] sm:$0xff] %v16443_v56  ;;  %v7269_v45 = vpop.f32.mrf.mxu1 }
 0x439   : > { %v7631_v26 = vpop.f32.mrf.mxu0  ;;  %v18143_v45 = vld [vmem:[#allocation32_spill] sm:$0xff] }
 0x43a   : > { %v7272_v26 = vpop.f32.mrf.mxu1  ;;  %7496 = vmatmul.mubr.bf16.gmra.mxu1 %v18140_v43 }
 0x43b   : > { %v16450_v24 = vpop.f32.mrf.mxu0  ;;  %v16462_v33 = vadd.f32 %v7272_v26, %v7096_v58  ;;  %7503 = vmatprep.mubr.bf16.mxu1 %v15640_v61  ;;  %v18145_v58 = vld [vmem:[#allocation167_spill] sm:$0xff] }
 0x43c   : > { %18135 = vst [vmem:[#allocation176_spill] sm:$0xff] %v16450_v24  ;;  %v7274_v15 = vpop.f32.mrf.mxu1  ;;  %v18146_v61 = vld [vmem:[#allocation211_spill] sm:$0xff] }
 0x43d   : > { %v7636_v28 = vpop.f32.mrf.mxu0  ;;  %v7107_v43 = vadd.f32 %v16369_v1, %v18146_v61 }
 0x43e   : > { %v7275_v7 = vpop.f32.mrf.mxu1 }
 0x43f   : > { %v16457_v47 = vpop.f32.mrf.mxu0  ;;  %v16467_v28 = vadd.f32 %v7275_v7, %v7099_v10  ;;  %v18148_v7 = vld [vmem:[#allocation220_spill] sm:$0xff] }
 0x440   : > { %18138 = vst [vmem:[#allocation182_spill] sm:$0xff] %v16457_v47  ;;  %v7277_v6 = vpop.f32.mrf.mxu1  ;;  %v7104_v47 = vadd.f32 %v16369_v1, %v18143_v45  ;;  %v18149_v45 = vld [vmem:[#allocation173_spill] sm:$0xff] }
 0x441   : > { %v7639_v5 = vpop.f32.mrf.mxu0  ;;  %18142 = vst [vmem:[#allocation180_spill] sm:$0xff] %v16467_v28  ;;  %v7112_v6 = vadd.f32 %v16369_v1, %v18148_v7  ;;  %v18152_v7 = vld [vmem:[#allocation178_spill] sm:$0xff] }
 0x442   : > { %v7280_v38 = vpop.f32.mrf.mxu1  ;;  %v18144_v5 = vld [vmem:[#allocation142_spill] sm:$0xff] }
 0x443   : > { %7504 = vmatmul.mubr.bf16.gmra.mxu1 %v18144_v5  ;;  %v16472_v24 = vadd.f32 %v7280_v38, %v7104_v47  ;;  %v18150_v47 = vld [vmem:[#allocation174_spill] sm:$0xff]  ;;  %v18151_v5 = vld [vmem:[#allocation221_spill] sm:$0xff] }
 0x444   : > { %7511 = vmatprep.mubr.bf16.mxu1 %v18145_v58  ;;  %v7282_v26 = vpop.f32.mrf.mxu1  ;;  %v7115_v58 = vadd.f32 %v16369_v1, %v18151_v5 }
 0x446   : > { %v7283_v15 = vpop.f32.mrf.mxu1 }
 0x447   : > { %v16477_v39 = vadd.f32 %v7283_v15, %v7107_v43  ;;  %v7120_v15 = vadd.f32 %v16369_v1, %v16263_v12  ;;  %v18154_v12 = vld [vmem:[#allocation179_spill] sm:$0xff] }
 0x448   : > { %v7285_v10 = vpop.f32.mrf.mxu1 }
 0x449   : > { %18147 = vst [vmem:[#allocation50_spill] sm:$0xff] %v16477_v39 }
 0x44a   : > { %v7288_v56 = vpop.f32.mrf.mxu1 }
 0x44b   : > { %7512 = vmatmul.mubr.bf16.gmra.mxu1 %v18149_v45  ;;  %v16482_v28 = vadd.f32 %v7288_v56, %v7112_v6  ;;  %v18153_v56 = vld [vmem:[#allocation170_spill] sm:$0xff]  ;;  %v7123_v45 = vadd.f32 %v16369_v1, %v16273_v13 }
 0x44c   : > { %7519 = vmatprep.mubr.bf16.mxu1 %v18150_v47  ;;  %v7290_v38 = vpop.f32.mrf.mxu1 }
 0x44e   : > { %v7291_v26 = vpop.f32.mrf.mxu1 }
 0x44f   : > { %v16487_v61 = vadd.f32 %v7291_v26, %v7115_v58  ;;  %v7128_v58 = vadd.f32 %v16369_v1, %v16279_v41 }
 0x450   : > { %v7293_v43 = vpop.f32.mrf.mxu1 }
 0x452   : > { %v7296_v10 = vpop.f32.mrf.mxu1 }
 0x453   : > { %7520 = vmatmul.mubr.bf16.gmra.mxu1 %v18152_v7  ;;  %v16492_v39 = vadd.f32 %v7296_v10, %v7120_v15  ;;  %v7131_v10 = vadd.f32 %v16369_v1, %v16285_v54 }
 0x454   : > { %7527 = vmatprep.mubr.bf16.mxu1 %v18153_v56  ;;  %v7298_v6 = vpop.f32.mrf.mxu1 }
 0x455   : > { %v7136_v6 = vadd.f32 %v16369_v1, %v16298_v60 }
 0x456   : > { %v7299_v47 = vpop.f32.mrf.mxu1 }
 0x457   : > { %v16497_v38 = vadd.f32 %v7299_v47, %v7123_v45 }
 0x458   : > { %v7301_v5 = vpop.f32.mrf.mxu1 }
 0x45a   : > { %v7304_v26 = vpop.f32.mrf.mxu1 }
 0x45b   : > { %7528 = vmatmul.mubr.bf16.gmra.mxu1 %v18154_v12  ;;  %v16502_v43 = vadd.f32 %v7304_v26, %v7128_v58  ;;  %v7144_v26 = vadd.f32 %v16369_v1, %v16310_v27 }
 0x45c   : > { %7535 = vmatprep.mubr.bf16.mxu1 %v16320_v32  ;;  %v7306_v15 = vpop.f32.mrf.mxu1  ;;  %v7139_v32 = vadd.f32 %v16369_v1, %v16300_v36  ;;  %v7152_v36 = vadd.f32 %v16369_v1, %v16322_v9 }
 0x45e   : > { %v7307_v7 = vpop.f32.mrf.mxu1 }
 0x45f   : > { %v16507_v13 = vadd.f32 %v7307_v7, %v7131_v10 }
 0x460   : > { %v7309_v56 = vpop.f32.mrf.mxu1 }
 0x462   : > { %v7312_v45 = vpop.f32.mrf.mxu1 }
 0x463   : > { %7536 = vmatmul.mubr.bf16.gmra.mxu1 %v16250_v30  ;;  %v16512_v41 = vadd.f32 %v7312_v45, %v7136_v6  ;;  %v7147_v30 = vadd.f32 %v16369_v1, %v16315_v3  ;;  %v11324_v3 = vld [vmem:[%s16534_s7 + $0x38] sm:$0xff]  }
 0x464   : > { %v7314_v47 = vpop.f32.mrf.mxu1  ;;  %11015 = vmatprep.subr.bf16.mxu1 %v11324_v3 }
 0x465   : > { %11016 = vmatpush3.bf16.msra.mxu1 %v11324_v3 }
 0x466   : > { %v7315_v5 = vpop.f32.mrf.mxu1 }
 0x467   : > { %v16516_v58 = vadd.f32 %v7315_v5, %v7139_v32  ;;  %v7155_v5 = vadd.f32 %v16369_v1, %v16325_v63 }
 0x468   : > { %v7317_v54 = vpop.f32.mrf.mxu1 }
 0x46a   : > { %v7320_v12 = vpop.f32.mrf.mxu1 }
 0x46b   : > { %v16520_v15 = vadd.f32 %v7320_v12, %v7144_v26 }
 0x46c   : > { %v7322_v60 = vpop.f32.mrf.mxu1 }
 0x46e   : > { %v7323_v10 = vpop.f32.mrf.mxu1  ;;  %v16529_v45 = vpop.f32.mrf.mxu0 }
 0x46f   : > { %v16524_v7 = vadd.f32 %v7323_v10, %v7147_v30  ;;  %v7160_v30 = vadd.f32 %v16369_v1, %v16328_v8  ;;  %v7168_v8 = vadd.f32 %v16369_v1, %v16338_v51  ;;  %v7176_v51 = vadd.f32 %v16369_v1, %v16349_v4 }
 0x470   : > { %v7325_v56 = vpop.f32.mrf.mxu1  ;;  %v7644_v32 = vpop.f32.mrf.mxu0  ;;  %v7184_v4 = vadd.f32 %v16369_v1, %v16359_v14 }
 0x472   : > { %v7328_v6 = vpop.f32.mrf.mxu1  ;;  %v16541_v54 = vpop.f32.mrf.mxu0 }
 0x473   : > { %v16536_v27 = vadd.f32 %v7328_v6, %v7152_v36 }
 0x474   : > { %v7330_v47 = vpop.f32.mrf.mxu1  ;;  %v7647_v60 = vpop.f32.mrf.mxu0 }
 0x475   : > { %18155 = vst [vmem:[#allocation57_spill] sm:$0xff] %v16536_v27  ;;  %v7163_v47 = vadd.f32 %v16369_v1, %v16336_v0  ;;  %v7171_v0 = vadd.f32 %v16369_v1, %v16346_v19 }
 0x476   : > { %v7331_v9 = vpop.f32.mrf.mxu1  ;;  %v16547_v56 = vpop.f32.mrf.mxu0 }
 0x477   : > { %v16543_v26 = vadd.f32 %v7331_v9, %v7155_v5 }
 0x478   : > { %v7333_v12 = vpop.f32.mrf.mxu1  ;;  %v7652_v63 = vpop.f32.mrf.mxu0 }
 0x479   : > { %18156 = vst [vmem:[#allocation169_spill] sm:$0xff] %v16543_v26  ;;  %v11325_v63 = vld [vmem:[%s16534_s7 + $0x30] sm:$0xff]  }
 0x47a   : > { %v7336_v10 = vpop.f32.mrf.mxu1  ;;  %v16553_v3 = vpop.f32.mrf.mxu0  ;;  %11017 = vmatprep.subr.bf16.mxu1 %v11325_v63 }
 0x47b   : > { %v16549_v36 = vadd.f32 %v7336_v10, %v7160_v30  ;;  %11018 = vmatpush3.bf16.msra.mxu1 %v11325_v63 }
 0x47c   : > { %v7338_v6 = vpop.f32.mrf.mxu1  ;;  %v7655_v12 = vpop.f32.mrf.mxu0 }
 0x47d   : > { %18157 = vst [vmem:[#allocation190_spill] sm:$0xff] %v16549_v36 }
 0x47e   : > { %v7339_v32 = vpop.f32.mrf.mxu1  ;;  %v16559_v26 = vpop.f32.mrf.mxu0 }
 0x47f   : > { %v16555_v5 = vadd.f32 %v7339_v32, %v7163_v47 }
 0x480   : > { %v7341_v9 = vpop.f32.mrf.mxu1  ;;  %v7660_v6 = vpop.f32.mrf.mxu0 }
 0x481   : > { %18158 = vst [vmem:[#allocation184_spill] sm:$0xff] %v16555_v5  ;;  %v7179_v6 = vadd.f32 %v16369_v1, %v16355_v11  ;;  %v7187_v11 = vadd.f32 %v16369_v1, %v16371_v37 }
 0x482   : > { %v7344_v60 = vpop.f32.mrf.mxu1  ;;  %v16566_v27 = vpop.f32.mrf.mxu0 }
 0x483   : > { %v16561_v30 = vadd.f32 %v7344_v60, %v7168_v8 }
 0x484   : > { %v7346_v10 = vpop.f32.mrf.mxu1  ;;  %v7663_v9 = vpop.f32.mrf.mxu0 }
 0x485   : > { %18159 = vst [vmem:[#allocation181_spill] sm:$0xff] %v16561_v30 }
 0x486   : > { %v7347_v36 = vpop.f32.mrf.mxu1  ;;  %v16572_v8 = vpop.f32.mrf.mxu0 }
 0x487   : > { %v16568_v47 = vadd.f32 %v7347_v36, %v7171_v0 }
 0x488   : > { %v7349_v32 = vpop.f32.mrf.mxu1  ;;  %v7668_v10 = vpop.f32.mrf.mxu0 }
 0x489   : > { %18160 = vst [vmem:[#allocation185_spill] sm:$0xff] %v16568_v47  ;;  %v11326_v10 = vld [vmem:[%s16534_s7 + $0x28] sm:$0xff]  }
 0x48a   : > { %v7352_v12 = vpop.f32.mrf.mxu1  ;;  %v16578_v0 = vpop.f32.mrf.mxu0  ;;  %11019 = vmatprep.subr.bf16.mxu1 %v11326_v10 }
 0x48b   : > { %v16574_v60 = vadd.f32 %v7352_v12, %v7176_v51  ;;  %11020 = vmatpush3.bf16.msra.mxu1 %v11326_v10 }
 0x48c   : > { %v7354_v19 = vpop.f32.mrf.mxu1  ;;  %v7671_v9 = vpop.f32.mrf.mxu0 }
 0x48d   : > { %18161 = vst [vmem:[#allocation183_spill] sm:$0xff] %v16574_v60 }
 0x48e   : > { %v7355_v36 = vpop.f32.mrf.mxu1  ;;  %v16584_v30 = vpop.f32.mrf.mxu0 }
 0x48f   : > { %v16580_v32 = vadd.f32 %v7355_v36, %v7179_v6 }
 0x490   : > { %v7357_v63 = vpop.f32.mrf.mxu1  ;;  %v7676_v19 = vpop.f32.mrf.mxu0 }
 0x491   : > { %18162 = vst [vmem:[#allocation186_spill] sm:$0xff] %v16580_v32 }
 0x492   : > { %v7360_v47 = vpop.f32.mrf.mxu1  ;;  %v16591_v5 = vpop.f32.mrf.mxu0 }
 0x493   : > { %v16586_v51 = vadd.f32 %v7360_v47, %v7184_v4 }
 0x494   : > { %v7362_v12 = vpop.f32.mrf.mxu1  ;;  %v7679_v63 = vpop.f32.mrf.mxu0 }
 0x495   : > { %18163 = vst [vmem:[#allocation195_spill] sm:$0xff] %v16586_v51 }
 0x496   : > { %v7363_v60 = vpop.f32.mrf.mxu1  ;;  %v16595_v9 = vpop.f32.mrf.mxu0 }
 0x497   : > { %v16593_v6 = vadd.f32 %v7363_v60, %v7187_v11  ;;  %18165 = vst [vmem:[#allocation193_spill] sm:$0xff] %v16595_v9 }
 0x498   : > { %v7365_v36 = vpop.f32.mrf.mxu1  ;;  %v7684_v12 = vpop.f32.mrf.mxu0 }
 0x499   : > { %18164 = vst [vmem:[#allocation189_spill] sm:$0xff] %v16593_v6 }
 0x49a   : > { %v7401_v14 = vpop.f32.mrf.mxu1  ;;  %v16599_v37 = vpop.f32.mrf.mxu0 }
 0x49b   : > { %v7402_v47 = vadd.f32 %v7401_v14, %v16378_v21  ;;  %18166 = vst [vmem:[#allocation177_spill] sm:$0xff] %v16599_v37 }
 0x49c   : > { %v7403_v4 = vpop.f32.mrf.mxu1  ;;  %v7687_v36 = vpop.f32.mrf.mxu0 }
 0x49d   : > { %v7579_v19 = vadd.f32 %v16352_v40, %v7402_v47 }
 0x49e   : > { %v7404_v1 = vpop.f32.mrf.mxu1  ;;  %v16607_v21 = vpop.f32.mrf.mxu0 }
 0x49f   : > { %v16601_v51 = vmax.f32 %v7579_v19, 0.0  ;;  %v7405_v60 = vadd.f32 %v7404_v1, %v16385_v16  ;;  %18167 = vst [vmem:[#allocation171_spill] sm:$0xff] %v16607_v21 }
 0x4a0   : > { %v7406_v11 = vpop.f32.mrf.mxu1  ;;  %v7692_v19 = vpop.f32.mrf.mxu0 }
 0x4a1   : > { %v10553_v10 = vpack.c.bf16 %v16601_v51, %v16601_v51  ;;  %v7582_v63 = vadd.f32 %v16357_v31, %v7405_v60 }
 0x4a2   : > { %v7409_v6 = vpop.f32.mrf.mxu1  ;;  %v16611_v36 = vpop.f32.mrf.mxu0 }
 0x4a3   : > { %v7856_v14 = vshrl.u32 %v10553_v10, 16  ;;  %v7859_v4 = vshll.u32 %v10553_v10, 16  ;;  %v7722_v40 = vmax.f32 %v7582_v63, 0.0  ;;  %v7410_v47 = vadd.f32 %v7409_v6, %v16392_v29 }
 0x4a4   : > { %v7411_v12 = vpop.f32.mrf.mxu1  ;;  %v7695_v21 = vpop.f32.mrf.mxu0 }
 0x4a5   : > { %v7858_v32 = vrot.slane %v7856_v14, 4  ;;  %v7861_v37 = vrot.slane %v7859_v4, 5  ;;  %v10554_v16 = vpack.c.bf16 %v7722_v40, %v7722_v40  ;;  %v7587_v1 = vadd.f32 %v16366_v46, %v7410_v47  ;;  %v11327_v47 = vld [vmem:[%s16534_s7 + $0x20] sm:$0xff]  }
 0x4a6   : > { %v7412_v11 = vpop.f32.mrf.mxu1  ;;  %v16619_v46 = vpop.f32.mrf.mxu0  ;;  %11021 = vmatprep.subr.bf16.mxu1 %v11327_v47 }
 0x4a7   : > { %v7862_v31 = vor.u32 %v7861_v37, %v7858_v32  ;;  %v7865_v60 = vshll.u32 %v10554_v16, 16  ;;  %v16613_v9 = vmax.f32 %v7587_v1, 0.0  ;;  %v7413_v10 = vadd.f32 %v7412_v11, %v16399_v34  ;;  %11022 = vmatpush3.bf16.msra.mxu1 %v11327_v47 }
 0x4a8   : > { %v7414_v63 = vpop.f32.mrf.mxu1  ;;  %v7700_v34 = vpop.f32.mrf.mxu0 }
 0x4a9   : > { %v7867_v29 = vrot.slane %v7865_v60, 5  ;;  %v10555_v6 = vpack.c.bf16 %v16613_v9, %v16613_v9  ;;  %v7590_v14 = vadd.f32 %v16373_v55, %v7413_v10  ;;  %v7863_v4 = vrot.slane %v7862_v31, 4 }
 0x4aa   : > { %v7417_v40 = vpop.f32.mrf.mxu1  ;;  %v16626_v10 = vpop.f32.mrf.mxu0 }
 0x4ab   : > { %v7870_v12 = vshrl.u32 %v10555_v6, 16  ;;  %v7873_v32 = vshll.u32 %v10555_v6, 16  ;;  %v7724_v37 = vmax.f32 %v7590_v14, 0.0  ;;  %v7418_v19 = vadd.f32 %v7417_v40, %v16406_v52 }
 0x4ac   : > { %v7419_v16 = vpop.f32.mrf.mxu1  ;;  %v7868_v21 = vsel %vm11957_vm3, %v7863_v4, %v7867_v29 }
 0x4ad   : > { %v7872_v1 = vrot.slane %v7870_v12, 4  ;;  %v7875_v11 = vrot.slane %v7873_v32, 5  ;;  %v10556_v60 = vpack.c.bf16 %v7724_v37, %v7724_v37  ;;  %v7595_v55 = vadd.f32 %v16380_v17, %v7418_v19  ;;  %v7703_v16 = vpop.f32.mrf.mxu0 }
 0x4ae   : > { %v7420_v31 = vpop.f32.mrf.mxu1  ;;  %v11329_v16 = vld [vmem:[%s16534_s7 + $0x10] sm:$0xff]  }
 0x4af   : > { %v7879_v63 = vshll.u32 %v10556_v60, 16  ;;  %v16628_v6 = vmax.f32 %v7595_v55, 0.0  ;;  %v7421_v52 = vadd.f32 %v7420_v31, %v16413_v23  ;;  %v7876_v14 = vor.u32 %v7875_v11, %v7872_v1  ;;  %v16636_v32 = vpop.f32.mrf.mxu0  ;;  %v11328_v23 = vld [vmem:[%s16534_s7 + $0x18] sm:$0xff]  }
 0x4b0   : > { %v7422_v40 = vpop.f32.mrf.mxu1  ;;  %11023 = vmatprep.subr.bf16.mxu1 %v11328_v23 }
 0x4b1   : > { %v7881_v29 = vrot.slane %v7879_v63, 5  ;;  %v10557_v4 = vpack.c.bf16 %v16628_v6, %v16628_v6  ;;  %v7598_v12 = vadd.f32 %v16387_v18, %v7421_v52  ;;  %v10597_v17 = vpack.c.bf16 %v16628_v6, %v16613_v9  ;;  %v7708_v55 = vpop.f32.mrf.mxu0  ;;  %11024 = vmatpush3.bf16.msra.mxu1 %v11328_v23 }
 0x4b2   : > { %v7425_v47 = vpop.f32.mrf.mxu1  ;;  %v7877_v37 = vrot.slane %v7876_v14, 4  ;;  %11025 = vmatprep.subr.bf16.mxu1 %v11329_v16 }
 0x4b3   : > { %v7884_v34 = vshrl.u32 %v10557_v4, 16  ;;  %v7887_v1 = vshll.u32 %v10557_v4, 16  ;;  %v7726_v11 = vmax.f32 %v7598_v12, 0.0  ;;  %v7426_v60 = vadd.f32 %v7425_v47, %v16420_v22  ;;  %8173 = vrot.lane.b32.xlu0 %v10597_v17, %s11528_s28  ;;  %v16647_v4 = vpop.f32.mrf.mxu0 }
 0x4b4   : > { %v7427_v18 = vpop.f32.mrf.mxu1  ;;  %v7882_v31 = vsel %vm11957_vm3, %v7877_v37, %v7881_v29 }
 0x4b5   : > { %v7886_v63 = vrot.slane %v7884_v34, 4  ;;  %v7889_v52 = vrot.slane %v7887_v1, 5  ;;  %v10558_v14 = vpack.c.bf16 %v7726_v11, %v7726_v11  ;;  %v7603_v40 = vadd.f32 %v16394_v50, %v7426_v60  ;;  %v7711_v50 = vpop.f32.mrf.mxu0  ;;  %11026 = vmatpush3.bf16.msra.mxu1 %v11329_v16 }
 0x4b6   : > { %v7428_v19 = vpop.f32.mrf.mxu1  ;;  %v10190_v12 = vcombine.low %v7868_v21, %v7882_v31 }
 0x4b7   : > { %v7893_v22 = vshll.u32 %v10558_v14, 16  ;;  %v16649_v47 = vmax.f32 %v7603_v40, 0.0  ;;  %v7429_v17 = vadd.f32 %v7428_v19, %v16427_v35  ;;  %v7890_v18 = vor.u32 %v7889_v52, %v7886_v63  ;;  %v16656_v11 = vpop.f32.mrf.mxu0  ;;  %v11330_v52 = vld [vmem:[%s16534_s7 + $0x8] sm:$0xff]   ;;  %v11331_v14 = vld [vmem:[%s16534_s7] sm:$0xff]  }
 0x4b8   : > { %8149 = vrot.lane.b32.xlu0 %v10190_v12, %s11530_s24  ;;  %v7430_v29 = vpop.f32.mrf.mxu1  ;;  %11027 = vmatprep.subr.bf16.mxu1 %v11330_v52 }
 0x4b9   : > { %v7895_v37 = vrot.slane %v7893_v22, 5  ;;  %v10559_v23 = vpack.c.bf16 %v16649_v47, %v16649_v47  ;;  %v7606_v21 = vadd.f32 %v16401_v57, %v7429_v17  ;;  %v7891_v34 = vrot.slane %v7890_v18, 4  ;;  %v7716_v12 = vpop.f32.mrf.mxu0  ;;  %11028 = vmatpush3.bf16.msra.mxu1 %v11330_v52 }
 0x4ba   : > { %v7433_v1 = vpop.f32.mrf.mxu1  ;;  %v10590_v35 = vpack.c.bf16 %v16649_v47, %v16628_v6  ;;  %11029 = vmatprep.subr.bf16.mxu1 %v11331_v14 }
 0x4bb   : > { %v7898_v19 = vshrl.u32 %v10559_v23, 16  ;;  %v7901_v60 = vshll.u32 %v10559_v23, 16  ;;  %v7728_v55 = vmax.f32 %v7606_v21, 0.0  ;;  %v7434_v63 = vadd.f32 %v7433_v1, %v16434_v25  ;;  %v16666_v50 = vpop.f32.mrf.mxu0 }
 0x4bc   : > { %v7435_v40 = vpop.f32.mrf.mxu1  ;;  %v7896_v57 = vsel %vm11957_vm3, %v7891_v34, %v7895_v37 }
 0x4bd   : > { %v7900_v22 = vrot.slane %v7898_v19, 4  ;;  %v7903_v16 = vrot.slane %v7901_v60, 5  ;;  %v10560_v17 = vpack.c.bf16 %v7728_v55, %v7728_v55  ;;  %v7611_v18 = vadd.f32 %v16408_v44, %v7434_v63  ;;  %v7719_v34 = vpop.f32.mrf.mxu0  ;;  %11030 = vmatpush3.bf16.msra.mxu1 %v11331_v14 }
 0x4be   : > { %v7436_v29 = vpop.f32.mrf.mxu1  ;;  %v10206_v23 = vcombine.low %v7882_v31, %v7896_v57 }
 0x4bf   : > { %v7907_v21 = vshll.u32 %v10560_v17, 16  ;;  %v16668_v25 = vmax.f32 %v7611_v18, 0.0  ;;  %v7437_v1 = vadd.f32 %v7436_v29, %v16441_v20  ;;  %v7904_v40 = vor.u32 %v7903_v16, %v7900_v22 }
 0x4c0   : > { %8199 = vrot.lane.b32.xlu0 %v10206_v23, %s11531_s13  ;;  %v7438_v37 = vpop.f32.mrf.mxu1 }
 0x4c1   : > { %v7909_v19 = vrot.slane %v7907_v21, 5  ;;  %v10561_v44 = vpack.c.bf16 %v16668_v25, %v16668_v25  ;;  %v7614_v60 = vadd.f32 %v16415_v53, %v7437_v1  ;;  %v10598_v31 = vpack.c.bf16 %v16668_v25, %v16649_v47 }
 0x4c2   : > { %v7441_v55 = vpop.f32.mrf.mxu1  ;;  %v7905_v63 = vrot.slane %v7904_v40, 4 }
 0x4c3   : > { %v7912_v20 = vshrl.u32 %v10561_v44, 16  ;;  %v7915_v52 = vshll.u32 %v10561_v44, 16  ;;  %v7730_v12 = vmax.f32 %v7614_v60, 0.0  ;;  %v7442_v22 = vadd.f32 %v7441_v55, %v16448_v59  ;;  %8175 = vrot.lane.b32.xlu1 %v10598_v31, %s11528_s28 }
 0x4c4   : > { %v7443_v16 = vpop.f32.mrf.mxu1  ;;  %v7910_v17 = vsel %vm11957_vm3, %v7905_v63, %v7909_v19 }
 0x4c5   : > { %v7914_v18 = vrot.slane %v7912_v20, 4  ;;  %v7917_v29 = vrot.slane %v7915_v52, 5  ;;  %v10562_v53 = vpack.c.bf16 %v7730_v12, %v7730_v12  ;;  %v7619_v23 = vadd.f32 %v16422_v2, %v7442_v22 }
 0x4c6   : > { %v7444_v21 = vpop.f32.mrf.mxu1  ;;  %v10191_v1 = vcombine.low %v7896_v57, %v7910_v17 }
 0x4c7   : > { %v7921_v40 = vshll.u32 %v10562_v53, 16  ;;  %v16682_v14 = vmax.f32 %v7619_v23, 0.0  ;;  %v7445_v37 = vadd.f32 %v7444_v21, %v16455_v48  ;;  %v7918_v34 = vor.u32 %v7917_v29, %v7914_v18 }
 0x4c8   : > { %8151 = vrot.lane.b32.xlu1 %v10191_v1, %s11530_s24  ;;  %v7446_v59 = vpop.f32.mrf.mxu1  ;;  %v18168_v1 = vld [vmem:[#allocation180_spill] sm:$0xff] }
 0x4c9   : > { %v7923_v44 = vrot.slane %v7921_v40, 5  ;;  %v10563_v19 = vpack.c.bf16 %v16682_v14, %v16682_v14  ;;  %v7622_v60 = vadd.f32 %v16429_v62, %v7445_v37  ;;  %v7919_v31 = vrot.slane %v7918_v34, 4 }
 0x4ca   : > { %v7449_v55 = vpop.f32.mrf.mxu1  ;;  %v10591_v2 = vpack.c.bf16 %v16682_v14, %v16668_v25 }
 0x4cb   : > { %v7926_v57 = vshrl.u32 %v10563_v19, 16  ;;  %v7929_v63 = vshll.u32 %v10563_v19, 16  ;;  %v7732_v20 = vmax.f32 %v7622_v60, 0.0  ;;  %v7450_v48 = vadd.f32 %v7449_v55, %v16462_v33 }
 0x4cc   : > { %v7451_v52 = vpop.f32.mrf.mxu1  ;;  %v7924_v12 = vsel %vm11957_vm3, %v7919_v31, %v7923_v44  ;;  %v18169_v44 = vld [vmem:[#allocation168_spill] sm:$0xff] }
 0x4cd   : > { %v7928_v22 = vrot.slane %v7926_v57, 4  ;;  %v7931_v16 = vrot.slane %v7929_v63, 5  ;;  %v10564_v18 = vpack.c.bf16 %v7732_v20, %v7732_v20  ;;  %v7627_v29 = vadd.f32 %v16436_v49, %v7450_v48 }
 0x4ce   : > { %v7452_v62 = vpop.f32.mrf.mxu1  ;;  %v10207_v53 = vcombine.low %v7910_v17, %v7924_v12 }
 0x4cf   : > { %v7935_v23 = vshll.u32 %v10564_v18, 16  ;;  %v16695_v21 = vmax.f32 %v7627_v29, 0.0  ;;  %v7453_v40 = vadd.f32 %v7452_v62, %v18168_v1  ;;  %v7932_v37 = vor.u32 %v7931_v16, %v7928_v22  ;;  %v18170_v18 = vld [vmem:[#allocation176_spill] sm:$0xff] }
 0x4d0   : > { %8201 = vrot.lane.b32.xlu1 %v10207_v53, %s11531_s13  ;;  %v7454_v33 = vpop.f32.mrf.mxu1 }
 0x4d1   : > { %v7937_v34 = vrot.slane %v7935_v23, 5  ;;  %v10565_v59 = vpack.c.bf16 %v16695_v21, %v16695_v21  ;;  %v7630_v19 = vadd.f32 %v18169_v44, %v7453_v40  ;;  %v10599_v49 = vpack.c.bf16 %v16695_v21, %v16682_v14  ;;  %v18171_v40 = vld [vmem:[#allocation50_spill] sm:$0xff] }
 0x4d2   : > { %v7457_v60 = vpop.f32.mrf.mxu1  ;;  %v7933_v17 = vrot.slane %v7932_v37, 4  ;;  %v18172_v44 = vld [vmem:[#allocation182_spill] sm:$0xff] }
 0x4d3   : > { %v7940_v31 = vshrl.u32 %v10565_v59, 16  ;;  %v7943_v55 = vshll.u32 %v10565_v59, 16  ;;  %v7734_v57 = vmax.f32 %v7630_v19, 0.0  ;;  %v7458_v63 = vadd.f32 %v7457_v60, %v16472_v24  ;;  %8177 = vrot.lane.b32.xlu0 %v10599_v49, %s11528_s28 }
 0x4d4   : > { %v7459_v20 = vpop.f32.mrf.mxu1  ;;  %v7938_v48 = vsel %vm11957_vm3, %v7933_v17, %v7937_v34 }
 0x4d5   : > { %v7942_v52 = vrot.slane %v7940_v31, 4  ;;  %v7945_v22 = vrot.slane %v7943_v55, 5  ;;  %v10566_v16 = vpack.c.bf16 %v7734_v57, %v7734_v57  ;;  %v7635_v29 = vadd.f32 %v18170_v18, %v7458_v63 }
 0x4d6   : > { %v7460_v62 = vpop.f32.mrf.mxu1  ;;  %v10192_v53 = vcombine.low %v7924_v12, %v7938_v48 }
 0x4d7   : > { %v7949_v23 = vshll.u32 %v10566_v16, 16  ;;  %v16709_v1 = vmax.f32 %v7635_v29, 0.0  ;;  %v7461_v37 = vadd.f32 %v7460_v62, %v18171_v40  ;;  %v7946_v33 = vor.u32 %v7945_v22, %v7942_v52 }
 0x4d8   : > { %8153 = vrot.lane.b32.xlu0 %v10192_v53, %s11530_s24  ;;  %v7462_v24 = vpop.f32.mrf.mxu1 }
 0x4d9   : > { %v7951_v59 = vrot.slane %v7949_v23, 5  ;;  %v10567_v34 = vpack.c.bf16 %v16709_v1, %v16709_v1  ;;  %v7638_v19 = vadd.f32 %v18172_v44, %v7461_v37  ;;  %v7947_v49 = vrot.slane %v7946_v33, 4 }
 0x4da   : > { %v7465_v60 = vpop.f32.mrf.mxu1  ;;  %v10592_v12 = vpack.c.bf16 %v16709_v1, %v16695_v21 }
 0x4db   : > { %v7954_v17 = vshrl.u32 %v10567_v34, 16  ;;  %v7957_v31 = vshll.u32 %v10567_v34, 16  ;;  %v7736_v55 = vmax.f32 %v7638_v19, 0.0  ;;  %v7466_v57 = vadd.f32 %v7465_v60, %v16482_v28 }
 0x4dc   : > { %v7467_v63 = vpop.f32.mrf.mxu1  ;;  %v7952_v20 = vsel %vm11957_vm3, %v7947_v49, %v7951_v59 }
 0x4dd   : > { %v7956_v52 = vrot.slane %v7954_v17, 4  ;;  %v7959_v22 = vrot.slane %v7957_v31, 5  ;;  %v10568_v16 = vpack.c.bf16 %v7736_v55, %v7736_v55  ;;  %v7643_v18 = vadd.f32 %v16529_v45, %v7466_v57 }
 0x4de   : > { %v7468_v29 = vpop.f32.mrf.mxu1  ;;  %v10208_v62 = vcombine.low %v7938_v48, %v7952_v20 }
 0x4df   : > { %v7963_v53 = vshll.u32 %v10568_v16, 16  ;;  %v7737_v23 = vmax.f32 %v7643_v18, 0.0  ;;  %v7469_v40 = vadd.f32 %v7468_v29, %v16487_v61  ;;  %v7960_v37 = vor.u32 %v7959_v22, %v7956_v52 }
 0x4e0   : > { %8203 = vrot.lane.b32.xlu0 %v10208_v62, %s11531_s13  ;;  %v7470_v33 = vpop.f32.mrf.mxu1 }
 0x4e1   : > { %v7965_v28 = vrot.slane %v7963_v53, 5  ;;  %v10585_v24 = vpack.c.bf16 %v7737_v23, %v7737_v23  ;;  %v7646_v34 = vadd.f32 %v16541_v54, %v7469_v40  ;;  %v10600_v59 = vpack.c.bf16 %v7737_v23, %v16709_v1 }
 0x4e2   : > { %v7473_v44 = vpop.f32.mrf.mxu1  ;;  %v7961_v19 = vrot.slane %v7960_v37, 4 }
 0x4e3   : > { %v8090_v49 = vshrl.u32 %v10585_v24, 16  ;;  %v8093_v45 = vshll.u32 %v10585_v24, 16  ;;  %v7738_v60 = vmax.f32 %v7646_v34, 0.0  ;;  %v7474_v48 = vadd.f32 %v7473_v44, %v16492_v39  ;;  %8179 = vrot.lane.b32.xlu1 %v10600_v59, %s11528_s28 }
 0x4e4   : > { %v7475_v61 = vpop.f32.mrf.mxu1  ;;  %v7966_v17 = vsel %vm11957_vm3, %v7961_v19, %v7965_v28 }
 0x4e5   : > { %v8092_v31 = vrot.slane %v8090_v49, 4  ;;  %v8095_v55 = vrot.slane %v8093_v45, 5  ;;  %v10586_v57 = vpack.c.bf16 %v7738_v60, %v7738_v60  ;;  %v7651_v54 = vadd.f32 %v16547_v56, %v7474_v48 }
 0x4e6   : > { %v7476_v63 = vpop.f32.mrf.mxu1  ;;  %v10193_v52 = vcombine.low %v7952_v20, %v7966_v17 }
 0x4e7   : > { %v8096_v22 = vor.u32 %v8095_v55, %v8092_v31  ;;  %v8099_v16 = vshll.u32 %v10586_v57, 16  ;;  %v16731_v18 = vmax.f32 %v7651_v54, 0.0  ;;  %v7477_v29 = vadd.f32 %v7476_v63, %v16497_v38 }
 0x4e8   : > { %8155 = vrot.lane.b32.xlu1 %v10193_v52, %s11530_s24  ;;  %v7478_v39 = vpop.f32.mrf.mxu1 }
 0x4e9   : > { %v8101_v62 = vrot.slane %v8099_v16, 5  ;;  %v10569_v53 = vpack.c.bf16 %v16731_v18, %v16731_v18  ;;  %v7654_v23 = vadd.f32 %v16553_v3, %v7477_v29  ;;  %v8097_v40 = vrot.slane %v8096_v22, 4 }
 0x4ea   : > { %v7481_v37 = vpop.f32.mrf.mxu1 }
 0x4eb   : > { %v7968_v56 = vshrl.u32 %v10569_v53, 16  ;;  %v7971_v33 = vshll.u32 %v10569_v53, 16  ;;  %v7740_v20 = vmax.f32 %v7654_v23, 0.0  ;;  %v7482_v28 = vadd.f32 %v7481_v37, %v16502_v43 }
 0x4ec   : > { %v7483_v24 = vpop.f32.mrf.mxu1  ;;  %v8102_v38 = vsel %vm11957_vm3, %v8097_v40, %v8101_v62 }
 0x4ed   : > { %v7970_v34 = vrot.slane %v7968_v56, 4  ;;  %v7973_v59 = vrot.slane %v7971_v33, 5  ;;  %v10570_v44 = vpack.c.bf16 %v7740_v20, %v7740_v20  ;;  %v7659_v19 = vadd.f32 %v16559_v26, %v7482_v28 }
 0x4ee   : > { %v7484_v49 = vpop.f32.mrf.mxu1  ;;  %v10209_v45 = vcombine.low %v7966_v17, %v8102_v38 }
 0x4ef   : > { %v7974_v60 = vor.u32 %v7973_v59, %v7970_v34  ;;  %v7977_v3 = vshll.u32 %v10570_v44, 16  ;;  %v16742_v48 = vmax.f32 %v7659_v19, 0.0  ;;  %v7485_v61 = vadd.f32 %v7484_v49, %v16507_v13 }
 0x4f0   : > { %8205 = vrot.lane.b32.xlu1 %v10209_v45, %s11531_s13  ;;  %v7486_v43 = vpop.f32.mrf.mxu1 }
 0x4f1   : > { %v7979_v31 = vrot.slane %v7977_v3, 5  ;;  %v10571_v55 = vpack.c.bf16 %v16742_v48, %v16742_v48  ;;  %v7662_v57 = vadd.f32 %v16566_v27, %v7485_v61  ;;  %v7975_v54 = vrot.slane %v7974_v60, 4 }
 0x4f2   : > { %v7489_v63 = vpop.f32.mrf.mxu1  ;;  %v10593_v26 = vpack.c.bf16 %v16742_v48, %v16731_v18 }
 0x4f3   : > { %v7982_v17 = vshrl.u32 %v10571_v55, 16  ;;  %v7985_v52 = vshll.u32 %v10571_v55, 16  ;;  %v7742_v22 = vmax.f32 %v7662_v57, 0.0  ;;  %v7490_v16 = vadd.f32 %v7489_v63, %v16512_v41 }
 0x4f4   : > { %v7491_v13 = vpop.f32.mrf.mxu1  ;;  %v7980_v29 = vsel %vm11957_vm3, %v7975_v54, %v7979_v31 }
 0x4f5   : > { %v7984_v39 = vrot.slane %v7982_v17, 4  ;;  %v7987_v62 = vrot.slane %v7985_v52, 5  ;;  %v10572_v53 = vpack.c.bf16 %v7742_v22, %v7742_v22  ;;  %v7667_v23 = vadd.f32 %v16572_v8, %v7490_v16 }
 0x4f6   : > { %v7492_v27 = vpop.f32.mrf.mxu1 }
 0x4f7   : > { %v7991_v40 = vshll.u32 %v10572_v53, 16  ;;  %v16755_v37 = vmax.f32 %v7667_v23, 0.0  ;;  %v7493_v56 = vadd.f32 %v7492_v27, %v16516_v58  ;;  %v7988_v33 = vor.u32 %v7987_v62, %v7984_v39  ;;  %v18173_v53 = vld [vmem:[#allocation57_spill] sm:$0xff] }
 0x4f8   : > { %v7494_v20 = vpop.f32.mrf.mxu1 }
 0x4f9   : > { %v7993_v28 = vrot.slane %v7991_v40, 5  ;;  %v10573_v41 = vpack.c.bf16 %v16755_v37, %v16755_v37  ;;  %v7670_v24 = vadd.f32 %v16578_v0, %v7493_v56  ;;  %v10601_v38 = vpack.c.bf16 %v16755_v37, %v16742_v48  ;;  %v18174_v20 = vld [vmem:[#allocation193_spill] sm:$0xff] }
 0x4fa   : > { %v7497_v34 = vpop.f32.mrf.mxu1  ;;  %v7989_v59 = vrot.slane %v7988_v33, 4 }
 0x4fb   : > { %v7996_v8 = vshrl.u32 %v10573_v41, 16  ;;  %v7999_v44 = vshll.u32 %v10573_v41, 16  ;;  %v7744_v19 = vmax.f32 %v7670_v24, 0.0  ;;  %v7498_v49 = vadd.f32 %v7497_v34, %v16520_v15  ;;  %8181 = vrot.lane.b32.xlu0 %v10601_v38, %s11528_s28  ;;  %v18175_v34 = vld [vmem:[#allocation169_spill] sm:$0xff] }
 0x4fc   : > { %v7499_v58 = vpop.f32.mrf.mxu1  ;;  %v7994_v45 = vsel %vm11957_vm3, %v7989_v59, %v7993_v28 }
 0x4fd   : > { %v7998_v60 = vrot.slane %v7996_v8, 4  ;;  %v8001_v3 = vrot.slane %v7999_v44, 5  ;;  %v10574_v61 = vpack.c.bf16 %v7744_v19, %v7744_v19  ;;  %v7675_v0 = vadd.f32 %v16584_v30, %v7498_v49  ;;  %v18176_v58 = vld [vmem:[#allocation177_spill] sm:$0xff] }
 0x4fe   : > { %v7500_v43 = vpop.f32.mrf.mxu1  ;;  %v10194_v31 = vcombine.low %v7980_v29, %v7994_v45 }
 0x4ff   : > { %v8005_v55 = vshll.u32 %v10574_v61, 16  ;;  %v16768_v57 = vmax.f32 %v7675_v0, 0.0  ;;  %v7501_v54 = vadd.f32 %v7500_v43, %v16524_v7  ;;  %v8002_v63 = vor.u32 %v8001_v3, %v7998_v60 }
 0x500   : > { %8157 = vrot.lane.b32.xlu0 %v10194_v31, %s11530_s24  ;;  %v7502_v15 = vpop.f32.mrf.mxu1 }
 0x501   : > { %v8007_v17 = vrot.slane %v8005_v55, 5  ;;  %v10575_v52 = vpack.c.bf16 %v16768_v57, %v16768_v57  ;;  %v7678_v22 = vadd.f32 %v16591_v5, %v7501_v54  ;;  %v8003_v16 = vrot.slane %v8002_v63, 4  ;;  %v18177_v55 = vld [vmem:[#allocation190_spill] sm:$0xff] }
 0x502   : > { %v10594_v30 = vpack.c.bf16 %v16768_v57, %v16755_v37 }
 0x503   : > { %v7505_v13 = vpop.f32.mrf.mxu1  ;;  %v8010_v29 = vshrl.u32 %v10575_v52, 16  ;;  %v8013_v39 = vshll.u32 %v10575_v52, 16  ;;  %v7746_v62 = vmax.f32 %v7678_v22, 0.0  ;;  %v8008_v27 = vsel %vm11957_vm3, %v8003_v16, %v8007_v17  ;;  %v18178_v16 = vld [vmem:[#allocation171_spill] sm:$0xff] }
 0x504   : > { %v7506_v7 = vadd.f32 %v7505_v13, %v18173_v53  ;;  %v10210_v41 = vcombine.low %v7994_v45, %v8008_v27 }
 0x505   : > { %v7507_v23 = vpop.f32.mrf.mxu1  ;;  %v8012_v40 = vrot.slane %v8010_v29, 4  ;;  %v8015_v56 = vrot.slane %v8013_v39, 5  ;;  %v10576_v33 = vpack.c.bf16 %v7746_v62, %v7746_v62 }
 0x506   : > { %v7683_v28 = vadd.f32 %v18174_v20, %v7506_v7  ;;  %8207 = vrot.lane.b32.xlu0 %v10210_v41, %s11531_s13  ;;  %v18179_v7 = vld [vmem:[#allocation184_spill] sm:$0xff] }
 0x507   : > { %v7508_v5 = vpop.f32.mrf.mxu1  ;;  %v8019_v24 = vshll.u32 %v10576_v33, 16  ;;  %v8016_v8 = vor.u32 %v8015_v56, %v8012_v40 }
 0x508   : > { %v16781_v38 = vmax.f32 %v7683_v28, 0.0  ;;  %v7509_v59 = vadd.f32 %v7508_v5, %v18175_v34 }
 0x509   : > { %v7510_v44 = vpop.f32.mrf.mxu1  ;;  %v8021_v19 = vrot.slane %v8019_v24, 5  ;;  %v8017_v45 = vrot.slane %v8016_v8, 4  ;;  %v18180_v8 = vld [vmem:[#allocation181_spill] sm:$0xff] }
 0x50a   : > { %v10577_v49 = vpack.c.bf16 %v16781_v38, %v16781_v38  ;;  %v7686_v60 = vadd.f32 %v18176_v58, %v7509_v59  ;;  %v10602_v3 = vpack.c.bf16 %v16781_v38, %v16768_v57 }
 0x50b   : > { %v7513_v61 = vpop.f32.mrf.mxu1  ;;  %v8022_v15 = vsel %vm11957_vm3, %v8017_v45, %v8021_v19 }
 0x50c   : > { %v8024_v0 = vshrl.u32 %v10577_v49, 16  ;;  %v8027_v43 = vshll.u32 %v10577_v49, 16  ;;  %v7748_v31 = vmax.f32 %v7686_v60, 0.0  ;;  %v7514_v54 = vadd.f32 %v7513_v61, %v18177_v55  ;;  %8183 = vrot.lane.b32.xlu1 %v10602_v3, %s11528_s28 }
 0x50d   : > { %v7515_v63 = vpop.f32.mrf.mxu1  ;;  %v10195_v39 = vcombine.low %v8008_v27, %v8022_v15 }
 0x50e   : > { %v8026_v17 = vrot.slane %v8024_v0, 4  ;;  %v8029_v52 = vrot.slane %v8027_v43, 5  ;;  %v10578_v22 = vpack.c.bf16 %v7748_v31, %v7748_v31  ;;  %v7691_v13 = vadd.f32 %v18178_v16, %v7514_v54  ;;  %v18181_v31 = vld [vmem:[#allocation185_spill] sm:$0xff] }
 0x50f   : > { %v7516_v29 = vpop.f32.mrf.mxu1 }
 0x510   : > { %v8033_v62 = vshll.u32 %v10578_v22, 16  ;;  %v16795_v53 = vmax.f32 %v7691_v13, 0.0  ;;  %v7517_v23 = vadd.f32 %v7516_v29, %v18179_v7  ;;  %v8030_v40 = vor.u32 %v8029_v52, %v8026_v17  ;;  %8159 = vrot.lane.b32.xlu1 %v10195_v39, %s11530_s24 }
 0x511   : > { %v7518_v56 = vpop.f32.mrf.mxu1 }
 0x512   : > { %v8035_v33 = vrot.slane %v8033_v62, 5  ;;  %v10579_v20 = vpack.c.bf16 %v16795_v53, %v16795_v53  ;;  %v7694_v28 = vadd.f32 %v16611_v36, %v7517_v23  ;;  %v8031_v5 = vrot.slane %v8030_v40, 4  ;;  %v18182_v23 = vld [vmem:[#allocation183_spill] sm:$0xff] }
 0x513   : > { %v7521_v41 = vpop.f32.mrf.mxu1  ;;  %v10595_v27 = vpack.c.bf16 %v16795_v53, %v16781_v38 }
 0x514   : > { %v8038_v24 = vshrl.u32 %v10579_v20, 16  ;;  %v8041_v34 = vshll.u32 %v10579_v20, 16  ;;  %v7750_v59 = vmax.f32 %v7694_v28, 0.0  ;;  %v7522_v44 = vadd.f32 %v7521_v41, %v18180_v8 }
 0x515   : > { %v7523_v19 = vpop.f32.mrf.mxu1  ;;  %v8036_v49 = vsel %vm11957_vm3, %v8031_v5, %v8035_v33 }
 0x516   : > { %v8040_v58 = vrot.slane %v8038_v24, 4  ;;  %v8043_v60 = vrot.slane %v8041_v34, 5  ;;  %v10580_v3 = vpack.c.bf16 %v7750_v59, %v7750_v59  ;;  %v7699_v61 = vadd.f32 %v16619_v46, %v7522_v44  ;;  %v18183_v34 = vld [vmem:[#allocation186_spill] sm:$0xff] }
 0x517   : > { %v7524_v36 = vpop.f32.mrf.mxu1  ;;  %v10211_v45 = vcombine.low %v8022_v15, %v8036_v49 }
 0x518   : > { %v8047_v0 = vshll.u32 %v10580_v3, 16  ;;  %v16808_v43 = vmax.f32 %v7699_v61, 0.0  ;;  %v7525_v55 = vadd.f32 %v7524_v36, %v18181_v31  ;;  %v8044_v54 = vor.u32 %v8043_v60, %v8040_v58  ;;  %v18184_v36 = vld [vmem:[#allocation195_spill] sm:$0xff] }
 0x519   : > { %8209 = vrot.lane.b32.xlu1 %v10211_v45, %s11531_s13  ;;  %v7526_v63 = vpop.f32.mrf.mxu1 }
 0x51a   : > { %v8049_v17 = vrot.slane %v8047_v0, 5  ;;  %v10581_v52 = vpack.c.bf16 %v16808_v43, %v16808_v43  ;;  %v7702_v22 = vadd.f32 %v16626_v10, %v7525_v55  ;;  %v8045_v16 = vrot.slane %v8044_v54, 4 }
 0x51b   : > { %v7529_v13 = vpop.f32.mrf.mxu1  ;;  %v10603_v46 = vpack.c.bf16 %v16808_v43, %v16795_v53 }
 0x51c   : > { %v8052_v15 = vshrl.u32 %v10581_v52, 16  ;;  %v8055_v29 = vshll.u32 %v10581_v52, 16  ;;  %v7752_v39 = vmax.f32 %v7702_v22, 0.0  ;;  %v8050_v62 = vsel %vm11957_vm3, %v8045_v16, %v8049_v17 }
 0x51d   : > { %v10196_v7 = vcombine.low %v8036_v49, %v8050_v62  ;;  %v7530_v40 = vadd.f32 %v7529_v13, %v18182_v23  ;;  %8185 = vrot.lane.b32.xlu0 %v10603_v46, %s11528_s28  ;;  %v7531_v56 = vpop.f32.mrf.mxu1 }
 0x51e   : > { %v8054_v33 = vrot.slane %v8052_v15, 4  ;;  %v8057_v20 = vrot.slane %v8055_v29, 5  ;;  %v10582_v10 = vpack.c.bf16 %v7752_v39, %v7752_v39  ;;  %v18185_v29 = vld [vmem:[#allocation189_spill] sm:$0xff] }
 0x51f   : > { %v7707_v28 = vadd.f32 %v16636_v32, %v7530_v40  ;;  %v7532_v5 = vpop.f32.mrf.mxu1 }
 0x520   : > { %v8058_v41 = vor.u32 %v8057_v20, %v8054_v33  ;;  %v8061_v24 = vshll.u32 %v10582_v10, 16  ;;  %v7533_v59 = vadd.f32 %v7532_v5, %v18183_v34 }
 0x521   : > { %v16823_v8 = vmax.f32 %v7707_v28, 0.0  ;;  %8161 = vrot.lane.b32.xlu0 %v10196_v7, %s11530_s24  ;;  %v7534_v44 = vpop.f32.mrf.mxu1 }
 0x522   : > { %v8059_v19 = vrot.slane %v8058_v41, 4  ;;  %v8063_v49 = vrot.slane %v8061_v24, 5  ;;  %v7710_v58 = vadd.f32 %v16647_v4, %v7533_v59 }
 0x523   : > { %v10583_v60 = vpack.c.bf16 %v16823_v8, %v16823_v8  ;;  %v7537_v3 = vpop.f32.mrf.mxu1  ;;  %v10596_v32 = vpack.c.bf16 %v16823_v8, %v16808_v43  ;;  %v11340_v43 = vld [vmem:[%s11804_s3 + $0x54] ss:$8 sps:$4 sm:$0xff]  }
 0x524   : > { %v7754_v61 = vmax.f32 %v7710_v58, 0.0  ;;  %v7538_v45 = vadd.f32 %v7537_v3, %v18184_v36  ;;  %v8064_v0 = vsel %vm11957_vm3, %v8059_v19, %v8063_v49 }
 0x525   : > { %v8066_v31 = vshrl.u32 %v10583_v60, 16  ;;  %v8069_v55 = vshll.u32 %v10583_v60, 16  ;;  %v7539_v54 = vpop.f32.mrf.mxu1  ;;  %v10212_v63 = vcombine.low %v8050_v62, %v8064_v0  ;;  %v8174_v16 = vpop.permute.xlu0 %8173 }
 0x526   : > { %v10584_v17 = vpack.c.bf16 %v7754_v61, %v7754_v61  ;;  %v7715_v4 = vadd.f32 %v16656_v11, %v7538_v45 }
 0x527   : > { %v8068_v52 = vrot.slane %v8066_v31, 4  ;;  %v8071_v22 = vrot.slane %v8069_v55, 5  ;;  %v7540_v13 = vpop.f32.mrf.mxu1  ;;  %8211 = vrot.lane.b32.xlu0 %v10212_v63, %s11531_s13 }
 0x528   : > { %v8075_v46 = vshll.u32 %v10584_v17, 16  ;;  %v7755_v15 = vmax.f32 %v7715_v4, 0.0  ;;  %v7541_v39 = vadd.f32 %v7540_v13, %v18185_v29 }
 0x529   : > { %v8072_v7 = vor.u32 %v8071_v22, %v8068_v52  ;;  %v7542_v23 = vpop.f32.mrf.mxu1 }
 0x52a   : > { %v8077_v40 = vrot.slane %v8075_v46, 5  ;;  %v10587_v56 = vpack.c.bf16 %v7755_v15, %v7755_v15  ;;  %v10604_v33 = vpack.c.bf16 %v7755_v15, %v16823_v8  ;;  %v7718_v62 = vadd.f32 %v16666_v50, %v7541_v39  ;;  %v8150_v5 = vpop.permute.xlu0 %8149  ;;  %v11338_v8 = vld [vmem:[%s11804_s3 + $0x50] ss:$8 sps:$4 sm:$0xff]  }
 0x52b   : > { %v8073_v20 = vrot.slane %v8072_v7, 4  ;;  %v18186_v50 = vpack.c.bf16 %v16613_v9, %v16601_v51 }
 0x52c   : > { %v8104_v11 = vshrl.u32 %v10587_v56, 16  ;;  %v8107_v10 = vshll.u32 %v10587_v56, 16  ;;  %v7756_v28 = vmax.f32 %v7718_v62, 0.0  ;;  %8187 = vrot.lane.b32.xlu1 %v10604_v33, %s11528_s28 }
 0x52d   : > { %v8078_v41 = vsel %vm11957_vm3, %v8073_v20, %v8077_v40  ;;  %v8218_v58 = vsel %vm8215_vm4, %v18186_v50, %v8150_v5  ;;  %v11337_v5 = vld [vmem:[%s11804_s3 + $0x64] ss:$8 sps:$4 sm:$0xff]   ;;  %v11350_v50 = vld [vmem:[%s11804_s3 + $0x10] ss:$8 sps:$4 sm:$0xff]  }
 0x52e   : > { %v8106_v24 = vrot.slane %v8104_v11, 4  ;;  %v8109_v34 = vrot.slane %v8107_v10, 5  ;;  %v10588_v59 = vpack.c.bf16 %v7756_v28, %v7756_v28  ;;  %v10197_v44 = vcombine.low %v8064_v0, %v8078_v41  ;;  %v11332_v10 = vld [vmem:[%s11804_s3 + $0x70] ss:$8 sps:$4 sm:$0xff]   ;;  %v11334_v28 = vld [vmem:[%s11804_s3 + $0x74] ss:$8 sps:$4 sm:$0xff]  }
 0x52f   : > { %v8241_v36 = vsel %vm1457_vm0, %v8218_v58, %v8174_v16  ;;  %9042 = vmatprep.subr.bf16.mxu1 %v11334_v28  ;;  %v11355_v58 = vld [vmem:[%s11804_s3 + $0x4] ss:$8 sps:$4 sm:$0xff]  }
 0x530   : > { %v8110_v19 = vor.u32 %v8109_v34, %v8106_v24  ;;  %v8113_v49 = vshll.u32 %v10588_v59, 16  ;;  %8163 = vrot.lane.b32.xlu1 %v10197_v44, %s11530_s24  ;;  %v11341_v24 = vld [vmem:[%s11804_s3 + $0x40] ss:$8 sps:$4 sm:$0xff]   ;;  %v11346_v34 = vld [vmem:[%s11804_s3 + $0x34] ss:$8 sps:$4 sm:$0xff]  }
 0x531   : > { %v11344_v59 = vld [vmem:[%s11804_s3 + $0x30] ss:$8 sps:$4 sm:$0xff]   ;;  %v11349_v44 = vld [vmem:[%s11804_s3 + $0x24] ss:$8 sps:$4 sm:$0xff]  }
 0x532   : > { %v8111_v60 = vrot.slane %v8110_v19, 4  ;;  %v8115_v3 = vrot.slane %v8113_v49, 5  ;;  %v8200_v61 = vpop.permute.xlu0 %8199  ;;  %v11347_v19 = vld [vmem:[%s11804_s3 + $0x20] ss:$8 sps:$4 sm:$0xff]   ;;  %v11352_v49 = vld [vmem:[%s11804_s3 + $0x14] ss:$8 sps:$4 sm:$0xff]  }
 0x533   : > { %v8258_v45 = vsel %vm8256_vm5, %v8241_v36, %v8200_v61  ;;  %v11356_v61 = vld [vmem:[%s11804_s3 + $0xf0] ss:$8 sps:$4 sm:$0xff]   ;;  %v11361_v36 = vld [vmem:[%s11804_s3 + $0xe4] ss:$8 sps:$4 sm:$0xff]  }
 0x534   : > { %v8116_v0 = vsel %vm11957_vm3, %v8111_v60, %v8115_v3  ;;  %11031 = vmatprep.mubr.bf16.mxu1 %v8258_v45  ;;  %v11353_v60 = vld [vmem:[%s11804_s3] ss:$8 sps:$4 sm:$0xff]   ;;  %v11358_v3 = vld [vmem:[%s11804_s3 + $0xf4] ss:$8 sps:$4 sm:$0xff]  }
 0x535   : > { %v10213_v31 = vcombine.low %v8078_v41, %v8116_v0  ;;  %v8176_v55 = vpop.permute.xlu1 %8175  ;;  %v11335_v41 = vld [vmem:[%s11804_s3 + $0x60] ss:$8 sps:$4 sm:$0xff]   ;;  %v11364_v0 = vld [vmem:[%s11804_s3 + $0xd4] ss:$8 sps:$4 sm:$0xff]  }
 0x536   : > { %v11359_v45 = vld [vmem:[%s11804_s3 + $0xe0] ss:$8 sps:$4 sm:$0xff]  }
 0x537   : > { %8213 = vrot.lane.b32.xlu1 %v10213_v31, %s11531_s13  ;;  %v11362_v31 = vld [vmem:[%s11804_s3 + $0xd0] ss:$8 sps:$4 sm:$0xff]  }
 0x53a   : > { %v8152_v51 = vpop.permute.xlu1 %8151 }
 0x53b   : > { %v8221_v9 = vsel %vm8215_vm4, %v10590_v35, %v8152_v51  ;;  %v11365_v51 = vld [vmem:[%s11804_s3 + $0xc0] ss:$8 sps:$4 sm:$0xff]  }
 0x53c   : > { %v8243_v54 = vsel %vm1457_vm0, %v8221_v9, %v8176_v55  ;;  %v11367_v55 = vld [vmem:[%s11804_s3 + $0xc4] ss:$8 sps:$4 sm:$0xff]  }
 0x542   : > { %v8202_v63 = vpop.permute.xlu1 %8201 }
 0x543   : > { %v8261_v17 = vsel %vm8256_vm5, %v8243_v54, %v8202_v63  ;;  %v11370_v54 = vld [vmem:[%s11804_s3 + $0xb4] ss:$8 sps:$4 sm:$0xff]   ;;  %v11368_v63 = vld [vmem:[%s11804_s3 + $0xb0] ss:$8 sps:$4 sm:$0xff]  }
 0x544   : > { %11032 = vmatmul.mubr.bf16.vlgmr.msra.gmra.mxu1 %v8261_v17 }
 0x545   : > { %v8178_v4 = vpop.permute.xlu0 %8177  ;;  %9043 = vmatpush1.bf16.msra.mxu1 %v11332_v10 }
 0x546   : > { %9044 = vmatprep.subr.bf16.mxu1 %v11337_v5 }
 0x549   : > { %9045 = vmatpush1.bf16.msra.mxu1 %v11335_v41 }
 0x54a   : > { %v8154_v42 = vpop.permute.xlu0 %8153  ;;  %9046 = vmatprep.subr.bf16.mxu1 %v11340_v43 }
 0x54b   : > { %v8224_v52 = vsel %vm8215_vm4, %v10591_v2, %v8154_v42  ;;  %v11371_v42 = vld [vmem:[%s11804_s3 + $0xa0] ss:$8 sps:$4 sm:$0xff]  }
 0x54c   : > { %v8245_v16 = vsel %vm1457_vm0, %v8224_v52, %v8178_v4  ;;  %v11373_v4 = vld [vmem:[%s11804_s3 + $0xa4] ss:$8 sps:$4 sm:$0xff]  }
 0x54d   : > { %9047 = vmatpush1.bf16.msra.mxu1 %v11338_v8 }
 0x552   : > { %v8204_v22 = vpop.permute.xlu0 %8203 }
 0x553   : > { %v8264_v6 = vsel %vm8256_vm5, %v8245_v16, %v8204_v22 }
 0x554   : > { %11035 = vmatprep.mubr.bf16.mxu1 %v8264_v6 }
 0x555   : > { %v8180_v47 = vpop.permute.xlu1 %8179 }
 0x55a   : > { %v8156_v35 = vpop.permute.xlu1 %8155 }
 0x55b   : > { %v8227_v13 = vsel %vm8215_vm4, %v10592_v12, %v8156_v35 }
 0x55c   : > { %v8247_v46 = vsel %vm1457_vm0, %v8227_v13, %v8180_v47  ;;  %v16930_v47 = vld [vmem:[%s559_s15] ss:$0 sm:$0xff] }
 0x562   : > { %v8206_v15 = vpop.permute.xlu1 %8205 }
 0x563   : > { %v8267_v25 = vsel %vm8256_vm5, %v8247_v46, %v8206_v15 }
 0x564   : > { %11036 = vmatmul.mubr.bf16.gmra.mxu1 %v8267_v25 }
 0x56d   : > { %v8182_v14 = vpop.permute.xlu0 %8181 }
 0x572   : > { %v8158_v2 = vpop.permute.xlu0 %8157 }
 0x573   : > { %v8230_v29 = vsel %vm8215_vm4, %v10593_v26, %v8158_v2 }
 0x574   : > { %v8249_v7 = vsel %vm1457_vm0, %v8230_v29, %v8182_v14 }
 0x578   : > { %v8208_v39 = vpop.permute.xlu0 %8207 }
 0x579   : > { %v8270_v21 = vsel %vm8256_vm5, %v8249_v7, %v8208_v39 }
 0x57a   : > { %11039 = vmatprep.mubr.bf16.mxu1 %v8270_v21 }
 0x57e   : > { %v8184_v1 = vpop.permute.xlu1 %8183 }
 0x582   : > { %v8160_v12 = vpop.permute.xlu1 %8159 }
 0x583   : > { %v8233_v23 = vsel %vm8215_vm4, %v10594_v30, %v8160_v12 }
 0x584   : > { %v8251_v40 = vsel %vm1457_vm0, %v8233_v23, %v8184_v1 }
 0x58b   : > { %v8210_v56 = vpop.permute.xlu1 %8209 }
 0x58c   : > { %v8273_v18 = vsel %vm8256_vm5, %v8251_v40, %v8210_v56 }
 0x58d   : > { %11040 = vmatmul.mubr.bf16.gmra.mxu1 %v8273_v18 }
 0x58f   : > { %v8186_v48 = vpop.permute.xlu0 %8185 }
 0x593   : > { %v8162_v26 = vpop.permute.xlu0 %8161 }
 0x594   : > { %v8236_v33 = vsel %vm8215_vm4, %v10595_v27, %v8162_v26 }
 0x595   : > { %v8253_v37 = vsel %vm1457_vm0, %v8236_v33, %v8186_v48 }
 0x599   : > { %v8212_v62 = vpop.permute.xlu0 %8211 }
 0x59a   : > { %v8276_v57 = vsel %vm8256_vm5, %v8253_v37, %v8212_v62 }
 0x59b   : > { %11043 = vmatprep.mubr.bf16.mxu1 %v8276_v57 }
 0x59e   : > { %v8188_v30 = vpop.permute.xlu1 %8187 }
 0x5a2   : > { %v8164_v20 = vpop.permute.xlu1 %8163 }
 0x5a3   : > { %v8239_v11 = vsel %vm8215_vm4, %v10596_v32, %v8164_v20  ;;  %v11343_v32 = vld [vmem:[%s11804_s3 + $0x44] ss:$8 sps:$4 sm:$0xff]  }
 0x5a4   : > { %v8255_v38 = vsel %vm1457_vm0, %v8239_v11, %v8188_v30  ;;  %9048 = vmatprep.subr.bf16.mxu1 %v11343_v32 }
 0x5a5   : > { %9049 = vmatpush1.bf16.msra.mxu1 %v11341_v24 }
 0x5a6   : > { %9050 = vmatprep.subr.bf16.mxu1 %v11346_v34  ;;  %v11374_v34 = vld [vmem:[%s11804_s3 + $0x90] ss:$8 sps:$4 sm:$0xff]  }
 0x5a9   : > { %v8214_v53 = vpop.permute.xlu1 %8213  ;;  %9051 = vmatpush1.bf16.msra.mxu1 %v11344_v59  ;;  %v11376_v59 = vld [vmem:[%s11804_s3 + $0x94] ss:$8 sps:$4 sm:$0xff]  }
 0x5aa   : > { %v8279_v27 = vsel %vm8256_vm5, %v8255_v38, %v8214_v53  ;;  %9052 = vmatprep.subr.bf16.mxu1 %v11349_v44 }
 0x5ab   : > { %11044 = vmatmul.mubr.bf16.gmra.mxu1 %v8279_v27 }
 0x5ad   : > { %9053 = vmatpush1.bf16.msra.mxu1 %v11347_v19 }
 0x5ae   : > { %9054 = vmatprep.subr.bf16.mxu1 %v11352_v49 }
 0x5b1   : > { %9055 = vmatpush1.bf16.msra.mxu1 %v11350_v50 }
 0x5b2   : > { %9056 = vmatprep.subr.bf16.mxu1 %v11355_v58 }
 0x5b5   : > { %9057 = vmatpush1.bf16.msra.mxu1 %v11353_v60 }
 0x5b6   : > { %9058 = vmatprep.subr.bf16.mxu1 %v11358_v3 }
 0x5b9   : > { %9059 = vmatpush2.bf16.msra.mxu1 %v11356_v61 }
 0x5ba   : > { %9060 = vmatprep.subr.bf16.mxu1 %v11361_v36 }
 0x5bd   : > { %9061 = vmatpush2.bf16.msra.mxu1 %v11359_v45 }
 0x5be   : > { %9062 = vmatprep.subr.bf16.mxu1 %v11364_v0 }
 0x5c1   : > { %9063 = vmatpush2.bf16.msra.mxu1 %v11362_v31  ;;  %v11377_v31 = vld [vmem:[%s11804_s3 + $0x80] ss:$8 sps:$4 sm:$0xff]  }
 0x5c2   : > { %9064 = vmatprep.subr.bf16.mxu1 %v11367_v55  ;;  %v11379_v55 = vld [vmem:[%s11804_s3 + $0x84] ss:$8 sps:$4 sm:$0xff]  }
 0x5c5   : > { %9065 = vmatpush2.bf16.msra.mxu1 %v11365_v51 }
 0x5c6   : > { %9066 = vmatprep.subr.bf16.mxu1 %v11370_v54 }
 0x5c9   : > { %9067 = vmatpush2.bf16.msra.mxu1 %v11368_v63 }
 0x5ca   : > { %9068 = vmatprep.subr.bf16.mxu1 %v11373_v4 }
 0x5cd   : > { %9069 = vmatpush2.bf16.msra.mxu1 %v11371_v42 }
 0x5ce   : > { %9070 = vmatprep.subr.bf16.mxu1 %v11376_v59 }
 0x5d1   : > { %9071 = vmatpush2.bf16.msra.mxu1 %v11374_v34 }
 0x5d2   : > { %9072 = vmatprep.subr.bf16.mxu1 %v11379_v55 }
 0x5d5   : > { %9073 = vmatpush2.bf16.msra.mxu1 %v11377_v31 }
 0x604   : > { %v11033_v9 = vpop.f32.mrf.mxu1 }
 0x605   : > { %v8395_v46 = vadd.f32 %v11033_v9, %v16930_v47 }
 0x606   : > { %v8386_v17 = vpop.f32.mrf.mxu1 }
 0x607   : > { %v8387_v25 = vadd.f32 %v16930_v47, %v8386_v17  ;;  %v8451_v29 = vmax.f32 %v8395_v46, 0.0 }
 0x608   : > { %v11034_v52 = vpop.f32.mrf.mxu1 }
 0x609   : > { %v8398_v35 = vadd.f32 %v11034_v52, %v16930_v47  ;;  %v8449_v1 = vmax.f32 %v8387_v25, 0.0  ;;  %v8485_v18 = vrot.slane %v8451_v29, 1 }
 0x60a   : > { %v8389_v22 = vpop.f32.mrf.mxu1 }
 0x60b   : > { %v8390_v15 = vadd.f32 %v16930_v47, %v8389_v22  ;;  %v8452_v14 = vmax.f32 %v8398_v35, 0.0  ;;  %v8467_v37 = vrot.slane %v8449_v1, 1  ;;  %v8489_v53 = vmax.f32 %v8451_v29, %v8485_v18  ;;  %v11382_v22 = vld [vmem:[%s11804_s3 + $0x174] ss:$8 sps:$4 sm:$0xff]  }
 0x60c   : > { %9083 = vmatprep.subr.bf16.mxu1 %v11382_v22 }
 0x60d   : > { %v8450_v39 = vmax.f32 %v8390_v15, 0.0  ;;  %v8493_v12 = vrot.slane %v8452_v14, 1  ;;  %v8471_v41 = vmax.f32 %v8449_v1, %v8467_v37 }
 0x60f   : > { %v8475_v48 = vrot.slane %v8450_v39, 1  ;;  %v8497_v57 = vmax.f32 %v8452_v14, %v8493_v12 }
 0x611   : > { %v8479_v27 = vmax.f32 %v8450_v39, %v8475_v48  ;;  %v8499_v43 = vmax.f32 %v8489_v53, %v8497_v57 }
 0x613   : > { %v8481_v44 = vmax.f32 %v8471_v41, %v8479_v27  ;;  %v8572_v58 = vrot.slane %v8499_v43, 4  ;;  %v8566_v61 = vrot.slane %v8499_v43, 2 }
 0x615   : > { %v8549_v45 = vrot.slane %v8481_v44, 4  ;;  %v8543_v9 = vrot.slane %v8481_v44, 2  ;;  %v8555_v63 = vrot.slane %v8481_v44, 6 }
 0x624   : > { %v16922_v16 = vpop.f32.mrf.mxu1 }
 0x626   : > { %v16928_v6 = vpop.f32.mrf.mxu1 }
 0x627   : > { %v8403_v18 = vadd.f32 %v16930_v47, %v16928_v6 }
 0x628   : > { %v16933_v13 = vpop.f32.mrf.mxu1 }
 0x629   : > { %v8453_v57 = vmax.f32 %v8403_v18, 0.0  ;;  %v11428_v18 = vld [vmem:[%s11831_s12 + $0x78] sm:$0xff]  }
 0x62a   : > { %v16938_v2 = vpop.f32.mrf.mxu1  ;;  %10745 = vmatprep.subr.bf16.mxu0 %v11428_v18 }
 0x64d   : > { %v11041_v7 = vpop.f32.mrf.mxu1 }
 0x64e   : > { %v8427_v21 = vadd.f32 %v11041_v7, %v16930_v47 }
 0x64f   : > { %v8418_v23 = vpop.f32.mrf.mxu1 }
 0x650   : > { %v8459_v40 = vmax.f32 %v8427_v21, 0.0  ;;  %v8419_v56 = vadd.f32 %v16930_v47, %v8418_v23  ;;  %v8578_v21 = vrot.slane %v8499_v43, 6  ;;  %v8414_v23 = vadd.f32 %v16933_v13, %v16930_v47 }
 0x651   : > { %v11042_v26 = vpop.f32.mrf.mxu1 }
 0x652   : > { %v8457_v33 = vmax.f32 %v8419_v56, 0.0  ;;  %v8430_v62 = vadd.f32 %v11042_v26, %v16930_v47  ;;  %v8486_v20 = vrot.slane %v8459_v40, 1  ;;  %v8411_v56 = vadd.f32 %v16922_v16, %v16930_v47 }
 0x653   : > { %v8421_v30 = vpop.f32.mrf.mxu1  ;;  %v8456_v48 = vmax.f32 %v8414_v23, 0.0 }
 0x654   : > { %v8460_v11 = vmax.f32 %v8430_v62, 0.0  ;;  %v8422_v38 = vadd.f32 %v16930_v47, %v8421_v30  ;;  %v8468_v10 = vrot.slane %v8457_v33, 1  ;;  %v8490_v8 = vmax.f32 %v8459_v40, %v8486_v20 }
 0x655   : > { %v8406_v40 = vadd.f32 %v16930_v47, %v16938_v2  ;;  %v8455_v37 = vmax.f32 %v8411_v56, 0.0  ;;  %v8529_v2 = vrot.slane %v8456_v48, 1 }
 0x656   : > { %v8494_v28 = vrot.slane %v8460_v11, 1  ;;  %v8458_v5 = vmax.f32 %v8422_v38, 0.0  ;;  %v8472_v19 = vmax.f32 %v8457_v33, %v8468_v10  ;;  %v8503_v10 = vrot.slane %v8453_v57, 1 }
 0x657   : > { %v8454_v26 = vmax.f32 %v8406_v40, 0.0  ;;  %v8521_v27 = vrot.slane %v8455_v37, 1 }
 0x658   : > { %v8498_v32 = vmax.f32 %v8460_v11, %v8494_v28  ;;  %v8476_v24 = vrot.slane %v8458_v5, 1 }
 0x659   : > { %v8511_v11 = vrot.slane %v8454_v26, 1  ;;  %v8525_v59 = vmax.f32 %v8455_v37, %v8521_v27  ;;  %v11433_v37 = vld [vmem:[%s11831_s12 + $0x28] sm:$0xff]  }
 0x65a   : > { %v8500_v49 = vmax.f32 %v8490_v8, %v8498_v32  ;;  %v8480_v50 = vmax.f32 %v8458_v5, %v8476_v24 }
 0x65b   : > { %v8515_v8 = vmax.f32 %v8454_v26, %v8511_v11  ;;  %v11430_v26 = vld [vmem:[%s11831_s12 + $0x70] sm:$0xff]  }
 0x65c   : > { %v8482_v60 = vmax.f32 %v8472_v19, %v8480_v50  ;;  %v8573_v3 = vrot.slane %v8500_v49, 3  ;;  %v8567_v36 = vrot.slane %v8500_v49, 1  ;;  %v8563_v0 = vrot.slane %v8500_v49, 7 }
 0x65d   : > { %v8579_v4 = vrot.slane %v8500_v49, 5 }
 0x65e   : > { %v8550_v51 = vrot.slane %v8482_v60, 3  ;;  %v8544_v54 = vrot.slane %v8482_v60, 1  ;;  %v8556_v17 = vrot.slane %v8482_v60, 5  ;;  %v8539_v42 = vrot.slane %v8482_v60, 7 }
 0x65f   : > { %v16949_v52 = vsel %vm8540_vm6, %v8563_v0, %v8499_v43  ;;  %v8574_v46 = vsel %vm8540_vm6, %v8573_v3, %v8572_v58  ;;  %v8568_v25 = vsel %vm8540_vm6, %v8567_v36, %v8566_v61  ;;  %v8580_v1 = vsel %vm8540_vm6, %v8579_v4, %v8578_v21 }
 0x660   : > { %v8551_v35 = vsel %vm8540_vm6, %v8550_v51, %v8549_v45  ;;  %v8545_v15 = vsel %vm8540_vm6, %v8544_v54, %v8543_v9  ;;  %v16957_v39 = vsel %vm8540_vm6, %v8539_v42, %v8481_v44  ;;  %v8557_v7 = vsel %vm8540_vm6, %v8556_v17, %v8555_v63 }
 0x661   : > { %v11111_v14 = vpack.i.bf16 %v8551_v35, %v8574_v46  ;;  %v11106_v29 = vpack.i.bf16 %v8545_v15, %v8568_v25  ;;  %v11116_v12 = vpack.i.bf16 %v8557_v7, %v8580_v1  ;;  %v8533_v43 = vmax.f32 %v8456_v48, %v8529_v2  ;;  %v11429_v48 = vld [vmem:[%s11831_s12 + $0x38] sm:$0xff]  }
 0x662   : > { %v8507_v44 = vmax.f32 %v8453_v57, %v8503_v10  ;;  %10746 = vmatpush3.bf16.msra.mxu0 %v11429_v48  ;;  %v11434_v57 = vld [vmem:[%s11831_s12 + $0x60] sm:$0xff]   ;;  %v11422_v48 = vld [vmem:[%s11804_s3 + $0x190] ss:$8 sps:$4 sm:$0xff]  }
 0x663   : > { %11112 = vrot.lane.b32.xlu1 %v11111_v14, %s11528_s28  ;;  %11107 = vrot.lane.b32.xlu0 %v11106_v29, %s11530_s24  ;;  %v8535_v58 = vmax.f32 %v8525_v59, %v8533_v43  ;;  %v11388_v59 = vld [vmem:[%s11804_s3 + $0x154] ss:$8 sps:$4 sm:$0xff]  }
 0x664   : > { %v8517_v60 = vmax.f32 %v8507_v44, %v8515_v8  ;;  %10747 = vmatprep.subr.bf16.mxu0 %v11430_v26  ;;  %v11386_v44 = vld [vmem:[%s11804_s3 + $0x150] ss:$8 sps:$4 sm:$0xff]  }
 0x665   : > { %v8612_v51 = vrot.slane %v8535_v58, 2  ;;  %v8624_v23 = vrot.slane %v8535_v58, 6 }
 0x666   : > { %v8595_v55 = vrot.slane %v8517_v60, 4  ;;  %v8589_v63 = vrot.slane %v8517_v60, 2  ;;  %v8601_v4 = vrot.slane %v8517_v60, 6 }
 0x667   : > { %11117 = vrot.lane.b32.xlu0 %v11116_v12, %s11531_s13 }
 0x66b   : > { %v11045_v33 = vpop.f32.mrf.mxu1 }
 0x66c   : > { %v8443_v62 = vadd.f32 %v11045_v33, %v16930_v47  ;;  %v11431_v33 = vld [vmem:[%s11831_s12 + $0x30] sm:$0xff]  }
 0x66d   : > { %v8434_v30 = vpop.f32.mrf.mxu1  ;;  %10748 = vmatpush3.bf16.msra.mxu0 %v11431_v33  ;;  %v11427_v33 = vld [vmem:[%s11804_s3 + $0x184] ss:$8 sps:$4 sm:$0xff]  }
 0x66e   : > { %v8463_v13 = vmax.f32 %v8443_v62, 0.0  ;;  %v8435_v20 = vadd.f32 %v16930_v47, %v8434_v30  ;;  %v11432_v62 = vld [vmem:[%s11831_s12 + $0x68] sm:$0xff]   ;;  %v11435_v30 = vld [vmem:[%s11831_s12 + $0x20] sm:$0xff]  }
 0x66f   : > { %v11046_v38 = vpop.f32.mrf.mxu1  ;;  %10749 = vmatprep.subr.bf16.mxu0 %v11432_v62 }
 0x670   : > { %v8461_v53 = vmax.f32 %v8435_v20, 0.0  ;;  %v8446_v16 = vadd.f32 %v11046_v38, %v16930_v47  ;;  %v8522_v28 = vrot.slane %v8463_v13, 1 }
 0x671   : > { %v8437_v6 = vpop.f32.mrf.mxu1  ;;  %10750 = vmatpush3.bf16.msra.mxu0 %v11433_v37 }
 0x672   : > { %v8464_v5 = vmax.f32 %v8446_v16, 0.0  ;;  %v8438_v41 = vadd.f32 %v16930_v47, %v8437_v6  ;;  %v8504_v32 = vrot.slane %v8461_v53, 1  ;;  %v8526_v19 = vmax.f32 %v8463_v13, %v8522_v28  ;;  %10751 = vmatprep.subr.bf16.mxu0 %v11434_v57  ;;  %v11425_v57 = vld [vmem:[%s11804_s3 + $0x180] ss:$8 sps:$4 sm:$0xff]  }
 0x673   : > { %v8618_v47 = vrot.slane %v8535_v58, 4 }
 0x674   : > { %v8530_v24 = vrot.slane %v8464_v5, 1  ;;  %v8462_v34 = vmax.f32 %v8438_v41, 0.0  ;;  %v8508_v3 = vmax.f32 %v8461_v53, %v8504_v32 }
 0x675   : > { %10752 = vmatpush3.bf16.msra.mxu0 %v11435_v30 }
 0x676   : > { %v8534_v49 = vmax.f32 %v8464_v5, %v8530_v24  ;;  %v8512_v50 = vrot.slane %v8462_v34, 1  ;;  %v11380_v24 = vld [vmem:[%s11804_s3 + $0x170] ss:$8 sps:$4 sm:$0xff]  }
 0x678   : > { %v8536_v61 = vmax.f32 %v8526_v19, %v8534_v49  ;;  %v8516_v36 = vmax.f32 %v8462_v34, %v8512_v50  ;;  %v11383_v34 = vld [vmem:[%s11804_s3 + $0x160] ss:$8 sps:$4 sm:$0xff]   ;;  %v11391_v19 = vld [vmem:[%s11804_s3 + $0x144] ss:$8 sps:$4 sm:$0xff]   ;;  %v11394_v50 = vld [vmem:[%s11804_s3 + $0x134] ss:$8 sps:$4 sm:$0xff]  }
 0x679   : > { %v11389_v49 = vld [vmem:[%s11804_s3 + $0x140] ss:$8 sps:$4 sm:$0xff]  }
 0x67a   : > { %v8518_v45 = vmax.f32 %v8508_v3, %v8516_v36  ;;  %v8619_v0 = vrot.slane %v8536_v61, 3  ;;  %v8613_v31 = vrot.slane %v8536_v61, 1  ;;  %v8609_v9 = vrot.slane %v8536_v61, 7  ;;  %v11395_v3 = vld [vmem:[%s11804_s3 + $0x120] ss:$8 sps:$4 sm:$0xff]  }
 0x67b   : > { %v8625_v22 = vrot.slane %v8536_v61, 5  ;;  %v11400_v61 = vld [vmem:[%s11804_s3 + $0x114] ss:$8 sps:$4 sm:$0xff]  }
 0x67c   : > { %v8596_v54 = vrot.slane %v8518_v45, 3  ;;  %v8590_v17 = vrot.slane %v8518_v45, 1  ;;  %v8602_v42 = vrot.slane %v8518_v45, 5  ;;  %v16977_v35 = vsel %vm8540_vm6, %v8609_v9, %v8535_v58  ;;  %v11392_v58 = vld [vmem:[%s11804_s3 + $0x130] ss:$8 sps:$4 sm:$0xff]  }
 0x67d   : > { %v8586_v46 = vrot.slane %v8518_v45, 7  ;;  %v8620_v25 = vsel %vm8540_vm6, %v8619_v0, %v8618_v47  ;;  %v8614_v29 = vsel %vm8540_vm6, %v8613_v31, %v8612_v51  ;;  %v8626_v40 = vsel %vm8540_vm6, %v8625_v22, %v8624_v23  ;;  %v11403_v51 = vld [vmem:[%s11804_s3 + $0x104] ss:$8 sps:$4 sm:$0xff]  }
 0x67e   : > { %v8597_v15 = vsel %vm8540_vm6, %v8596_v54, %v8595_v55  ;;  %v8591_v14 = vsel %vm8540_vm6, %v8590_v17, %v8589_v63  ;;  %v8603_v12 = vsel %vm8540_vm6, %v8602_v42, %v8601_v4  ;;  %v11398_v55 = vld [vmem:[%s11804_s3 + $0x110] ss:$8 sps:$4 sm:$0xff]   ;;  %v11401_v17 = vld [vmem:[%s11804_s3 + $0x100] ss:$8 sps:$4 sm:$0xff]   ;;  %v11406_v4 = vld [vmem:[%s11804_s3 + $0x1f4] ss:$8 sps:$4 sm:$0xff]  }
 0x67f   : > { %v11126_v7 = vpack.i.bf16 %v8597_v15, %v8620_v25  ;;  %v11121_v21 = vpack.i.bf16 %v8591_v14, %v8614_v29  ;;  %v16984_v1 = vsel %vm8540_vm6, %v8586_v46, %v8517_v60  ;;  %v11131_v56 = vpack.i.bf16 %v8603_v12, %v8626_v40  ;;  %v11397_v60 = vld [vmem:[%s11804_s3 + $0x124] ss:$8 sps:$4 sm:$0xff]   ;;  %v11407_v15 = vld [vmem:[%s11804_s3 + $0x1e0] ss:$8 sps:$4 sm:$0xff]   ;;  %v11412_v25 = vld [vmem:[%s11804_s3 + $0x1d4] ss:$8 sps:$4 sm:$0xff]  }
 0x680   : > { %v11409_v46 = vld [vmem:[%s11804_s3 + $0x1e4] ss:$8 sps:$4 sm:$0xff]   ;;  %v11410_v14 = vld [vmem:[%s11804_s3 + $0x1d0] ss:$8 sps:$4 sm:$0xff]   ;;  %v11419_v40 = vld [vmem:[%s11804_s3 + $0x1a0] ss:$8 sps:$4 sm:$0xff]  }
 0x681   : > { %11127 = vrot.lane.b32.xlu0 %v11126_v7, %s11528_s28  ;;  %11122 = vrot.lane.b32.xlu1 %v11121_v21, %s11530_s24  ;;  %v11415_v29 = vld [vmem:[%s11804_s3 + $0x1c4] ss:$8 sps:$4 sm:$0xff]   ;;  %v11413_v7 = vld [vmem:[%s11804_s3 + $0x1c0] ss:$8 sps:$4 sm:$0xff]   ;;  %s576_s24 = scalar_lea.vmem %s17117_s10, %s11653_s14 }
 0x682   : > { %v11418_v21 = vld [vmem:[%s11804_s3 + $0x1b4] ss:$8 sps:$4 sm:$0xff]   ;;  %v11416_v12 = vld [vmem:[%s11804_s3 + $0x1b0] ss:$8 sps:$4 sm:$0xff]   ;;  %v11421_v23 = vld [vmem:[%s11804_s3 + $0x1a4] ss:$8 sps:$4 sm:$0xff]  }
 0x685   : > { %11132 = vrot.lane.b32.xlu1 %v11131_v56, %s11531_s13  ;;  %v11424_v56 = vld [vmem:[%s11804_s3 + $0x194] ss:$8 sps:$4 sm:$0xff]   ;;  %s10305_s13 = sshll.u32 %s11518_s20, 5  ;;  %s11532_s20 = smov [#allocation2]  }
 0x686   : > { %s17067_s28 = scalar_lea.hbm %s17118_s11, %s10305_s13 }
 0x6d5   : > { %v11113_v13 = vpop.permute.xlu1 %11112  ;;  %v11108_v20 = vpop.permute.xlu0 %11107 }
 0x6d6   : > { %v11110_v2 = vunpack.i.h.bf16 %v11108_v20  ;;  %v11109_v11 = vunpack.i.l.bf16 %v11108_v20  ;;  %v11115_v38 = vunpack.i.h.bf16 %v11113_v13  ;;  %v11114_v53 = vunpack.i.l.bf16 %v11113_v13 }
 0x6d8   : > { %v8630_v16 = vsel %vm8215_vm4, %v16957_v39, %v11110_v2  ;;  %v8633_v27 = vsel %vm8215_vm4, %v16949_v52, %v11109_v11  ;;  %v11385_v52 = vld [vmem:[%s11804_s3 + $0x164] ss:$8 sps:$4 sm:$0xff]   ;;  %v11436_v2 = vld [vmem:[%s11831_s12 + $0x58] sm:$0xff]  }
 0x6d9   : > { %v11118_v10 = vpop.permute.xlu0 %11117  ;;  %v8631_v5 = vsel %vm1457_vm0, %v8630_v16, %v11115_v38  ;;  %v8634_v41 = vsel %vm1457_vm0, %v8633_v27, %v11114_v53  ;;  %v11437_v11 = vld [vmem:[%s11831_s12 + $0x18] sm:$0xff]   ;;  %10753 = vmatprep.subr.bf16.mxu0 %v11436_v2  ;;  %v11439_v38 = vld [vmem:[%s11831_s12 + $0x10] sm:$0xff]   ;;  %v11440_v53 = vld [vmem:[%s11831_s12 + $0x48] sm:$0xff]  }
 0x6da   : > { %v11120_v6 = vunpack.i.h.bf16 %v11118_v10  ;;  %v11119_v28 = vunpack.i.l.bf16 %v11118_v10  ;;  %10754 = vmatpush3.bf16.msra.mxu0 %v11437_v11  ;;  %v11441_v16 = vld [vmem:[%s11831_s12 + $0x8] sm:$0xff]   ;;  %v11442_v27 = vld [vmem:[%s11831_s12 + $0x40] sm:$0xff]  }
 0x6db   : > { %v11443_v10 = vld [vmem:[%s11831_s12] sm:$0xff]  }
 0x6dc   : > { %v8632_v43 = vsel %vm8256_vm5, %v8631_v5, %v11120_v6  ;;  %v8635_v8 = vsel %vm8256_vm5, %v8634_v41, %v11119_v28 }
 0x6dd   : > { %v8642_v39 = vpack.c.bf16 %v8632_v43, %v8632_v43  ;;  %v8643_v32 = vpack.c.bf16 %v8635_v8, %v8635_v8  ;;  %v8712_v43 = vlaneseq }
 0x6df   : > { %9074 = vmatprep.mubr.bf16.mxu1 %v8643_v32  ;;  %v8713_v8 = vshrl.u32 %v8712_v43, 7 }
 0x6e0   : > { %9075 = vmatmul.mubr.bf16.vlgmr.msra.gmra.mxu1 %v8642_v39 }
 0x6e1   : > { %9084 = vmatpush1.bf16.msra.mxu1 %v11380_v24  ;;  %v8714_v39 = vsub.s32 0, %v8713_v8  ;;  %v8718_v24 = vsub.s32 1, %v8713_v8 }
 0x6e2   : > { %9085 = vmatprep.subr.bf16.mxu1 %v11385_v52 }
 0x6e5   : > { %9086 = vmatpush1.bf16.msra.mxu1 %v11383_v34 }
 0x6e6   : > { %9087 = vmatprep.subr.bf16.mxu1 %v11388_v59 }
 0x6e9   : > { %9088 = vmatpush1.bf16.msra.mxu1 %v11386_v44 }
 0x6ea   : > { %9089 = vmatprep.subr.bf16.mxu1 %v11391_v19 }
 0x6ed   : > { %9090 = vmatpush1.bf16.msra.mxu1 %v11389_v49 }
 0x6ee   : > { %9091 = vmatprep.subr.bf16.mxu1 %v11394_v50 }
 0x6f1   : > { %9092 = vmatpush1.bf16.msra.mxu1 %v11392_v58 }
 0x6f2   : > { %9093 = vmatprep.subr.bf16.mxu1 %v11397_v60 }
 0x6f3   : > { %v11123_v36 = vpop.permute.xlu1 %11122  ;;  %v11128_v45 = vpop.permute.xlu0 %11127 }
 0x6f4   : > { %v11124_v0 = vunpack.i.l.bf16 %v11123_v36  ;;  %v11129_v31 = vunpack.i.l.bf16 %v11128_v45  ;;  %v11125_v18 = vunpack.i.h.bf16 %v11123_v36  ;;  %v11130_v26 = vunpack.i.h.bf16 %v11128_v45 }
 0x6f5   : > { %9094 = vmatpush1.bf16.msra.mxu1 %v11395_v3 }
 0x6f6   : > { %v8639_v47 = vsel %vm8215_vm4, %v16977_v35, %v11124_v0  ;;  %9095 = vmatprep.subr.bf16.mxu1 %v11400_v61  ;;  %v11404_v35 = vld [vmem:[%s11804_s3 + $0x1f0] ss:$8 sps:$4 sm:$0xff]   ;;  %v8636_v62 = vsel %vm8215_vm4, %v16984_v1, %v11125_v18  ;;  %s9513_s3 = sshll.u32 %s11653_s14, 1 }
 0x6f7   : > { %v11133_v9 = vpop.permute.xlu1 %11132  ;;  %v8640_v63 = vsel %vm1457_vm0, %v8639_v47, %v11129_v31  ;;  %v8637_v30 = vsel %vm1457_vm0, %v8636_v62, %v11130_v26  ;;  %v11438_v1 = vld [vmem:[%s11831_s12 + $0x50] sm:$0xff]   ;;  %s568_s16 = scalar_lea.vmem %s17115_s8, %s9513_s3  ;;  %s526_s12 = sand.u32 1, %s11510_s18  }
 0x6f8   : > { %v11134_v54 = vunpack.i.l.bf16 %v11133_v9  ;;  %v11135_v37 = vunpack.i.h.bf16 %v11133_v9  ;;  %10755 = vmatprep.subr.bf16.mxu0 %v11438_v1  ;;  %v8710_v32 = vld [vmem:[%s568_s16] sm:$0x3]  ;;  %s9504_s23 = sshll.u32 %s526_s12, 1  ;;  %s9305_s21 = scalar_lea.sflag [#allocation3], %s526_s12 }
 0x6f9   : > { %9096 = vmatpush1.bf16.msra.mxu1 %v11398_v55  ;;  %10756 = vmatpush3.bf16.msra.mxu0 %v11439_v38  ;;  %v8715_v52 = vrot.slane %v8710_v32, %v8714_v39  ;;  %v8719_v34 = vrot.slane %v8710_v32, %v8718_v24  ;;  %v10287_v55 = vld [vmem:[%s576_s24] ss:$0 sm:$0xff]  ;;  %s528_s1 = scalar_lea.vmem [#allocation2], %s9504_s23  ;;  %s11454_s16 = sshll.u32 %s11532_s20, 4  ;;  %s11455_s16 = int_to_ptr.vmem [resolvable:$false] %s11454_s16 }
 0x6fa   : > { %9097 = vmatprep.subr.bf16.mxu1 %v11403_v51  ;;  %v8641_v42 = vsel %vm8256_vm5, %v8640_v63, %v11134_v54  ;;  %v8638_v13 = vsel %vm8256_vm5, %v8637_v30, %v11135_v37  ;;  %10757 = vmatprep.subr.bf16.mxu0 %v11440_v53  ;;  %s9319_s25 = sshll.u32 %s528_s1, 4  ;;  %s11456_s23 = scalar_lea.vmem %s11455_s16, 64  ;;  %s9320_s25 = int_to_ptr.vmem [resolvable:$true] %s9319_s25 }
 0x6fb   : > { %v8645_v22 = vpack.c.bf16 %v8641_v42, %v8641_v42  ;;  %v8644_v20 = vpack.c.bf16 %v8638_v13, %v8638_v13  ;;  %s11450_s14 = scalar_lea.vmem %s9320_s25, 32  ;;  %p11457_p1 = scmp.lt.s32.totalorder %s9320_s25, %s11455_s16 }
 0x6fc   : > { %p11451_p12 = scmp.ne.s32.totalorder %s9320_s25, %s11450_s14  ;;  %p11458_p2 = scmp.lt.s32.totalorder %s11456_s23, %s11450_s14 }
 0x6fd   : > { %9098 = vmatpush1.bf16.msra.mxu1 %v11401_v17  ;;  %9115 = vmatprep.mubr.bf16.mxu1 %v8645_v22 }
 0x6fe   : > { %9099 = vmatprep.subr.bf16.mxu1 %v11406_v4  ;;  %10758 = vmatpush3.bf16.msra.mxu0 %v11441_v16  ;;  %p11452_p13 = pnand %p11451_p12, %p11633_p4  ;;  %p11459_p3 = por %p11458_p2, %p11457_p1 }
 0x6ff   : > { %10759 = vmatprep.subr.bf16.mxu0 %v11442_v27 }
 0x700   : > { %p11453_p0 = pneg %p11452_p13 }
 0x701   : > { %9100 = vmatpush2.bf16.msra.mxu1 %v11404_v35 }
 0x702   : > { %9101 = vmatprep.subr.bf16.mxu1 %v11409_v46  ;;  %10760 = vmatpush3.bf16.msra.mxu0 %v11443_v10  ;;  %p11460_p5 = pnand %p11459_p3, %p11453_p0 }
 0x705   : > { %9102 = vmatpush2.bf16.msra.mxu1 %v11407_v15 }
 0x706   : > { %9103 = vmatprep.subr.bf16.mxu1 %v11412_v25 }
 0x709   : > { %9104 = vmatpush2.bf16.msra.mxu1 %v11410_v14 }
 0x70a   : > { %9105 = vmatprep.subr.bf16.mxu1 %v11415_v29 }
 0x70d   : > { %9106 = vmatpush2.bf16.msra.mxu1 %v11413_v7 }
 0x70e   : > { %9107 = vmatprep.subr.bf16.mxu1 %v11418_v21 }
 0x711   : > { %9108 = vmatpush2.bf16.msra.mxu1 %v11416_v12 }
 0x712   : > { %9109 = vmatprep.subr.bf16.mxu1 %v11421_v23 }
 0x715   : > { %9110 = vmatpush2.bf16.msra.mxu1 %v11419_v40 }
 0x716   : > { %9111 = vmatprep.subr.bf16.mxu1 %v11424_v56 }
 0x719   : > { %9112 = vmatpush2.bf16.msra.mxu1 %v11422_v48 }
 0x71a   : > { %9113 = vmatprep.subr.bf16.mxu1 %v11427_v33 }
 0x71d   : > { %9114 = vmatpush2.bf16.msra.mxu1 %v11425_v57 }
 0x720   : > { %9116 = vmatmul.mubr.bf16.vlgmr.msra.gmra.mxu1 %v8644_v20 }
 0x7a0   : > { %v9076_v6 = vpop.f32.mrf.mxu1 }
 0x7a1   : > { %v9077_v59 = vadd.f32 %v9076_v6, %v8715_v52 }
 0x7a2   : > { %v9078_v28 = vpop.f32.mrf.mxu1 }
 0x7a3   : > { %v9079_v19 = vadd.f32 %v9078_v28, %v8719_v34 }
 0x7a4   : > { %v9080_v5 = vpop.f32.mrf.mxu1 }
 0x7a6   : > { %v9081_v41 = vpop.f32.mrf.mxu1 }
 0x7e0   : > { %v9117_v44 = vpop.f32.mrf.mxu1 }
 0x7e1   : > { %v9118_v49 = vadd.f32 %v9117_v44, %v9077_v59 }
 0x7e2   : > { %v9119_v50 = vpop.f32.mrf.mxu1 }
 0x7e3   : > { %v9120_v58 = vadd.f32 %v9119_v50, %v9079_v19  ;;  %v9124_v60 = vmax.f32 %v9118_v49, 0.0 }
 0x7e4   : > { %v9121_v3 = vpop.f32.mrf.mxu1 }
 0x7e5   : > { %v9125_v61 = vmax.f32 %v9120_v58, 0.0  ;;  %v9126_v0 = vpack.c.bf16 %v9124_v60, %v9124_v60 }
 0x7e6   : > { %v9122_v36 = vpop.f32.mrf.mxu1 }
 0x7e7   : > { %v9127_v45 = vpack.c.bf16 %v9125_v61, %v9125_v61 }
 0x7e9   : > { %9295 = vmatprep.mubr.bf16.mxu0 %v9127_v45 }
 0x7ea   : > { %9296 = vmatmul.mubr.bf16.vlgmr.msra.gmra.mxu0 %v9126_v0 }
 0x8aa   : > { %v10761_v31 = vpop.f32.mrf.mxu0 }
 0x8ac   : > { %v10762_v47 = vpop.f32.mrf.mxu0 }
 0x8ad   : > { %v10763_v51 = vadd.f32 %v10762_v47, %v10761_v31 }
 0x8ae   : > { %v10764_v9 = vpop.f32.mrf.mxu0 }
 0x8af   : > { %v9298_v54 = vadd.f32 %v10763_v51, %v10287_v55 }
 0x8b0   : > { %v10765_v63 = vpop.f32.mrf.mxu0 }
 0x8b1   : > { %9303 = vst [vmem:[%s528_s1] sm:$0x3] %v9298_v54 }
 0x8b2   : > { %11463 = shalt.err (!%p11460_p5)
}
 0x8b3   : > { %s11464_s26 = scalar_lea.hbm %s17067_s28, 32  ;;  %s11468_s24 = scalar_lea.hbm %s17118_s11, 64 }
 0x8b4   : > { %p11465_p6 = scmp.ne.s32.totalorder %s17067_s28, %s11464_s26  ;;  %p11469_p10 = scmp.lt.s32.totalorder %s17067_s28, %s17118_s11 }
 0x8b5   : > { %p11470_p11 = scmp.lt.s32.totalorder %s11468_s24, %s11464_s26 }
 0x8b6   : > { %p11466_p7 = pnand %p11465_p6, %p11633_p4 }
 0x8b7   : > { %p11471_p12 = por %p11470_p11, %p11469_p10 }
 0x8b8   : > { %p11467_p9 = pneg %p11466_p7 }
 0x8ba   : > { %p11472_p13 = pnand %p11471_p12, %p11467_p9 }
 0x8bc   : > { %11475 = shalt.err (!%p11472_p13)
}
 0x8bd   : > { %11047 = dma.vmem_to_hbm [thread:$0]  (%p11633_p4), %s9320_s25, 32, %s17067_s28, %s9305_s21  }
 0x8be PF: > { %p11053_p0 = scmp.ge.s32.totalorder %s11526_s22, 2  ;;  %s9331_s15 = sand.u32 1, %s11506_s17  }
 0x8bf   : > { %s9332_s3 = scalar_lea.sflag [#allocation3], %s9331_s15 }
 0x8c0   : > { %p11050_p1 = pnand %p11053_p0, %p11640_p8 }
 0x8c2   : > { %p11051_p2 = pneg %p11050_p1 }
 0x8c4   : > { %11501 = dma.done.wait (%p11051_p2), %s9332_s3, 32  }
 0x8c5   : > { %11503 = vsyncadd (%p11051_p2), %s9332_s3, 4294967264  ;;  %s24_s22 = sadd.s32 1, %s11526_s22   ;;  %s18187_s20 = sld [smem:[#allocation5_spill]] }
 0x8c6   : > { %p21_p3 = scmp.ge.s32.totalorder %s24_s22, 4   ;;  %s18188_s21 = sld [smem:[#allocation6_spill]] }
 0x8c7   : > { %s18189_s17 = smov %s11510_s18  ;;  %s18190_s18 = smov %s11514_s19 }
 0x8c8   : > { %s18191_s19 = smov %s11646_s30  ;;  %23 = sbr.rel (!%p21_p3) target bundleno = 8 (0x8), region = 129 }
 0x8cd   :  { %9337 = vsyncpa [#allocation3], 1 }
 0x8ce   :  { %9339 = vsyncpa [#allocation3 + $0x1], 1 }

</bundles_post_ra>
